<compile_context>
chip_gen: v7x
topology: tpu7x:2x2x1
jax: 0.10.0
libtpu: 0.0.40
codegen_flags: <defaults>
</compile_context>

<pallas_src>
import functools

import jax
import jax.numpy as jnp
from jax.experimental import pallas as pl
from jax.experimental.pallas import tpu as pltpu


def _round_up(x, m):
    return ((x + m - 1) // m) * m


# ------------------------------ fused kernel ------------------------------

def _bottleneck_kernel(x_ref, w1_ref, s1_ref, b1_ref,
                       w2_ref, s2_ref, b2_ref,
                       w3_ref, s3_ref, b3_ref,
                       o_ref, hpad_ref, wide_ref, *, H, W, B_TILE):
    """relu(bn3(conv3(relu(bn2(conv2(relu(bn1(conv1(x)))))))) + x) for B_TILE images."""
    P = w1_ref.shape[1]                      # planes
    cin = w1_ref.shape[0]
    cout = w3_ref.shape[1]
    M = H * W
    Rt, Wp, _ = hpad_ref.shape               # Rt = B_TILE*(H+2)+2 ; Wp = round_up(W+2, 8)
    nflat = Rt * Wp
    nq = Rt - 4                              # conv2 "q" rows actually computed
    npos = nq * Wp

    # ---- conv1 (1x1) + bn1 + relu: one matmul for all B_TILE images --------
    x = x_ref[...].reshape(B_TILE * M, cin)                          # bf16
    y1 = jnp.dot(x, w1_ref[...], preferred_element_type=jnp.float32)
    h1 = jnp.maximum(y1 * s1_ref[...] + b1_ref[...], 0.0).astype(hpad_ref.dtype)

    # ---- scatter h1 into the padded bf16 scratch ----------------------------
    # Layout (Rt, Wp, P): image b's data rows live at [b*(H+2)+2, b*(H+2)+2+H);
    # 2 zero rows above image 0 and 2 zero rows after each image (shared as the
    # next image's top halo); columns [W, Wp) are the left/right zero halo.
    # Only the halo strips are zeroed each step; the interior is overwritten.
    hpad_ref[:, W:, :] = jnp.zeros((Rt, Wp - W, P), hpad_ref.dtype)
    hpad_ref[0:2, 0:W, :] = jnp.zeros((2, W, P), hpad_ref.dtype)
    h1r = h1.reshape(B_TILE, H, W, P)
    for b in range(B_TILE):
        base = b * (H + 2)
        hpad_ref[base + 2:base + 2 + H, 0:W, :] = h1r[b]
        hpad_ref[base + H + 2:base + H + 4, 0:W, :] = jnp.zeros((2, W, P),
                                                                hpad_ref.dtype)

    # ---- build the kw-expanded buffer once ----------------------------------
    # wide[j] = [flat[j-1] | flat[j] | flat[j+1]]  (flat = row-major scratch).
    # The +/-1 column shifts are hoisted here, so the per-kh matmul LHS below
    # are Wp-aligned row views of wide_ref (Wp is a multiple of 8).
    flat = hpad_ref[...].reshape(nflat, P)
    zrow = jnp.zeros((1, P), flat.dtype)
    wide_ref[:, 0:P] = jnp.concatenate([zrow, flat[:nflat - 1, :]], axis=0)
    wide_ref[:, P:2 * P] = flat
    wide_ref[:, 2 * P:3 * P] = jnp.concatenate([flat[1:, :], zrow], axis=0)

    # ---- conv2 (3x3, stride 1, pad 1) as 3 matmuls with K = 3*P --------------
    # Output position i = (q-1)*Wp + c (q in [1, nq]) for tap row kh reads
    # wide[(1+kh)*Wp + i]; w2_ref[kh] is (3P, P) = [w[kh,0]; w[kh,1]; w[kh,2]].
    acc = (jnp.dot(wide_ref[1 * Wp:1 * Wp + npos, :], w2_ref[0],
                   preferred_element_type=jnp.float32)
           + jnp.dot(wide_ref[2 * Wp:2 * Wp + npos, :], w2_ref[1],
                     preferred_element_type=jnp.float32)
           + jnp.dot(wide_ref[3 * Wp:3 * Wp + npos, :], w2_ref[2],
                     preferred_element_type=jnp.float32))

    # ---- keep only the real (H, W) positions, then bn2 + relu ----------------
    acc3 = acc.reshape(nq, Wp, P)
    blocks = [acc3[b * (H + 2):b * (H + 2) + H, 0:W, :] for b in range(B_TILE)]
    h2f = jnp.concatenate(blocks, axis=0).reshape(B_TILE * M, P)
    h2 = jnp.maximum(h2f * s2_ref[...] + b2_ref[...], 0.0).astype(w3_ref.dtype)

    # ---- conv3 (1x1) + bn3 + identity residual + relu ------------------------
    y3 = jnp.dot(h2, w3_ref[...], preferred_element_type=jnp.float32)
    out = jnp.maximum(y3 * s3_ref[...] + b3_ref[...] + x.astype(jnp.float32), 0.0)
    o_ref[...] = out.reshape(B_TILE, M, cout).astype(o_ref.dtype)


# ------------------------------ host wrappers ------------------------------

def bottleneck_forward_nhwc(x_nhwc, params, *, b_tile=2):
    """x_nhwc: (N, H, W, Cin), Cin == planes*4 (identity residual, stride 1).

    Returns a bf16 (N, H, W, Cin) tensor.  Prefer feeding bf16 directly so the
    cast below is a no-op (no extra HBM pass).
    """
    n, h, w, cin = x_nhwc.shape
    planes = params["w1"].shape[1]
    cout = params["w3"].shape[1]
    assert cout == cin, "identity residual requires inplanes == planes * 4"
    assert n % b_tile == 0, "batch must be divisible by b_tile"
    m = h * w
    wp = _round_up(w + 2, 8)
    rt = b_tile * (h + 2) + 2
    npos = (rt - 4) * wp
    steps = n // b_tile

    x_rows = x_nhwc.reshape(n, m, cin).astype(jnp.bfloat16)   # reshape is free
    w2k = params["w2"].reshape(3, 3 * planes, planes)         # (kh, kw*cin, out)

    flops = int(2 * n * m * cin * planes
                + 2 * steps * npos * (3 * planes) * planes * 3
                + 2 * n * m * planes * cout)
    bytes_accessed = int(n * m * cin * 2 + n * m * cout * 2
                         + (params["w1"].size + params["w2"].size
                            + params["w3"].size) * 2
                         + 2 * (2 * planes + cout) * 4)

    # VMEM budget: double-buffered in/out slabs + scratches + temp headroom.
    blk = b_tile * m * (cin + cout) * 2
    scratch = rt * wp * planes * 2 * 4                 # hpad (1x) + wide (3x)
    temps = 8 * npos * planes * 4
    vmem_limit = int(min(max(2 * blk + scratch + temps + (8 << 20), 32 << 20),
                         96 << 20))

    kernel = functools.partial(_bottleneck_kernel, H=h, W=w, B_TILE=b_tile)

    out_rows = pl.pallas_call(
        kernel,
        out_shape=jax.ShapeDtypeStruct((n, m, cout), jnp.bfloat16),
        grid=(steps,),
        in_specs=[
            pl.BlockSpec((b_tile, m, cin), lambda i: (i, 0, 0)),              # x
            pl.BlockSpec((cin, planes), lambda i: (0, 0)),                    # w1
            pl.BlockSpec((1, planes), lambda i: (0, 0)),                      # s1
            pl.BlockSpec((1, planes), lambda i: (0, 0)),                      # b1
            pl.BlockSpec((3, 3 * planes, planes), lambda i: (0, 0, 0)),       # w2
            pl.BlockSpec((1, planes), lambda i: (0, 0)),                      # s2
            pl.BlockSpec((1, planes), lambda i: (0, 0)),                      # b2
            pl.BlockSpec((planes, cout), lambda i: (0, 0)),                   # w3
            pl.BlockSpec((1, cout), lambda i: (0, 0)),                        # s3
            pl.BlockSpec((1, cout), lambda i: (0, 0)),                        # b3
        ],
        out_specs=pl.BlockSpec((b_tile, m, cout), lambda i: (i, 0, 0)),
        scratch_shapes=[
            pltpu.VMEM((rt, wp, planes), jnp.bfloat16),           # padded h1
            pltpu.VMEM((rt * wp, 3 * planes), jnp.bfloat16),      # kw-expanded
        ],
        compiler_params=pltpu.CompilerParams(
            dimension_semantics=("parallel",),
            vmem_limit_bytes=vmem_limit),
        cost_estimate=pl.CostEstimate(flops=flops, transcendentals=0,
                                      bytes_accessed=bytes_accessed),
    )(x_rows, params["w1"], params["s1"], params["b1"],
      w2k, params["s2"], params["b2"],
      params["w3"], params["s3"], params["b3"])

    return out_rows.reshape(n, h, w, cout)


def bottleneck_forward(x_nchw, params, *, b_tile=2):
    """PyTorch-layout entry: (N, C, H, W) -> (N, C, H, W).

    The NCHW->NHWC transpose + cast is an extra full HBM pass; in a real
    network fuse it into the producing layer and use the NHWC entry directly.
    """
    x_nhwc = jnp.transpose(x_nchw, (0, 2, 3, 1))
    out = bottleneck_forward_nhwc(x_nhwc, params, b_tile=b_tile)
    return jnp.transpose(out, (0, 3, 1, 2))


# ------------------------------ parameters ------------------------------

def _fold_bn(gamma, beta, mean, var, eps=1e-5):
    scale = gamma / jnp.sqrt(var + eps)
    bias = beta - mean * scale
    return (scale.reshape(1, -1).astype(jnp.float32),
            bias.reshape(1, -1).astype(jnp.float32))


def make_params(key, inplanes, planes):
    ks = jax.random.split(key, 6)

    def bn(k, c):
        kg, kb, km, kv = jax.random.split(k, 4)
        gamma = 1.0 + 0.1 * jax.random.normal(kg, (c,), jnp.float32)
        beta = 0.1 * jax.random.normal(kb, (c,), jnp.float32)
        mean = 0.1 * jax.random.normal(km, (c,), jnp.float32)
        var = jnp.abs(1.0 + 0.1 * jax.random.normal(kv, (c,), jnp.float32))
        return _fold_bn(gamma, beta, mean, var)

    p = {}
    p["w1"] = (0.1 * jax.random.normal(ks[0], (inplanes, planes),
                                       jnp.float32)).astype(jnp.bfloat16)
    p["w2"] = (0.1 * jax.random.normal(ks[1], (3, 3, planes, planes),
                                       jnp.float32)).astype(jnp.bfloat16)
    p["w3"] = (0.1 * jax.random.normal(ks[2], (planes, planes * 4),
                                       jnp.float32)).astype(jnp.bfloat16)
    p["s1"], p["b1"] = bn(ks[3], planes)
    p["s2"], p["b2"] = bn(ks[4], planes)
    p["s3"], p["b3"] = bn(ks[5], planes * 4)
    return p


# ------------------------------ plain-JAX reference ------------------------------

def reference_forward_nhwc(x_nhwc, params):
    x = x_nhwc.astype(jnp.bfloat16)
    s1, b1 = params["s1"].reshape(-1), params["b1"].reshape(-1)
    s2, b2 = params["s2"].reshape(-1), params["b2"].reshape(-1)
    s3, b3 = params["s3"].reshape(-1), params["b3"].reshape(-1)

    h1 = jnp.einsum("nhwc,co->nhwo", x, params["w1"],
                    preferred_element_type=jnp.float32)
    h1 = jnp.maximum(h1 * s1 + b1, 0.0).astype(jnp.bfloat16)

    h2 = jax.lax.conv_general_dilated(
        h1, params["w2"], window_strides=(1, 1), padding=((1, 1), (1, 1)),
        dimension_numbers=("NHWC", "HWIO", "NHWC"),
        preferred_element_type=jnp.float32)
    h2 = jnp.maximum(h2 * s2 + b2, 0.0).astype(jnp.bfloat16)

    y3 = jnp.einsum("nhwc,co->nhwo", h2, params["w3"],
                    preferred_element_type=jnp.float32)
    out = jnp.maximum(y3 * s3 + b3 + x.astype(jnp.float32), 0.0)
    return out


# ------------------------------ smoke test ------------------------------

if __name__ == "__main__":
    key = jax.random.PRNGKey(0)
    k_x, k_p = jax.random.split(key)

    planes = 64
    inplanes = planes * 4          # identity residual (no downsample), stride=1
    N, H, W = 8, 16, 16            # grid = 4 steps -> >=2 per TensorCore on v7x
    B_TILE = 2

    # NHWC bf16 is the kernel's native activation layout.
    x_nhwc = jax.random.normal(k_x, (N, H, W, inplanes),
                               jnp.float32).astype(jnp.bfloat16)
    params = make_params(k_p, inplanes, planes)

    out = jax.block_until_ready(
        bottleneck_forward_nhwc(x_nhwc, params, b_tile=B_TILE))
    ref = jax.block_until_ready(reference_forward_nhwc(x_nhwc, params))

    assert out.shape == (N, H, W, inplanes)
    err = float(jnp.max(jnp.abs(out.astype(jnp.float32) - ref)))
    scale = float(jnp.max(jnp.abs(ref))) + 1e-6
    assert err / scale < 2e-2, f"mismatch vs reference: abs err {err}, scale {scale}"

    print("KERNEL_OK")
</pallas_src>

<mosaic_0001>
module attributes {stable_mosaic.version = 11 : i64} {
  func.func @_bottleneck_kernel(%arg0: i32, %arg1: memref<2x256x256xbf16, #tpu.memory_space<vmem>>, %arg2: memref<256x64xbf16, #tpu.memory_space<vmem>>, %arg3: memref<1x64xf32, #tpu.memory_space<vmem>>, %arg4: memref<1x64xf32, #tpu.memory_space<vmem>>, %arg5: memref<3x192x64xbf16, #tpu.memory_space<vmem>>, %arg6: memref<1x64xf32, #tpu.memory_space<vmem>>, %arg7: memref<1x64xf32, #tpu.memory_space<vmem>>, %arg8: memref<64x256xbf16, #tpu.memory_space<vmem>>, %arg9: memref<1x256xf32, #tpu.memory_space<vmem>>, %arg10: memref<1x256xf32, #tpu.memory_space<vmem>>, %arg11: memref<2x256x256xbf16, #tpu.memory_space<vmem>>, %arg12: memref<38x24x64xbf16, #tpu.memory_space<vmem>>, %arg13: memref<912x192xbf16, #tpu.memory_space<vmem>>) attributes {dimension_semantics = [#tpu.dimension_semantics<parallel>], iteration_bounds = array<i64: 4>, scalar_prefetch = 0 : i64, scratch_operands = 2 : i64, tpu.core_type = #tpu.core_type<tc>, window_params = [{transform_indices = @transform_0, window_bounds = array<i64: 2, 256, 256>}, {pipeline_mode = #tpu.pipeline_mode<synchronous>, transform_indices = @transform_1, window_bounds = array<i64: 256, 64>}, {pipeline_mode = #tpu.pipeline_mode<synchronous>, transform_indices = @transform_2, window_bounds = array<i64: 1, 64>}, {pipeline_mode = #tpu.pipeline_mode<synchronous>, transform_indices = @transform_3, window_bounds = array<i64: 1, 64>}, {pipeline_mode = #tpu.pipeline_mode<synchronous>, transform_indices = @transform_4, window_bounds = array<i64: 3, 192, 64>}, {pipeline_mode = #tpu.pipeline_mode<synchronous>, transform_indices = @transform_5, window_bounds = array<i64: 1, 64>}, {pipeline_mode = #tpu.pipeline_mode<synchronous>, transform_indices = @transform_6, window_bounds = array<i64: 1, 64>}, {pipeline_mode = #tpu.pipeline_mode<synchronous>, transform_indices = @transform_7, window_bounds = array<i64: 64, 256>}, {pipeline_mode = #tpu.pipeline_mode<synchronous>, transform_indices = @transform_8, window_bounds = array<i64: 1, 256>}, {pipeline_mode = #tpu.pipeline_mode<synchronous>, transform_indices = @transform_9, window_bounds = array<i64: 1, 256>}, {transform_indices = @transform_10, window_bounds = array<i64: 2, 256, 256>}]} {
    %c0 = arith.constant 0 : index
    %c0_0 = arith.constant 0 : index
    %c0_1 = arith.constant 0 : index
    %0 = vector.load %arg1[%c0, %c0_0, %c0_1] : memref<2x256x256xbf16, #tpu.memory_space<vmem>>, vector<2x256x256xbf16>
    %1 = vector.shape_cast %0 : vector<2x256x256xbf16> to vector<512x256xbf16>
    %c0_2 = arith.constant 0 : index
    %c0_3 = arith.constant 0 : index
    %2 = vector.load %arg2[%c0_2, %c0_3] : memref<256x64xbf16, #tpu.memory_space<vmem>>, vector<256x64xbf16>
    %cst = arith.constant dense<0.000000e+00> : vector<512x64xf32>
    %3 = tpu.matmul %1, %2, %cst {dimension_numbers = #tpu.dot_dimension_numbers<[1], [0], [0], [1], [0, 0, 1, 1], [], []>} : vector<512x256xbf16>, vector<256x64xbf16>, vector<512x64xf32> -> vector<512x64xf32>
    %c0_4 = arith.constant 0 : index
    %c0_5 = arith.constant 0 : index
    %4 = vector.load %arg3[%c0_4, %c0_5] : memref<1x64xf32, #tpu.memory_space<vmem>>, vector<1x64xf32>
    %5 = vector.broadcast %4 : vector<1x64xf32> to vector<512x64xf32>
    %6 = arith.mulf %3, %5 : vector<512x64xf32>
    %c0_6 = arith.constant 0 : index
    %c0_7 = arith.constant 0 : index
    %7 = vector.load %arg4[%c0_6, %c0_7] : memref<1x64xf32, #tpu.memory_space<vmem>>, vector<1x64xf32>
    %8 = vector.broadcast %7 : vector<1x64xf32> to vector<512x64xf32>
    %9 = arith.addf %6, %8 : vector<512x64xf32>
    %cst_8 = arith.constant 0.000000e+00 : f32
    %10 = vector.broadcast %cst_8 : f32 to vector<512x64xf32>
    %11 = arith.maximumf %9, %10 : vector<512x64xf32>
    %12 = arith.truncf %11 : vector<512x64xf32> to vector<512x64xbf16>
    %cst_9 = arith.constant 0.000000e+00 : bf16
    %13 = vector.broadcast %cst_9 : bf16 to vector<38x8x64xbf16>
    %c0_10 = arith.constant 0 : index
    %c16 = arith.constant 16 : index
    %c0_11 = arith.constant 0 : index
    %14 = vector.load %arg12[%c0_10, %c16, %c0_11] : memref<38x24x64xbf16, #tpu.memory_space<vmem>>, vector<38x8x64xbf16>
    tpu.vector_store %arg12[%c0_10, %c16, %c0_11], %13 {strides = array<i32>} : memref<38x24x64xbf16, #tpu.memory_space<vmem>>, vector<38x8x64xbf16>,
    %cst_12 = arith.constant 0.000000e+00 : bf16
    %15 = vector.broadcast %cst_12 : bf16 to vector<2x16x64xbf16>
    %c0_13 = arith.constant 0 : index
    %c0_14 = arith.constant 0 : index
    %c0_15 = arith.constant 0 : index
    %16 = vector.load %arg12[%c0_13, %c0_14, %c0_15] : memref<38x24x64xbf16, #tpu.memory_space<vmem>>, vector<2x16x64xbf16>
    tpu.vector_store %arg12[%c0_13, %c0_14, %c0_15], %15 {strides = array<i32>} : memref<38x24x64xbf16, #tpu.memory_space<vmem>>, vector<2x16x64xbf16>,
    %17 = vector.shape_cast %12 : vector<512x64xbf16> to vector<2x16x16x64xbf16>
    %18 = vector.extract_strided_slice %17 {offsets = [0, 0, 0, 0], sizes = [1, 16, 16, 64], strides = [1, 1, 1, 1]} : vector<2x16x16x64xbf16> to vector<1x16x16x64xbf16>
    %19 = vector.shape_cast %18 : vector<1x16x16x64xbf16> to vector<16x16x64xbf16>
    %c2 = arith.constant 2 : index
    %c0_16 = arith.constant 0 : index
    %c0_17 = arith.constant 0 : index
    %20 = vector.load %arg12[%c2, %c0_16, %c0_17] : memref<38x24x64xbf16, #tpu.memory_space<vmem>>, vector<16x16x64xbf16>
    tpu.vector_store %arg12[%c2, %c0_16, %c0_17], %19 {strides = array<i32>} : memref<38x24x64xbf16, #tpu.memory_space<vmem>>, vector<16x16x64xbf16>,
    %cst_18 = arith.constant 0.000000e+00 : bf16
    %21 = vector.broadcast %cst_18 : bf16 to vector<2x16x64xbf16>
    %c18 = arith.constant 18 : index
    %c0_19 = arith.constant 0 : index
    %c0_20 = arith.constant 0 : index
    %22 = vector.load %arg12[%c18, %c0_19, %c0_20] : memref<38x24x64xbf16, #tpu.memory_space<vmem>>, vector<2x16x64xbf16>
    tpu.vector_store %arg12[%c18, %c0_19, %c0_20], %21 {strides = array<i32>} : memref<38x24x64xbf16, #tpu.memory_space<vmem>>, vector<2x16x64xbf16>,
    %23 = vector.extract_strided_slice %17 {offsets = [1, 0, 0, 0], sizes = [1, 16, 16, 64], strides = [1, 1, 1, 1]} : vector<2x16x16x64xbf16> to vector<1x16x16x64xbf16>
    %24 = vector.shape_cast %23 : vector<1x16x16x64xbf16> to vector<16x16x64xbf16>
    %c20 = arith.constant 20 : index
    %c0_21 = arith.constant 0 : index
    %c0_22 = arith.constant 0 : index
    %25 = vector.load %arg12[%c20, %c0_21, %c0_22] : memref<38x24x64xbf16, #tpu.memory_space<vmem>>, vector<16x16x64xbf16>
    tpu.vector_store %arg12[%c20, %c0_21, %c0_22], %24 {strides = array<i32>} : memref<38x24x64xbf16, #tpu.memory_space<vmem>>, vector<16x16x64xbf16>,
    %cst_23 = arith.constant 0.000000e+00 : bf16
    %26 = vector.broadcast %cst_23 : bf16 to vector<2x16x64xbf16>
    %c36 = arith.constant 36 : index
    %c0_24 = arith.constant 0 : index
    %c0_25 = arith.constant 0 : index
    %27 = vector.load %arg12[%c36, %c0_24, %c0_25] : memref<38x24x64xbf16, #tpu.memory_space<vmem>>, vector<2x16x64xbf16>
    tpu.vector_store %arg12[%c36, %c0_24, %c0_25], %26 {strides = array<i32>} : memref<38x24x64xbf16, #tpu.memory_space<vmem>>, vector<2x16x64xbf16>,
    %c0_26 = arith.constant 0 : index
    %c0_27 = arith.constant 0 : index
    %c0_28 = arith.constant 0 : index
    %28 = vector.load %arg12[%c0_26, %c0_27, %c0_28] : memref<38x24x64xbf16, #tpu.memory_space<vmem>>, vector<38x24x64xbf16>
    %29 = vector.shape_cast %28 : vector<38x24x64xbf16> to vector<912x64xbf16>
    %cst_29 = arith.constant 0.000000e+00 : bf16
    %30 = vector.broadcast %cst_29 : bf16 to vector<1x64xbf16>
    %31 = vector.extract_strided_slice %29 {offsets = [0, 0], sizes = [911, 64], strides = [1, 1]} : vector<912x64xbf16> to vector<911x64xbf16>
    %32 = tpu.concatenate %30, %31 in 0 : vector<1x64xbf16>, vector<911x64xbf16> -> vector<912x64xbf16>
    %c0_30 = arith.constant 0 : index
    %c0_31 = arith.constant 0 : index
    %33 = vector.load %arg13[%c0_30, %c0_31] : memref<912x192xbf16, #tpu.memory_space<vmem>>, vector<912x64xbf16>
    tpu.vector_store %arg13[%c0_30, %c0_31], %32 {strides = array<i32>} : memref<912x192xbf16, #tpu.memory_space<vmem>>, vector<912x64xbf16>,
    %c0_32 = arith.constant 0 : index
    %c64 = arith.constant 64 : index
    %34 = vector.load %arg13[%c0_32, %c64] : memref<912x192xbf16, #tpu.memory_space<vmem>>, vector<912x64xbf16>
    tpu.vector_store %arg13[%c0_32, %c64], %29 {strides = array<i32>} : memref<912x192xbf16, #tpu.memory_space<vmem>>, vector<912x64xbf16>,
    %35 = vector.extract_strided_slice %29 {offsets = [1, 0], sizes = [911, 64], strides = [1, 1]} : vector<912x64xbf16> to vector<911x64xbf16>
    %36 = tpu.concatenate %35, %30 in 0 : vector<911x64xbf16>, vector<1x64xbf16> -> vector<912x64xbf16>
    %c0_33 = arith.constant 0 : index
    %c128 = arith.constant 128 : index
    %37 = vector.load %arg13[%c0_33, %c128] : memref<912x192xbf16, #tpu.memory_space<vmem>>, vector<912x64xbf16>
    tpu.vector_store %arg13[%c0_33, %c128], %36 {strides = array<i32>} : memref<912x192xbf16, #tpu.memory_space<vmem>>, vector<912x64xbf16>,
    %c24 = arith.constant 24 : index
    %c0_34 = arith.constant 0 : index
    %38 = vector.load %arg13[%c24, %c0_34] : memref<912x192xbf16, #tpu.memory_space<vmem>>, vector<816x192xbf16>
    %c0_35 = arith.constant 0 : index
    %c0_36 = arith.constant 0 : index
    %c0_37 = arith.constant 0 : index
    %39 = vector.load %arg5[%c0_35, %c0_36, %c0_37] : memref<3x192x64xbf16, #tpu.memory_space<vmem>>, vector<1x192x64xbf16>
    %40 = vector.shape_cast %39 : vector<1x192x64xbf16> to vector<192x64xbf16>
    %cst_38 = arith.constant dense<0.000000e+00> : vector<816x64xf32>
    %41 = tpu.matmul %38, %40, %cst_38 {dimension_numbers = #tpu.dot_dimension_numbers<[1], [0], [0], [1], [0, 0, 1, 1], [], []>} : vector<816x192xbf16>, vector<192x64xbf16>, vector<816x64xf32> -> vector<816x64xf32>
    %c48 = arith.constant 48 : index
    %c0_39 = arith.constant 0 : index
    %42 = vector.load %arg13[%c48, %c0_39] : memref<912x192xbf16, #tpu.memory_space<vmem>>, vector<816x192xbf16>
    %c1 = arith.constant 1 : index
    %c0_40 = arith.constant 0 : index
    %c0_41 = arith.constant 0 : index
    %43 = vector.load %arg5[%c1, %c0_40, %c0_41] : memref<3x192x64xbf16, #tpu.memory_space<vmem>>, vector<1x192x64xbf16>
    %44 = vector.shape_cast %43 : vector<1x192x64xbf16> to vector<192x64xbf16>
    %cst_42 = arith.constant dense<0.000000e+00> : vector<816x64xf32>
    %45 = tpu.matmul %42, %44, %cst_42 {dimension_numbers = #tpu.dot_dimension_numbers<[1], [0], [0], [1], [0, 0, 1, 1], [], []>} : vector<816x192xbf16>, vector<192x64xbf16>, vector<816x64xf32> -> vector<816x64xf32>
    %46 = arith.addf %41, %45 : vector<816x64xf32>
    %c72 = arith.constant 72 : index
    %c0_43 = arith.constant 0 : index
    %47 = vector.load %arg13[%c72, %c0_43] : memref<912x192xbf16, #tpu.memory_space<vmem>>, vector<816x192xbf16>
    %c2_44 = arith.constant 2 : index
    %c0_45 = arith.constant 0 : index
    %c0_46 = arith.constant 0 : index
    %48 = vector.load %arg5[%c2_44, %c0_45, %c0_46] : memref<3x192x64xbf16, #tpu.memory_space<vmem>>, vector<1x192x64xbf16>
    %49 = vector.shape_cast %48 : vector<1x192x64xbf16> to vector<192x64xbf16>
    %cst_47 = arith.constant dense<0.000000e+00> : vector<816x64xf32>
    %50 = tpu.matmul %47, %49, %cst_47 {dimension_numbers = #tpu.dot_dimension_numbers<[1], [0], [0], [1], [0, 0, 1, 1], [], []>} : vector<816x192xbf16>, vector<192x64xbf16>, vector<816x64xf32> -> vector<816x64xf32>
    %51 = arith.addf %46, %50 : vector<816x64xf32>
    %52 = vector.shape_cast %51 : vector<816x64xf32> to vector<34x24x64xf32>
    %53 = vector.extract_strided_slice %52 {offsets = [0, 0, 0], sizes = [16, 16, 64], strides = [1, 1, 1]} : vector<34x24x64xf32> to vector<16x16x64xf32>
    %54 = vector.extract_strided_slice %52 {offsets = [18, 0, 0], sizes = [16, 16, 64], strides = [1, 1, 1]} : vector<34x24x64xf32> to vector<16x16x64xf32>
    %55 = tpu.concatenate %53, %54 in 0 : vector<16x16x64xf32>, vector<16x16x64xf32> -> vector<32x16x64xf32>
    %56 = vector.shape_cast %55 : vector<32x16x64xf32> to vector<512x64xf32>
    %c0_48 = arith.constant 0 : index
    %c0_49 = arith.constant 0 : index
    %57 = vector.load %arg6[%c0_48, %c0_49] : memref<1x64xf32, #tpu.memory_space<vmem>>, vector<1x64xf32>
    %58 = vector.broadcast %57 : vector<1x64xf32> to vector<512x64xf32>
    %59 = arith.mulf %56, %58 : vector<512x64xf32>
    %c0_50 = arith.constant 0 : index
    %c0_51 = arith.constant 0 : index
    %60 = vector.load %arg7[%c0_50, %c0_51] : memref<1x64xf32, #tpu.memory_space<vmem>>, vector<1x64xf32>
    %61 = vector.broadcast %60 : vector<1x64xf32> to vector<512x64xf32>
    %62 = arith.addf %59, %61 : vector<512x64xf32>
    %cst_52 = arith.constant 0.000000e+00 : f32
    %63 = vector.broadcast %cst_52 : f32 to vector<512x64xf32>
    %64 = arith.maximumf %62, %63 : vector<512x64xf32>
    %65 = arith.truncf %64 : vector<512x64xf32> to vector<512x64xbf16>
    %c0_53 = arith.constant 0 : index
    %c0_54 = arith.constant 0 : index
    %66 = vector.load %arg8[%c0_53, %c0_54] : memref<64x256xbf16, #tpu.memory_space<vmem>>, vector<64x256xbf16>
    %cst_55 = arith.constant dense<0.000000e+00> : vector<512x256xf32>
    %67 = tpu.matmul %65, %66, %cst_55 {dimension_numbers = #tpu.dot_dimension_numbers<[1], [0], [0], [1], [0, 0, 1, 1], [], []>} : vector<512x64xbf16>, vector<64x256xbf16>, vector<512x256xf32> -> vector<512x256xf32>
    %c0_56 = arith.constant 0 : index
    %c0_57 = arith.constant 0 : index
    %68 = vector.load %arg9[%c0_56, %c0_57] : memref<1x256xf32, #tpu.memory_space<vmem>>, vector<1x256xf32>
    %69 = vector.broadcast %68 : vector<1x256xf32> to vector<512x256xf32>
    %70 = arith.mulf %67, %69 : vector<512x256xf32>
    %c0_58 = arith.constant 0 : index
    %c0_59 = arith.constant 0 : index
    %71 = vector.load %arg10[%c0_58, %c0_59] : memref<1x256xf32, #tpu.memory_space<vmem>>, vector<1x256xf32>
    %72 = vector.broadcast %71 : vector<1x256xf32> to vector<512x256xf32>
    %73 = arith.addf %70, %72 : vector<512x256xf32>
    %74 = arith.extf %1 : vector<512x256xbf16> to vector<512x256xf32>
    %75 = arith.addf %73, %74 : vector<512x256xf32>
    %cst_60 = arith.constant 0.000000e+00 : f32
    %76 = vector.broadcast %cst_60 : f32 to vector<512x256xf32>
    %77 = arith.maximumf %75, %76 : vector<512x256xf32>
    %78 = vector.shape_cast %77 : vector<512x256xf32> to vector<2x256x256xf32>
    %79 = arith.truncf %78 : vector<2x256x256xf32> to vector<2x256x256xbf16>
    %c0_61 = arith.constant 0 : index
    %c0_62 = arith.constant 0 : index
    %c0_63 = arith.constant 0 : index
    %80 = vector.load %arg11[%c0_61, %c0_62, %c0_63] : memref<2x256x256xbf16, #tpu.memory_space<vmem>>, vector<2x256x256xbf16>
    tpu.vector_store %arg11[%c0_61, %c0_62, %c0_63], %79 {strides = array<i32>} : memref<2x256x256xbf16, #tpu.memory_space<vmem>>, vector<2x256x256xbf16>,
    return
  }
  func.func @transform_0(%arg0: i32) -> (i32, i32, i32) {
    %c0_i32 = arith.constant 0 : i32
    %c0_i32_0 = arith.constant 0 : i32
    %c0_i32_1 = arith.constant 0 : i32
    return %arg0, %c0_i32, %c0_i32_0 : i32, i32, i32
  }
  func.func @transform_1(%arg0: i32) -> (i32, i32) {
    %c0_i32 = arith.constant 0 : i32
    %c0_i32_0 = arith.constant 0 : i32
    %c0_i32_1 = arith.constant 0 : i32
    return %c0_i32, %c0_i32_0 : i32, i32
  }
  func.func @transform_2(%arg0: i32) -> (i32, i32) {
    %c0_i32 = arith.constant 0 : i32
    %c0_i32_0 = arith.constant 0 : i32
    %c0_i32_1 = arith.constant 0 : i32
    return %c0_i32, %c0_i32_0 : i32, i32
  }
  func.func @transform_3(%arg0: i32) -> (i32, i32) {
    %c0_i32 = arith.constant 0 : i32
    %c0_i32_0 = arith.constant 0 : i32
    %c0_i32_1 = arith.constant 0 : i32
    return %c0_i32, %c0_i32_0 : i32, i32
  }
  func.func @transform_4(%arg0: i32) -> (i32, i32, i32) {
    %c0_i32 = arith.constant 0 : i32
    %c0_i32_0 = arith.constant 0 : i32
    %c0_i32_1 = arith.constant 0 : i32
    %c0_i32_2 = arith.constant 0 : i32
    return %c0_i32, %c0_i32_0, %c0_i32_1 : i32, i32, i32
  }
  func.func @transform_5(%arg0: i32) -> (i32, i32) {
    %c0_i32 = arith.constant 0 : i32
    %c0_i32_0 = arith.constant 0 : i32
    %c0_i32_1 = arith.constant 0 : i32
    return %c0_i32, %c0_i32_0 : i32, i32
  }
  func.func @transform_6(%arg0: i32) -> (i32, i32) {
    %c0_i32 = arith.constant 0 : i32
    %c0_i32_0 = arith.constant 0 : i32
    %c0_i32_1 = arith.constant 0 : i32
    return %c0_i32, %c0_i32_0 : i32, i32
  }
  func.func @transform_7(%arg0: i32) -> (i32, i32) {
    %c0_i32 = arith.constant 0 : i32
    %c0_i32_0 = arith.constant 0 : i32
    %c0_i32_1 = arith.constant 0 : i32
    return %c0_i32, %c0_i32_0 : i32, i32
  }
  func.func @transform_8(%arg0: i32) -> (i32, i32) {
    %c0_i32 = arith.constant 0 : i32
    %c0_i32_0 = arith.constant 0 : i32
    %c0_i32_1 = arith.constant 0 : i32
    return %c0_i32, %c0_i32_0 : i32, i32
  }
  func.func @transform_9(%arg0: i32) -> (i32, i32) {
    %c0_i32 = arith.constant 0 : i32
    %c0_i32_0 = arith.constant 0 : i32
    %c0_i32_1 = arith.constant 0 : i32
    return %c0_i32, %c0_i32_0 : i32, i32
  }
  func.func @transform_10(%arg0: i32) -> (i32, i32, i32) {
    %c0_i32 = arith.constant 0 : i32
    %c0_i32_0 = arith.constant 0 : i32
    %c0_i32_1 = arith.constant 0 : i32
    return %arg0, %c0_i32, %c0_i32_0 : i32, i32, i32
  }
}

</mosaic_0001>

<bundles_post_ra>
// kernel: tpu_custom_call.1
= control target key start
LH: loop header
LB: loop body
LE: loop exit
PB: predicated region body
PF: predicated region fallthrough
CT: control target
= control target key end

     0   :  { %15 = vsyncpa [#allocation5], 0  ;;  %s12355_s0 = inlined_call_operand.hbm [shape: bf16[8,256,256], index: 0, kind: input, shape index: {}]   ;;  %s12356_s1 = inlined_call_operand.vmem [shape: bf16[256,64], index: 1, kind: input, shape index: {}]   ;;  %s12357_s2 = inlined_call_operand.vmem [shape: f32[1,64], index: 2, kind: input, shape index: {}]   ;;  %s12358_s3 = inlined_call_operand.vmem [shape: f32[1,64], index: 3, kind: input, shape index: {}]   ;;  %s12359_s4 = inlined_call_operand.vmem [shape: bf16[3,192,64], index: 4, kind: input, shape index: {}]   ;;  %s12360_s5 = inlined_call_operand.vmem [shape: f32[1,64], index: 5, kind: input, shape index: {}]   ;;  %s12361_s6 = inlined_call_operand.vmem [shape: f32[1,64], index: 6, kind: input, shape index: {}]   ;;  %s12362_s7 = inlined_call_operand.vmem [shape: bf16[64,256], index: 7, kind: input, shape index: {}]   ;;  %s12363_s8 = inlined_call_operand.vmem [shape: f32[1,256], index: 8, kind: input, shape index: {}]   ;;  %s12364_s9 = inlined_call_operand.vmem [shape: f32[1,256], index: 9, kind: input, shape index: {}]   ;;  %s12365_s10 = inlined_call_operand.hbm [shape: bf16[8,256,256], index: 10, kind: output, shape index: {}]  }
   0x1   :  { %17 = vsyncpa [#allocation5 + $0x1], 0 }
   0x2   :  { %18 = vsyncpa [#allocation6], 0 }
   0x3   :  { %20 = vsyncpa [#allocation6 + $0x1], 0  ;;  %s9658_s13 = smov 0   ;;  %s9660_s14 = smov 0  }
   0x4   :  { %s9662_s15 = smov 0   ;;  %s9664_s16 = smov 0  }
   0x5 LB: > { %s9679_s17 = sadd.s32 4294967295, %s9593_s16   ;;  %s8146_s18 = sadd.s32 4294967294, %s9593_s16   ;;  %s9593_s16 = sphi %s9664_s16, %s12412_s16   ;;  %s9589_s15 = sphi %s9662_s15, %s12411_s15   ;;  %s9585_s14 = sphi %s9660_s14, %s12410_s14   ;;  %s9581_s13 = sphi %s9658_s13, %s12409_s13  }
   0x6   : > { %s9683_s19 = sadd.s32 1, %s9593_s16   ;;  %s33_s20 = sadd.s32 1, %s9589_s15 }
   0x7   : > { %s30_s21 = ssub.s32 %s9593_s16, %s9683_s19  ;;  %p40_p0 = scmp.ne.s32.totalorder %s9589_s15, %s9585_s14 }
   0x8   : > { %p31_p1 = scmp.eq.s32.totalorder %s30_s21, 0  ;;  %p41_p2 = scmp.eq.s32.totalorder %s9593_s16, 0 }
   0x9   : > { %p46_p3 = scmp.ne.s32.totalorder %s9585_s14, %s9581_s13  ;;  %p47_p4 = scmp.eq.s32.totalorder %s9679_s17, 0 }
   0xa   : > { %s9695_s22 = scalar_select %p31_p1, %s9589_s15, %s33_s20  }
   0xb   : > { %p9697_p5 = por %p41_p2, %p40_p0  ;;  %p9701_p6 = por %p47_p4, %p46_p3 }
   0xc   : > { %12371 = sst [smem:[#allocation10_spill]] %s9695_s22  ;;  %p259_p7 = scmp.eq.s32.totalorder %s9679_s17, 3 }
   0xd   : > { %p265_p8 = scmp.eq.s32.totalorder %s8146_s18, 3  ;;  %p9154_p9 = scmp.lt.s32.totalorder %s9593_s16, 4 }
   0xe   : > { %p9707_p10 = por %p259_p7, %p40_p0  ;;  %s312_s27 = sand.u32 1, %s9589_s15  }
   0xf   : > { %p9711_p11 = por %p265_p8, %p46_p3  ;;  %s8709_s28 = sshll.u32 %s9593_s16, 13 }
  0x10   : > { %s12374_s25 = scalar_select %p9707_p10, 1, 0 }
  0x11   : > { %s12375_s26 = scalar_select %p9711_p11, 1, 0 }
  0x12   : > { %s8149_s29 = sshll.u32 %s312_s27, 9  ;;  %s9720_s12 = scalar_lea.hbm %s12355_s0, %s8709_s28 }
  0x13   : > { %s316_s18 = scalar_lea.vmem [#allocation4], %s8149_s29  ;;  %p9724_p12 = pnand %p9154_p9, %p9697_p5 }
  0x14   : > { %s324_s20 = sshll.u32 %s316_s18, 4  ;;  %s9730_s22 = scalar_lea.sflag [#allocation5], %s312_s27  ;;  %s9728_s20 = int_to_ptr.vmem [resolvable:$true] %s324_s20 }
  0x15   : > { %s9497_s30 = scalar_lea.hbm %s9720_s12, 8192  ;;  %p9499_p0 = pneg %p9724_p12 }
  0x16   : > { %p9498_p13 = scmp.ne.s32.totalorder %s9720_s12, %s9497_s30  ;;  %s9502_s29 = scalar_lea.hbm %s12355_s0, 32768 }
  0x17   : > { %p9503_p3 = scmp.lt.u32.totalorder %s9720_s12, %s12355_s0  ;;  %p9504_p4 = scmp.lt.u32.totalorder %s9502_s29, %s9497_s30 }
  0x18   : > { %p9500_p1 = pnand %p9499_p0, %p9498_p13  ;;  %p9506_p7 = scmp.lt.u32.totalorder %s9497_s30, %s9720_s12 }
  0x19   : > { %p9505_p5 = por %p9504_p4, %p9503_p3 }
  0x1a   : > { %p9501_p2 = pneg %p9500_p1 }
  0x1b   : > { %p9507_p8 = por %p9506_p7, %p9505_p5 }
  0x1d   : > { %p9508_p9 = pnand %p9507_p8, %p9501_p2 }
  0x1f   : > { %9511 = shalt.err (!%p9508_p9)
}
  0x20   : > { %s9512_s27 = scalar_lea.vmem %s9728_s20, 8192  ;;  %s9595_s28 = smov [#allocation4]  }
  0x21   : > { %p9513_p13 = scmp.ne.s32.totalorder %s9728_s20, %s9512_s27  ;;  %s9517_s23 = sshll.u32 %s9595_s28, 4  ;;  %s9518_s23 = int_to_ptr.vmem [resolvable:$false] %s9517_s23 }
  0x22   : > { %s9519_s11 = scalar_lea.vmem %s9518_s23, 16384  ;;  %p9520_p10 = scmp.lt.s32.totalorder %s9728_s20, %s9518_s23 }
  0x23   : > { %p9515_p1 = pnand %p9513_p13, %p9499_p0  ;;  %p9521_p3 = scmp.lt.s32.totalorder %s9519_s11, %s9512_s27 }
  0x25   : > { %p9516_p11 = pneg %p9515_p1  ;;  %p9522_p4 = por %p9521_p3, %p9520_p10 }
  0x27   : > { %p9523_p5 = pnand %p9522_p4, %p9516_p11 }
  0x29   : > { %9526 = shalt.err (!%p9523_p5)
}
  0x2a   : > { %s9596_s30 = smov 128   ;;  %s9597_s29 = smov 8  }
  0x2b   : > { %9149 = dma.hbm_to_vmem [thread:$0]  (!%p9724_p12), %s9720_s12, 8192, %s9728_s20, %s9730_s22, %s9596_s30, %s9596_s30, %s9597_s29  }
  0x2c   : > { %p8153_p0 = scmp.ge.s32.totalorder %s9593_s16, 1  ;;  %p332_p2 = scmp.lt.s32.totalorder %s9593_s16, 5 }
  0x2e   : > { %p333_p7 = pnand %p8153_p0, %p332_p2 }
  0x30   : > { %336 = sbr.rel (%p333_p7) target bundleno = 2023 (0x7e7), region = 60 }
  0x37   : > { %s9761_s18 = sand.u32 1, %s9585_s14  }
  0x38   : > { %s8154_s27 = sshll.u32 %s9761_s18, 9  ;;  %s339_s28 = scalar_lea.sflag [#allocation5], %s9761_s18 }
  0x39   : > { %s9767_s23 = scalar_lea.vmem [#allocation4], %s8154_s27 }
  0x3a   : > { %9572 = dma.done.wait (%p9701_p6), %s339_s28, 8192  }
  0x3b   : > { %9574 = vsyncadd (%p9701_p6), %s339_s28, 4294959104  ;;  %v12368_v0 = vmov 0   ;;  %v9194_v1 = vld [vmem:[%s12356_s1] sm:$0xff]   ;;  %v9195_v2 = vld [vmem:[%s12356_s1 + $0x8] sm:$0xff]   ;;  %vm1421_vm0 = vcmask 519168   ;;  %vm2679_vm2 = vcmask 523264  }
  0x3c   : > { %894 = vmatprep.subr.bf16.mxu0 %v12368_v0  ;;  %8840 = vmatprep.subr.bf16.mxu1 %v12368_v0  ;;  %v9196_v3 = vld [vmem:[%s12356_s1 + $0x10] sm:$0xff]   ;;  %v9197_v4 = vld [vmem:[%s12356_s1 + $0x18] sm:$0xff]   ;;  %v9198_v5 = vld [vmem:[%s12356_s1 + $0x20] sm:$0xff]   ;;  %1422 = vst.msk [vmem:[#allocation2 + $0x8] sm:$0xf] %vm1421_vm0, %v12368_v0  ;;  %s9599_s12 = smov 64  }
  0x3d   : > { %895 = vmatpush1.bf16.msra.mxu0 %v9194_v1  ;;  %v382_v6 = vld [vmem:[%s9767_s23] sm:$0xff]  ;;  %v383_v7 = vld [vmem:[%s9767_s23 + $0x8] sm:$0xff]  ;;  %v9199_v9 = vld [vmem:[%s12356_s1 + $0x28] sm:$0xff]   ;;  %1423 = vst.msk [vmem:[#allocation2 + $0x14] sm:$0xf] %vm1421_vm0, %v12368_v0  ;;  %vm2908_vm4 = vcmask 1048064  }
  0x3e   : > { %896 = vmatprep.subr.bf16.mxu0 %v12368_v0  ;;  %v8157_v8 = vcombine.high %v382_v6, %v383_v7  ;;  %v9200_v10 = vld [vmem:[%s12356_s1 + $0x30] sm:$0xff]   ;;  %v9201_v11 = vld [vmem:[%s12356_s1 + $0x38] sm:$0xff]   ;;  %v9202_v12 = vld [vmem:[%s12356_s1 + $0x40] sm:$0xff]   ;;  %v8156_v22 = vcombine.low %v382_v6, %v383_v7  ;;  %1424 = vst.msk [vmem:[#allocation2 + $0x20] sm:$0xf] %vm1421_vm0, %v12368_v0  ;;  %vm4143_vm5 = vcmask 1043456  }
  0x3f   : > { %v9203_v13 = vld [vmem:[%s12356_s1 + $0x48] sm:$0xff]   ;;  %v9204_v14 = vld [vmem:[%s12356_s1 + $0x50] sm:$0xff]   ;;  %v9205_v15 = vld [vmem:[%s12356_s1 + $0x58] sm:$0xff]   ;;  %1425 = vst.msk [vmem:[#allocation2 + $0x2c] sm:$0xf] %vm1421_vm0, %v12368_v0  ;;  %s11815_s28 = scalar_lea.vmem [#allocation7], %s8154_s27 }
  0x40   : > { %926 = vmatprep.mubr.bf16.mxu0 %v8157_v8  ;;  %v9206_v16 = vld [vmem:[%s12356_s1 + $0x60] sm:$0xff]   ;;  %v9207_v17 = vld [vmem:[%s12356_s1 + $0x68] sm:$0xff]   ;;  %v9208_v18 = vld [vmem:[%s12356_s1 + $0x70] sm:$0xff]   ;;  %1426 = vst.msk [vmem:[#allocation2 + $0x38] sm:$0xf] %vm1421_vm0, %v12368_v0  ;;  %s8073_s24 = sshll.u32 %s11815_s28, 4  ;;  %s12310_s24 = int_to_ptr.vmem [resolvable:$true] %s8073_s24 }
  0x41   : > { %897 = vmatpush1.bf16.msra.mxu0 %v9195_v2  ;;  %v9209_v19 = vld [vmem:[%s12356_s1 + $0x78] sm:$0xff]   ;;  %v384_v20 = vld [vmem:[%s9767_s23 + $0x10] sm:$0xff]  ;;  %v385_v21 = vld [vmem:[%s9767_s23 + $0x18] sm:$0xff]  ;;  %1427 = vst.msk [vmem:[#allocation2 + $0x44] sm:$0xf] %vm1421_vm0, %v12368_v0  ;;  %s8059_s29 = scalar_lea.sflag [#allocation6], %s9761_s18 }
  0x42   : > { %898 = vmatprep.subr.bf16.mxu0 %v12368_v0  ;;  %v8159_v23 = vcombine.high %v384_v20, %v385_v21  ;;  %v386_v24 = vld [vmem:[%s9767_s23 + $0x20] sm:$0xff]  ;;  %v387_v25 = vld [vmem:[%s9767_s23 + $0x28] sm:$0xff]  ;;  %v8158_v26 = vcombine.low %v384_v20, %v385_v21  ;;  %v388_v28 = vld [vmem:[%s9767_s23 + $0x30] sm:$0xff]  ;;  %1428 = vst.msk [vmem:[#allocation2 + $0x50] sm:$0xf] %vm1421_vm0, %v12368_v0  ;;  %s9527_s27 = scalar_lea.vmem %s12310_s24, 8192 }
  0x43   : > { %v8161_v27 = vcombine.high %v386_v24, %v387_v25  ;;  %v389_v29 = vld [vmem:[%s9767_s23 + $0x38] sm:$0xff]  ;;  %v8160_v30 = vcombine.low %v386_v24, %v387_v25  ;;  %v390_v32 = vld [vmem:[%s9767_s23 + $0x40] sm:$0xff]  ;;  %v391_v33 = vld [vmem:[%s9767_s23 + $0x48] sm:$0xff]  ;;  %1429 = vst.msk [vmem:[#allocation2 + $0x5c] sm:$0xf] %vm1421_vm0, %v12368_v0  ;;  %p9528_p6 = scmp.ne.s32.totalorder %s12310_s24, %s9527_s27  ;;  %p12406_p10 = scmp.ne.s32.totalorder %s12374_s25, 0 }
  0x44   : > { %v8163_v31 = vcombine.high %v388_v28, %v389_v29  ;;  %v8162_v34 = vcombine.low %v388_v28, %v389_v29  ;;  %v8165_v35 = vcombine.high %v390_v32, %v391_v33  ;;  %v392_v36 = vld [vmem:[%s9767_s23 + $0x50] sm:$0xff]  ;;  %v393_v37 = vld [vmem:[%s9767_s23 + $0x58] sm:$0xff]  ;;  %v8164_v38 = vcombine.low %v390_v32, %v391_v33  ;;  %v394_v40 = vld [vmem:[%s9767_s23 + $0x60] sm:$0xff]  ;;  %1430 = vst.msk [vmem:[#allocation2 + $0x68] sm:$0xf] %vm1421_vm0, %v12368_v0 }
  0x45   : > { %899 = vmatpush1.bf16.msra.mxu0 %v9196_v3  ;;  %v8167_v39 = vcombine.high %v392_v36, %v393_v37  ;;  %v395_v41 = vld [vmem:[%s9767_s23 + $0x68] sm:$0xff]  ;;  %v8166_v42 = vcombine.low %v392_v36, %v393_v37  ;;  %v396_v44 = vld [vmem:[%s9767_s23 + $0x70] sm:$0xff]  ;;  %v397_v45 = vld [vmem:[%s9767_s23 + $0x78] sm:$0xff]  ;;  %1431 = vst.msk [vmem:[#allocation2 + $0x74] sm:$0xf] %vm1421_vm0, %v12368_v0  ;;  %p9529_p11 = pnand %p9528_p6, %p12406_p10 }
  0x46   : > { %900 = vmatprep.subr.bf16.mxu0 %v12368_v0  ;;  %v8169_v43 = vcombine.high %v394_v40, %v395_v41  ;;  %v8168_v46 = vcombine.low %v394_v40, %v395_v41  ;;  %v8171_v47 = vcombine.high %v396_v44, %v397_v45  ;;  %v398_v48 = vld [vmem:[%s9767_s23 + $0x80] sm:$0xff]  ;;  %v399_v49 = vld [vmem:[%s9767_s23 + $0x88] sm:$0xff]  ;;  %v8170_v50 = vcombine.low %v396_v44, %v397_v45  ;;  %v400_v52 = vld [vmem:[%s9767_s23 + $0x90] sm:$0xff] }
  0x47   : > { %v8173_v51 = vcombine.high %v398_v48, %v399_v49  ;;  %v401_v53 = vld [vmem:[%s9767_s23 + $0x98] sm:$0xff]  ;;  %v8172_v54 = vcombine.low %v398_v48, %v399_v49  ;;  %v402_v56 = vld [vmem:[%s9767_s23 + $0xa0] sm:$0xff]  ;;  %v403_v57 = vld [vmem:[%s9767_s23 + $0xa8] sm:$0xff]  ;;  %1432 = vst.msk [vmem:[#allocation2 + $0x80] sm:$0xf] %vm1421_vm0, %v12368_v0  ;;  %p9530_p12 = pneg %p9529_p11 }
  0x48   : > { %v8175_v55 = vcombine.high %v400_v52, %v401_v53  ;;  %v8174_v58 = vcombine.low %v400_v52, %v401_v53  ;;  %v8177_v59 = vcombine.high %v402_v56, %v403_v57  ;;  %v404_v60 = vld [vmem:[%s9767_s23 + $0xb0] sm:$0xff]  ;;  %v405_v61 = vld [vmem:[%s9767_s23 + $0xb8] sm:$0xff]  ;;  %v8176_v62 = vcombine.low %v402_v56, %v403_v57  ;;  %v406_v1 = vld [vmem:[%s9767_s23 + $0xc0] sm:$0xff]  ;;  %1433 = vst.msk [vmem:[#allocation2 + $0x8c] sm:$0xf] %vm1421_vm0, %v12368_v0 }
  0x49   : > { %901 = vmatpush1.bf16.msra.mxu0 %v9197_v4  ;;  %v8179_v63 = vcombine.high %v404_v60, %v405_v61  ;;  %v407_v2 = vld [vmem:[%s9767_s23 + $0xc8] sm:$0xff]  ;;  %v8178_v3 = vcombine.low %v404_v60, %v405_v61  ;;  %1434 = vst.msk [vmem:[#allocation2 + $0x98] sm:$0xf] %vm1421_vm0, %v12368_v0  ;;  %1435 = vst.msk [vmem:[#allocation2 + $0xa4] sm:$0xf] %vm1421_vm0, %v12368_v0  ;;  %v409_v6 = vld [vmem:[%s9767_s23 + $0xd8] sm:$0xff] }
  0x4a   : > { %902 = vmatprep.subr.bf16.mxu0 %v12368_v0  ;;  %v8181_v4 = vcombine.high %v406_v1, %v407_v2  ;;  %1436 = vst.msk [vmem:[#allocation2 + $0xb0] sm:$0xf] %vm1421_vm0, %v12368_v0  ;;  %1437 = vst.msk [vmem:[#allocation2 + $0xbc] sm:$0xf] %vm1421_vm0, %v12368_v0  ;;  %v8180_v7 = vcombine.low %v406_v1, %v407_v2  ;;  %vm2966_vm1 = vsmask.f32 7424 }
  0x4b   : > { %1438 = vst.msk [vmem:[#allocation2 + $0xc8] sm:$0xf] %vm1421_vm0, %v12368_v0  ;;  %1439 = vst.msk [vmem:[#allocation2 + $0xd4] sm:$0xf] %vm1421_vm0, %v12368_v0  ;;  %vm2163_vm3 = vsmask.f32 256 }
  0x4c   : > { %1440 = vst.msk [vmem:[#allocation2 + $0xe0] sm:$0xf] %vm1421_vm0, %v12368_v0  ;;  %1441 = vst.msk [vmem:[#allocation2 + $0xec] sm:$0xf] %vm1421_vm0, %v12368_v0 }
  0x4d   : > { %903 = vmatpush1.bf16.msra.mxu0 %v9198_v5  ;;  %1442 = vst.msk [vmem:[#allocation2 + $0xf8] sm:$0xf] %vm1421_vm0, %v12368_v0  ;;  %1443 = vst.msk [vmem:[#allocation2 + $0x104] sm:$0xf] %vm1421_vm0, %v12368_v0  ;;  %v408_v5 = vld [vmem:[%s9767_s23 + $0xd0] sm:$0xff] }
  0x4e   : > { %904 = vmatprep.subr.bf16.mxu0 %v12368_v0  ;;  %1444 = vst.msk [vmem:[#allocation2 + $0x110] sm:$0xf] %vm1421_vm0, %v12368_v0  ;;  %1445 = vst.msk [vmem:[#allocation2 + $0x11c] sm:$0xf] %vm1421_vm0, %v12368_v0  ;;  %v8183_v8 = vcombine.high %v408_v5, %v409_v6 }
  0x4f   : > { %1446 = vst.msk [vmem:[#allocation2 + $0x128] sm:$0xf] %vm1421_vm0, %v12368_v0  ;;  %1447 = vst.msk [vmem:[#allocation2 + $0x134] sm:$0xf] %vm1421_vm0, %v12368_v0 }
  0x50   : > { %1448 = vst.msk [vmem:[#allocation2 + $0x140] sm:$0xf] %vm1421_vm0, %v12368_v0  ;;  %1449 = vst.msk [vmem:[#allocation2 + $0x14c] sm:$0xf] %vm1421_vm0, %v12368_v0 }
  0x51   : > { %905 = vmatpush1.bf16.msra.mxu0 %v9199_v9  ;;  %1450 = vst.msk [vmem:[#allocation2 + $0x158] sm:$0xf] %vm1421_vm0, %v12368_v0  ;;  %1451 = vst.msk [vmem:[#allocation2 + $0x164] sm:$0xf] %vm1421_vm0, %v12368_v0  ;;  %v410_v9 = vld [vmem:[%s9767_s23 + $0xe0] sm:$0xff] }
  0x52   : > { %906 = vmatprep.subr.bf16.mxu0 %v12368_v0  ;;  %1452 = vst.msk [vmem:[#allocation2 + $0x170] sm:$0xf] %vm1421_vm0, %v12368_v0  ;;  %1453 = vst.msk [vmem:[#allocation2 + $0x17c] sm:$0xf] %vm1421_vm0, %v12368_v0 }
  0x53   : > { %1454 = vst.msk [vmem:[#allocation2 + $0x188] sm:$0xf] %vm1421_vm0, %v12368_v0  ;;  %1455 = vst.msk [vmem:[#allocation2 + $0x194] sm:$0xf] %vm1421_vm0, %v12368_v0 }
  0x54   : > { %1456 = vst.msk [vmem:[#allocation2 + $0x1a0] sm:$0xf] %vm1421_vm0, %v12368_v0  ;;  %1457 = vst.msk [vmem:[#allocation2 + $0x1ac] sm:$0xf] %vm1421_vm0, %v12368_v0 }
  0x55   : > { %907 = vmatpush1.bf16.msra.mxu0 %v9200_v10  ;;  %1458 = vst.msk [vmem:[#allocation2 + $0x1b8] sm:$0xf] %vm1421_vm0, %v12368_v0  ;;  %1459 = vst.msk [vmem:[#allocation2 + $0x1c4] sm:$0xf] %vm1421_vm0, %v12368_v0  ;;  %v411_v10 = vld [vmem:[%s9767_s23 + $0xe8] sm:$0xff] }
  0x56   : > { %908 = vmatprep.subr.bf16.mxu0 %v12368_v0  ;;  %1460 = vst.msk [vmem:[#allocation2] sm:$0xf] %vm1421_vm0, %v12368_v0  ;;  %1461 = vst.msk [vmem:[#allocation2 + $0x4] sm:$0xf] %vm1421_vm0, %v12368_v0 }
  0x57   : > { %1462 = vst.msk [vmem:[#allocation2 + $0xc] sm:$0xf] %vm1421_vm0, %v12368_v0  ;;  %1463 = vst.msk [vmem:[#allocation2 + $0x10] sm:$0xf] %vm1421_vm0, %v12368_v0 }
  0x58   : > { %1610 = vst.msk [vmem:[#allocation2 + $0xd8] sm:$0xf] %vm1421_vm0, %v12368_v0  ;;  %1611 = vst.msk [vmem:[#allocation2 + $0xdc] sm:$0xf] %vm1421_vm0, %v12368_v0 }
  0x59   : > { %909 = vmatpush1.bf16.msra.mxu0 %v9201_v11  ;;  %1612 = vst.msk [vmem:[#allocation2 + $0xe4] sm:$0xf] %vm1421_vm0, %v12368_v0  ;;  %1613 = vst.msk [vmem:[#allocation2 + $0xe8] sm:$0xf] %vm1421_vm0, %v12368_v0  ;;  %v8182_v11 = vcombine.low %v408_v5, %v409_v6 }
  0x5a   : > { %910 = vmatprep.subr.bf16.mxu0 %v12368_v0  ;;  %1760 = vst.msk [vmem:[#allocation2 + $0x1b0] sm:$0xf] %vm1421_vm0, %v12368_v0  ;;  %1761 = vst.msk [vmem:[#allocation2 + $0x1b4] sm:$0xf] %vm1421_vm0, %v12368_v0 }
  0x5b   : > { %1762 = vst.msk [vmem:[#allocation2 + $0x1bc] sm:$0xf] %vm1421_vm0, %v12368_v0  ;;  %1763 = vst.msk [vmem:[#allocation2 + $0x1c0] sm:$0xf] %vm1421_vm0, %v12368_v0 }
  0x5d   : > { %911 = vmatpush1.bf16.msra.mxu0 %v9202_v12  ;;  %v8185_v12 = vcombine.high %v410_v9, %v411_v10 }
  0x5e   : > { %912 = vmatprep.subr.bf16.mxu0 %v12368_v0 }
  0x61   : > { %913 = vmatpush1.bf16.msra.mxu0 %v9203_v13  ;;  %v9969_v13 = vld [vmem:[#allocation2 + $0x8] sm:$0xff]  }
  0x62   : > { %914 = vmatprep.subr.bf16.mxu0 %v12368_v0 }
  0x65   : > { %915 = vmatpush1.bf16.msra.mxu0 %v9204_v14  ;;  %v9971_v14 = vld [vmem:[#allocation2 + $0x10] sm:$0xff]  }
  0x66   : > { %916 = vmatprep.subr.bf16.mxu0 %v12368_v0 }
  0x69   : > { %917 = vmatpush1.bf16.msra.mxu0 %v9205_v15  ;;  %v2175_v15 = vshll.u32 %v9969_v13, 16 }
  0x6a   : > { %918 = vmatprep.subr.bf16.mxu0 %v12368_v0 }
  0x6b   : > { %v2969_v20 = vrot.slane %v2175_v15, 1 }
  0x6d   : > { %919 = vmatpush1.bf16.msra.mxu0 %v9206_v16  ;;  %v2183_v16 = vshll.u32 %v9971_v14, 16 }
  0x6e   : > { %920 = vmatprep.subr.bf16.mxu0 %v12368_v0 }
  0x6f   : > { %v9982_v21 = vrot.slane %v2183_v16, 1 }
  0x71   : > { %921 = vmatpush1.bf16.msra.mxu0 %v9207_v17  ;;  %v412_v17 = vld [vmem:[%s9767_s23 + $0xf0] sm:$0xff] }
  0x72   : > { %922 = vmatprep.subr.bf16.mxu0 %v12368_v0 }
  0x75   : > { %923 = vmatpush1.bf16.msra.mxu0 %v9208_v18  ;;  %v413_v18 = vld [vmem:[%s9767_s23 + $0xf8] sm:$0xff] }
  0x76   : > { %924 = vmatprep.subr.bf16.mxu0 %v12368_v0  ;;  %v8187_v24 = vcombine.high %v412_v17, %v413_v18  ;;  %v8186_v28 = vcombine.low %v412_v17, %v413_v18  ;;  %v439_v17 = vld [vmem:[%s9767_s23 + $0x1c8] sm:$0xff] }
  0x79   : > { %925 = vmatpush1.bf16.msra.mxu0 %v9209_v19  ;;  %v2172_v19 = vshrl.u32 %v9969_v13, 16 }
  0x7a   : > { %3636 = vmatprep.subr.bf16.mxu0 %v12368_v0 }
  0x7c   : > { %927 = vmatmul.mubr.bf16.vlgmr.msra.gmra.mrb[0].mxu0 %v8156_v22  ;;  %v2971_v22 = vor.u32 %v2969_v20, %v2172_v19  ;;  %v10023_v20 = vld [vmem:[%s12358_s3] ss:$0 sm:$0xff] }
  0x7d   : > { %934 = vmatprep.mubr.bf16.mxu0 %v8159_v23  ;;  %v8184_v23 = vcombine.low %v410_v9, %v411_v10 }
  0x7e   : > { %v2973_v25 = vsel %vm2966_vm1, %v2971_v22, %v9982_v21 }
  0x7f   : > { %3198 = vst.msk [vmem:[#allocation3 + $0x18] sm:$0xff] %vm2679_vm2, %v2973_v25 }
  0x84   : > { %935 = vmatmul.mubr.bf16.gmra.mrb[4].mxu0 %v8158_v26  ;;  %v414_v26 = vld [vmem:[%s9767_s23 + $0x100] sm:$0xff] }
  0x85   : > { %942 = vmatprep.mubr.bf16.mxu0 %v8161_v27  ;;  %v415_v27 = vld [vmem:[%s9767_s23 + $0x108] sm:$0xff] }
  0x86   : > { %v8189_v29 = vcombine.high %v414_v26, %v415_v27  ;;  %v8188_v32 = vcombine.low %v414_v26, %v415_v27 }
  0x8c   : > { %943 = vmatmul.mubr.bf16.gmra.mrb[8].mxu0 %v8160_v30  ;;  %v416_v30 = vld [vmem:[%s9767_s23 + $0x110] sm:$0xff] }
  0x8d   : > { %950 = vmatprep.mubr.bf16.mxu0 %v8163_v31  ;;  %v417_v31 = vld [vmem:[%s9767_s23 + $0x118] sm:$0xff] }
  0x8e   : > { %v8191_v33 = vcombine.high %v416_v30, %v417_v31  ;;  %v8190_v36 = vcombine.low %v416_v30, %v417_v31 }
  0x94   : > { %951 = vmatmul.mubr.bf16.gmra.mrb[12].mxu0 %v8162_v34  ;;  %v418_v34 = vld [vmem:[%s9767_s23 + $0x120] sm:$0xff] }
  0x95   : > { %958 = vmatprep.mubr.bf16.mxu0 %v8165_v35  ;;  %v419_v35 = vld [vmem:[%s9767_s23 + $0x128] sm:$0xff] }
  0x96   : > { %v8193_v37 = vcombine.high %v418_v34, %v419_v35  ;;  %v8192_v40 = vcombine.low %v418_v34, %v419_v35  ;;  %v440_v34 = vld [vmem:[%s9767_s23 + $0x1d0] sm:$0xff]  ;;  %v441_v35 = vld [vmem:[%s9767_s23 + $0x1d8] sm:$0xff] }
  0x9c   : > { %959 = vmatmul.mubr.bf16.gmra.mrb[16].mxu0 %v8164_v38  ;;  %v420_v38 = vld [vmem:[%s9767_s23 + $0x130] sm:$0xff] }
  0x9d   : > { %966 = vmatprep.mubr.bf16.mxu0 %v8167_v39  ;;  %v421_v39 = vld [vmem:[%s9767_s23 + $0x138] sm:$0xff] }
  0x9e   : > { %v8195_v41 = vcombine.high %v420_v38, %v421_v39  ;;  %v8194_v44 = vcombine.low %v420_v38, %v421_v39 }
  0xa4   : > { %967 = vmatmul.mubr.bf16.gmra.mrb[20].mxu0 %v8166_v42  ;;  %v422_v42 = vld [vmem:[%s9767_s23 + $0x140] sm:$0xff] }
  0xa5   : > { %974 = vmatprep.mubr.bf16.mxu0 %v8169_v43  ;;  %v423_v43 = vld [vmem:[%s9767_s23 + $0x148] sm:$0xff] }
  0xa6   : > { %v8197_v45 = vcombine.high %v422_v42, %v423_v43  ;;  %v8196_v48 = vcombine.low %v422_v42, %v423_v43  ;;  %v8215_v42 = vcombine.high %v440_v34, %v441_v35 }
  0xac   : > { %975 = vmatmul.mubr.bf16.gmra.mrb[24].mxu0 %v8168_v46  ;;  %v424_v46 = vld [vmem:[%s9767_s23 + $0x150] sm:$0xff] }
  0xad   : > { %982 = vmatprep.mubr.bf16.mxu0 %v8171_v47  ;;  %v425_v47 = vld [vmem:[%s9767_s23 + $0x158] sm:$0xff] }
  0xae   : > { %v8199_v49 = vcombine.high %v424_v46, %v425_v47  ;;  %v8198_v52 = vcombine.low %v424_v46, %v425_v47  ;;  %v10036_v46 = vld [vmem:[#allocation2 + $0xd8] sm:$0xff]  }
  0xb4   : > { %983 = vmatmul.mubr.bf16.gmra.mrb[28].mxu0 %v8170_v50  ;;  %v426_v50 = vld [vmem:[%s9767_s23 + $0x160] sm:$0xff] }
  0xb5   : > { %990 = vmatprep.mubr.bf16.mxu0 %v8173_v51  ;;  %v427_v51 = vld [vmem:[%s9767_s23 + $0x168] sm:$0xff] }
  0xb6   : > { %v8201_v53 = vcombine.high %v426_v50, %v427_v51  ;;  %v8200_v56 = vcombine.low %v426_v50, %v427_v51  ;;  %v10040_v50 = vld [vmem:[#allocation2 + $0xe0] sm:$0xff]  }
  0xbc   : > { %991 = vmatmul.mubr.bf16.gmra.mrb[32].mxu0 %v8172_v54  ;;  %v428_v54 = vld [vmem:[%s9767_s23 + $0x170] sm:$0xff] }
  0xbd   : > { %998 = vmatprep.mubr.bf16.mxu0 %v8175_v55  ;;  %v429_v55 = vld [vmem:[%s9767_s23 + $0x178] sm:$0xff] }
  0xbe   : > { %v8203_v57 = vcombine.high %v428_v54, %v429_v55  ;;  %v8202_v60 = vcombine.low %v428_v54, %v429_v55  ;;  %v10046_v54 = vld [vmem:[%s9767_s23 + $0x1e8] sm:$0xff]  ;;  %v2380_v55 = vshrl.u32 %v10036_v46, 16 }
  0xc4   : > { %999 = vmatmul.mubr.bf16.gmra.mrb[36].mxu0 %v8174_v58  ;;  %v430_v58 = vld [vmem:[%s9767_s23 + $0x180] sm:$0xff] }
  0xc5   : > { %1006 = vmatprep.mubr.bf16.mxu0 %v8177_v59  ;;  %v431_v59 = vld [vmem:[%s9767_s23 + $0x188] sm:$0xff] }
  0xc6   : > { %v8205_v61 = vcombine.high %v430_v58, %v431_v59  ;;  %v8204_v1 = vcombine.low %v430_v58, %v431_v59  ;;  %v2180_v58 = vshrl.u32 %v9971_v14, 16  ;;  %v2391_v59 = vshll.u32 %v10040_v50, 16 }
  0xcc   : > { %1007 = vmatmul.mubr.bf16.gmra.mrb[40].mxu0 %v8176_v62  ;;  %v432_v62 = vld [vmem:[%s9767_s23 + $0x190] sm:$0xff] }
  0xcd   : > { %1014 = vmatprep.mubr.bf16.mxu0 %v8179_v63  ;;  %v433_v63 = vld [vmem:[%s9767_s23 + $0x198] sm:$0xff] }
  0xce   : > { %v8207_v2 = vcombine.high %v432_v62, %v433_v63  ;;  %v8206_v5 = vcombine.low %v432_v62, %v433_v63  ;;  %v8214_v63 = vcombine.low %v440_v34, %v441_v35 }
  0xd4   : > { %1015 = vmatmul.mubr.bf16.gmra.mrb[44].mxu0 %v8178_v3  ;;  %v434_v3 = vld [vmem:[%s9767_s23 + $0x1a0] sm:$0xff] }
  0xd5   : > { %1022 = vmatprep.mubr.bf16.mxu0 %v8181_v4  ;;  %v435_v4 = vld [vmem:[%s9767_s23 + $0x1a8] sm:$0xff] }
  0xd6   : > { %v8209_v6 = vcombine.high %v434_v3, %v435_v4  ;;  %v8208_v9 = vcombine.low %v434_v3, %v435_v4 }
  0xdc   : > { %1023 = vmatmul.mubr.bf16.gmra.mrb[48].mxu0 %v8180_v7  ;;  %v436_v7 = vld [vmem:[%s9767_s23 + $0x1b0] sm:$0xff] }
  0xdd   : > { %1030 = vmatprep.mubr.bf16.mxu0 %v8183_v8  ;;  %v437_v8 = vld [vmem:[%s9767_s23 + $0x1b8] sm:$0xff] }
  0xde   : > { %v8211_v10 = vcombine.high %v436_v7, %v437_v8 }
  0xe4   : > { %1031 = vmatmul.mubr.bf16.gmra.mrb[52].mxu0 %v8182_v11  ;;  %v10016_v11 = vld [vmem:[%s12357_s2] ss:$0 sm:$0xff] }
  0xe5   : > { %1038 = vmatprep.mubr.bf16.mxu0 %v8185_v12  ;;  %v438_v12 = vld [vmem:[%s9767_s23 + $0x1c0] sm:$0xff] }
  0xe6   : > { %v8213_v26 = vcombine.high %v438_v12, %v439_v17 }
  0xec   : > { %1039 = vmatmul.mubr.bf16.gmra.mrb[56].mxu0 %v8184_v23 }
  0xed   : > { %1046 = vmatprep.mubr.bf16.mxu0 %v8187_v24  ;;  %v8210_v24 = vcombine.low %v436_v7, %v437_v8  ;;  %v3050_v7 = vrot.slane %v2391_v59, 1 }
  0xf4   : > { %1047 = vmatmul.mubr.bf16.gmra.mrb[60].mxu0 %v8186_v28 }
  0xf5   : > { %1054 = vmatprep.mubr.bf16.mxu0 %v8189_v29 }
  0xfc   : > { %1055 = vmatmul.mubr.bf16.gmra.mrb[64].mxu0 %v8188_v32 }
  0xfd   : > { %1062 = vmatprep.mubr.bf16.mxu0 %v8191_v33 }
 0x104   : > { %1063 = vmatmul.mubr.bf16.gmra.mrb[68].mxu0 %v8190_v36 }
 0x105   : > { %1070 = vmatprep.mubr.bf16.mxu0 %v8193_v37 }
 0x10c   : > { %1071 = vmatmul.mubr.bf16.gmra.mrb[72].mxu0 %v8192_v40  ;;  %v8212_v40 = vcombine.low %v438_v12, %v439_v17  ;;  %v2974_v17 = vor.u32 %v9982_v21, %v2180_v58  ;;  %v2388_v21 = vshrl.u32 %v10040_v50, 16 }
 0x10d   : > { %1078 = vmatprep.mubr.bf16.mxu0 %v8195_v41 }
 0x114   : > { %1079 = vmatmul.mubr.bf16.gmra.mrb[76].mxu0 %v8194_v44 }
 0x115   : > { %1086 = vmatprep.mubr.bf16.mxu0 %v8197_v45 }
 0x11c   : > { %1087 = vmatmul.mubr.bf16.gmra.mrb[80].mxu0 %v8196_v48 }
 0x11d   : > { %1094 = vmatprep.mubr.bf16.mxu0 %v8199_v49  ;;  %v2383_v49 = vshll.u32 %v10036_v46, 16 }
 0x124   : > { %1095 = vmatmul.mubr.bf16.gmra.mrb[84].mxu0 %v8198_v52 }
 0x125   : > { %1102 = vmatprep.mubr.bf16.mxu0 %v8201_v53  ;;  %v10043_v53 = vld [vmem:[%s9767_s23 + $0x1e0] sm:$0xff] }
 0x126   : > { %v8216_v35 = vcombine.low %v10043_v53, %v10046_v54 }
 0x12c   : > { %1103 = vmatmul.mubr.bf16.gmra.mrb[88].mxu0 %v8200_v56  ;;  %v10051_v56 = vrot.slane %v2383_v49, 1 }
 0x12d   : > { %1110 = vmatprep.mubr.bf16.mxu0 %v8203_v57 }
 0x134   : > { %1111 = vmatmul.mubr.bf16.gmra.mrb[92].mxu0 %v8202_v60 }
 0x135   : > { %1118 = vmatprep.mubr.bf16.mxu0 %v8205_v61 }
 0x13c   : > { %1119 = vmatmul.mubr.bf16.gmra.mrb[96].mxu0 %v8204_v1  ;;  %v3049_v1 = vor.u32 %v10051_v56, %v2380_v55 }
 0x13d   : > { %1126 = vmatprep.mubr.bf16.mxu0 %v8207_v2  ;;  %v10060_v2 = vld [vmem:[#allocation2 + $0xe8] sm:$0xff]  }
 0x144   : > { %1127 = vmatmul.mubr.bf16.gmra.mrb[100].mxu0 %v8206_v5 }
 0x145   : > { %1134 = vmatprep.mubr.bf16.mxu0 %v8209_v6  ;;  %v8217_v6 = vcombine.high %v10043_v53, %v10046_v54 }
 0x14c   : > { %1135 = vmatmul.mubr.bf16.gmra.mrb[104].mxu0 %v8208_v9 }
 0x14d   : > { %1142 = vmatprep.mubr.bf16.mxu0 %v8211_v10 }
 0x14f   : > { %v928_v18 = vpop.f32.mrb[0].mxu0 }
 0x150   : > { %v1190_v22 = vmul.f32 %v10016_v11, %v928_v18  ;;  %v930_v23 = vpop.f32.mrb[1].mxu0  ;;  %v3051_v18 = vsel %vm2966_vm1, %v3049_v1, %v3050_v7 }
 0x151   : > { %v931_v25 = vpop.f32.mrb[2].mxu0  ;;  %3224 = vst.msk [vmem:[#allocation3 + $0x1b8] sm:$0xff] %vm2679_vm2, %v3051_v18 }
 0x152   : > { %v1261_v27 = vadd.f32 %v10023_v20, %v1190_v22  ;;  %v1191_v28 = vmul.f32 %v10016_v11, %v931_v25  ;;  %v933_v29 = vpop.f32.mrb[3].mxu0  ;;  %v2399_v22 = vshll.u32 %v10060_v2, 16 }
 0x154   : > { %v1325_v30 = vmax.f32 %v1261_v27, 0.0  ;;  %v1262_v31 = vadd.f32 %v10023_v20, %v1191_v28  ;;  %1143 = vmatmul.mubr.bf16.gmra.mrb[108].mxu0 %v8210_v24  ;;  %v10079_v27 = vld [vmem:[%s9767_s23 + $0x1f0] sm:$0xff]  ;;  %v10082_v28 = vld [vmem:[%s9767_s23 + $0x1f8] sm:$0xff] }
 0x155   : > { %1150 = vmatprep.mubr.bf16.mxu0 %v8213_v26 }
 0x156   : > { %v8710_v32 = vpack.c.bf16 %v1325_v30, %v1325_v30  ;;  %v1326_v33 = vmax.f32 %v1262_v31, 0.0 }
 0x157   : > { %v936_v36 = vpop.f32.mrb[4].mxu0 }
 0x158   : > { %1577 = vst.msk [vmem:[#allocation2 + $0x18] sm:$0xf] %vm1421_vm0, %v8710_v32  ;;  %v8711_v37 = vpack.c.bf16 %v1326_v33, %v1326_v33  ;;  %v1192_v38 = vmul.f32 %v10016_v11, %v936_v36  ;;  %v938_v39 = vpop.f32.mrb[5].mxu0  ;;  %v10087_v36 = vrot.slane %v2180_v58, 7 }
 0x159   : > { %v939_v41 = vpop.f32.mrb[6].mxu0 }
 0x15a   : > { %1578 = vst.msk [vmem:[#allocation2 + $0x1c] sm:$0xf] %vm1421_vm0, %v8711_v37  ;;  %v1263_v43 = vadd.f32 %v10023_v20, %v1192_v38  ;;  %v1193_v44 = vmul.f32 %v10016_v11, %v939_v41  ;;  %v941_v45 = vpop.f32.mrb[7].mxu0  ;;  %v3052_v37 = vor.u32 %v3050_v7, %v2388_v21  ;;  %v10093_v38 = vrot.slane %v2399_v22, 1 }
 0x15c   : > { %v1327_v47 = vmax.f32 %v1263_v43, 0.0  ;;  %v1264_v48 = vadd.f32 %v10023_v20, %v1193_v44  ;;  %1151 = vmatmul.mubr.bf16.gmra.mrb[112].mxu0 %v8212_v40 }
 0x15d   : > { %1158 = vmatprep.mubr.bf16.mxu0 %v8215_v42  ;;  %v8219_v42 = vcombine.high %v10079_v27, %v10082_v28 }
 0x15e   : > { %v8712_v51 = vpack.c.bf16 %v1327_v47, %v1327_v47  ;;  %v1328_v52 = vmax.f32 %v1264_v48, 0.0 }
 0x15f   : > { %v944_v57 = vpop.f32.mrb[8].mxu0  ;;  %v1770_v3 = vld [vmem:[#allocation2 + $0x18] sm:$0xf] }
 0x160   : > { %1579 = vst.msk [vmem:[#allocation2 + $0x24] sm:$0xf] %vm1421_vm0, %v8712_v51  ;;  %v8713_v60 = vpack.c.bf16 %v1328_v52, %v1328_v52  ;;  %v1194_v61 = vmul.f32 %v10016_v11, %v944_v57  ;;  %v946_v62 = vpop.f32.mrb[9].mxu0  ;;  %v3054_v51 = vsel %vm2966_vm1, %v3052_v37, %v10093_v38 }
 0x161   : > { %v1771_v4 = vld [vmem:[#allocation2 + $0x1c] sm:$0xf]  ;;  %v947_v5 = vpop.f32.mrb[10].mxu0  ;;  %3225 = vst.msk [vmem:[#allocation3 + $0x1c8] sm:$0xff] %vm2679_vm2, %v3054_v51 }
 0x162   : > { %v10066_v8 = vcombine.low %v1770_v3, %v1771_v4  ;;  %1580 = vst.msk [vmem:[#allocation2 + $0x28] sm:$0xf] %vm1421_vm0, %v8713_v60  ;;  %v1265_v9 = vadd.f32 %v10023_v20, %v1194_v61  ;;  %v1195_v10 = vmul.f32 %v10016_v11, %v947_v5  ;;  %v949_v12 = vpop.f32.mrb[11].mxu0 }
 0x164   : > { %v1329_v23 = vmax.f32 %v1265_v9, 0.0  ;;  %v1266_v24 = vadd.f32 %v10023_v20, %v1195_v10  ;;  %1159 = vmatmul.mubr.bf16.gmra.mrb[116].mxu0 %v8214_v63  ;;  %v2188_v25 = vshrl.u32 %v10066_v8, 16  ;;  %v2191_v26 = vshll.u32 %v10066_v8, 16 }
 0x165   : > { %1166 = vmatprep.mubr.bf16.mxu0 %v8217_v6 }
 0x166   : > { %v8714_v29 = vpack.c.bf16 %v1329_v23, %v1329_v23  ;;  %v1330_v30 = vmax.f32 %v1266_v24, 0.0  ;;  %v2975_v31 = vrot.slane %v2191_v26, 1  ;;  %v2190_v32 = vrot.slane %v2188_v25, 7 }
 0x167   : > { %v9266_v33 = vld [vmem:[#allocation2 + $0x20] sm:$0xff]   ;;  %v952_v34 = vpop.f32.mrb[12].mxu0 }
 0x168   : > { %1581 = vst.msk [vmem:[#allocation2 + $0x30] sm:$0xf] %vm1421_vm0, %v8714_v29  ;;  %v8715_v39 = vpack.c.bf16 %v1330_v30, %v1330_v30  ;;  %v1196_v40 = vmul.f32 %v10016_v11, %v952_v34  ;;  %v954_v41 = vpop.f32.mrb[13].mxu0  ;;  %v2976_v43 = vsel %vm2966_vm1, %v2974_v17, %v2975_v31  ;;  %v2199_v45 = vshll.u32 %v9266_v33, 16 }
 0x169   : > { %v955_v44 = vpop.f32.mrb[14].mxu0  ;;  %3199 = vst.msk [vmem:[#allocation3 + $0x28] sm:$0xff] %vm2679_vm2, %v2976_v43  ;;  %v9286_v47 = vld [vmem:[#allocation2 + $0x28] sm:$0xff]   ;;  %v2196_v48 = vshrl.u32 %v9266_v33, 16  ;;  %v2193_v52 = vor.u32 %v2191_v26, %v2190_v32  ;;  %v2977_v58 = vor.u32 %v2975_v31, %v2188_v25  ;;  %v8218_v30 = vcombine.low %v10079_v27, %v10082_v28 }
 0x16a   : > { %1582 = vst.msk [vmem:[#allocation2 + $0x34] sm:$0xf] %vm1421_vm0, %v8715_v39  ;;  %v1267_v53 = vadd.f32 %v10023_v20, %v1196_v40  ;;  %v1197_v54 = vmul.f32 %v10016_v11, %v955_v44  ;;  %v957_v57 = vpop.f32.mrb[15].mxu0  ;;  %v2978_v60 = vrot.slane %v2199_v45, 1  ;;  %v2204_v61 = vshrl.u32 %v9286_v47, 16 }
 0x16b   : > { %v2207_v62 = vshll.u32 %v9286_v47, 16  ;;  %v2194_v63 = vsel %vm2163_vm3, %v10087_v36, %v2193_v52  ;;  %v2198_v4 = vrot.slane %v2196_v48, 7 }
 0x16c   : > { %v1331_v1 = vmax.f32 %v1267_v53, 0.0  ;;  %v1268_v3 = vadd.f32 %v10023_v20, %v1197_v54  ;;  %1167 = vmatmul.mubr.bf16.gmra.mrb[120].mxu0 %v8216_v35  ;;  %2683 = vst.msk [vmem:[#allocation3 + $0x30] sm:$0xff] %vm2679_vm2, %v2194_v63  ;;  %v2979_v5 = vsel %vm2966_vm1, %v2977_v58, %v2978_v60  ;;  %v2206_v6 = vrot.slane %v2204_v61, 7 }
 0x16d   : > { %1174 = vmatprep.mubr.bf16.mxu0 %v8219_v42  ;;  %v2980_v7 = vor.u32 %v2978_v60, %v2196_v48  ;;  %v2981_v9 = vrot.slane %v2207_v62, 1  ;;  %3200 = vst.msk [vmem:[#allocation3 + $0x38] sm:$0xff] %vm2679_vm2, %v2979_v5  ;;  %v2201_v17 = vor.u32 %v2199_v45, %v2198_v4 }
 0x16e   : > { %v8716_v10 = vpack.c.bf16 %v1331_v1, %v1331_v1  ;;  %v1332_v12 = vmax.f32 %v1268_v3, 0.0  ;;  %v2209_v23 = vor.u32 %v2207_v62, %v2206_v6 }
 0x16f   : > { %v960_v18 = vpop.f32.mrb[16].mxu0  ;;  %v2982_v24 = vsel %vm2966_vm1, %v2980_v7, %v2981_v9  ;;  %v2202_v31 = vsel %vm2163_vm3, %v2190_v32, %v2201_v17  ;;  %v2983_v43 = vor.u32 %v2981_v9, %v2204_v61 }
 0x170   : > { %1583 = vst.msk [vmem:[#allocation2 + $0x3c] sm:$0xf] %vm1421_vm0, %v8716_v10  ;;  %v8717_v25 = vpack.c.bf16 %v1332_v12, %v1332_v12  ;;  %v1198_v26 = vmul.f32 %v10016_v11, %v960_v18  ;;  %v962_v29 = vpop.f32.mrb[17].mxu0  ;;  %v2210_v35 = vsel %vm2163_vm3, %v2198_v4, %v2209_v23 }
 0x171   : > { %3201 = vst.msk [vmem:[#allocation3 + $0x48] sm:$0xff] %vm2679_vm2, %v2982_v24  ;;  %v963_v33 = vpop.f32.mrb[18].mxu0  ;;  %v9287_v34 = vld [vmem:[#allocation2 + $0x30] sm:$0xff]   ;;  %2684 = vst.msk [vmem:[#allocation3 + $0x40] sm:$0xff] %vm2679_vm2, %v2202_v31 }
 0x172   : > { %1584 = vst.msk [vmem:[#allocation2 + $0x40] sm:$0xf] %vm1421_vm0, %v8717_v25  ;;  %v1269_v37 = vadd.f32 %v10023_v20, %v1198_v26  ;;  %v1199_v39 = vmul.f32 %v10016_v11, %v963_v33  ;;  %v965_v40 = vpop.f32.mrb[19].mxu0  ;;  %v2212_v27 = vshrl.u32 %v9287_v34, 16  ;;  %v2215_v28 = vshll.u32 %v9287_v34, 16 }
 0x173   : > { %2685 = vst.msk [vmem:[#allocation3 + $0x50] sm:$0xff] %vm2679_vm2, %v2210_v35 }
 0x174   : > { %v1333_v41 = vmax.f32 %v1269_v37, 0.0  ;;  %v1270_v32 = vadd.f32 %v10023_v20, %v1199_v39  ;;  %1175 = vmatmul.mubr.bf16.gmra.mrb[124].mxu0 %v8218_v30  ;;  %v3259_v42 = vld [vmem:[#allocation3 + $0x38] sm:$0xff]  ;;  %v2214_v44 = vrot.slane %v2212_v27, 7  ;;  %v2984_v45 = vrot.slane %v2215_v28, 1 }
 0x175   : > { %8395 = vmatprep.mubr.msk.bf16.mxu0 %vm2679_vm2, %v3259_v42 }
 0x176   : > { %v8718_v47 = vpack.c.bf16 %v1333_v41, %v1333_v41  ;;  %v1334_v48 = vmax.f32 %v1270_v32, 0.0  ;;  %v2217_v52 = vor.u32 %v2215_v28, %v2214_v44  ;;  %v2985_v53 = vsel %vm2966_vm1, %v2983_v43, %v2984_v45 }
 0x177   : > { %v968_v51 = vpop.f32.mrb[20].mxu0  ;;  %v9288_v54 = vld [vmem:[#allocation2 + $0x38] sm:$0xff]   ;;  %3202 = vst.msk [vmem:[#allocation3 + $0x58] sm:$0xff] %vm2679_vm2, %v2985_v53  ;;  %v2986_v9 = vor.u32 %v2984_v45, %v2212_v27 }
 0x178   : > { %1585 = vst.msk [vmem:[#allocation2 + $0x48] sm:$0xf] %vm1421_vm0, %v8718_v47  ;;  %v8719_v57 = vpack.c.bf16 %v1334_v48, %v1334_v48  ;;  %v1200_v58 = vmul.f32 %v10016_v11, %v968_v51  ;;  %v970_v60 = vpop.f32.mrb[21].mxu0  ;;  %v2220_v62 = vshrl.u32 %v9288_v54, 16  ;;  %v2223_v63 = vshll.u32 %v9288_v54, 16 }
 0x179   : > { %v971_v61 = vpop.f32.mrb[22].mxu0  ;;  %v9289_v1 = vld [vmem:[#allocation2 + $0x40] sm:$0xff]   ;;  %v2218_v3 = vsel %vm2163_vm3, %v2206_v6, %v2217_v52 }
 0x17a   : > { %1586 = vst.msk [vmem:[#allocation2 + $0x4c] sm:$0xf] %vm1421_vm0, %v8719_v57  ;;  %v1271_v4 = vadd.f32 %v10023_v20, %v1200_v58  ;;  %v1201_v5 = vmul.f32 %v10016_v11, %v971_v61  ;;  %v973_v7 = vpop.f32.mrb[23].mxu0  ;;  %v2222_v10 = vrot.slane %v2220_v62, 7  ;;  %v2987_v12 = vrot.slane %v2223_v63, 1 }
 0x17b   : > { %2686 = vst.msk [vmem:[#allocation3 + $0x60] sm:$0xff] %vm2679_vm2, %v2218_v3  ;;  %v2228_v17 = vshrl.u32 %v9289_v1, 16  ;;  %v2231_v18 = vshll.u32 %v9289_v1, 16 }
 0x17c   : > { %v1335_v23 = vmax.f32 %v1271_v4, 0.0  ;;  %v1272_v24 = vadd.f32 %v10023_v20, %v1201_v5  ;;  %v2225_v25 = vor.u32 %v2223_v63, %v2222_v10  ;;  %v2988_v6 = vsel %vm2966_vm1, %v2986_v9, %v2987_v12 }
 0x17d   : > { %v2989_v26 = vor.u32 %v2987_v12, %v2220_v62  ;;  %v2230_v29 = vrot.slane %v2228_v17, 7  ;;  %3203 = vst.msk [vmem:[#allocation3 + $0x68] sm:$0xff] %vm2679_vm2, %v2988_v6  ;;  %v2990_v33 = vrot.slane %v2231_v18, 1 }
 0x17e   : > { %v8720_v30 = vpack.c.bf16 %v1335_v23, %v1335_v23  ;;  %v1336_v31 = vmax.f32 %v1272_v24, 0.0  ;;  %v2226_v37 = vsel %vm2163_vm3, %v2214_v44, %v2225_v25 }
 0x17f   : > { %v976_v34 = vpop.f32.mrb[24].mxu0  ;;  %v2233_v35 = vor.u32 %v2231_v18, %v2230_v29  ;;  %v2991_v28 = vsel %vm2966_vm1, %v2989_v26, %v2990_v33  ;;  %2687 = vst.msk [vmem:[#allocation3 + $0x70] sm:$0xff] %vm2679_vm2, %v2226_v37  ;;  %v2992_v53 = vor.u32 %v2990_v33, %v2228_v17 }
 0x180   : > { %1587 = vst.msk [vmem:[#allocation2 + $0x54] sm:$0xf] %vm1421_vm0, %v8720_v30  ;;  %v8721_v39 = vpack.c.bf16 %v1336_v31, %v1336_v31  ;;  %v1202_v40 = vmul.f32 %v10016_v11, %v976_v34  ;;  %v978_v27 = vpop.f32.mrb[25].mxu0 }
 0x181   : > { %v979_v41 = vpop.f32.mrb[26].mxu0  ;;  %3204 = vst.msk [vmem:[#allocation3 + $0x78] sm:$0xff] %vm2679_vm2, %v2991_v28  ;;  %v9290_v32 = vld [vmem:[#allocation2 + $0x48] sm:$0xff]   ;;  %v2234_v42 = vsel %vm2163_vm3, %v2222_v10, %v2233_v35 }
 0x182   : > { %1588 = vst.msk [vmem:[#allocation2 + $0x58] sm:$0xf] %vm1421_vm0, %v8721_v39  ;;  %v1273_v43 = vadd.f32 %v10023_v20, %v1202_v40  ;;  %v1203_v44 = vmul.f32 %v10016_v11, %v979_v41  ;;  %v981_v45 = vpop.f32.mrb[27].mxu0  ;;  %v2236_v47 = vshrl.u32 %v9290_v32, 16  ;;  %v2239_v48 = vshll.u32 %v9290_v32, 16 }
 0x183   : > { %2688 = vst.msk [vmem:[#allocation3 + $0x80] sm:$0xff] %vm2679_vm2, %v2234_v42 }
 0x184   : > { %v1337_v51 = vmax.f32 %v1273_v43, 0.0  ;;  %v1274_v52 = vadd.f32 %v10023_v20, %v1203_v44  ;;  %v2238_v54 = vrot.slane %v2236_v47, 7  ;;  %v2993_v57 = vrot.slane %v2239_v48, 1 }
 0x186   : > { %v8722_v58 = vpack.c.bf16 %v1337_v51, %v1337_v51  ;;  %v1338_v60 = vmax.f32 %v1274_v52, 0.0  ;;  %v2241_v62 = vor.u32 %v2239_v48, %v2238_v54  ;;  %v2994_v63 = vsel %vm2966_vm1, %v2992_v53, %v2993_v57 }
 0x187   : > { %v984_v61 = vpop.f32.mrb[28].mxu0  ;;  %v9291_v1 = vld [vmem:[#allocation2 + $0x50] sm:$0xff]   ;;  %3205 = vst.msk [vmem:[#allocation3 + $0x88] sm:$0xff] %vm2679_vm2, %v2994_v63  ;;  %v2995_v25 = vor.u32 %v2993_v57, %v2236_v47 }
 0x188   : > { %1589 = vst.msk [vmem:[#allocation2 + $0x60] sm:$0xf] %vm1421_vm0, %v8722_v58  ;;  %v8723_v3 = vpack.c.bf16 %v1338_v60, %v1338_v60  ;;  %v1204_v4 = vmul.f32 %v10016_v11, %v984_v61  ;;  %v986_v5 = vpop.f32.mrb[29].mxu0  ;;  %v2244_v9 = vshrl.u32 %v9291_v1, 16  ;;  %v2247_v10 = vshll.u32 %v9291_v1, 16 }
 0x189   : > { %v987_v7 = vpop.f32.mrb[30].mxu0  ;;  %v9292_v12 = vld [vmem:[#allocation2 + $0x58] sm:$0xff]   ;;  %v2242_v17 = vsel %vm2163_vm3, %v2230_v29, %v2241_v62 }
 0x18a   : > { %1590 = vst.msk [vmem:[#allocation2 + $0x64] sm:$0xf] %vm1421_vm0, %v8723_v3  ;;  %v1275_v18 = vadd.f32 %v10023_v20, %v1204_v4  ;;  %v1205_v23 = vmul.f32 %v10016_v11, %v987_v7  ;;  %v989_v24 = vpop.f32.mrb[31].mxu0  ;;  %v2246_v6 = vrot.slane %v2244_v9, 7  ;;  %v2996_v26 = vrot.slane %v2247_v10, 1 }
 0x18b   : > { %2689 = vst.msk [vmem:[#allocation3 + $0x90] sm:$0xff] %vm2679_vm2, %v2242_v17  ;;  %v2252_v30 = vshrl.u32 %v9292_v12, 16  ;;  %v2255_v31 = vshll.u32 %v9292_v12, 16 }
 0x18c   : > { %v1339_v33 = vmax.f32 %v1275_v18, 0.0  ;;  %v1276_v34 = vadd.f32 %v10023_v20, %v1205_v23  ;;  %v2249_v35 = vor.u32 %v2247_v10, %v2246_v6  ;;  %v2997_v29 = vsel %vm2966_vm1, %v2995_v25, %v2996_v26 }
 0x18d   : > { %v2998_v37 = vor.u32 %v2996_v26, %v2244_v9  ;;  %v2254_v39 = vrot.slane %v2252_v30, 7  ;;  %3206 = vst.msk [vmem:[#allocation3 + $0x98] sm:$0xff] %vm2679_vm2, %v2997_v29  ;;  %v2999_v28 = vrot.slane %v2255_v31, 1 }
 0x18e   : > { %v8724_v40 = vpack.c.bf16 %v1339_v33, %v1339_v33  ;;  %v1340_v27 = vmax.f32 %v1276_v34, 0.0  ;;  %v2250_v42 = vsel %vm2163_vm3, %v2238_v54, %v2249_v35 }
 0x18f   : > { %v992_v41 = vpop.f32.mrb[32].mxu0  ;;  %v2257_v32 = vor.u32 %v2255_v31, %v2254_v39  ;;  %v3000_v47 = vsel %vm2966_vm1, %v2998_v37, %v2999_v28  ;;  %2690 = vst.msk [vmem:[#allocation3 + $0xa0] sm:$0xff] %vm2679_vm2, %v2250_v42  ;;  %v3001_v63 = vor.u32 %v2999_v28, %v2252_v30 }
 0x190   : > { %1591 = vst.msk [vmem:[#allocation2 + $0x6c] sm:$0xf] %vm1421_vm0, %v8724_v40  ;;  %v8725_v43 = vpack.c.bf16 %v1340_v27, %v1340_v27  ;;  %v1206_v44 = vmul.f32 %v10016_v11, %v992_v41  ;;  %v994_v45 = vpop.f32.mrb[33].mxu0 }
 0x191   : > { %v995_v48 = vpop.f32.mrb[34].mxu0  ;;  %3207 = vst.msk [vmem:[#allocation3 + $0xa8] sm:$0xff] %vm2679_vm2, %v3000_v47  ;;  %v9293_v51 = vld [vmem:[#allocation2 + $0x60] sm:$0xff]   ;;  %v2258_v52 = vsel %vm2163_vm3, %v2246_v6, %v2257_v32 }
 0x192   : > { %1592 = vst.msk [vmem:[#allocation2 + $0x70] sm:$0xf] %vm1421_vm0, %v8725_v43  ;;  %v1277_v53 = vadd.f32 %v10023_v20, %v1206_v44  ;;  %v1207_v54 = vmul.f32 %v10016_v11, %v995_v48  ;;  %v997_v57 = vpop.f32.mrb[35].mxu0  ;;  %v2260_v58 = vshrl.u32 %v9293_v51, 16  ;;  %v2263_v60 = vshll.u32 %v9293_v51, 16 }
 0x193   : > { %2691 = vst.msk [vmem:[#allocation3 + $0xb0] sm:$0xff] %vm2679_vm2, %v2258_v52 }
 0x194   : > { %v1341_v61 = vmax.f32 %v1277_v53, 0.0  ;;  %v1278_v62 = vadd.f32 %v10023_v20, %v1207_v54  ;;  %v2262_v1 = vrot.slane %v2260_v58, 7  ;;  %v3002_v3 = vrot.slane %v2263_v60, 1 }
 0x196   : > { %v8726_v4 = vpack.c.bf16 %v1341_v61, %v1341_v61  ;;  %v1342_v5 = vmax.f32 %v1278_v62, 0.0  ;;  %v2265_v9 = vor.u32 %v2263_v60, %v2262_v1  ;;  %v3003_v10 = vsel %vm2966_vm1, %v3001_v63, %v3002_v3 }
 0x197   : > { %v1000_v7 = vpop.f32.mrb[36].mxu0  ;;  %v9294_v12 = vld [vmem:[#allocation2 + $0x68] sm:$0xff]   ;;  %3208 = vst.msk [vmem:[#allocation3 + $0xb8] sm:$0xff] %vm2679_vm2, %v3003_v10  ;;  %v3004_v35 = vor.u32 %v3002_v3, %v2260_v58 }
 0x198   : > { %1593 = vst.msk [vmem:[#allocation2 + $0x78] sm:$0xf] %vm1421_vm0, %v8726_v4  ;;  %v8727_v17 = vpack.c.bf16 %v1342_v5, %v1342_v5  ;;  %v1208_v18 = vmul.f32 %v10016_v11, %v1000_v7  ;;  %v1002_v23 = vpop.f32.mrb[37].mxu0  ;;  %v2268_v25 = vshrl.u32 %v9294_v12, 16  ;;  %v2271_v6 = vshll.u32 %v9294_v12, 16 }
 0x199   : > { %v1003_v24 = vpop.f32.mrb[38].mxu0  ;;  %v9295_v26 = vld [vmem:[#allocation2 + $0x70] sm:$0xff]   ;;  %v2266_v30 = vsel %vm2163_vm3, %v2254_v39, %v2265_v9 }
 0x19a   : > { %1594 = vst.msk [vmem:[#allocation2 + $0x7c] sm:$0xf] %vm1421_vm0, %v8727_v17  ;;  %v1279_v31 = vadd.f32 %v10023_v20, %v1208_v18  ;;  %v1209_v33 = vmul.f32 %v10016_v11, %v1003_v24  ;;  %v1005_v34 = vpop.f32.mrb[39].mxu0  ;;  %v2270_v29 = vrot.slane %v2268_v25, 7  ;;  %v3005_v37 = vrot.slane %v2271_v6, 1 }
 0x19b   : > { %2692 = vst.msk [vmem:[#allocation3 + $0xc0] sm:$0xff] %vm2679_vm2, %v2266_v30  ;;  %v2276_v40 = vshrl.u32 %v9295_v26, 16  ;;  %v2279_v27 = vshll.u32 %v9295_v26, 16 }
 0x19c   : > { %v1343_v28 = vmax.f32 %v1279_v31, 0.0  ;;  %v1280_v41 = vadd.f32 %v10023_v20, %v1209_v33  ;;  %v2273_v32 = vor.u32 %v2271_v6, %v2270_v29  ;;  %v3006_v39 = vsel %vm2966_vm1, %v3004_v35, %v3005_v37 }
 0x19d   : > { %v3007_v42 = vor.u32 %v3005_v37, %v2268_v25  ;;  %v2278_v43 = vrot.slane %v2276_v40, 7  ;;  %3209 = vst.msk [vmem:[#allocation3 + $0xc8] sm:$0xff] %vm2679_vm2, %v3006_v39  ;;  %v3008_v47 = vrot.slane %v2279_v27, 1 }
 0x19e   : > { %v8728_v44 = vpack.c.bf16 %v1343_v28, %v1343_v28  ;;  %v1344_v45 = vmax.f32 %v1280_v41, 0.0  ;;  %v2274_v52 = vsel %vm2163_vm3, %v2262_v1, %v2273_v32 }
 0x19f   : > { %v1008_v48 = vpop.f32.mrb[40].mxu0  ;;  %v2281_v51 = vor.u32 %v2279_v27, %v2278_v43  ;;  %v3009_v58 = vsel %vm2966_vm1, %v3007_v42, %v3008_v47  ;;  %2693 = vst.msk [vmem:[#allocation3 + $0xd0] sm:$0xff] %vm2679_vm2, %v2274_v52  ;;  %v3010_v10 = vor.u32 %v3008_v47, %v2276_v40 }
 0x1a0   : > { %1595 = vst.msk [vmem:[#allocation2 + $0x84] sm:$0xf] %vm1421_vm0, %v8728_v44  ;;  %v8729_v53 = vpack.c.bf16 %v1344_v45, %v1344_v45  ;;  %v1210_v54 = vmul.f32 %v10016_v11, %v1008_v48  ;;  %v1010_v57 = vpop.f32.mrb[41].mxu0 }
 0x1a1   : > { %v1011_v60 = vpop.f32.mrb[42].mxu0  ;;  %3210 = vst.msk [vmem:[#allocation3 + $0xd8] sm:$0xff] %vm2679_vm2, %v3009_v58  ;;  %v9296_v61 = vld [vmem:[#allocation2 + $0x78] sm:$0xff]   ;;  %v2282_v62 = vsel %vm2163_vm3, %v2270_v29, %v2281_v51 }
 0x1a2   : > { %1596 = vst.msk [vmem:[#allocation2 + $0x88] sm:$0xf] %vm1421_vm0, %v8729_v53  ;;  %v1281_v63 = vadd.f32 %v10023_v20, %v1210_v54  ;;  %v1211_v1 = vmul.f32 %v10016_v11, %v1011_v60  ;;  %v1013_v3 = vpop.f32.mrb[43].mxu0  ;;  %v2284_v4 = vshrl.u32 %v9296_v61, 16  ;;  %v2287_v5 = vshll.u32 %v9296_v61, 16 }
 0x1a3   : > { %2694 = vst.msk [vmem:[#allocation3 + $0xe0] sm:$0xff] %vm2679_vm2, %v2282_v62 }
 0x1a4   : > { %v1345_v7 = vmax.f32 %v1281_v63, 0.0  ;;  %v1282_v9 = vadd.f32 %v10023_v20, %v1211_v1  ;;  %v2286_v12 = vrot.slane %v2284_v4, 7  ;;  %v3011_v17 = vrot.slane %v2287_v5, 1 }
 0x1a6   : > { %v8730_v18 = vpack.c.bf16 %v1345_v7, %v1345_v7  ;;  %v1346_v23 = vmax.f32 %v1282_v9, 0.0  ;;  %v2289_v25 = vor.u32 %v2287_v5, %v2286_v12  ;;  %v3012_v6 = vsel %vm2966_vm1, %v3010_v10, %v3011_v17 }
 0x1a7   : > { %v1016_v24 = vpop.f32.mrb[44].mxu0  ;;  %v9297_v26 = vld [vmem:[#allocation2 + $0x80] sm:$0xff]   ;;  %3211 = vst.msk [vmem:[#allocation3 + $0xe8] sm:$0xff] %vm2679_vm2, %v3012_v6  ;;  %v3013_v32 = vor.u32 %v3011_v17, %v2284_v4 }
 0x1a8   : > { %1597 = vst.msk [vmem:[#allocation2 + $0x90] sm:$0xf] %vm1421_vm0, %v8730_v18  ;;  %v8731_v30 = vpack.c.bf16 %v1346_v23, %v1346_v23  ;;  %v1212_v31 = vmul.f32 %v10016_v11, %v1016_v24  ;;  %v1018_v33 = vpop.f32.mrb[45].mxu0  ;;  %v2292_v35 = vshrl.u32 %v9297_v26, 16  ;;  %v2295_v29 = vshll.u32 %v9297_v26, 16 }
 0x1a9   : > { %v1019_v34 = vpop.f32.mrb[46].mxu0  ;;  %v9298_v37 = vld [vmem:[#allocation2 + $0x88] sm:$0xff]   ;;  %v2290_v40 = vsel %vm2163_vm3, %v2278_v43, %v2289_v25 }
 0x1aa   : > { %1598 = vst.msk [vmem:[#allocation2 + $0x94] sm:$0xf] %vm1421_vm0, %v8731_v30  ;;  %v1283_v27 = vadd.f32 %v10023_v20, %v1212_v31  ;;  %v1213_v28 = vmul.f32 %v10016_v11, %v1019_v34  ;;  %v1021_v41 = vpop.f32.mrb[47].mxu0  ;;  %v2294_v39 = vrot.slane %v2292_v35, 7  ;;  %v3014_v42 = vrot.slane %v2295_v29, 1 }
 0x1ab   : > { %2695 = vst.msk [vmem:[#allocation3 + $0xf0] sm:$0xff] %vm2679_vm2, %v2290_v40  ;;  %v2300_v44 = vshrl.u32 %v9298_v37, 16  ;;  %v2303_v45 = vshll.u32 %v9298_v37, 16 }
 0x1ac   : > { %v1347_v47 = vmax.f32 %v1283_v27, 0.0  ;;  %v1284_v48 = vadd.f32 %v10023_v20, %v1213_v28  ;;  %v2297_v51 = vor.u32 %v2295_v29, %v2294_v39  ;;  %v3015_v43 = vsel %vm2966_vm1, %v3013_v32, %v3014_v42 }
 0x1ad   : > { %v3016_v52 = vor.u32 %v3014_v42, %v2292_v35  ;;  %v2302_v53 = vrot.slane %v2300_v44, 7  ;;  %3212 = vst.msk [vmem:[#allocation3 + $0xf8] sm:$0xff] %vm2679_vm2, %v3015_v43  ;;  %v3017_v58 = vrot.slane %v2303_v45, 1 }
 0x1ae   : > { %v8732_v54 = vpack.c.bf16 %v1347_v47, %v1347_v47  ;;  %v1348_v57 = vmax.f32 %v1284_v48, 0.0  ;;  %v2298_v62 = vsel %vm2163_vm3, %v2286_v12, %v2297_v51 }
 0x1af   : > { %v1024_v60 = vpop.f32.mrb[48].mxu0  ;;  %v2305_v61 = vor.u32 %v2303_v45, %v2302_v53  ;;  %v3018_v4 = vsel %vm2966_vm1, %v3016_v52, %v3017_v58  ;;  %2696 = vst.msk [vmem:[#allocation3 + $0x100] sm:$0xff] %vm2679_vm2, %v2298_v62  ;;  %v3019_v6 = vor.u32 %v3017_v58, %v2300_v44 }
 0x1b0   : > { %1599 = vst.msk [vmem:[#allocation2 + $0x9c] sm:$0xf] %vm1421_vm0, %v8732_v54  ;;  %v8733_v63 = vpack.c.bf16 %v1348_v57, %v1348_v57  ;;  %v1214_v1 = vmul.f32 %v10016_v11, %v1024_v60  ;;  %v1026_v3 = vpop.f32.mrb[49].mxu0 }
 0x1b1   : > { %v1027_v5 = vpop.f32.mrb[50].mxu0  ;;  %3213 = vst.msk [vmem:[#allocation3 + $0x108] sm:$0xff] %vm2679_vm2, %v3018_v4  ;;  %v9299_v7 = vld [vmem:[#allocation2 + $0x90] sm:$0xff]   ;;  %v2306_v9 = vsel %vm2163_vm3, %v2294_v39, %v2305_v61 }
 0x1b2   : > { %1600 = vst.msk [vmem:[#allocation2 + $0xa0] sm:$0xf] %vm1421_vm0, %v8733_v63  ;;  %v1285_v10 = vadd.f32 %v10023_v20, %v1214_v1  ;;  %v1215_v12 = vmul.f32 %v10016_v11, %v1027_v5  ;;  %v1029_v17 = vpop.f32.mrb[51].mxu0  ;;  %v2308_v18 = vshrl.u32 %v9299_v7, 16  ;;  %v2311_v23 = vshll.u32 %v9299_v7, 16 }
 0x1b3   : > { %2697 = vst.msk [vmem:[#allocation3 + $0x110] sm:$0xff] %vm2679_vm2, %v2306_v9 }
 0x1b4   : > { %v1349_v24 = vmax.f32 %v1285_v10, 0.0  ;;  %v1286_v25 = vadd.f32 %v10023_v20, %v1215_v12  ;;  %v2310_v26 = vrot.slane %v2308_v18, 7  ;;  %v3020_v30 = vrot.slane %v2311_v23, 1 }
 0x1b6   : > { %v8734_v31 = vpack.c.bf16 %v1349_v24, %v1349_v24  ;;  %v1350_v33 = vmax.f32 %v1286_v25, 0.0  ;;  %v2313_v35 = vor.u32 %v2311_v23, %v2310_v26  ;;  %v3021_v29 = vsel %vm2966_vm1, %v3019_v6, %v3020_v30 }
 0x1b7   : > { %v1032_v34 = vpop.f32.mrb[52].mxu0  ;;  %v9300_v37 = vld [vmem:[#allocation2 + $0x98] sm:$0xff]   ;;  %3214 = vst.msk [vmem:[#allocation3 + $0x118] sm:$0xff] %vm2679_vm2, %v3021_v29  ;;  %v3022_v51 = vor.u32 %v3020_v30, %v2308_v18 }
 0x1b8   : > { %1601 = vst.msk [vmem:[#allocation2 + $0xa8] sm:$0xf] %vm1421_vm0, %v8734_v31  ;;  %v8735_v40 = vpack.c.bf16 %v1350_v33, %v1350_v33  ;;  %v1216_v27 = vmul.f32 %v10016_v11, %v1032_v34  ;;  %v1034_v28 = vpop.f32.mrb[53].mxu0  ;;  %v2316_v32 = vshrl.u32 %v9300_v37, 16  ;;  %v2319_v39 = vshll.u32 %v9300_v37, 16 }
 0x1b9   : > { %v1035_v41 = vpop.f32.mrb[54].mxu0  ;;  %v9301_v42 = vld [vmem:[#allocation2 + $0xa0] sm:$0xff]   ;;  %v2314_v44 = vsel %vm2163_vm3, %v2302_v53, %v2313_v35 }
 0x1ba   : > { %1602 = vst.msk [vmem:[#allocation2 + $0xac] sm:$0xf] %vm1421_vm0, %v8735_v40  ;;  %v1287_v45 = vadd.f32 %v10023_v20, %v1216_v27  ;;  %v1217_v47 = vmul.f32 %v10016_v11, %v1035_v41  ;;  %v1037_v48 = vpop.f32.mrb[55].mxu0  ;;  %v2318_v43 = vrot.slane %v2316_v32, 7  ;;  %v3023_v52 = vrot.slane %v2319_v39, 1 }
 0x1bb   : > { %2698 = vst.msk [vmem:[#allocation3 + $0x120] sm:$0xff] %vm2679_vm2, %v2314_v44  ;;  %v2324_v54 = vshrl.u32 %v9301_v42, 16  ;;  %v2327_v57 = vshll.u32 %v9301_v42, 16 }
 0x1bc   : > { %v1351_v58 = vmax.f32 %v1287_v45, 0.0  ;;  %v1288_v60 = vadd.f32 %v10023_v20, %v1217_v47  ;;  %v2321_v61 = vor.u32 %v2319_v39, %v2318_v43  ;;  %v3024_v53 = vsel %vm2966_vm1, %v3022_v51, %v3023_v52 }
 0x1bd   : > { %v3025_v62 = vor.u32 %v3023_v52, %v2316_v32  ;;  %v2326_v63 = vrot.slane %v2324_v54, 7  ;;  %3215 = vst.msk [vmem:[#allocation3 + $0x128] sm:$0xff] %vm2679_vm2, %v3024_v53  ;;  %v3026_v4 = vrot.slane %v2327_v57, 1 }
 0x1be   : > { %v8736_v1 = vpack.c.bf16 %v1351_v58, %v1351_v58  ;;  %v1352_v3 = vmax.f32 %v1288_v60, 0.0  ;;  %v2322_v9 = vsel %vm2163_vm3, %v2310_v26, %v2321_v61 }
 0x1bf   : > { %v1040_v5 = vpop.f32.mrb[56].mxu0  ;;  %v2329_v7 = vor.u32 %v2327_v57, %v2326_v63  ;;  %v3027_v18 = vsel %vm2966_vm1, %v3025_v62, %v3026_v4  ;;  %2699 = vst.msk [vmem:[#allocation3 + $0x130] sm:$0xff] %vm2679_vm2, %v2322_v9  ;;  %v3028_v29 = vor.u32 %v3026_v4, %v2324_v54 }
 0x1c0   : > { %1603 = vst.msk [vmem:[#allocation2 + $0xb4] sm:$0xf] %vm1421_vm0, %v8736_v1  ;;  %v8737_v10 = vpack.c.bf16 %v1352_v3, %v1352_v3  ;;  %v1218_v12 = vmul.f32 %v10016_v11, %v1040_v5  ;;  %v1042_v17 = vpop.f32.mrb[57].mxu0 }
 0x1c1   : > { %v1043_v23 = vpop.f32.mrb[58].mxu0  ;;  %3216 = vst.msk [vmem:[#allocation3 + $0x138] sm:$0xff] %vm2679_vm2, %v3027_v18  ;;  %v9303_v24 = vld [vmem:[#allocation2 + $0xa8] sm:$0xff]   ;;  %v2330_v25 = vsel %vm2163_vm3, %v2318_v43, %v2329_v7 }
 0x1c2   : > { %1604 = vst.msk [vmem:[#allocation2 + $0xb8] sm:$0xf] %vm1421_vm0, %v8737_v10  ;;  %v1289_v6 = vadd.f32 %v10023_v20, %v1218_v12  ;;  %v1219_v26 = vmul.f32 %v10016_v11, %v1043_v23  ;;  %v1045_v30 = vpop.f32.mrb[59].mxu0  ;;  %v2332_v31 = vshrl.u32 %v9303_v24, 16  ;;  %v2335_v33 = vshll.u32 %v9303_v24, 16 }
 0x1c3   : > { %2700 = vst.msk [vmem:[#allocation3 + $0x140] sm:$0xff] %vm2679_vm2, %v2330_v25 }
 0x1c4   : > { %v1353_v34 = vmax.f32 %v1289_v6, 0.0  ;;  %v1290_v35 = vadd.f32 %v10023_v20, %v1219_v26  ;;  %v2334_v37 = vrot.slane %v2332_v31, 7  ;;  %v3029_v40 = vrot.slane %v2335_v33, 1 }
 0x1c6   : > { %v8738_v27 = vpack.c.bf16 %v1353_v34, %v1353_v34  ;;  %v1354_v28 = vmax.f32 %v1290_v35, 0.0  ;;  %v2337_v32 = vor.u32 %v2335_v33, %v2334_v37  ;;  %v3030_v39 = vsel %vm2966_vm1, %v3028_v29, %v3029_v40  ;;  %v10276_v35 = vld [vmem:[%s12358_s3] ss:$0 sm:$0xff] }
 0x1c7   : > { %v1048_v41 = vpop.f32.mrb[60].mxu0  ;;  %v9304_v42 = vld [vmem:[#allocation2 + $0xb0] sm:$0xff]   ;;  %3217 = vst.msk [vmem:[#allocation3 + $0x148] sm:$0xff] %vm2679_vm2, %v3030_v39  ;;  %v3031_v61 = vor.u32 %v3029_v40, %v2332_v31 }
 0x1c8   : > { %1605 = vst.msk [vmem:[#allocation2 + $0xc0] sm:$0xf] %vm1421_vm0, %v8738_v27  ;;  %v8739_v44 = vpack.c.bf16 %v1354_v28, %v1354_v28  ;;  %v1220_v45 = vmul.f32 %v10016_v11, %v1048_v41  ;;  %v1050_v47 = vpop.f32.mrb[61].mxu0  ;;  %v2340_v51 = vshrl.u32 %v9304_v42, 16  ;;  %v2343_v43 = vshll.u32 %v9304_v42, 16 }
 0x1c9   : > { %v1051_v48 = vpop.f32.mrb[62].mxu0  ;;  %v9306_v52 = vld [vmem:[#allocation2 + $0xb8] sm:$0xff]   ;;  %v2338_v54 = vsel %vm2163_vm3, %v2326_v63, %v2337_v32 }
 0x1ca   : > { %1606 = vst.msk [vmem:[#allocation2 + $0xc4] sm:$0xf] %vm1421_vm0, %v8739_v44  ;;  %v1291_v57 = vadd.f32 %v10023_v20, %v1220_v45  ;;  %v1221_v58 = vmul.f32 %v10016_v11, %v1051_v48  ;;  %v1053_v60 = vpop.f32.mrb[63].mxu0  ;;  %v2342_v53 = vrot.slane %v2340_v51, 7  ;;  %v3032_v62 = vrot.slane %v2343_v43, 1  ;;  %v9404_v50 = vld [vmem:[#allocation2 + $0xb8] sm:$0xff]  }
 0x1cb   : > { %2701 = vst.msk [vmem:[#allocation3 + $0x150] sm:$0xff] %vm2679_vm2, %v2338_v54  ;;  %v2348_v1 = vshrl.u32 %v9306_v52, 16  ;;  %v2351_v3 = vshll.u32 %v9306_v52, 16  ;;  %v10284_v48 = vrot.slane %v2380_v55, 7 }
 0x1cc   : > { %v1355_v4 = vmax.f32 %v1291_v57, 0.0  ;;  %v1292_v5 = vadd.f32 %v10023_v20, %v1221_v58  ;;  %v2345_v7 = vor.u32 %v2343_v43, %v2342_v53  ;;  %v3033_v63 = vsel %vm2966_vm1, %v3031_v61, %v3032_v62  ;;  %v10265_v20 = vld [vmem:[%s12357_s2] ss:$0 sm:$0xff] }
 0x1cd   : > { %v3034_v9 = vor.u32 %v3032_v62, %v2340_v51  ;;  %v2350_v10 = vrot.slane %v2348_v1, 7  ;;  %3218 = vst.msk [vmem:[#allocation3 + $0x158] sm:$0xff] %vm2679_vm2, %v3033_v63  ;;  %v3035_v11 = vrot.slane %v2351_v3, 1  ;;  %v2385_v63 = vor.u32 %v2383_v49, %v10284_v48 }
 0x1ce   : > { %v8740_v12 = vpack.c.bf16 %v1355_v4, %v1355_v4  ;;  %v1356_v17 = vmax.f32 %v1292_v5, 0.0  ;;  %v2346_v24 = vsel %vm2163_vm3, %v2334_v37, %v2345_v7 }
 0x1cf   : > { %v1056_v18 = vpop.f32.mrb[64].mxu0  ;;  %v2353_v23 = vor.u32 %v2351_v3, %v2350_v10  ;;  %v3036_v30 = vsel %vm2966_vm1, %v3034_v9, %v3035_v11  ;;  %2702 = vst.msk [vmem:[#allocation3 + $0x160] sm:$0xff] %vm2679_vm2, %v2346_v24  ;;  %v3037_v39 = vor.u32 %v3035_v11, %v2348_v1 }
 0x1d0   : > { %1607 = vst.msk [vmem:[#allocation2 + $0xcc] sm:$0xf] %vm1421_vm0, %v8740_v12  ;;  %v8741_v25 = vpack.c.bf16 %v1356_v17, %v1356_v17  ;;  %v1222_v6 = vmul.f32 %v10265_v20, %v1056_v18  ;;  %v1058_v26 = vpop.f32.mrb[65].mxu0 }
 0x1d1   : > { %v1059_v31 = vpop.f32.mrb[66].mxu0  ;;  %3219 = vst.msk [vmem:[#allocation3 + $0x168] sm:$0xff] %vm2679_vm2, %v3036_v30  ;;  %v9307_v33 = vld [vmem:[#allocation2 + $0xc0] sm:$0xff]   ;;  %v2354_v34 = vsel %vm2163_vm3, %v2342_v53, %v2353_v23 }
 0x1d2   : > { %1608 = vst.msk [vmem:[#allocation2 + $0xd0] sm:$0xf] %vm1421_vm0, %v8741_v25  ;;  %v1293_v29 = vadd.f32 %v10276_v35, %v1222_v6  ;;  %v1223_v37 = vmul.f32 %v10265_v20, %v1059_v31  ;;  %v1061_v40 = vpop.f32.mrb[67].mxu0  ;;  %v2356_v27 = vshrl.u32 %v9307_v33, 16  ;;  %v2359_v28 = vshll.u32 %v9307_v33, 16  ;;  %v9380_v33 = vld [vmem:[#allocation2 + $0xe8] sm:$0xff]  }
 0x1d3   : > { %2703 = vst.msk [vmem:[#allocation3 + $0x170] sm:$0xff] %vm2679_vm2, %v2354_v34  ;;  %v2396_v34 = vshrl.u32 %v9380_v33, 16 }
 0x1d4   : > { %v1357_v41 = vmax.f32 %v1293_v29, 0.0  ;;  %v1294_v32 = vadd.f32 %v10276_v35, %v1223_v37  ;;  %v2358_v42 = vrot.slane %v2356_v27, 7  ;;  %v3038_v44 = vrot.slane %v2359_v28, 1 }
 0x1d6   : > { %v8742_v45 = vpack.c.bf16 %v1357_v41, %v1357_v41  ;;  %v1358_v47 = vmax.f32 %v1294_v32, 0.0  ;;  %v2361_v43 = vor.u32 %v2359_v28, %v2358_v42  ;;  %v3039_v52 = vsel %vm2966_vm1, %v3037_v39, %v3038_v44 }
 0x1d7   : > { %v1064_v51 = vpop.f32.mrb[68].mxu0  ;;  %v9309_v54 = vld [vmem:[#allocation2 + $0xc8] sm:$0xff]   ;;  %3220 = vst.msk [vmem:[#allocation3 + $0x178] sm:$0xff] %vm2679_vm2, %v3039_v52  ;;  %v3040_v7 = vor.u32 %v3038_v44, %v2356_v27  ;;  %v3055_v52 = vor.u32 %v10093_v38, %v2396_v34 }
 0x1d8   : > { %1727 = vst.msk [vmem:[#allocation2 + $0xf0] sm:$0xf] %vm1421_vm0, %v8742_v45  ;;  %v8743_v57 = vpack.c.bf16 %v1358_v47, %v1358_v47  ;;  %v1224_v58 = vmul.f32 %v10265_v20, %v1064_v51  ;;  %v1066_v60 = vpop.f32.mrb[69].mxu0  ;;  %v2364_v53 = vshrl.u32 %v9309_v54, 16  ;;  %v2367_v62 = vshll.u32 %v9309_v54, 16  ;;  %v9406_v2 = vld [vmem:[#allocation2 + $0xc8] sm:$0xff]  }
 0x1d9   : > { %v1067_v61 = vpop.f32.mrb[70].mxu0  ;;  %v9310_v1 = vld [vmem:[#allocation2 + $0xd0] sm:$0xff]   ;;  %v2362_v55 = vsel %vm2163_vm3, %v2350_v10, %v2361_v43 }
 0x1da   : > { %1728 = vst.msk [vmem:[#allocation2 + $0xf4] sm:$0xf] %vm1421_vm0, %v8743_v57  ;;  %v1295_v3 = vadd.f32 %v10276_v35, %v1224_v58  ;;  %v1225_v4 = vmul.f32 %v10265_v20, %v1067_v61  ;;  %v1069_v5 = vpop.f32.mrb[71].mxu0  ;;  %v2366_v9 = vrot.slane %v2364_v53, 7  ;;  %v3041_v12 = vrot.slane %v2367_v62, 1 }
 0x1db   : > { %2704 = vst.msk [vmem:[#allocation3 + $0x180] sm:$0xff] %vm2679_vm2, %v2362_v55  ;;  %v2372_v17 = vshrl.u32 %v9310_v1, 16  ;;  %v2375_v11 = vshll.u32 %v9310_v1, 16  ;;  %v10319_v61 = vrot.slane %v2396_v34, 7 }
 0x1dc   : > { %v1359_v18 = vmax.f32 %v1295_v3, 0.0  ;;  %v1296_v10 = vadd.f32 %v10276_v35, %v1225_v4  ;;  %v2369_v23 = vor.u32 %v2367_v62, %v2366_v9  ;;  %v3042_v24 = vsel %vm2966_vm1, %v3040_v7, %v3041_v12 }
 0x1dd   : > { %v3043_v25 = vor.u32 %v3041_v12, %v2364_v53  ;;  %v2374_v6 = vrot.slane %v2372_v17, 7  ;;  %3221 = vst.msk [vmem:[#allocation3 + $0x188] sm:$0xff] %vm2679_vm2, %v3042_v24  ;;  %v3044_v46 = vrot.slane %v2375_v11, 1 }
 0x1de   : > { %v8744_v26 = vpack.c.bf16 %v1359_v18, %v1359_v18  ;;  %v1360_v30 = vmax.f32 %v1296_v10, 0.0  ;;  %v2370_v29 = vsel %vm2163_vm3, %v2358_v42, %v2369_v23 }
 0x1df   : > { %v1072_v49 = vpop.f32.mrb[72].mxu0  ;;  %v2377_v31 = vor.u32 %v2375_v11, %v2374_v6  ;;  %v2386_v37 = vsel %vm2163_vm3, %v2374_v6, %v2385_v63  ;;  %v3045_v41 = vsel %vm2966_vm1, %v3043_v25, %v3044_v46  ;;  %v3046_v32 = vor.u32 %v3044_v46, %v2372_v17  ;;  %2705 = vst.msk [vmem:[#allocation3 + $0x190] sm:$0xff] %vm2679_vm2, %v2370_v29 }
 0x1e0   : > { %1729 = vst.msk [vmem:[#allocation2 + $0xfc] sm:$0xf] %vm1421_vm0, %v8744_v26  ;;  %v8745_v40 = vpack.c.bf16 %v1360_v30, %v1360_v30  ;;  %v1226_v27 = vmul.f32 %v10265_v20, %v1072_v49  ;;  %v1074_v28 = vpop.f32.mrb[73].mxu0 }
 0x1e1   : > { %2707 = vst.msk [vmem:[#allocation3 + $0x1b0] sm:$0xff] %vm2679_vm2, %v2386_v37  ;;  %v1075_v39 = vpop.f32.mrb[74].mxu0  ;;  %3222 = vst.msk [vmem:[#allocation3 + $0x198] sm:$0xff] %vm2679_vm2, %v3045_v41  ;;  %v9316_v44 = vld [vmem:[#allocation2 + $0xf0] sm:$0xff]   ;;  %v2378_v42 = vsel %vm2163_vm3, %v2366_v9, %v2377_v31  ;;  %v3048_v43 = vsel %vm2966_vm1, %v3046_v32, %v10051_v56 }
 0x1e2   : > { %1730 = vst.msk [vmem:[#allocation2 + $0x100] sm:$0xf] %vm1421_vm0, %v8745_v40  ;;  %v1297_v45 = vadd.f32 %v10276_v35, %v1226_v27  ;;  %v1227_v47 = vmul.f32 %v10265_v20, %v1075_v39  ;;  %v1077_v51 = vpop.f32.mrb[75].mxu0  ;;  %v2404_v54 = vshrl.u32 %v9316_v44, 16  ;;  %v2407_v57 = vshll.u32 %v9316_v44, 16 }
 0x1e3   : > { %2706 = vst.msk [vmem:[#allocation3 + $0x1a0] sm:$0xff] %vm2679_vm2, %v2378_v42  ;;  %3223 = vst.msk [vmem:[#allocation3 + $0x1a8] sm:$0xff] %vm2679_vm2, %v3048_v43 }
 0x1e4   : > { %v1361_v58 = vmax.f32 %v1297_v45, 0.0  ;;  %v1298_v60 = vadd.f32 %v10276_v35, %v1227_v47  ;;  %v2406_v53 = vrot.slane %v2404_v54, 7  ;;  %v3056_v62 = vrot.slane %v2407_v57, 1 }
 0x1e6   : > { %v8746_v1 = vpack.c.bf16 %v1361_v58, %v1361_v58  ;;  %v1362_v55 = vmax.f32 %v1298_v60, 0.0  ;;  %v2409_v4 = vor.u32 %v2407_v57, %v2406_v53  ;;  %v3057_v56 = vsel %vm2966_vm1, %v3055_v52, %v3056_v62 }
 0x1e7   : > { %v1080_v3 = vpop.f32.mrb[76].mxu0  ;;  %v9318_v5 = vld [vmem:[#allocation2 + $0xf8] sm:$0xff]   ;;  %3226 = vst.msk [vmem:[#allocation3 + $0x1d8] sm:$0xff] %vm2679_vm2, %v3057_v56  ;;  %v3058_v25 = vor.u32 %v3056_v62, %v2404_v54 }
 0x1e8   : > { %1731 = vst.msk [vmem:[#allocation2 + $0x108] sm:$0xf] %vm1421_vm0, %v8746_v1  ;;  %v8747_v7 = vpack.c.bf16 %v1362_v55, %v1362_v55  ;;  %v1228_v38 = vmul.f32 %v10265_v20, %v1080_v3  ;;  %v1082_v63 = vpop.f32.mrb[77].mxu0  ;;  %v2412_v12 = vshrl.u32 %v9318_v5, 16  ;;  %v2415_v17 = vshll.u32 %v9318_v5, 16  ;;  %v10346_v55 = vld [vmem:[#allocation2 + $0x1b0] sm:$0xff]  }
 0x1e9   : > { %v1083_v9 = vpop.f32.mrb[78].mxu0  ;;  %v9319_v11 = vld [vmem:[#allocation2 + $0x100] sm:$0xff]   ;;  %v2410_v18 = vsel %vm2163_vm3, %v10319_v61, %v2409_v4 }
 0x1ea   : > { %1732 = vst.msk [vmem:[#allocation2 + $0x10c] sm:$0xf] %vm1421_vm0, %v8747_v7  ;;  %v1299_v10 = vadd.f32 %v10276_v35, %v1228_v38  ;;  %v1229_v23 = vmul.f32 %v10265_v20, %v1083_v9  ;;  %v1085_v24 = vpop.f32.mrb[79].mxu0  ;;  %v2414_v6 = vrot.slane %v2412_v12, 7  ;;  %v3059_v26 = vrot.slane %v2415_v17, 1 }
 0x1eb   : > { %2710 = vst.msk [vmem:[#allocation3 + $0x1e0] sm:$0xff] %vm2679_vm2, %v2410_v18  ;;  %v2420_v30 = vshrl.u32 %v9319_v11, 16  ;;  %v2423_v46 = vshll.u32 %v9319_v11, 16 }
 0x1ec   : > { %v1363_v49 = vmax.f32 %v1299_v10, 0.0  ;;  %v1300_v31 = vadd.f32 %v10276_v35, %v1229_v23  ;;  %v2417_v33 = vor.u32 %v2415_v17, %v2414_v6  ;;  %v3060_v34 = vsel %vm2966_vm1, %v3058_v25, %v3059_v26 }
 0x1ed   : > { %v3061_v29 = vor.u32 %v3059_v26, %v2412_v12  ;;  %v2422_v37 = vrot.slane %v2420_v30, 7  ;;  %3227 = vst.msk [vmem:[#allocation3 + $0x1e8] sm:$0xff] %vm2679_vm2, %v3060_v34  ;;  %v3062_v28 = vrot.slane %v2423_v46, 1  ;;  %v2599_v10 = vshll.u32 %v10346_v55, 16 }
 0x1ee   : > { %v8748_v40 = vpack.c.bf16 %v1363_v49, %v1363_v49  ;;  %v1364_v27 = vmax.f32 %v1300_v31, 0.0  ;;  %v2418_v39 = vsel %vm2163_vm3, %v2406_v53, %v2417_v33  ;;  %v10358_v33 = vld [vmem:[#allocation2 + $0x1b8] sm:$0xff]  }
 0x1ef   : > { %v1088_v41 = vpop.f32.mrb[80].mxu0  ;;  %v2425_v32 = vor.u32 %v2423_v46, %v2422_v37  ;;  %v3063_v47 = vsel %vm2966_vm1, %v3061_v29, %v3062_v28  ;;  %2711 = vst.msk [vmem:[#allocation3 + $0x1f0] sm:$0xff] %vm2679_vm2, %v2418_v39  ;;  %v3064_v3 = vor.u32 %v3062_v28, %v2420_v30 }
 0x1f0   : > { %1733 = vst.msk [vmem:[#allocation2 + $0x114] sm:$0xf] %vm1421_vm0, %v8748_v40  ;;  %v8749_v44 = vpack.c.bf16 %v1364_v27, %v1364_v27  ;;  %v1230_v42 = vmul.f32 %v10265_v20, %v1088_v41  ;;  %v1090_v45 = vpop.f32.mrb[81].mxu0 }
 0x1f1   : > { %v1091_v51 = vpop.f32.mrb[82].mxu0  ;;  %3228 = vst.msk [vmem:[#allocation3 + $0x1f8] sm:$0xff] %vm2679_vm2, %v3063_v47  ;;  %v9321_v43 = vld [vmem:[#allocation2 + $0x108] sm:$0xff]   ;;  %v2426_v52 = vsel %vm2163_vm3, %v2414_v6, %v2425_v32  ;;  %v10364_v32 = vrot.slane %v2599_v10, 1 }
 0x1f2   : > { %1734 = vst.msk [vmem:[#allocation2 + $0x118] sm:$0xf] %vm1421_vm0, %v8749_v44  ;;  %v1301_v54 = vadd.f32 %v10276_v35, %v1230_v42  ;;  %v1231_v57 = vmul.f32 %v10265_v20, %v1091_v51  ;;  %v1093_v58 = vpop.f32.mrb[83].mxu0  ;;  %v2428_v60 = vshrl.u32 %v9321_v43, 16  ;;  %v2431_v53 = vshll.u32 %v9321_v43, 16 }
 0x1f3   : > { %2712 = vst.msk [vmem:[#allocation3 + $0x200] sm:$0xff] %vm2679_vm2, %v2426_v52  ;;  %v12367_v52 = vshll.u32 %v10358_v33, 16 }
 0x1f4   : > { %v1365_v62 = vmax.f32 %v1301_v54, 0.0  ;;  %v1302_v1 = vadd.f32 %v10276_v35, %v1231_v57  ;;  %v2430_v4 = vrot.slane %v2428_v60, 7  ;;  %v3065_v56 = vrot.slane %v2431_v53, 1 }
 0x1f6   : > { %v8750_v5 = vpack.c.bf16 %v1365_v62, %v1365_v62  ;;  %v1366_v7 = vmax.f32 %v1302_v1, 0.0  ;;  %v2433_v63 = vor.u32 %v2431_v53, %v2430_v4  ;;  %v3066_v9 = vsel %vm2966_vm1, %v3064_v3, %v3065_v56 }
 0x1f7   : > { %v1096_v38 = vpop.f32.mrb[84].mxu0  ;;  %v9322_v12 = vld [vmem:[#allocation2 + $0x110] sm:$0xff]   ;;  %3229 = vst.msk [vmem:[#allocation3 + $0x208] sm:$0xff] %vm2679_vm2, %v3066_v9  ;;  %v3067_v31 = vor.u32 %v3065_v56, %v2428_v60  ;;  %v10387_v9 = vrot.slane %v12367_v52, 1 }
 0x1f8   : > { %1735 = vst.msk [vmem:[#allocation2 + $0x120] sm:$0xf] %vm1421_vm0, %v8750_v5  ;;  %v8751_v17 = vpack.c.bf16 %v1366_v7, %v1366_v7  ;;  %v1232_v11 = vmul.f32 %v10265_v20, %v1096_v38  ;;  %v1098_v18 = vpop.f32.mrb[85].mxu0  ;;  %v2436_v24 = vshrl.u32 %v9322_v12, 16  ;;  %v2439_v25 = vshll.u32 %v9322_v12, 16  ;;  %v9302_v12 = vld [vmem:[%s12359_s4 + $0x60] sm:$0xff]  }
 0x1f9   : > { %v1099_v23 = vpop.f32.mrb[86].mxu0  ;;  %v9324_v6 = vld [vmem:[#allocation2 + $0x118] sm:$0xff]   ;;  %v2434_v26 = vsel %vm2163_vm3, %v2422_v37, %v2433_v63  ;;  %v2596_v37 = vshrl.u32 %v10346_v55, 16  ;;  %8852 = vmatpush1.bf16.msra.mxu1 %v9302_v12  ;;  %3637 = vmatpush1.bf16.msra.mxu0 %v9302_v12  ;;  %v5054_v52 = vld [vmem:[#allocation3 + $0x108] sm:$0xff] }
 0x1fa   : > { %1736 = vst.msk [vmem:[#allocation2 + $0x124] sm:$0xf] %vm1421_vm0, %v8751_v17  ;;  %v1303_v30 = vadd.f32 %v10276_v35, %v1232_v11  ;;  %v1233_v46 = vmul.f32 %v10265_v20, %v1099_v23  ;;  %v1101_v49 = vpop.f32.mrb[87].mxu0  ;;  %v2438_v34 = vrot.slane %v2436_v24, 7  ;;  %v3068_v29 = vrot.slane %v2439_v25, 1  ;;  %8841 = vmatprep.subr.bf16.mxu1 %v12368_v0  ;;  %3638 = vmatprep.subr.bf16.mxu0 %v12368_v0 }
 0x1fb   : > { %2713 = vst.msk [vmem:[#allocation3 + $0x210] sm:$0xff] %vm2679_vm2, %v2434_v26  ;;  %v2444_v40 = vshrl.u32 %v9324_v6, 16  ;;  %v2447_v27 = vshll.u32 %v9324_v6, 16  ;;  %v3130_v3 = vor.u32 %v10364_v32, %v2596_v37 }
 0x1fc   : > { %v1367_v28 = vmax.f32 %v1303_v30, 0.0  ;;  %v1304_v41 = vadd.f32 %v10276_v35, %v1233_v46  ;;  %v2441_v39 = vor.u32 %v2439_v25, %v2438_v34  ;;  %v3069_v44 = vsel %vm2966_vm1, %v3067_v31, %v3068_v29  ;;  %v9305_v31 = vld [vmem:[%s12359_s4 + $0x68] sm:$0xff]  }
 0x1fd   : > { %v3070_v42 = vor.u32 %v3068_v29, %v2436_v24  ;;  %v2446_v45 = vrot.slane %v2444_v40, 7  ;;  %3230 = vst.msk [vmem:[#allocation3 + $0x218] sm:$0xff] %vm2679_vm2, %v3069_v44  ;;  %v3071_v43 = vrot.slane %v2447_v27, 1  ;;  %v3132_v24 = vsel %vm2966_vm1, %v3130_v3, %v10387_v9  ;;  %8853 = vmatpush1.bf16.msra.mxu1 %v9305_v31  ;;  %3639 = vmatpush1.bf16.msra.mxu0 %v9305_v31 }
 0x1fe   : > { %v8752_v47 = vpack.c.bf16 %v1367_v28, %v1367_v28  ;;  %v1368_v51 = vmax.f32 %v1304_v41, 0.0  ;;  %v2442_v58 = vsel %vm2163_vm3, %v2430_v4, %v2441_v39  ;;  %3251 = vst.msk [vmem:[#allocation3 + $0x368] sm:$0xff] %vm2679_vm2, %v3132_v24  ;;  %8842 = vmatprep.subr.bf16.mxu1 %v12368_v0  ;;  %3640 = vmatprep.subr.bf16.mxu0 %v12368_v0 }
 0x1ff   : > { %v1104_v54 = vpop.f32.mrb[88].mxu0  ;;  %v2449_v57 = vor.u32 %v2447_v27, %v2446_v45  ;;  %v3072_v1 = vsel %vm2966_vm1, %v3070_v42, %v3071_v43  ;;  %2714 = vst.msk [vmem:[#allocation3 + $0x220] sm:$0xff] %vm2679_vm2, %v2442_v58  ;;  %v3073_v25 = vor.u32 %v3071_v43, %v2444_v40 }
 0x200   : > { %1737 = vst.msk [vmem:[#allocation2 + $0x12c] sm:$0xf] %vm1421_vm0, %v8752_v47  ;;  %v8753_v60 = vpack.c.bf16 %v1368_v51, %v1368_v51  ;;  %v1234_v53 = vmul.f32 %v10265_v20, %v1104_v54  ;;  %v1106_v62 = vpop.f32.mrb[89].mxu0 }
 0x201   : > { %v1107_v56 = vpop.f32.mrb[90].mxu0  ;;  %3231 = vst.msk [vmem:[#allocation3 + $0x228] sm:$0xff] %vm2679_vm2, %v3072_v1  ;;  %v10378_v5 = vld [vmem:[#allocation2 + $0x120] sm:$0xff]   ;;  %v2450_v4 = vsel %vm2163_vm3, %v2438_v34, %v2449_v57 }
 0x202   : > { %1738 = vst.msk [vmem:[#allocation2 + $0x130] sm:$0xf] %vm1421_vm0, %v8753_v60  ;;  %v1305_v7 = vadd.f32 %v10276_v35, %v1234_v53  ;;  %v1235_v38 = vmul.f32 %v10265_v20, %v1107_v56  ;;  %v1109_v63 = vpop.f32.mrb[91].mxu0  ;;  %v2452_v17 = vshrl.u32 %v10378_v5, 16  ;;  %v2455_v11 = vshll.u32 %v10378_v5, 16  ;;  %v9308_v60 = vld [vmem:[%s12359_s4 + $0x70] sm:$0xff]  }
 0x203   : > { %2715 = vst.msk [vmem:[#allocation3 + $0x230] sm:$0xff] %vm2679_vm2, %v2450_v4  ;;  %8854 = vmatpush1.bf16.msra.mxu1 %v9308_v60  ;;  %3641 = vmatpush1.bf16.msra.mxu0 %v9308_v60 }
 0x204   : > { %v1369_v18 = vmax.f32 %v1305_v7, 0.0  ;;  %v1306_v23 = vadd.f32 %v10276_v35, %v1235_v38  ;;  %v2454_v6 = vrot.slane %v2452_v17, 7  ;;  %v3074_v26 = vrot.slane %v2455_v11, 1  ;;  %8843 = vmatprep.subr.bf16.mxu1 %v12368_v0  ;;  %3642 = vmatprep.subr.bf16.mxu0 %v12368_v0 }
 0x206   : > { %v8754_v30 = vpack.c.bf16 %v1369_v18, %v1369_v18  ;;  %v1370_v46 = vmax.f32 %v1306_v23, 0.0  ;;  %v2457_v34 = vor.u32 %v2455_v11, %v2454_v6  ;;  %v3075_v29 = vsel %vm2966_vm1, %v3073_v25, %v3074_v26  ;;  %v9311_v23 = vld [vmem:[%s12359_s4 + $0x78] sm:$0xff]  }
 0x207   : > { %v1112_v49 = vpop.f32.mrb[92].mxu0  ;;  %v10404_v40 = vld [vmem:[#allocation2 + $0x128] sm:$0xff]   ;;  %3232 = vst.msk [vmem:[#allocation3 + $0x238] sm:$0xff] %vm2679_vm2, %v3075_v29  ;;  %v3076_v58 = vor.u32 %v3074_v26, %v2452_v17  ;;  %8855 = vmatpush1.bf16.msra.mxu1 %v9311_v23  ;;  %3643 = vmatpush1.bf16.msra.mxu0 %v9311_v23 }
 0x208   : > { %1739 = vst.msk [vmem:[#allocation2 + $0x138] sm:$0xf] %vm1421_vm0, %v8754_v30  ;;  %v8755_v27 = vpack.c.bf16 %v1370_v46, %v1370_v46  ;;  %v1236_v28 = vmul.f32 %v10265_v20, %v1112_v49  ;;  %v1114_v41 = vpop.f32.mrb[93].mxu0  ;;  %v2460_v44 = vshrl.u32 %v10404_v40, 16  ;;  %v2463_v42 = vshll.u32 %v10404_v40, 16  ;;  %8844 = vmatprep.subr.bf16.mxu1 %v12368_v0  ;;  %3644 = vmatprep.subr.bf16.mxu0 %v12368_v0 }
 0x209   : > { %v1115_v39 = vpop.f32.mrb[94].mxu0  ;;  %v10411_v47 = vld [vmem:[#allocation2 + $0x130] sm:$0xff]   ;;  %v2458_v51 = vsel %vm2163_vm3, %v2446_v45, %v2457_v34  ;;  %v9314_v41 = vld [vmem:[%s12359_s4 + $0x80] sm:$0xff]  }
 0x20a   : > { %1740 = vst.msk [vmem:[#allocation2 + $0x13c] sm:$0xf] %vm1421_vm0, %v8755_v27  ;;  %v1307_v43 = vadd.f32 %v10276_v35, %v1236_v28  ;;  %v1237_v54 = vmul.f32 %v10265_v20, %v1115_v39  ;;  %v1117_v57 = vpop.f32.mrb[95].mxu0  ;;  %v2462_v53 = vrot.slane %v2460_v44, 7  ;;  %v3077_v45 = vrot.slane %v2463_v42, 1 }
 0x20b   : > { %2716 = vst.msk [vmem:[#allocation3 + $0x240] sm:$0xff] %vm2679_vm2, %v2458_v51  ;;  %v2468_v62 = vshrl.u32 %v10411_v47, 16  ;;  %v2471_v1 = vshll.u32 %v10411_v47, 16  ;;  %8856 = vmatpush1.bf16.msra.mxu1 %v9314_v41  ;;  %3645 = vmatpush1.bf16.msra.mxu0 %v9314_v41 }
 0x20c   : > { %v1371_v3 = vmax.f32 %v1307_v43, 0.0  ;;  %v1308_v56 = vadd.f32 %v10276_v35, %v1237_v54  ;;  %v2465_v4 = vor.u32 %v2463_v42, %v2462_v53  ;;  %v3078_v7 = vsel %vm2966_vm1, %v3076_v58, %v3077_v45  ;;  %8845 = vmatprep.subr.bf16.mxu1 %v12368_v0  ;;  %3646 = vmatprep.subr.bf16.mxu0 %v12368_v0 }
 0x20d   : > { %v3079_v38 = vor.u32 %v3077_v45, %v2460_v44  ;;  %v2470_v63 = vrot.slane %v2468_v62, 7  ;;  %3233 = vst.msk [vmem:[#allocation3 + $0x248] sm:$0xff] %vm2679_vm2, %v3078_v7  ;;  %v3080_v11 = vrot.slane %v2471_v1, 1  ;;  %v9317_v45 = vld [vmem:[%s12359_s4 + $0x88] sm:$0xff]  }
 0x20e   : > { %v8756_v12 = vpack.c.bf16 %v1371_v3, %v1371_v3  ;;  %v1372_v17 = vmax.f32 %v1308_v56, 0.0  ;;  %v2466_v25 = vsel %vm2163_vm3, %v2454_v6, %v2465_v4 }
 0x20f   : > { %v1120_v18 = vpop.f32.mrb[96].mxu0  ;;  %v2473_v24 = vor.u32 %v2471_v1, %v2470_v63  ;;  %v3081_v49 = vsel %vm2966_vm1, %v3079_v38, %v3080_v11  ;;  %2717 = vst.msk [vmem:[#allocation3 + $0x250] sm:$0xff] %vm2679_vm2, %v2466_v25  ;;  %v3082_v43 = vor.u32 %v3080_v11, %v2468_v62  ;;  %8857 = vmatpush1.bf16.msra.mxu1 %v9317_v45 }
 0x210   : > { %1741 = vst.msk [vmem:[#allocation2 + $0x144] sm:$0xf] %vm1421_vm0, %v8756_v12  ;;  %v8757_v26 = vpack.c.bf16 %v1372_v17, %v1372_v17  ;;  %v1238_v30 = vmul.f32 %v10265_v20, %v1120_v18  ;;  %v1122_v46 = vpop.f32.mrb[97].mxu0  ;;  %3647 = vmatpush1.bf16.msra.mxu0 %v9317_v45  ;;  %8846 = vmatprep.subr.bf16.mxu1 %v12368_v0 }
 0x211   : > { %v1123_v31 = vpop.f32.mrb[98].mxu0  ;;  %3234 = vst.msk [vmem:[#allocation3 + $0x258] sm:$0xff] %vm2679_vm2, %v3081_v49  ;;  %v10439_v34 = vld [vmem:[#allocation2 + $0x138] sm:$0xff]   ;;  %v2474_v29 = vsel %vm2163_vm3, %v2462_v53, %v2473_v24  ;;  %3648 = vmatprep.subr.bf16.mxu0 %v12368_v0 }
 0x212   : > { %1742 = vst.msk [vmem:[#allocation2 + $0x148] sm:$0xf] %vm1421_vm0, %v8757_v26  ;;  %v1309_v6 = vadd.f32 %v10276_v35, %v1238_v30  ;;  %v1239_v27 = vmul.f32 %v10265_v20, %v1123_v31  ;;  %v1125_v28 = vpop.f32.mrb[99].mxu0  ;;  %v2476_v39 = vshrl.u32 %v10439_v34, 16  ;;  %v2479_v44 = vshll.u32 %v10439_v34, 16  ;;  %v9320_v30 = vld [vmem:[%s12359_s4 + $0x90] sm:$0xff]  }
 0x213   : > { %2718 = vst.msk [vmem:[#allocation3 + $0x260] sm:$0xff] %vm2679_vm2, %v2474_v29  ;;  %8858 = vmatpush1.bf16.msra.mxu1 %v9320_v30 }
 0x214   : > { %v1373_v42 = vmax.f32 %v1309_v6, 0.0  ;;  %v1310_v51 = vadd.f32 %v10276_v35, %v1239_v27  ;;  %v2478_v54 = vrot.slane %v2476_v39, 7  ;;  %v3083_v57 = vrot.slane %v2479_v44, 1  ;;  %3649 = vmatpush1.bf16.msra.mxu0 %v9320_v30  ;;  %8847 = vmatprep.subr.bf16.mxu1 %v12368_v0 }
 0x215   : > { %3650 = vmatprep.subr.bf16.mxu0 %v12368_v0 }
 0x216   : > { %v8758_v58 = vpack.c.bf16 %v1373_v42, %v1373_v42  ;;  %v1374_v60 = vmax.f32 %v1310_v51, 0.0  ;;  %v2481_v1 = vor.u32 %v2479_v44, %v2478_v54  ;;  %v3084_v3 = vsel %vm2966_vm1, %v3082_v43, %v3083_v57 }
 0x217   : > { %v1128_v53 = vpop.f32.mrb[100].mxu0  ;;  %v10460_v56 = vld [vmem:[#allocation2 + $0x140] sm:$0xff]   ;;  %3235 = vst.msk [vmem:[#allocation3 + $0x268] sm:$0xff] %vm2679_vm2, %v3084_v3  ;;  %v3085_v26 = vor.u32 %v3083_v57, %v2476_v39  ;;  %v9323_v57 = vld [vmem:[%s12359_s4 + $0x98] sm:$0xff]  }
 0x218   : > { %1743 = vst.msk [vmem:[#allocation2 + $0x150] sm:$0xf] %vm1421_vm0, %v8758_v58  ;;  %v8759_v62 = vpack.c.bf16 %v1374_v60, %v1374_v60  ;;  %v1240_v4 = vmul.f32 %v10265_v20, %v1128_v53  ;;  %v1130_v7 = vpop.f32.mrb[101].mxu0  ;;  %v2484_v12 = vshrl.u32 %v10460_v56, 16  ;;  %v2487_v17 = vshll.u32 %v10460_v56, 16  ;;  %8859 = vmatpush1.bf16.msra.mxu1 %v9323_v57  ;;  %3651 = vmatpush1.bf16.msra.mxu0 %v9323_v57 }
 0x219   : > { %v1131_v38 = vpop.f32.mrb[102].mxu0  ;;  %v10467_v11 = vld [vmem:[#allocation2 + $0x148] sm:$0xff]   ;;  %v2482_v18 = vsel %vm2163_vm3, %v2470_v63, %v2481_v1  ;;  %8848 = vmatprep.subr.bf16.mxu1 %v12368_v0  ;;  %3652 = vmatprep.subr.bf16.mxu0 %v12368_v0 }
 0x21a   : > { %1744 = vst.msk [vmem:[#allocation2 + $0x154] sm:$0xf] %vm1421_vm0, %v8759_v62  ;;  %v1311_v23 = vadd.f32 %v10276_v35, %v1240_v4  ;;  %v1241_v24 = vmul.f32 %v10265_v20, %v1131_v38  ;;  %v1133_v25 = vpop.f32.mrb[103].mxu0  ;;  %v2486_v46 = vrot.slane %v2484_v12, 7  ;;  %v3086_v63 = vrot.slane %v2487_v17, 1 }
 0x21b   : > { %2719 = vst.msk [vmem:[#allocation3 + $0x270] sm:$0xff] %vm2679_vm2, %v2482_v18  ;;  %v2492_v49 = vshrl.u32 %v10467_v11, 16  ;;  %v2495_v31 = vshll.u32 %v10467_v11, 16 }
 0x21c   : > { %v1375_v29 = vmax.f32 %v1311_v23, 0.0  ;;  %v1312_v6 = vadd.f32 %v10276_v35, %v1241_v24  ;;  %v2489_v27 = vor.u32 %v2487_v17, %v2486_v46  ;;  %v3087_v28 = vsel %vm2966_vm1, %v3085_v26, %v3086_v63  ;;  %v9326_v17 = vld [vmem:[%s12359_s4 + $0xa0] sm:$0xff]  }
 0x21d   : > { %v3088_v41 = vor.u32 %v3086_v63, %v2484_v12  ;;  %v2494_v39 = vrot.slane %v2492_v49, 7  ;;  %3236 = vst.msk [vmem:[#allocation3 + $0x278] sm:$0xff] %vm2679_vm2, %v3087_v28  ;;  %v3089_v51 = vrot.slane %v2495_v31, 1  ;;  %8860 = vmatpush1.bf16.msra.mxu1 %v9326_v17  ;;  %3653 = vmatpush1.bf16.msra.mxu0 %v9326_v17 }
 0x21e   : > { %v8760_v44 = vpack.c.bf16 %v1375_v29, %v1375_v29  ;;  %v1376_v42 = vmax.f32 %v1312_v6, 0.0  ;;  %v2490_v60 = vsel %vm2163_vm3, %v2478_v54, %v2489_v27  ;;  %8849 = vmatprep.subr.bf16.mxu1 %v12368_v0  ;;  %3654 = vmatprep.subr.bf16.mxu0 %v12368_v0  ;;  %v9329_v6 = vld [vmem:[%s12359_s4 + $0xa8] sm:$0xff]  }
 0x21f   : > { %v1136_v43 = vpop.f32.mrb[104].mxu0  ;;  %v2497_v58 = vor.u32 %v2495_v31, %v2494_v39  ;;  %v3090_v3 = vsel %vm2966_vm1, %v3088_v41, %v3089_v51  ;;  %2720 = vst.msk [vmem:[#allocation3 + $0x280] sm:$0xff] %vm2679_vm2, %v2490_v60  ;;  %v3091_v26 = vor.u32 %v3089_v51, %v2492_v49 }
 0x220   : > { %1745 = vst.msk [vmem:[#allocation2 + $0x15c] sm:$0xf] %vm1421_vm0, %v8760_v44  ;;  %v8761_v53 = vpack.c.bf16 %v1376_v42, %v1376_v42  ;;  %v1242_v45 = vmul.f32 %v10265_v20, %v1136_v43  ;;  %v1138_v1 = vpop.f32.mrb[105].mxu0 }
 0x221   : > { %v1139_v62 = vpop.f32.mrb[106].mxu0  ;;  %3237 = vst.msk [vmem:[#allocation3 + $0x288] sm:$0xff] %vm2679_vm2, %v3090_v3  ;;  %v10495_v4 = vld [vmem:[#allocation2 + $0x150] sm:$0xff]   ;;  %v2498_v7 = vsel %vm2163_vm3, %v2486_v46, %v2497_v58  ;;  %8861 = vmatpush1.bf16.msra.mxu1 %v9329_v6  ;;  %3655 = vmatpush1.bf16.msra.mxu0 %v9329_v6 }
 0x222   : > { %1746 = vst.msk [vmem:[#allocation2 + $0x160] sm:$0xf] %vm1421_vm0, %v8761_v53  ;;  %v1313_v54 = vadd.f32 %v10276_v35, %v1242_v45  ;;  %v1243_v38 = vmul.f32 %v10265_v20, %v1139_v62  ;;  %v1141_v12 = vpop.f32.mrb[107].mxu0  ;;  %v2500_v18 = vshrl.u32 %v10495_v4, 16  ;;  %v2503_v23 = vshll.u32 %v10495_v4, 16  ;;  %8850 = vmatprep.subr.bf16.mxu1 %v12368_v0  ;;  %3656 = vmatprep.subr.bf16.mxu0 %v12368_v0 }
 0x223   : > { %2721 = vst.msk [vmem:[#allocation3 + $0x290] sm:$0xff] %vm2679_vm2, %v2498_v7 }
 0x224   : > { %v1377_v24 = vmax.f32 %v1313_v54, 0.0  ;;  %v1314_v25 = vadd.f32 %v10276_v35, %v1243_v38  ;;  %v2502_v30 = vrot.slane %v2500_v18, 7  ;;  %v3092_v46 = vrot.slane %v2503_v23, 1  ;;  %v9332_v38 = vld [vmem:[%s12359_s4 + $0xb0] sm:$0xff]  }
 0x225   : > { %8862 = vmatpush1.bf16.msra.mxu1 %v9332_v38  ;;  %3657 = vmatpush1.bf16.msra.mxu0 %v9332_v38 }
 0x226   : > { %v8762_v63 = vpack.c.bf16 %v1377_v24, %v1377_v24  ;;  %v1378_v31 = vmax.f32 %v1314_v25, 0.0  ;;  %v2505_v27 = vor.u32 %v2503_v23, %v2502_v30  ;;  %v3093_v28 = vsel %vm2966_vm1, %v3091_v26, %v3092_v46  ;;  %8851 = vmatprep.subr.bf16.mxu1 %v12368_v0  ;;  %3658 = vmatprep.subr.bf16.mxu0 %v12368_v0 }
 0x227   : > { %v1144_v29 = vpop.f32.mrb[108].mxu0  ;;  %v10516_v41 = vld [vmem:[#allocation2 + $0x158] sm:$0xff]   ;;  %3238 = vst.msk [vmem:[#allocation3 + $0x298] sm:$0xff] %vm2679_vm2, %v3093_v28  ;;  %v3094_v3 = vor.u32 %v3092_v46, %v2500_v18 }
 0x228   : > { %1747 = vst.msk [vmem:[#allocation2 + $0x168] sm:$0xf] %vm1421_vm0, %v8762_v63  ;;  %v8763_v49 = vpack.c.bf16 %v1378_v31, %v1378_v31  ;;  %v1244_v44 = vmul.f32 %v10265_v20, %v1144_v29  ;;  %v1146_v42 = vpop.f32.mrb[109].mxu0  ;;  %v2508_v43 = vshrl.u32 %v10516_v41, 16  ;;  %v2511_v57 = vshll.u32 %v10516_v41, 16 }
 0x229   : > { %v1147_v51 = vpop.f32.mrb[110].mxu0  ;;  %v2506_v58 = vsel %vm2163_vm3, %v2494_v39, %v2505_v27  ;;  %v10528_v1 = vld [vmem:[#allocation2 + $0x160] sm:$0xff]  }
 0x22a   : > { %1748 = vst.msk [vmem:[#allocation2 + $0x16c] sm:$0xf] %vm1421_vm0, %v8763_v49  ;;  %v1315_v60 = vadd.f32 %v10276_v35, %v1244_v44  ;;  %v1245_v53 = vmul.f32 %v10265_v20, %v1147_v51  ;;  %v1149_v45 = vpop.f32.mrb[111].mxu0  ;;  %v2510_v62 = vrot.slane %v2508_v43, 7  ;;  %v3095_v7 = vrot.slane %v2511_v57, 1  ;;  %v9335_v49 = vld [vmem:[%s12359_s4 + $0xb8] sm:$0xff]  }
 0x22b   : > { %2722 = vst.msk [vmem:[#allocation3 + $0x2a0] sm:$0xff] %vm2679_vm2, %v2506_v58  ;;  %v2516_v12 = vshrl.u32 %v10528_v1, 16  ;;  %v2519_v17 = vshll.u32 %v10528_v1, 16  ;;  %8863 = vmatpush1.bf16.msra.mxu1 %v9335_v49  ;;  %3659 = vmatpush1.bf16.msra.mxu0 %v9335_v49 }
 0x22c   : > { %v1379_v54 = vmax.f32 %v1315_v60, 0.0  ;;  %v1316_v39 = vadd.f32 %v10276_v35, %v1245_v53  ;;  %v2513_v23 = vor.u32 %v2511_v57, %v2510_v62  ;;  %v3096_v24 = vsel %vm2966_vm1, %v3094_v3, %v3095_v7  ;;  %4626 = vmatprep.subr.bf16.mxu1 %v12368_v0 }
 0x22d   : > { %v3097_v25 = vor.u32 %v3095_v7, %v2508_v43  ;;  %3239 = vst.msk [vmem:[#allocation3 + $0x2a8] sm:$0xff] %vm2679_vm2, %v3096_v24  ;;  %v2518_v18 = vrot.slane %v2516_v12, 7  ;;  %v3098_v46 = vrot.slane %v2519_v17, 1 }
 0x22e   : > { %v8764_v26 = vpack.c.bf16 %v1379_v54, %v1379_v54  ;;  %v1380_v63 = vmax.f32 %v1316_v39, 0.0  ;;  %v2514_v29 = vsel %vm2163_vm3, %v2502_v30, %v2513_v23 }
 0x22f   : > { %v1152_v31 = vpop.f32.mrb[112].mxu0  ;;  %v2521_v44 = vor.u32 %v2519_v17, %v2518_v18  ;;  %v3099_v42 = vsel %vm2966_vm1, %v3097_v25, %v3098_v46  ;;  %2723 = vst.msk [vmem:[#allocation3 + $0x2b0] sm:$0xff] %vm2679_vm2, %v2514_v29  ;;  %v3100_v38 = vor.u32 %v3098_v46, %v2516_v12 }
 0x230   : > { %1749 = vst.msk [vmem:[#allocation2 + $0x174] sm:$0xf] %vm1421_vm0, %v8764_v26  ;;  %v8765_v6 = vpack.c.bf16 %v1380_v63, %v1380_v63  ;;  %v1246_v27 = vmul.f32 %v10265_v20, %v1152_v31  ;;  %v1154_v28 = vpop.f32.mrb[113].mxu0 }
 0x231   : > { %v1155_v51 = vpop.f32.mrb[114].mxu0  ;;  %v10550_v43 = vld [vmem:[#allocation2 + $0x168] sm:$0xff]   ;;  %3240 = vst.msk [vmem:[#allocation3 + $0x2b8] sm:$0xff] %vm2679_vm2, %v3099_v42  ;;  %v2522_v60 = vsel %vm2163_vm3, %v2510_v62, %v2521_v44 }
 0x232   : > { %1750 = vst.msk [vmem:[#allocation2 + $0x178] sm:$0xf] %vm1421_vm0, %v8765_v6  ;;  %v1317_v30 = vadd.f32 %v10276_v35, %v1246_v27  ;;  %v1247_v57 = vmul.f32 %v10265_v20, %v1155_v51  ;;  %v1157_v58 = vpop.f32.mrb[115].mxu0  ;;  %v2524_v53 = vshrl.u32 %v10550_v43, 16  ;;  %v2527_v45 = vshll.u32 %v10550_v43, 16 }
 0x233   : > { %2724 = vst.msk [vmem:[#allocation3 + $0x2c0] sm:$0xff] %vm2679_vm2, %v2522_v60 }
 0x234   : > { %v1381_v3 = vmax.f32 %v1317_v30, 0.0  ;;  %v1318_v7 = vadd.f32 %v10276_v35, %v1247_v57  ;;  %v3101_v54 = vrot.slane %v2527_v45, 1  ;;  %v2526_v39 = vrot.slane %v2524_v53, 7 }
 0x236   : > { %v8766_v17 = vpack.c.bf16 %v1381_v3, %v1381_v3  ;;  %v1382_v23 = vmax.f32 %v1318_v7, 0.0  ;;  %v3102_v62 = vsel %vm2966_vm1, %v3100_v38, %v3101_v54  ;;  %v2529_v26 = vor.u32 %v2527_v45, %v2526_v39 }
 0x237   : > { %v1160_v24 = vpop.f32.mrb[116].mxu0  ;;  %v9276_v25 = vld [vmem:[#allocation2 + $0x170] sm:$0xff]   ;;  %3241 = vst.msk [vmem:[#allocation3 + $0x2c8] sm:$0xff] %vm2679_vm2, %v3102_v62  ;;  %v3103_v42 = vor.u32 %v3101_v54, %v2524_v53 }
 0x238   : > { %1751 = vst.msk [vmem:[#allocation2 + $0x180] sm:$0xf] %vm1421_vm0, %v8766_v17  ;;  %v8767_v63 = vpack.c.bf16 %v1382_v23, %v1382_v23  ;;  %v1248_v31 = vmul.f32 %v10265_v20, %v1160_v24  ;;  %v1162_v29 = vpop.f32.mrb[117].mxu0  ;;  %2829 = vrot.lane.b32.xlu0 %v9276_v25, %s9599_s12  ;;  %v2532_v12 = vshrl.u32 %v9276_v25, 16  ;;  %v2535_v46 = vshll.u32 %v9276_v25, 16 }
 0x239   : > { %v1163_v6 = vpop.f32.mrb[118].mxu0  ;;  %v9277_v27 = vld [vmem:[#allocation2 + $0x178] sm:$0xff]   ;;  %v2530_v28 = vsel %vm2163_vm3, %v2518_v18, %v2529_v26  ;;  %v9381_v26 = vld [vmem:[%s12357_s2] ss:$0 sm:$0xff] }
 0x23a   : > { %1752 = vst.msk [vmem:[#allocation2 + $0x184] sm:$0xf] %vm1421_vm0, %v8767_v63  ;;  %v1319_v49 = vadd.f32 %v10276_v35, %v1248_v31  ;;  %v1249_v44 = vmul.f32 %v10265_v20, %v1163_v6  ;;  %v1165_v51 = vpop.f32.mrb[119].mxu0  ;;  %v2534_v30 = vrot.slane %v2532_v12, 7  ;;  %v3104_v57 = vrot.slane %v2535_v46, 1 }
 0x23b   : > { %2725 = vst.msk [vmem:[#allocation3 + $0x2d0] sm:$0xff] %vm2679_vm2, %v2530_v28  ;;  %v2540_v58 = vshrl.u32 %v9277_v27, 16  ;;  %v2543_v60 = vshll.u32 %v9277_v27, 16 }
 0x23c   : > { %v1383_v45 = vmax.f32 %v1319_v49, 0.0  ;;  %v1320_v3 = vadd.f32 %v10276_v35, %v1249_v44  ;;  %v2537_v7 = vor.u32 %v2535_v46, %v2534_v30  ;;  %v3105_v18 = vsel %vm2966_vm1, %v3103_v42, %v3104_v57  ;;  %2831 = vrot.lane.b32.xlu0 %v9277_v27, %s9599_s12 }
 0x23d   : > { %v3106_v38 = vor.u32 %v3104_v57, %v2532_v12  ;;  %v2542_v17 = vrot.slane %v2540_v58, 7  ;;  %3242 = vst.msk [vmem:[#allocation3 + $0x2d8] sm:$0xff] %vm2679_vm2, %v3105_v18  ;;  %v3107_v53 = vrot.slane %v2543_v60, 1 }
 0x23e   : > { %v8768_v23 = vpack.c.bf16 %v1383_v45, %v1383_v45  ;;  %v1384_v20 = vmax.f32 %v1320_v3, 0.0  ;;  %v2538_v25 = vsel %vm2163_vm3, %v2526_v39, %v2537_v7  ;;  %v9382_v39 = vld [vmem:[%s12358_s3] ss:$0 sm:$0xff] }
 0x23f   : > { %v2545_v54 = vor.u32 %v2543_v60, %v2542_v17  ;;  %v1168_v24 = vpop.f32.mrb[120].mxu0  ;;  %v3108_v35 = vsel %vm2966_vm1, %v3106_v38, %v3107_v53  ;;  %2726 = vst.msk [vmem:[#allocation3 + $0x2e0] sm:$0xff] %vm2679_vm2, %v2538_v25  ;;  %v3109_v57 = vor.u32 %v3107_v53, %v2540_v58 }
 0x240   : > { %1753 = vst.msk [vmem:[#allocation2 + $0x18c] sm:$0xf] %vm1421_vm0, %v8768_v23  ;;  %v8769_v62 = vpack.c.bf16 %v1384_v20, %v1384_v20  ;;  %v1250_v63 = vmul.f32 %v9381_v26, %v1168_v24  ;;  %v1170_v31 = vpop.f32.mrb[121].mxu0 }
 0x241   : > { %3243 = vst.msk [vmem:[#allocation3 + $0x2e8] sm:$0xff] %vm2679_vm2, %v3108_v35  ;;  %v1171_v29 = vpop.f32.mrb[122].mxu0  ;;  %v9278_v6 = vld [vmem:[#allocation2 + $0x180] sm:$0xff]   ;;  %v2546_v12 = vsel %vm2163_vm3, %v2534_v30, %v2545_v54 }
 0x242   : > { %1754 = vst.msk [vmem:[#allocation2 + $0x190] sm:$0xf] %vm1421_vm0, %v8769_v62  ;;  %v1321_v46 = vadd.f32 %v9382_v39, %v1250_v63  ;;  %v1251_v27 = vmul.f32 %v9381_v26, %v1171_v29  ;;  %v1173_v28 = vpop.f32.mrb[123].mxu0  ;;  %2833 = vrot.lane.b32.xlu1 %v9278_v6, %s9599_s12  ;;  %v2548_v49 = vshrl.u32 %v9278_v6, 16  ;;  %v2551_v44 = vshll.u32 %v9278_v6, 16 }
 0x243   : > { %2727 = vst.msk [vmem:[#allocation3 + $0x2f0] sm:$0xff] %vm2679_vm2, %v2546_v12  ;;  %v2174_v28 = vrot.slane %v2172_v19, 7 }
 0x244   : > { %v1385_v42 = vmax.f32 %v1321_v46, 0.0  ;;  %v1322_v51 = vadd.f32 %v9382_v39, %v1251_v27  ;;  %v2550_v60 = vrot.slane %v2548_v49, 7  ;;  %v3110_v30 = vrot.slane %v2551_v44, 1 }
 0x246   : > { %v8770_v45 = vpack.c.bf16 %v1385_v42, %v1385_v42  ;;  %v1386_v3 = vmax.f32 %v1322_v51, 0.0  ;;  %v2553_v7 = vor.u32 %v2551_v44, %v2550_v60  ;;  %v3111_v18 = vsel %vm2966_vm1, %v3109_v57, %v3110_v30 }
 0x247   : > { %v1176_v38 = vpop.f32.mrb[124].mxu0  ;;  %v9279_v23 = vld [vmem:[#allocation2 + $0x188] sm:$0xff]   ;;  %3244 = vst.msk [vmem:[#allocation3 + $0x2f8] sm:$0xff] %vm2679_vm2, %v3111_v18  ;;  %v3112_v12 = vor.u32 %v3110_v30, %v2548_v49  ;;  %v10607_v18 = vld [vmem:[#allocation2] sm:$0xff]  }
 0x248   : > { %1755 = vst.msk [vmem:[#allocation2 + $0x198] sm:$0xf] %vm1421_vm0, %v8770_v45  ;;  %v8771_v20 = vpack.c.bf16 %v1386_v3, %v1386_v3  ;;  %v1252_v54 = vmul.f32 %v9381_v26, %v1176_v38  ;;  %v1178_v24 = vpop.f32.mrb[125].mxu0  ;;  %v3345_v25 = vld [vmem:[#allocation3 + $0x2e8] sm:$0xff]  ;;  %2835 = vrot.lane.b32.xlu1 %v9279_v23, %s9599_s12  ;;  %v2556_v58 = vshrl.u32 %v9279_v23, 16  ;;  %v2559_v53 = vshll.u32 %v9279_v23, 16 }
 0x249   : > { %v1179_v62 = vpop.f32.mrb[126].mxu0  ;;  %8438 = vmatprep.mubr.msk.bf16.mxu1 %vm2679_vm2, %v3345_v25  ;;  %v2554_v35 = vsel %vm2163_vm3, %v2542_v17, %v2553_v7  ;;  %v9280_v29 = vld [vmem:[#allocation2 + $0x190] sm:$0xff]   ;;  %v2185_v3 = vor.u32 %v2183_v16, %v10087_v36  ;;  %v2177_v16 = vor.u32 %v2175_v15, %v2174_v28  ;;  %v2165_v36 = vshrl.u32 %v10607_v18, 16 }
 0x24a   : > { %1756 = vst.msk [vmem:[#allocation2 + $0x19c] sm:$0xf] %vm1421_vm0, %v8771_v20  ;;  %v1323_v63 = vadd.f32 %v9382_v39, %v1252_v54  ;;  %v1253_v31 = vmul.f32 %v9381_v26, %v1179_v62  ;;  %v1181_v6 = vpop.f32.mrb[127].mxu0  ;;  %v2558_v46 = vrot.slane %v2556_v58, 7  ;;  %v3113_v27 = vrot.slane %v2559_v53, 1  ;;  %2837 = vrot.lane.b32.xlu0 %v9280_v29, %s9599_s12 }
 0x24b   : > { %2728 = vst.msk [vmem:[#allocation3 + $0x300] sm:$0xff] %vm2679_vm2, %v2554_v35  ;;  %v2564_v51 = vshrl.u32 %v9280_v29, 16  ;;  %v2567_v17 = vshll.u32 %v9280_v29, 16  ;;  %v2186_v54 = vsel %vm2163_vm3, %v2174_v28, %v2185_v3  ;;  %v2167_v62 = vrot.slane %v2165_v36, 7  ;;  %v9387_v36 = vld [vmem:[#allocation2 + $0x30] sm:$0xff]  }
 0x24c   : > { %v1387_v44 = vmax.f32 %v1323_v63, 0.0  ;;  %v1324_v42 = vadd.f32 %v9382_v39, %v1253_v31  ;;  %v2561_v57 = vor.u32 %v2559_v53, %v2558_v46  ;;  %v3114_v45 = vsel %vm2966_vm1, %v3112_v12, %v3113_v27  ;;  %2682 = vst.msk [vmem:[#allocation3 + $0x20] sm:$0xff] %vm2679_vm2, %v2186_v54  ;;  %v9388_v54 = vld [vmem:[#allocation2 + $0x38] sm:$0xff]  }
 0x24d   : > { %v3115_v26 = vor.u32 %v3113_v27, %v2556_v58  ;;  %3245 = vst.msk [vmem:[#allocation3 + $0x308] sm:$0xff] %vm2679_vm2, %v3114_v45  ;;  %v2566_v7 = vrot.slane %v2564_v51, 7  ;;  %v3116_v19 = vrot.slane %v2567_v17, 1  ;;  %v2178_v53 = vsel %vm2163_vm3, %v2167_v62, %v2177_v16  ;;  %v9386_v16 = vld [vmem:[#allocation2 + $0x28] sm:$0xff]  }
 0x24e   : > { %v8772_v49 = vpack.c.bf16 %v1387_v44, %v1387_v44  ;;  %v1388_v30 = vmax.f32 %v1324_v42, 0.0  ;;  %v2562_v39 = vsel %vm2163_vm3, %v2550_v60, %v2561_v57  ;;  %v10626_v35 = vrot.slane %v2596_v37, 7  ;;  %2681 = vst.msk [vmem:[#allocation3 + $0x10] sm:$0xff] %vm2679_vm2, %v2178_v53  ;;  %v9394_v62 = vld [vmem:[#allocation2 + $0x68] sm:$0xff]  }
 0x24f   : > { %v2569_v23 = vor.u32 %v2567_v17, %v2566_v7  ;;  %v3117_v20 = vsel %vm2966_vm1, %v3115_v26, %v3116_v19  ;;  %2729 = vst.msk [vmem:[#allocation3 + $0x310] sm:$0xff] %vm2679_vm2, %v2562_v39  ;;  %v3118_v58 = vor.u32 %v3116_v19, %v2564_v51  ;;  %v9398_v53 = vld [vmem:[#allocation2 + $0x88] sm:$0xff]  }
 0x250   : > { %1757 = vst.msk [vmem:[#allocation2 + $0x1a4] sm:$0xf] %vm1421_vm0, %v8772_v49  ;;  %v8773_v38 = vpack.c.bf16 %v1388_v30, %v1388_v30  ;;  %v2601_v37 = vor.u32 %v2599_v10, %v10626_v35  ;;  %v9383_v49 = vld [vmem:[#allocation2 + $0x8] sm:$0xff]   ;;  %v9384_v30 = vld [vmem:[#allocation2 + $0x10] sm:$0xff]  }
 0x251   : > { %3246 = vst.msk [vmem:[#allocation3 + $0x318] sm:$0xff] %vm2679_vm2, %v3117_v20  ;;  %v9281_v14 = vld [vmem:[#allocation2 + $0x198] sm:$0xff]   ;;  %v2570_v60 = vsel %vm2163_vm3, %v2558_v46, %v2569_v23 }
 0x252   : > { %1758 = vst.msk [vmem:[#allocation2 + $0x1a8] sm:$0xf] %vm1421_vm0, %v8773_v38  ;;  %2839 = vrot.lane.b32.xlu1 %v9281_v14, %s9599_s12  ;;  %v2572_v24 = vshrl.u32 %v9281_v14, 16  ;;  %v2575_v25 = vshll.u32 %v9281_v14, 16  ;;  %v9385_v14 = vld [vmem:[#allocation2 + $0x20] sm:$0xff]  }
 0x253   : > { %2730 = vst.msk [vmem:[#allocation3 + $0x320] sm:$0xff] %vm2679_vm2, %v2570_v60  ;;  %v9391_v60 = vld [vmem:[#allocation2 + $0x50] sm:$0xff]  }
 0x254   : > { %v2574_v13 = vrot.slane %v2572_v24, 7  ;;  %v3119_v15 = vrot.slane %v2575_v25, 1 }
 0x256   : > { %v2577_v63 = vor.u32 %v2575_v25, %v2574_v13  ;;  %v3120_v31 = vsel %vm2966_vm1, %v3118_v58, %v3119_v15  ;;  %v3121_v6 = vor.u32 %v3119_v15, %v2572_v24  ;;  %v9392_v24 = vld [vmem:[#allocation2 + $0x58] sm:$0xff]   ;;  %v9393_v25 = vld [vmem:[#allocation2 + $0x60] sm:$0xff]   ;;  %v9395_v58 = vld [vmem:[#allocation2 + $0x70] sm:$0xff]  }
 0x257   : > { %v9282_v29 = vld [vmem:[#allocation2 + $0x1a0] sm:$0xff]   ;;  %3247 = vst.msk [vmem:[#allocation3 + $0x328] sm:$0xff] %vm2679_vm2, %v3120_v31  ;;  %v2390_v31 = vrot.slane %v2388_v21, 7 }
 0x258   : > { %2841 = vrot.lane.b32.xlu0 %v9282_v29, %s9599_s12  ;;  %v2580_v12 = vshrl.u32 %v9282_v29, 16  ;;  %v2583_v46 = vshll.u32 %v9282_v29, 16  ;;  %v2578_v28 = vsel %vm2163_vm3, %v2566_v7, %v2577_v63  ;;  %v9397_v15 = vld [vmem:[#allocation2 + $0x80] sm:$0xff]   ;;  %v9399_v63 = vld [vmem:[#allocation2 + $0x90] sm:$0xff]   ;;  %v9400_v29 = vld [vmem:[#allocation2 + $0x98] sm:$0xff]  }
 0x259   : > { %v9283_v27 = vld [vmem:[#allocation2 + $0x1a8] sm:$0xff]   ;;  %2731 = vst.msk [vmem:[#allocation3 + $0x330] sm:$0xff] %vm2679_vm2, %v2578_v28 }
 0x25a   : > { %v2582_v44 = vrot.slane %v2580_v12, 7  ;;  %v3122_v42 = vrot.slane %v2583_v46, 1  ;;  %2843 = vrot.lane.b32.xlu1 %v9283_v27, %s9599_s12  ;;  %v2588_v51 = vshrl.u32 %v9283_v27, 16  ;;  %v2591_v17 = vshll.u32 %v9283_v27, 16  ;;  %v9402_v27 = vld [vmem:[#allocation2 + $0xa8] sm:$0xff]  }
 0x25c   : > { %v2585_v57 = vor.u32 %v2583_v46, %v2582_v44  ;;  %v3123_v45 = vsel %vm2966_vm1, %v3121_v6, %v3122_v42  ;;  %v3124_v26 = vor.u32 %v3122_v42, %v2580_v12  ;;  %v2590_v3 = vrot.slane %v2588_v51, 7  ;;  %2739 = vrot.lane.b32.xlu0 %v9383_v49, %s9599_s12  ;;  %v9401_v46 = vld [vmem:[#allocation2 + $0xa0] sm:$0xff]   ;;  %v9411_v42 = vld [vmem:[#allocation2 + $0xf0] sm:$0xff]  }
 0x25d   : > { %3248 = vst.msk [vmem:[#allocation3 + $0x338] sm:$0xff] %vm2679_vm2, %v3123_v45  ;;  %v3125_v55 = vrot.slane %v2591_v17, 1  ;;  %v2393_v6 = vor.u32 %v2391_v59, %v2390_v31  ;;  %v2401_v12 = vor.u32 %v2399_v22, %v10319_v61  ;;  %v9405_v59 = vld [vmem:[#allocation2 + $0xc0] sm:$0xff]   ;;  %v9407_v22 = vld [vmem:[#allocation2 + $0xd0] sm:$0xff]  }
 0x25e   : > { %v2593_v10 = vor.u32 %v2591_v17, %v2590_v3  ;;  %2741 = vrot.lane.b32.xlu1 %v9384_v30, %s9599_s12  ;;  %v2586_v7 = vsel %vm2163_vm3, %v2574_v13, %v2585_v57  ;;  %v2602_v19 = vsel %vm2163_vm3, %v2590_v3, %v2601_v37  ;;  %v9396_v13 = vld [vmem:[#allocation2 + $0x78] sm:$0xff]   ;;  %v9403_v37 = vld [vmem:[#allocation2 + $0xb0] sm:$0xff]   ;;  %v9409_v61 = vld [vmem:[#allocation2 + $0xe0] sm:$0xff]  }
 0x25f   : > { %v3126_v39 = vsel %vm2966_vm1, %v3124_v26, %v3125_v55  ;;  %v3127_v38 = vor.u32 %v3125_v55, %v2588_v51  ;;  %2732 = vst.msk [vmem:[#allocation3 + $0x340] sm:$0xff] %vm2679_vm2, %v2586_v7  ;;  %2734 = vst.msk [vmem:[#allocation3 + $0x360] sm:$0xff] %vm2679_vm2, %v2602_v19  ;;  %v2394_v28 = vsel %vm2163_vm3, %v10284_v48, %v2393_v6  ;;  %v9408_v48 = vld [vmem:[#allocation2 + $0xd8] sm:$0xff]   ;;  %v9413_v17 = vld [vmem:[#allocation2 + $0x100] sm:$0xff]  }
 0x260   : > { %3249 = vst.msk [vmem:[#allocation3 + $0x348] sm:$0xff] %vm2679_vm2, %v3126_v39  ;;  %2743 = vrot.lane.b32.xlu0 %v10066_v8, %s9599_s12  ;;  %v2594_v23 = vsel %vm2163_vm3, %v2582_v44, %v2593_v10  ;;  %v9389_v8 = vld [vmem:[#allocation2 + $0x40] sm:$0xff]   ;;  %2708 = vst.msk [vmem:[#allocation3 + $0x1c0] sm:$0xff] %vm2679_vm2, %v2394_v28  ;;  %v2402_v21 = vsel %vm2163_vm3, %v2390_v31, %v2401_v12  ;;  %v9410_v44 = vld [vmem:[#allocation2 + $0xe8] sm:$0xff]  }
 0x261   : > { %v3129_v20 = vsel %vm2966_vm1, %v3127_v38, %v10364_v32  ;;  %2733 = vst.msk [vmem:[#allocation3 + $0x350] sm:$0xff] %vm2679_vm2, %v2594_v23  ;;  %v9390_v32 = vld [vmem:[#allocation2 + $0x48] sm:$0xff]   ;;  %2709 = vst.msk [vmem:[#allocation3 + $0x1d0] sm:$0xff] %vm2679_vm2, %v2402_v21  ;;  %v9412_v51 = vld [vmem:[#allocation2 + $0xf8] sm:$0xff]  }
 0x262   : > { %2745 = vrot.lane.b32.xlu1 %v9385_v14, %s9599_s12  ;;  %3250 = vst.msk [vmem:[#allocation3 + $0x358] sm:$0xff] %vm2679_vm2, %v3129_v20  ;;  %v9414_v57 = vld [vmem:[#allocation2 + $0x108] sm:$0xff]   ;;  %v9415_v45 = vld [vmem:[#allocation2 + $0x110] sm:$0xff]   ;;  %v9416_v26 = vld [vmem:[#allocation2 + $0x118] sm:$0xff]  }
 0x263   : > { %v9341_v55 = vld [vmem:[%s12359_s4 + $0x10] sm:$0xff]   ;;  %v9418_v10 = vld [vmem:[#allocation2 + $0x1b8] sm:$0xff]   ;;  %v9343_v20 = vld [vmem:[%s12359_s4 + $0x20] sm:$0xff]  }
 0x264   : > { %2747 = vrot.lane.b32.xlu0 %v9386_v16, %s9599_s12  ;;  %v3349_v7 = vld [vmem:[#allocation3 + $0x308] sm:$0xff]  ;;  %v9342_v39 = vld [vmem:[%s12359_s4 + $0x18] sm:$0xff]   ;;  %v3351_v16 = vld [vmem:[#allocation3 + $0x318] sm:$0xff] }
 0x265   : > { %v3355_v28 = vld [vmem:[#allocation3 + $0x338] sm:$0xff] }
 0x266   : > { %2749 = vrot.lane.b32.xlu1 %v9387_v36, %s9599_s12 }
 0x268   : > { %2751 = vrot.lane.b32.xlu0 %v9388_v54, %s9599_s12 }
 0x26a   : > { %2753 = vrot.lane.b32.xlu1 %v9389_v8, %s9599_s12  ;;  %v9344_v8 = vld [vmem:[%s12359_s4 + $0x28] sm:$0xff]  }
 0x26c   : > { %2755 = vrot.lane.b32.xlu0 %v9390_v32, %s9599_s12 }
 0x26e   : > { %2757 = vrot.lane.b32.xlu1 %v9391_v60, %s9599_s12 }
 0x270   : > { %2759 = vrot.lane.b32.xlu0 %v9392_v24, %s9599_s12 }
 0x272   : > { %2761 = vrot.lane.b32.xlu1 %v9393_v25, %s9599_s12  ;;  %v9346_v25 = vld [vmem:[%s12359_s4 + $0x30] sm:$0xff]  }
 0x274   : > { %2763 = vrot.lane.b32.xlu0 %v9394_v62, %s9599_s12 }
 0x276   : > { %2765 = vrot.lane.b32.xlu1 %v9395_v58, %s9599_s12 }
 0x278   : > { %2767 = vrot.lane.b32.xlu0 %v9396_v13, %s9599_s12  ;;  %v3353_v13 = vld [vmem:[#allocation3 + $0x328] sm:$0xff] }
 0x27a   : > { %2769 = vrot.lane.b32.xlu1 %v9397_v15, %s9599_s12 }
 0x27c   : > { %2771 = vrot.lane.b32.xlu0 %v9398_v53, %s9599_s12  ;;  %v9347_v53 = vld [vmem:[%s12359_s4 + $0x38] sm:$0xff]  }
 0x27e   : > { %2773 = vrot.lane.b32.xlu1 %v9399_v63, %s9599_s12 }
 0x280   : > { %2775 = vrot.lane.b32.xlu0 %v9400_v29, %s9599_s12 }
 0x282   : > { %2777 = vrot.lane.b32.xlu1 %v9401_v46, %s9599_s12  ;;  %v9348_v46 = vld [vmem:[%s12359_s4 + $0x40] sm:$0xff]  }
 0x284   : > { %2779 = vrot.lane.b32.xlu0 %v9402_v27, %s9599_s12 }
 0x286   : > { %2781 = vrot.lane.b32.xlu1 %v9403_v37, %s9599_s12  ;;  %v9349_v37 = vld [vmem:[%s12359_s4 + $0x48] sm:$0xff]  }
 0x288   : > { %2783 = vrot.lane.b32.xlu0 %v9404_v50, %s9599_s12 }
 0x28a   : > { %2785 = vrot.lane.b32.xlu1 %v9405_v59, %s9599_s12 }
 0x28c   : > { %2787 = vrot.lane.b32.xlu0 %v9406_v2, %s9599_s12  ;;  %v9350_v2 = vld [vmem:[%s12359_s4 + $0x50] sm:$0xff]  }
 0x28e   : > { %2789 = vrot.lane.b32.xlu1 %v9407_v22, %s9599_s12 }
 0x290   : > { %2791 = vrot.lane.b32.xlu0 %v9408_v48, %s9599_s12 }
 0x292   : > { %2793 = vrot.lane.b32.xlu1 %v9409_v61, %s9599_s12  ;;  %v10816_v61 = vld [vmem:[#allocation3 + $0x48] sm:$0xff] }
 0x294   : > { %2795 = vrot.lane.b32.xlu0 %v9410_v44, %s9599_s12  ;;  %v3383_v44 = vld [vmem:[#allocation3 + $0x348] sm:$0xff] }
 0x296   : > { %2797 = vrot.lane.b32.xlu1 %v9411_v42, %s9599_s12 }
 0x298   : > { %2799 = vrot.lane.b32.xlu0 %v9412_v51, %s9599_s12  ;;  %v9351_v51 = vld [vmem:[%s12359_s4 + $0x58] sm:$0xff]  }
 0x29a   : > { %2801 = vrot.lane.b32.xlu1 %v9413_v17, %s9599_s12 }
 0x29c   : > { %2803 = vrot.lane.b32.xlu0 %v9414_v57, %s9599_s12 }
 0x29e   : > { %2805 = vrot.lane.b32.xlu1 %v9415_v45, %s9599_s12 }
 0x2a0   : > { %2807 = vrot.lane.b32.xlu0 %v9416_v26, %s9599_s12 }
 0x2a2   : > { %2809 = vrot.lane.b32.xlu1 %v10378_v5, %s9599_s12 }
 0x2a4   : > { %2811 = vrot.lane.b32.xlu0 %v10404_v40, %s9599_s12  ;;  %v9338_v40 = vld [vmem:[%s12359_s4] sm:$0xff]  }
 0x2a6   : > { %2813 = vrot.lane.b32.xlu1 %v10411_v47, %s9599_s12 }
 0x2a8   : > { %2815 = vrot.lane.b32.xlu0 %v10439_v34, %s9599_s12  ;;  %v3347_v34 = vld [vmem:[#allocation3 + $0x2f8] sm:$0xff] }
 0x2aa   : > { %v2830_v3 = vpop.permute.xlu0 %2829  ;;  %2817 = vrot.lane.b32.xlu1 %v10460_v56, %s9599_s12 }
 0x2ab   : > { %2955 = vst.msk [vmem:[#allocation3 + $0x2e0] sm:$0xff] %vm2908_vm4, %v2830_v3 }
 0x2ac   : > { %2819 = vrot.lane.b32.xlu0 %v10467_v11, %s9599_s12  ;;  %v9340_v11 = vld [vmem:[%s12359_s4 + $0x8] sm:$0xff]  }
 0x2ae   : > { %v2832_v5 = vpop.permute.xlu0 %2831  ;;  %2821 = vrot.lane.b32.xlu1 %v10495_v4, %s9599_s12  ;;  %v9417_v4 = vld [vmem:[#allocation2 + $0x1b0] sm:$0xff]  }
 0x2af   : > { %2956 = vst.msk [vmem:[#allocation3 + $0x2f0] sm:$0xff] %vm2908_vm4, %v2832_v5  ;;  %v10833_v5 = vld [vmem:[#allocation3 + $0x58] sm:$0xff] }
 0x2b0   : > { %2823 = vrot.lane.b32.xlu0 %v10516_v41, %s9599_s12 }
 0x2b2   : > { %2825 = vrot.lane.b32.xlu1 %v10528_v1, %s9599_s12  ;;  %v10722_v47 = vld [vmem:[#allocation3 + $0x2e0] sm:$0xff] }
 0x2b3   : > { %3981 = vmatmul.mubr.bf16.vlgmr.msra.gmra.mrb[0].mxu1 %v10722_v47  ;;  %v4322_v1 = vrot.slane %v10722_v47, 4 }
 0x2b4   : > { %4627 = vmatpush1.bf16.msra.mxu1 %v9338_v40  ;;  %v2834_v56 = vpop.permute.xlu1 %2833  ;;  %8439 = vmatprep.mubr.msk.bf16.mxu1 %vm2679_vm2, %v3347_v34  ;;  %v3385_v40 = vld [vmem:[#allocation3 + $0x358] sm:$0xff] }
 0x2b5   : > { %2957 = vst.msk [vmem:[#allocation3 + $0x300] sm:$0xff] %vm2908_vm4, %v2834_v56  ;;  %2827 = vrot.lane.b32.xlu0 %v10550_v43, %s9599_s12  ;;  %4628 = vmatprep.subr.bf16.mxu1 %v12368_v0  ;;  %v3255_v56 = vld [vmem:[#allocation3 + $0x18] sm:$0xf0] }
 0x2b6   : > { %2845 = vrot.lane.b32.xlu1 %v9417_v4, %s9599_s12  ;;  %v3346_v41 = vld [vmem:[#allocation3 + $0x2f0] sm:$0xff] }
 0x2b7   : > { %v4326_v49 = vrot.slane %v3346_v41, 4 }
 0x2b8   : > { %4629 = vmatpush1.bf16.msra.mxu1 %v9340_v11  ;;  %v3257_v11 = vld [vmem:[#allocation3 + $0x28] sm:$0xff] }
 0x2b9   : > { %4630 = vmatprep.subr.bf16.mxu1 %v12368_v0  ;;  %v10742_v43 = vsel %vm4143_vm5, %v4322_v1, %v4326_v49  ;;  %2847 = vrot.lane.b32.xlu0 %v9418_v10, %s9599_s12 }
 0x2ba   : > { %v2836_v30 = vpop.permute.xlu1 %2835  ;;  %2737 = vrot.lane.b32.xlu1 %v10607_v18, %s9599_s12 }
 0x2bb   : > { %2958 = vst.msk [vmem:[#allocation3 + $0x310] sm:$0xff] %vm2908_vm4, %v2836_v30  ;;  %3988 = vmatmul.mubr.bf16.gmra.mrb[4].mxu1 %v3346_v41  ;;  %v4147_v41 = vrot.slane %v3255_v56, 4 }
 0x2bc   : > { %8440 = vmatprep.mubr.msk.bf16.mxu1 %vm2679_vm2, %v3349_v7  ;;  %4631 = vmatpush1.bf16.msra.mxu1 %v9341_v55  ;;  %v3348_v19 = vld [vmem:[#allocation3 + $0x300] sm:$0xff]  ;;  %v2838_v38 = vpop.permute.xlu0 %2837 }
 0x2bd   : > { %4632 = vmatprep.subr.bf16.mxu1 %v12368_v0  ;;  %v4330_v23 = vrot.slane %v3348_v19, 4  ;;  %2959 = vst.msk [vmem:[#allocation3 + $0x320] sm:$0xff] %vm2908_vm4, %v2838_v38 }
 0x2bf   : > { %v10755_v18 = vsel %vm4143_vm5, %v4326_v49, %v4330_v23  ;;  %v4148_v49 = vrot.slane %v3257_v11, 4 }
 0x2c0   : > { %4633 = vmatpush1.bf16.msra.mxu1 %v9342_v39  ;;  %v10845_v39 = vld [vmem:[#allocation3 + $0x68] sm:$0xff] }
 0x2c1   : > { %4634 = vmatprep.subr.bf16.mxu1 %v12368_v0  ;;  %v4149_v38 = vsel %vm4143_vm5, %v4147_v41, %v4148_v49  ;;  %v4164_v41 = vrot.slane %v10845_v39, 4 }
 0x2c2   : > { %v3350_v14 = vld [vmem:[#allocation3 + $0x310] sm:$0xff] }
 0x2c3   : > { %3995 = vmatmul.mubr.bf16.gmra.mrb[8].mxu1 %v3348_v19  ;;  %v4334_v36 = vrot.slane %v3350_v14, 4 }
 0x2c4   : > { %8441 = vmatprep.mubr.msk.bf16.mxu1 %vm2679_vm2, %v3351_v16  ;;  %v2840_v54 = vpop.permute.xlu1 %2839  ;;  %4635 = vmatpush1.bf16.msra.mxu1 %v9343_v20  ;;  %v3352_v32 = vld [vmem:[#allocation3 + $0x320] sm:$0xff] }
 0x2c5   : > { %2960 = vst.msk [vmem:[#allocation3 + $0x330] sm:$0xff] %vm2908_vm4, %v2840_v54  ;;  %4636 = vmatprep.subr.bf16.mxu1 %v12368_v0  ;;  %v10768_v60 = vsel %vm4143_vm5, %v4330_v23, %v4334_v36  ;;  %v4338_v24 = vrot.slane %v3352_v32, 4  ;;  %v9419_v54 = vld [vmem:[#allocation3 + $0x38] sm:$0xff] }
 0x2c7   : > { %v10774_v62 = vsel %vm4143_vm5, %v4334_v36, %v4338_v24 }
 0x2c8   : > { %4637 = vmatpush1.bf16.msra.mxu1 %v9344_v8  ;;  %v4152_v8 = vrot.slane %v9419_v54, 4 }
 0x2c9   : > { %4638 = vmatprep.subr.bf16.mxu1 %v12368_v0 }
 0x2ca   : > { %v2842_v58 = vpop.permute.xlu0 %2841 }
 0x2cb   : > { %2961 = vst.msk [vmem:[#allocation3 + $0x340] sm:$0xff] %vm2908_vm4, %v2842_v58  ;;  %4003 = vmatmul.mubr.bf16.gmra.mrb[12].mxu1 %v3350_v14 }
 0x2cc   : > { %8442 = vmatprep.mubr.msk.bf16.mxu1 %vm2679_vm2, %v3353_v13  ;;  %v2844_v15 = vpop.permute.xlu1 %2843  ;;  %4639 = vmatpush1.bf16.msra.mxu1 %v9346_v25  ;;  %v10782_v63 = vld [vmem:[#allocation3 + $0x330] sm:$0xff]  ;;  %v9352_v25 = vld [vmem:[%s12359_s4 + $0xc0] sm:$0xff]  }
 0x2cd   : > { %2962 = vst.msk [vmem:[#allocation3 + $0x350] sm:$0xff] %vm2908_vm4, %v2844_v15  ;;  %4640 = vmatprep.subr.bf16.mxu1 %v12368_v0  ;;  %v4342_v31 = vrot.slane %v10782_v63, 4  ;;  %v10862_v15 = vld [vmem:[#allocation3 + $0x78] sm:$0xff] }
 0x2ce   : > { %v2740_v29 = vpop.permute.xlu0 %2739 }
 0x2cf   : > { %2910 = vst.msk [vmem:[#allocation3 + $0x10] sm:$0xff] %vm2908_vm4, %v2740_v29  ;;  %v10791_v6 = vsel %vm4143_vm5, %v4338_v24, %v4342_v31  ;;  %v4153_v29 = vsel %vm4143_vm5, %v4148_v49, %v4152_v8 }
 0x2d0   : > { %v2742_v12 = vpop.permute.xlu1 %2741  ;;  %4641 = vmatpush1.bf16.msra.mxu1 %v9347_v53 }
 0x2d1   : > { %2911 = vst.msk [vmem:[#allocation3 + $0x20] sm:$0xff] %vm2908_vm4, %v2742_v12  ;;  %4642 = vmatprep.subr.bf16.mxu1 %v12368_v0  ;;  %v9353_v12 = vld [vmem:[%s12359_s4 + $0xc8] sm:$0xff]  }
 0x2d2   : > { %v2744_v27 = vpop.permute.xlu0 %2743  ;;  %v3382_v45 = vld [vmem:[#allocation3 + $0x340] sm:$0xff] }
 0x2d3   : > { %2912 = vst.msk [vmem:[#allocation3 + $0x30] sm:$0xff] %vm2908_vm4, %v2744_v27  ;;  %4010 = vmatmul.mubr.bf16.gmra.mrb[16].mxu1 %v3352_v32 }
 0x2d4   : > { %8443 = vmatprep.mubr.msk.bf16.mxu1 %vm2679_vm2, %v3355_v28  ;;  %v2746_v21 = vpop.permute.xlu1 %2745  ;;  %4643 = vmatpush1.bf16.msra.mxu1 %v9348_v46  ;;  %v3384_v19 = vld [vmem:[#allocation3 + $0x350] sm:$0xff]  ;;  %v4156_v28 = vrot.slane %v10816_v61, 4 }
 0x2d5   : > { %2913 = vst.msk [vmem:[#allocation3 + $0x40] sm:$0xff] %vm2908_vm4, %v2746_v21  ;;  %4644 = vmatprep.subr.bf16.mxu1 %v12368_v0 }
 0x2d6   : > { %v2748_v50 = vpop.permute.xlu0 %2747  ;;  %v3254_v10 = vld [vmem:[#allocation3 + $0x10] sm:$0xf0] }
 0x2d7   : > { %2914 = vst.msk [vmem:[#allocation3 + $0x50] sm:$0xff] %vm2908_vm4, %v2748_v50  ;;  %v4144_v14 = vrot.slane %v3254_v10, 4 }
 0x2d8   : > { %v2750_v59 = vpop.permute.xlu1 %2749  ;;  %4645 = vmatpush1.bf16.msra.mxu1 %v9349_v37  ;;  %v3256_v23 = vld [vmem:[#allocation3 + $0x20] sm:$0xff]  ;;  %v9354_v37 = vld [vmem:[%s12359_s4 + $0xd0] sm:$0xff]  }
 0x2d9   : > { %2915 = vst.msk [vmem:[#allocation3 + $0x60] sm:$0xff] %vm2908_vm4, %v2750_v59  ;;  %4646 = vmatprep.subr.bf16.mxu1 %v12368_v0  ;;  %v4145_v36 = vrot.slane %v3256_v23, 4 }
 0x2da   : > { %v2752_v22 = vpop.permute.xlu0 %2751  ;;  %v10811_v48 = vld [vmem:[#allocation3 + $0x30] sm:$0xff] }
 0x2db   : > { %2916 = vst.msk [vmem:[#allocation3 + $0x70] sm:$0xff] %vm2908_vm4, %v2752_v22  ;;  %3669 = vmatmul.mubr.bf16.vlgmr.msra.gmra.mrb[128].mxu0 %v10811_v48  ;;  %4017 = vmatmul.mubr.bf16.gmra.mrb[20].mxu1 %v10782_v63  ;;  %v4146_v24 = vsel %vm4143_vm5, %v4144_v14, %v4145_v36  ;;  %v4150_v27 = vrot.slane %v10811_v48, 4  ;;  %v10886_v22 = vld [vmem:[#allocation3 + $0x88] sm:$0xff]  ;;  %v4157_v48 = vsel %vm4143_vm5, %v4152_v8, %v4156_v28  ;;  %v10943_v8 = vld [vmem:[#allocation3 + $0xb8] sm:$0xff] }
 0x2dc   : > { %8396 = vmatprep.mubr.msk.bf16.mxu0 %vm2679_vm2, %v10816_v61  ;;  %v2754_v42 = vpop.permute.xlu1 %2753  ;;  %8444 = vmatprep.mubr.msk.bf16.mxu1 %vm2679_vm2, %v3383_v44  ;;  %v10828_v3 = vld [vmem:[#allocation3 + $0x40] sm:$0xff]  ;;  %v9355_v44 = vld [vmem:[%s12359_s4 + $0xd8] sm:$0xff]  }
 0x2dd   : > { %2917 = vst.msk [vmem:[#allocation3 + $0x80] sm:$0xff] %vm2908_vm4, %v2754_v42  ;;  %4647 = vmatpush1.bf16.msra.mxu1 %v9350_v2  ;;  %v4151_v2 = vsel %vm4143_vm5, %v4145_v36, %v4150_v27  ;;  %v4154_v42 = vrot.slane %v10828_v3, 4 }
 0x2de   : > { %v2756_v17 = vpop.permute.xlu0 %2755  ;;  %4648 = vmatprep.subr.bf16.mxu1 %v12368_v0  ;;  %v10841_v7 = vld [vmem:[#allocation3 + $0x50] sm:$0xff] }
 0x2df   : > { %2918 = vst.msk [vmem:[#allocation3 + $0x90] sm:$0xff] %vm2908_vm4, %v2756_v17  ;;  %v4160_v17 = vrot.slane %v10833_v5, 4  ;;  %v4158_v11 = vrot.slane %v10841_v7, 4 }
 0x2e0   : > { %v2758_v57 = vpop.permute.xlu1 %2757  ;;  %v10858_v13 = vld [vmem:[#allocation3 + $0x60] sm:$0xff] }
 0x2e1   : > { %2919 = vst.msk [vmem:[#allocation3 + $0xa0] sm:$0xff] %vm2908_vm4, %v2758_v57  ;;  %4649 = vmatpush1.bf16.msra.mxu1 %v9351_v51 }
 0x2e2   : > { %v2760_v26 = vpop.permute.xlu0 %2759  ;;  %5744 = vmatprep.subr.bf16.mxu1 %v12368_v0  ;;  %v10881_v59 = vld [vmem:[#allocation3 + $0x70] sm:$0xff] }
 0x2e3   : > { %2920 = vst.msk [vmem:[#allocation3 + $0xb0] sm:$0xff] %vm2908_vm4, %v2760_v26  ;;  %3677 = vmatmul.mubr.bf16.gmra.mrb[132].mxu0 %v10828_v3  ;;  %4025 = vmatmul.mubr.bf16.gmra.mrb[24].mxu1 %v3382_v45  ;;  %v9356_v45 = vld [vmem:[%s12359_s4 + $0xe0] sm:$0xff]   ;;  %v4155_v3 = vsel %vm4143_vm5, %v4150_v27, %v4154_v42 }
 0x2e4   : > { %8397 = vmatprep.mubr.msk.bf16.mxu0 %vm2679_vm2, %v10833_v5  ;;  %v2762_v34 = vpop.permute.xlu1 %2761  ;;  %8445 = vmatprep.mubr.msk.bf16.mxu1 %vm2679_vm2, %v3385_v40  ;;  %v10904_v40 = vld [vmem:[#allocation3 + $0x80] sm:$0xff]  ;;  %v10910_v5 = vld [vmem:[#allocation3 + $0x98] sm:$0xff] }
 0x2e5   : > { %2921 = vst.msk [vmem:[#allocation3 + $0xc0] sm:$0xff] %vm2908_vm4, %v2762_v34  ;;  %v4161_v34 = vsel %vm4143_vm5, %v4156_v28, %v4160_v17 }
 0x2e6   : > { %v2764_v4 = vpop.permute.xlu0 %2763  ;;  %v10922_v10 = vld [vmem:[#allocation3 + $0x90] sm:$0xff] }
 0x2e7   : > { %2922 = vst.msk [vmem:[#allocation3 + $0xd0] sm:$0xff] %vm2908_vm4, %v2764_v4 }
 0x2e8   : > { %v2766_v55 = vpop.permute.xlu1 %2765  ;;  %v10938_v36 = vld [vmem:[#allocation3 + $0xa0] sm:$0xff] }
 0x2e9   : > { %2923 = vst.msk [vmem:[#allocation3 + $0xe0] sm:$0xff] %vm2908_vm4, %v2766_v55 }
 0x2ea   : > { %v2768_v30 = vpop.permute.xlu0 %2767 }
 0x2eb   : > { %2924 = vst.msk [vmem:[#allocation3 + $0xf0] sm:$0xff] %vm2908_vm4, %v2768_v30  ;;  %3684 = vmatmul.mubr.bf16.gmra.mrb[136].mxu0 %v10841_v7  ;;  %4032 = vmatmul.mubr.bf16.gmra.mrb[28].mxu1 %v3384_v19  ;;  %v4159_v30 = vsel %vm4143_vm5, %v4154_v42, %v4158_v11  ;;  %v10927_v7 = vld [vmem:[#allocation3 + $0xa8] sm:$0xff]  ;;  %v4165_v19 = vsel %vm4143_vm5, %v4160_v17, %v4164_v41  ;;  %v4174_v17 = vrot.slane %v10922_v10, 4 }
 0x2ec   : > { %8398 = vmatprep.mubr.msk.bf16.mxu0 %vm2679_vm2, %v10845_v39  ;;  %v2770_v20 = vpop.permute.xlu1 %2769  ;;  %8458 = vmatprep.mubr.msk.bf16.mxu1 %vm2679_vm2, %v4149_v38  ;;  %v4162_v38 = vrot.slane %v10858_v13, 4 }
 0x2ed   : > { %2925 = vst.msk [vmem:[#allocation3 + $0x100] sm:$0xff] %vm2908_vm4, %v2770_v20  ;;  %v4168_v20 = vrot.slane %v10862_v15, 4 }
 0x2ee   : > { %v2772_v16 = vpop.permute.xlu0 %2771  ;;  %v4163_v54 = vsel %vm4143_vm5, %v4158_v11, %v4162_v38  ;;  %v4184_v11 = vrot.slane %v10943_v8, 4 }
 0x2ef   : > { %2926 = vst.msk [vmem:[#allocation3 + $0x110] sm:$0xff] %vm2908_vm4, %v2772_v16 }
 0x2f0   : > { %v2774_v32 = vpop.permute.xlu1 %2773 }
 0x2f1   : > { %2927 = vst.msk [vmem:[#allocation3 + $0x120] sm:$0xff] %vm2908_vm4, %v2774_v32  ;;  %v4169_v32 = vsel %vm4143_vm5, %v4164_v41, %v4168_v20 }
 0x2f2   : > { %v2776_v58 = vpop.permute.xlu0 %2775 }
 0x2f3   : > { %2928 = vst.msk [vmem:[#allocation3 + $0x130] sm:$0xff] %vm2908_vm4, %v2776_v58  ;;  %3691 = vmatmul.mubr.bf16.gmra.mrb[140].mxu0 %v10858_v13  ;;  %4659 = vmatmul.mubr.bf16.vlgmr.msra.gmra.mrb[32].mxu1 %v4146_v24  ;;  %v4172_v13 = vrot.slane %v10886_v22, 4 }
 0x2f4   : > { %5745 = vmatpush1.bf16.msra.mxu1 %v9352_v25  ;;  %8399 = vmatprep.mubr.msk.bf16.mxu0 %vm2679_vm2, %v10862_v15  ;;  %v2778_v53 = vpop.permute.xlu1 %2777  ;;  %v4166_v25 = vrot.slane %v10881_v59, 4 }
 0x2f5   : > { %2929 = vst.msk [vmem:[#allocation3 + $0x140] sm:$0xff] %vm2908_vm4, %v2778_v53  ;;  %8459 = vmatprep.mubr.msk.bf16.mxu1 %vm2679_vm2, %v4153_v29  ;;  %5746 = vmatprep.subr.bf16.mxu1 %v12368_v0  ;;  %v10954_v29 = vld [vmem:[#allocation3 + $0xb0] sm:$0xff]  ;;  %v4173_v27 = vsel %vm4143_vm5, %v4168_v20, %v4172_v13 }
 0x2f6   : > { %v2780_v46 = vpop.permute.xlu0 %2779 }
 0x2f7   : > { %2930 = vst.msk [vmem:[#allocation3 + $0x150] sm:$0xff] %vm2908_vm4, %v2780_v46  ;;  %v10959_v46 = vld [vmem:[#allocation3 + $0xc8] sm:$0xff] }
 0x2f8   : > { %v2782_v21 = vpop.permute.xlu1 %2781  ;;  %5747 = vmatpush1.bf16.msra.mxu1 %v9353_v12  ;;  %v4167_v12 = vsel %vm4143_vm5, %v4162_v38, %v4166_v25 }
 0x2f9   : > { %2931 = vst.msk [vmem:[#allocation3 + $0x160] sm:$0xff] %vm2908_vm4, %v2782_v21  ;;  %5748 = vmatprep.subr.bf16.mxu1 %v12368_v0  ;;  %v9357_v21 = vld [vmem:[%s12359_s4 + $0xe8] sm:$0xff]  }
 0x2fa   : > { %v2784_v50 = vpop.permute.xlu0 %2783 }
 0x2fb   : > { %2932 = vst.msk [vmem:[#allocation3 + $0x170] sm:$0xff] %vm2908_vm4, %v2784_v50  ;;  %3699 = vmatmul.mubr.bf16.gmra.mrb[144].mxu0 %v10881_v59  ;;  %4667 = vmatmul.mubr.bf16.gmra.mrb[36].mxu1 %v4151_v2  ;;  %v4176_v59 = vrot.slane %v10910_v5, 4 }
 0x2fc   : > { %8400 = vmatprep.mubr.msk.bf16.mxu0 %vm2679_vm2, %v10886_v22  ;;  %v2786_v61 = vpop.permute.xlu1 %2785  ;;  %8460 = vmatprep.mubr.msk.bf16.mxu1 %vm2679_vm2, %v4157_v48  ;;  %v10974_v48 = vld [vmem:[#allocation3 + $0xc0] sm:$0xff] }
 0x2fd   : > { %2933 = vst.msk [vmem:[#allocation3 + $0x180] sm:$0xff] %vm2908_vm4, %v2786_v61  ;;  %5749 = vmatpush1.bf16.msra.mxu1 %v9354_v37  ;;  %v4170_v37 = vrot.slane %v10904_v40, 4  ;;  %v4177_v42 = vsel %vm4143_vm5, %v4172_v13, %v4176_v59  ;;  %v3289_v13 = vld [vmem:[#allocation3 + $0x128] sm:$0xff] }
 0x2fe   : > { %v2788_v51 = vpop.permute.xlu0 %2787  ;;  %5750 = vmatprep.subr.bf16.mxu1 %v12368_v0 }
 0x2ff   : > { %2934 = vst.msk [vmem:[#allocation3 + $0x190] sm:$0xff] %vm2908_vm4, %v2788_v51  ;;  %v4171_v61 = vsel %vm4143_vm5, %v4166_v25, %v4170_v37  ;;  %v3286_v25 = vld [vmem:[#allocation3 + $0x110] sm:$0xff] }
 0x300   : > { %v2790_v57 = vpop.permute.xlu1 %2789 }
 0x301   : > { %2935 = vst.msk [vmem:[#allocation3 + $0x1a0] sm:$0xff] %vm2908_vm4, %v2790_v57  ;;  %5751 = vmatpush1.bf16.msra.mxu1 %v9355_v44  ;;  %v3279_v44 = vld [vmem:[#allocation3 + $0xd8] sm:$0xff]  ;;  %v4180_v57 = vrot.slane %v10927_v7, 4 }
 0x302   : > { %v2792_v26 = vpop.permute.xlu0 %2791  ;;  %5752 = vmatprep.subr.bf16.mxu1 %v12368_v0  ;;  %v4192_v20 = vrot.slane %v3279_v44, 4 }
 0x303   : > { %2936 = vst.msk [vmem:[#allocation3 + $0x1b0] sm:$0xff] %vm2908_vm4, %v2792_v26  ;;  %3706 = vmatmul.mubr.bf16.gmra.mrb[148].mxu0 %v10904_v40  ;;  %4674 = vmatmul.mubr.bf16.gmra.mrb[40].mxu1 %v4155_v3  ;;  %v3278_v40 = vld [vmem:[#allocation3 + $0xd0] sm:$0xff]  ;;  %v4175_v3 = vsel %vm4143_vm5, %v4170_v37, %v4174_v17 }
 0x304   : > { %8401 = vmatprep.mubr.msk.bf16.mxu0 %vm2679_vm2, %v10910_v5  ;;  %v2794_v56 = vpop.permute.xlu1 %2793  ;;  %8461 = vmatprep.mubr.msk.bf16.mxu1 %vm2679_vm2, %v4161_v34  ;;  %v3281_v5 = vld [vmem:[#allocation3 + $0xe8] sm:$0xff]  ;;  %v4181_v34 = vsel %vm4143_vm5, %v4176_v59, %v4180_v57 }
 0x305   : > { %2937 = vst.msk [vmem:[#allocation3 + $0x1c0] sm:$0xff] %vm2908_vm4, %v2794_v56  ;;  %5753 = vmatpush1.bf16.msra.mxu1 %v9356_v45  ;;  %v4178_v56 = vrot.slane %v10938_v36, 4 }
 0x306   : > { %v2796_v4 = vpop.permute.xlu0 %2795  ;;  %5754 = vmatprep.subr.bf16.mxu1 %v12368_v0 }
 0x307   : > { %2938 = vst.msk [vmem:[#allocation3 + $0x1d0] sm:$0xff] %vm2908_vm4, %v2796_v4  ;;  %v3280_v4 = vld [vmem:[#allocation3 + $0xe0] sm:$0xff]  ;;  %v4179_v41 = vsel %vm4143_vm5, %v4174_v17, %v4178_v56  ;;  %v3295_v17 = vld [vmem:[#allocation3 + $0x158] sm:$0xff] }
 0x308   : > { %v2798_v49 = vpop.permute.xlu1 %2797 }
 0x309   : > { %2939 = vst.msk [vmem:[#allocation3 + $0x1e0] sm:$0xff] %vm2908_vm4, %v2798_v49  ;;  %5755 = vmatpush1.bf16.msra.mxu1 %v9357_v21  ;;  %v3283_v49 = vld [vmem:[#allocation3 + $0xf8] sm:$0xff] }
 0x30a   : > { %v2800_v55 = vpop.permute.xlu0 %2799  ;;  %5756 = vmatprep.subr.bf16.mxu1 %v12368_v0 }
 0x30b   : > { %2940 = vst.msk [vmem:[#allocation3 + $0x1f0] sm:$0xff] %vm2908_vm4, %v2800_v55  ;;  %3713 = vmatmul.mubr.bf16.gmra.mrb[152].mxu0 %v10922_v10  ;;  %4681 = vmatmul.mubr.bf16.gmra.mrb[44].mxu1 %v4159_v30  ;;  %v4185_v55 = vsel %vm4143_vm5, %v4180_v57, %v4184_v11  ;;  %v4182_v10 = vrot.slane %v10954_v29, 4  ;;  %v4188_v30 = vrot.slane %v10959_v46, 4 }
 0x30c   : > { %8402 = vmatprep.mubr.msk.bf16.mxu0 %vm2679_vm2, %v10927_v7  ;;  %v2802_v39 = vpop.permute.xlu1 %2801  ;;  %8462 = vmatprep.mubr.msk.bf16.mxu1 %vm2679_vm2, %v4165_v19  ;;  %v3282_v7 = vld [vmem:[#allocation3 + $0xf0] sm:$0xff] }
 0x30d   : > { %2941 = vst.msk [vmem:[#allocation3 + $0x200] sm:$0xff] %vm2908_vm4, %v2802_v39  ;;  %v4183_v19 = vsel %vm4143_vm5, %v4178_v56, %v4182_v10  ;;  %v3285_v39 = vld [vmem:[#allocation3 + $0x108] sm:$0xff]  ;;  %v4189_v38 = vsel %vm4143_vm5, %v4184_v11, %v4188_v30  ;;  %v4198_v21 = vrot.slane %v3282_v7, 4 }
 0x30e   : > { %v2804_v23 = vpop.permute.xlu0 %2803  ;;  %v4204_v37 = vrot.slane %v3285_v39, 4 }
 0x30f   : > { %2942 = vst.msk [vmem:[#allocation3 + $0x210] sm:$0xff] %vm2908_vm4, %v2804_v23  ;;  %v4186_v23 = vrot.slane %v10974_v48, 4 }
 0x310   : > { %v2806_v14 = vpop.permute.xlu1 %2805 }
 0x311   : > { %2943 = vst.msk [vmem:[#allocation3 + $0x220] sm:$0xff] %vm2908_vm4, %v2806_v14  ;;  %v9358_v14 = vld [vmem:[%s12359_s4 + $0xf0] sm:$0xff]  }
 0x312   : > { %v2808_v16 = vpop.permute.xlu0 %2807  ;;  %5757 = vmatpush1.bf16.msra.mxu1 %v9358_v14  ;;  %v3300_v14 = vld [vmem:[#allocation3 + $0x180] sm:$0xff] }
 0x313   : > { %2944 = vst.msk [vmem:[#allocation3 + $0x230] sm:$0xff] %vm2908_vm4, %v2808_v16  ;;  %3721 = vmatmul.mubr.bf16.gmra.mrb[156].mxu0 %v10938_v36  ;;  %4689 = vmatmul.mubr.bf16.gmra.mrb[48].mxu1 %v4163_v54  ;;  %v3284_v16 = vld [vmem:[#allocation3 + $0x100] sm:$0xff]  ;;  %v4187_v36 = vsel %vm4143_vm5, %v4182_v10, %v4186_v23  ;;  %v3287_v54 = vld [vmem:[#allocation3 + $0x118] sm:$0xff] }
 0x314   : > { %8403 = vmatprep.mubr.msk.bf16.mxu0 %vm2679_vm2, %v10943_v8  ;;  %v2810_v24 = vpop.permute.xlu1 %2809  ;;  %8463 = vmatprep.mubr.msk.bf16.mxu1 %vm2679_vm2, %v4169_v32  ;;  %v4193_v8 = vsel %vm4143_vm5, %v4188_v30, %v4192_v20  ;;  %v4190_v32 = vrot.slane %v3278_v40, 4 }
 0x315   : > { %2945 = vst.msk [vmem:[#allocation3 + $0x240] sm:$0xff] %vm2908_vm4, %v2810_v24  ;;  %5758 = vmatprep.subr.bf16.mxu1 %v12368_v0  ;;  %v4196_v24 = vrot.slane %v3281_v5, 4 }
 0x316   : > { %v2812_v58 = vpop.permute.xlu0 %2811 }
 0x317   : > { %2946 = vst.msk [vmem:[#allocation3 + $0x250] sm:$0xff] %vm2908_vm4, %v2812_v58  ;;  %v4191_v58 = vsel %vm4143_vm5, %v4186_v23, %v4190_v32 }
 0x318   : > { %v2814_v15 = vpop.permute.xlu1 %2813 }
 0x319   : > { %2947 = vst.msk [vmem:[#allocation3 + $0x260] sm:$0xff] %vm2908_vm4, %v2814_v15  ;;  %v4197_v15 = vsel %vm4143_vm5, %v4192_v20, %v4196_v24  ;;  %v4224_v20 = vrot.slane %v3295_v17, 4 }
 0x31a   : > { %v2816_v53 = vpop.permute.xlu0 %2815 }
 0x31b   : > { %2948 = vst.msk [vmem:[#allocation3 + $0x270] sm:$0xff] %vm2908_vm4, %v2816_v53  ;;  %3728 = vmatmul.mubr.bf16.gmra.mrb[160].mxu0 %v10954_v29  ;;  %4696 = vmatmul.mubr.bf16.gmra.mrb[52].mxu1 %v4167_v12  ;;  %v4194_v53 = vrot.slane %v3280_v4, 4  ;;  %v4200_v29 = vrot.slane %v3283_v49, 4  ;;  %v3288_v12 = vld [vmem:[#allocation3 + $0x120] sm:$0xff] }
 0x31c   : > { %8404 = vmatprep.mubr.msk.bf16.mxu0 %vm2679_vm2, %v10959_v46  ;;  %v2818_v28 = vpop.permute.xlu1 %2817  ;;  %8464 = vmatprep.mubr.msk.bf16.mxu1 %vm2679_vm2, %v4173_v27  ;;  %v3291_v27 = vld [vmem:[#allocation3 + $0x138] sm:$0xff]  ;;  %v4210_v56 = vrot.slane %v3288_v12, 4 }
 0x31d   : > { %2949 = vst.msk [vmem:[#allocation3 + $0x280] sm:$0xff] %vm2908_vm4, %v2818_v28  ;;  %v4195_v46 = vsel %vm4143_vm5, %v4190_v32, %v4194_v53  ;;  %v4201_v28 = vsel %vm4143_vm5, %v4196_v24, %v4200_v29  ;;  %v4199_v59 = vsel %vm4143_vm5, %v4194_v53, %v4198_v21  ;;  %v4216_v11 = vrot.slane %v3291_v27, 4 }
 0x31e   : > { %v2820_v50 = vpop.permute.xlu0 %2819 }
 0x31f   : > { %2950 = vst.msk [vmem:[#allocation3 + $0x290] sm:$0xff] %vm2908_vm4, %v2820_v50  ;;  %v3290_v50 = vld [vmem:[#allocation3 + $0x130] sm:$0xff] }
 0x320   : > { %v2822_v2 = vpop.permute.xlu1 %2821  ;;  %v4214_v10 = vrot.slane %v3290_v50, 4 }
 0x321   : > { %2951 = vst.msk [vmem:[#allocation3 + $0x2a0] sm:$0xff] %vm2908_vm4, %v2822_v2  ;;  %v3293_v2 = vld [vmem:[#allocation3 + $0x148] sm:$0xff] }
 0x322   : > { %v2824_v22 = vpop.permute.xlu0 %2823  ;;  %v4220_v30 = vrot.slane %v3293_v2, 4 }
 0x323   : > { %2952 = vst.msk [vmem:[#allocation3 + $0x2b0] sm:$0xff] %vm2908_vm4, %v2824_v22  ;;  %3735 = vmatmul.mubr.bf16.gmra.mrb[164].mxu0 %v10974_v48  ;;  %4703 = vmatmul.mubr.bf16.gmra.mrb[56].mxu1 %v4171_v61  ;;  %v4205_v22 = vsel %vm4143_vm5, %v4200_v29, %v4204_v37  ;;  %v4202_v48 = vrot.slane %v3284_v16, 4  ;;  %v4208_v61 = vrot.slane %v3287_v54, 4 }
 0x324   : > { %8405 = vmatprep.mubr.msk.bf16.mxu0 %vm2679_vm2, %v3279_v44  ;;  %v2826_v51 = vpop.permute.xlu1 %2825  ;;  %8465 = vmatprep.mubr.msk.bf16.mxu1 %vm2679_vm2, %v4177_v42  ;;  %v9359_v44 = vld [vmem:[%s12359_s4 + $0xf8] sm:$0xff]   ;;  %v3292_v42 = vld [vmem:[#allocation3 + $0x140] sm:$0xff] }
 0x325   : > { %2953 = vst.msk [vmem:[#allocation3 + $0x2c0] sm:$0xff] %vm2908_vm4, %v2826_v51  ;;  %v4203_v51 = vsel %vm4143_vm5, %v4198_v21, %v4202_v48  ;;  %v4209_v57 = vsel %vm4143_vm5, %v4204_v37, %v4208_v61  ;;  %5759 = vmatpush1.bf16.msra.mxu1 %v9359_v44  ;;  %v4218_v23 = vrot.slane %v3292_v42, 4  ;;  %v11073_v44 = vld [vmem:[#allocation3 + $0x1c0] sm:$0xff] }
 0x326   : > { %5760 = vmatprep.subr.bf16.mxu1 %v12368_v0 }
 0x327   : > { %v2828_v45 = vpop.permute.xlu0 %2827 }
 0x328   : > { %2954 = vst.msk [vmem:[#allocation3 + $0x2d0] sm:$0xff] %vm2908_vm4, %v2828_v45  ;;  %v2846_v26 = vpop.permute.xlu1 %2845  ;;  %v4206_v45 = vrot.slane %v3286_v25, 4 }
 0x329   : > { %2963 = vst.msk [vmem:[#allocation3 + $0x360] sm:$0xff] %vm2908_vm4, %v2846_v26  ;;  %v4212_v26 = vrot.slane %v3289_v13, 4 }
 0x32b   : > { %3743 = vmatmul.mubr.bf16.gmra.mrb[168].mxu0 %v3278_v40  ;;  %4711 = vmatmul.mubr.bf16.gmra.mrb[60].mxu1 %v4175_v3  ;;  %v3294_v40 = vld [vmem:[#allocation3 + $0x150] sm:$0xff]  ;;  %v4207_v3 = vsel %vm4143_vm5, %v4202_v48, %v4206_v45  ;;  %v4234_v48 = vrot.slane %v3300_v14, 4 }
 0x32c   : > { %8406 = vmatprep.mubr.msk.bf16.mxu0 %vm2679_vm2, %v3281_v5  ;;  %8466 = vmatprep.mubr.msk.bf16.mxu1 %vm2679_vm2, %v4181_v34  ;;  %v3297_v5 = vld [vmem:[#allocation3 + $0x168] sm:$0xff]  ;;  %v4213_v34 = vsel %vm4143_vm5, %v4208_v61, %v4212_v26  ;;  %v4222_v32 = vrot.slane %v3294_v40, 4 }
 0x32d   : > { %v4228_v24 = vrot.slane %v3297_v5, 4 }
 0x333   : > { %3750 = vmatmul.mubr.bf16.gmra.mrb[172].mxu0 %v3280_v4  ;;  %4718 = vmatmul.mubr.bf16.gmra.mrb[64].mxu1 %v4179_v41  ;;  %v3296_v4 = vld [vmem:[#allocation3 + $0x160] sm:$0xff]  ;;  %v4211_v41 = vsel %vm4143_vm5, %v4206_v45, %v4210_v56 }
 0x334   : > { %8407 = vmatprep.mubr.msk.bf16.mxu0 %vm2679_vm2, %v3283_v49  ;;  %8467 = vmatprep.mubr.msk.bf16.mxu1 %vm2679_vm2, %v4185_v55  ;;  %v3299_v49 = vld [vmem:[#allocation3 + $0x178] sm:$0xff]  ;;  %v4217_v55 = vsel %vm4143_vm5, %v4212_v26, %v4216_v11  ;;  %v4226_v53 = vrot.slane %v3296_v4, 4 }
 0x335   : > { %v4232_v29 = vrot.slane %v3299_v49, 4 }
 0x33b   : > { %3757 = vmatmul.mubr.bf16.gmra.mrb[176].mxu0 %v3282_v7  ;;  %4725 = vmatmul.mubr.bf16.gmra.mrb[68].mxu1 %v4183_v19  ;;  %v3298_v7 = vld [vmem:[#allocation3 + $0x170] sm:$0xff]  ;;  %v4215_v19 = vsel %vm4143_vm5, %v4210_v56, %v4214_v10 }
 0x33c   : > { %8408 = vmatprep.mubr.msk.bf16.mxu0 %vm2679_vm2, %v3285_v39  ;;  %8468 = vmatprep.mubr.msk.bf16.mxu1 %vm2679_vm2, %v4189_v38  ;;  %v3301_v39 = vld [vmem:[#allocation3 + $0x188] sm:$0xff]  ;;  %v4221_v38 = vsel %vm4143_vm5, %v4216_v11, %v4220_v30  ;;  %v4230_v21 = vrot.slane %v3298_v7, 4 }
 0x33d   : > { %v4236_v37 = vrot.slane %v3301_v39, 4 }
 0x343   : > { %3765 = vmatmul.mubr.bf16.gmra.mrb[180].mxu0 %v3284_v16  ;;  %4733 = vmatmul.mubr.bf16.gmra.mrb[72].mxu1 %v4187_v36  ;;  %v4219_v16 = vsel %vm4143_vm5, %v4214_v10, %v4218_v23  ;;  %v3303_v36 = vld [vmem:[#allocation3 + $0x198] sm:$0xff]  ;;  %v11102_v10 = vld [vmem:[#allocation3 + $0x1e0] sm:$0xff] }
 0x344   : > { %8409 = vmatprep.mubr.msk.bf16.mxu0 %vm2679_vm2, %v3287_v54  ;;  %8469 = vmatprep.mubr.msk.bf16.mxu1 %vm2679_vm2, %v4193_v8  ;;  %v4225_v54 = vsel %vm4143_vm5, %v4220_v30, %v4224_v20  ;;  %v9360_v8 = vld [vmem:[%s12359_s4 + $0x100] sm:$0xff]   ;;  %v4240_v61 = vrot.slane %v3303_v36, 4 }
 0x345   : > { %5761 = vmatpush1.bf16.msra.mxu1 %v9360_v8 }
 0x346   : > { %5762 = vmatprep.subr.bf16.mxu1 %v12368_v0 }
 0x34b   : > { %3772 = vmatmul.mubr.bf16.gmra.mrb[184].mxu0 %v3286_v25  ;;  %4740 = vmatmul.mubr.bf16.gmra.mrb[76].mxu1 %v4191_v58  ;;  %v3302_v25 = vld [vmem:[#allocation3 + $0x190] sm:$0xff]  ;;  %v4223_v58 = vsel %vm4143_vm5, %v4218_v23, %v4222_v32 }
 0x34c   : > { %8410 = vmatprep.mubr.msk.bf16.mxu0 %vm2679_vm2, %v3289_v13  ;;  %8470 = vmatprep.mubr.msk.bf16.mxu1 %vm2679_vm2, %v4197_v15  ;;  %v3305_v13 = vld [vmem:[#allocation3 + $0x1a8] sm:$0xff]  ;;  %v4229_v15 = vsel %vm4143_vm5, %v4224_v20, %v4228_v24  ;;  %v4238_v45 = vrot.slane %v3302_v25, 4 }
 0x34d   : > { %v4244_v26 = vrot.slane %v3305_v13, 4 }
 0x353   : > { %3779 = vmatmul.mubr.bf16.gmra.mrb[188].mxu0 %v3288_v12  ;;  %4747 = vmatmul.mubr.bf16.gmra.mrb[80].mxu1 %v4195_v46  ;;  %v11056_v12 = vld [vmem:[#allocation3 + $0x1a0] sm:$0xff]  ;;  %v4227_v46 = vsel %vm4143_vm5, %v4222_v32, %v4226_v53  ;;  %v11121_v32 = vld [vmem:[#allocation3 + $0x208] sm:$0xff] }
 0x354   : > { %8411 = vmatprep.mubr.msk.bf16.mxu0 %vm2679_vm2, %v3291_v27  ;;  %8471 = vmatprep.mubr.msk.bf16.mxu1 %vm2679_vm2, %v4201_v28  ;;  %v4233_v27 = vsel %vm4143_vm5, %v4228_v24, %v4232_v29  ;;  %v3307_v28 = vld [vmem:[#allocation3 + $0x1b8] sm:$0xff]  ;;  %v4242_v56 = vrot.slane %v11056_v12, 4  ;;  %v4250_v24 = vrot.slane %v11073_v44, 4 }
 0x356   : > { %v4243_v30 = vsel %vm4143_vm5, %v4238_v45, %v4242_v56 }
 0x35b   : > { %3787 = vmatmul.mubr.bf16.gmra.mrb[192].mxu0 %v3290_v50  ;;  %4755 = vmatmul.mubr.bf16.gmra.mrb[84].mxu1 %v4199_v59  ;;  %v11063_v50 = vld [vmem:[#allocation3 + $0x1b0] sm:$0xff]  ;;  %v4231_v59 = vsel %vm4143_vm5, %v4226_v53, %v4230_v21 }
 0x35c   : > { %8412 = vmatprep.mubr.msk.bf16.mxu0 %vm2679_vm2, %v3293_v2  ;;  %8472 = vmatprep.mubr.msk.bf16.mxu1 %vm2679_vm2, %v4205_v22  ;;  %v4237_v2 = vsel %vm4143_vm5, %v4232_v29, %v4236_v37  ;;  %v11068_v22 = vld [vmem:[#allocation3 + $0x1c8] sm:$0xff]  ;;  %v11130_v29 = vld [vmem:[#allocation3 + $0x200] sm:$0xff] }
 0x35d   : > { %v4252_v23 = vrot.slane %v11068_v22, 4 }
 0x363   : > { %3794 = vmatmul.mubr.bf16.gmra.mrb[196].mxu0 %v3292_v42  ;;  %4762 = vmatmul.mubr.bf16.gmra.mrb[88].mxu1 %v4203_v51  ;;  %v4235_v42 = vsel %vm4143_vm5, %v4230_v21, %v4234_v48  ;;  %v11077_v51 = vld [vmem:[#allocation3 + $0x1d8] sm:$0xff] }
 0x364   : > { %8413 = vmatprep.mubr.msk.bf16.mxu0 %vm2679_vm2, %v3295_v17  ;;  %8473 = vmatprep.mubr.msk.bf16.mxu1 %vm2679_vm2, %v4209_v57  ;;  %v4241_v17 = vsel %vm4143_vm5, %v4236_v37, %v4240_v61  ;;  %v9361_v57 = vld [vmem:[%s12359_s4 + $0x108] sm:$0xff]  }
 0x365   : > { %5763 = vmatpush1.bf16.msra.mxu1 %v9361_v57 }
 0x366   : > { %5764 = vmatprep.subr.bf16.mxu1 %v12368_v0 }
 0x36b   : > { %3801 = vmatmul.mubr.bf16.gmra.mrb[200].mxu0 %v3294_v40  ;;  %4769 = vmatmul.mubr.bf16.gmra.mrb[92].mxu1 %v4207_v3  ;;  %v11087_v40 = vld [vmem:[#allocation3 + $0x1d0] sm:$0xff]  ;;  %v4239_v3 = vsel %vm4143_vm5, %v4234_v48, %v4238_v45 }
 0x36c   : > { %8414 = vmatprep.mubr.msk.bf16.mxu0 %vm2679_vm2, %v3297_v5  ;;  %8474 = vmatprep.mubr.msk.bf16.mxu1 %vm2679_vm2, %v4213_v34  ;;  %v11091_v5 = vld [vmem:[#allocation3 + $0x1e8] sm:$0xff]  ;;  %v4245_v34 = vsel %vm4143_vm5, %v4240_v61, %v4244_v26  ;;  %v11149_v48 = vld [vmem:[#allocation3 + $0x210] sm:$0xff] }
 0x36d   : > { %v4260_v21 = vrot.slane %v11091_v5, 4 }
 0x373   : > { %3809 = vmatmul.mubr.bf16.gmra.mrb[204].mxu0 %v3296_v4  ;;  %4777 = vmatmul.mubr.bf16.gmra.mrb[96].mxu1 %v4211_v41  ;;  %v4248_v4 = vrot.slane %v3307_v28, 4 }
 0x374   : > { %8415 = vmatprep.mubr.msk.bf16.mxu0 %vm2679_vm2, %v3299_v49  ;;  %8475 = vmatprep.mubr.msk.bf16.mxu1 %vm2679_vm2, %v4217_v55 }
 0x37b   : > { %3816 = vmatmul.mubr.bf16.gmra.mrb[208].mxu0 %v3298_v7  ;;  %4784 = vmatmul.mubr.bf16.gmra.mrb[100].mxu1 %v4215_v19  ;;  %v11106_v7 = vld [vmem:[#allocation3 + $0x1f8] sm:$0xff]  ;;  %v4249_v19 = vsel %vm4143_vm5, %v4244_v26, %v4248_v4 }
 0x37c   : > { %8416 = vmatprep.mubr.msk.bf16.mxu0 %vm2679_vm2, %v3301_v39  ;;  %8476 = vmatprep.mubr.msk.bf16.mxu1 %vm2679_vm2, %v4221_v38  ;;  %v4246_v39 = vrot.slane %v11063_v50, 4  ;;  %v4264_v57 = vrot.slane %v11106_v7, 4 }
 0x37e   : > { %v4247_v8 = vsel %vm4143_vm5, %v4242_v56, %v4246_v39  ;;  %v4265_v56 = vsel %vm4143_vm5, %v4260_v21, %v4264_v57 }
 0x383   : > { %3823 = vmatmul.mubr.bf16.gmra.mrb[212].mxu0 %v3300_v14  ;;  %4791 = vmatmul.mubr.bf16.gmra.mrb[104].mxu1 %v4219_v16 }
 0x384   : > { %8417 = vmatprep.mubr.msk.bf16.mxu0 %vm2679_vm2, %v3303_v36  ;;  %8477 = vmatprep.mubr.msk.bf16.mxu1 %vm2679_vm2, %v4225_v54  ;;  %v4253_v36 = vsel %vm4143_vm5, %v4248_v4, %v4252_v23  ;;  %v11117_v54 = vld [vmem:[#allocation3 + $0x1f0] sm:$0xff] }
 0x385   : > { %v4262_v4 = vrot.slane %v11117_v54, 4 }
 0x38b   : > { %3831 = vmatmul.mubr.bf16.gmra.mrb[216].mxu0 %v3302_v25  ;;  %4799 = vmatmul.mubr.bf16.gmra.mrb[108].mxu1 %v4223_v58  ;;  %v4256_v58 = vrot.slane %v11077_v51, 4 }
 0x38c   : > { %8418 = vmatprep.mubr.msk.bf16.mxu0 %vm2679_vm2, %v3305_v13  ;;  %8478 = vmatprep.mubr.msk.bf16.mxu1 %vm2679_vm2, %v4229_v15 }
 0x393   : > { %3838 = vmatmul.mubr.bf16.gmra.mrb[220].mxu0 %v11056_v12  ;;  %4806 = vmatmul.mubr.bf16.gmra.mrb[112].mxu1 %v4227_v46  ;;  %v4251_v12 = vsel %vm4143_vm5, %v4246_v39, %v4250_v24  ;;  %v11134_v46 = vld [vmem:[#allocation3 + $0x218] sm:$0xff] }
 0x394   : > { %8479 = vmatprep.mubr.msk.bf16.mxu1 %vm2679_vm2, %v4233_v27  ;;  %8419 = vmatprep.mubr.msk.bf16.mxu0 %vm2679_vm2, %v3307_v28  ;;  %v4257_v27 = vsel %vm4143_vm5, %v4252_v23, %v4256_v58 }
 0x39b   : > { %3845 = vmatmul.mubr.bf16.gmra.mrb[224].mxu0 %v11063_v50  ;;  %4813 = vmatmul.mubr.bf16.gmra.mrb[116].mxu1 %v4231_v59  ;;  %v9362_v50 = vld [vmem:[%s12359_s4 + $0x110] sm:$0xff]   ;;  %v4254_v59 = vrot.slane %v11087_v40, 4 }
 0x39c   : > { %8480 = vmatprep.mubr.msk.bf16.mxu1 %vm2679_vm2, %v4237_v2  ;;  %8420 = vmatprep.mubr.msk.bf16.mxu0 %vm2679_vm2, %v11068_v22 }
 0x39d   : > { %5765 = vmatpush1.bf16.msra.mxu1 %v9362_v50  ;;  %v4255_v61 = vsel %vm4143_vm5, %v4250_v24, %v4254_v59  ;;  %v11194_v24 = vld [vmem:[#allocation3 + $0x240] sm:$0xff]  ;;  %v11211_v50 = vld [vmem:[#allocation3 + $0x250] sm:$0xff] }
 0x39e   : > { %5766 = vmatprep.subr.bf16.mxu1 %v12368_v0 }
 0x3a3   : > { %3851 = vmatmul.mubr.bf16.gmra.mrb[228].mxu0 %v11073_v44  ;;  %4821 = vmatmul.mubr.bf16.gmra.mrb[120].mxu1 %v4235_v42  ;;  %v11154_v44 = vld [vmem:[#allocation3 + $0x228] sm:$0xff]  ;;  %v4261_v42 = vsel %vm4143_vm5, %v4256_v58, %v4260_v21 }
 0x3a4   : > { %8421 = vmatprep.mubr.msk.bf16.mxu0 %vm2679_vm2, %v11077_v51  ;;  %8481 = vmatprep.mubr.msk.bf16.mxu1 %vm2679_vm2, %v4241_v17  ;;  %v4258_v51 = vrot.slane %v11102_v10, 4 }
 0x3a6   : > { %v4263_v39 = vsel %vm4143_vm5, %v4258_v51, %v4262_v4 }
 0x3ab   : > { %3857 = vmatmul.mubr.bf16.gmra.mrb[232].mxu0 %v11087_v40  ;;  %4828 = vmatmul.mubr.bf16.gmra.mrb[124].mxu1 %v4239_v3  ;;  %v11164_v3 = vld [vmem:[#allocation3 + $0x220] sm:$0xff] }
 0x3ac   : > { %8422 = vmatprep.mubr.msk.bf16.mxu0 %vm2679_vm2, %v11091_v5  ;;  %8482 = vmatprep.mubr.msk.bf16.mxu1 %vm2679_vm2, %v4245_v34  ;;  %v4259_v5 = vsel %vm4143_vm5, %v4254_v59, %v4258_v51  ;;  %v11168_v34 = vld [vmem:[#allocation3 + $0x238] sm:$0xff] }
 0x3ae   : > { %v11098_v11 = vpop.f32.mrb[128].mxu0 }
 0x3af   : > { %v3672_v41 = vpop.f32.mrb[129].mxu0 }
 0x3b0   : > { %v11100_v49 = vpop.f32.mrb[130].mxu0 }
 0x3b1   : > { %v3675_v55 = vpop.f32.mrb[131].mxu0 }
 0x3b2   : > { %v4268_v55 = vrot.slane %v11121_v32, 4 }
 0x3b3   : > { %3863 = vmatmul.mubr.bf16.gmra.mrb[236].mxu0 %v11102_v10  ;;  %4835 = vmatmul.mubr.bf16.gmra.mrb[128].mxu1 %v4243_v30 }
 0x3b4   : > { %8423 = vmatprep.mubr.msk.bf16.mxu0 %vm2679_vm2, %v11106_v7  ;;  %8483 = vmatprep.mubr.msk.bf16.mxu1 %vm2679_vm2, %v4249_v19  ;;  %v11178_v19 = vld [vmem:[#allocation3 + $0x230] sm:$0xff]  ;;  %v4269_v23 = vsel %vm4143_vm5, %v4264_v57, %v4268_v55 }
 0x3b6   : > { %v3678_v38 = vpop.f32.mrb[132].mxu0 }
 0x3b7   : > { %v3679_v20 = vpop.f32.mrb[133].mxu0  ;;  %v11182_v38 = vld [vmem:[#allocation3 + $0x248] sm:$0xff] }
 0x3b8   : > { %v11114_v14 = vpop.f32.mrb[134].mxu0  ;;  %v4266_v20 = vrot.slane %v11130_v29, 4 }
 0x3b9   : > { %v3682_v16 = vpop.f32.mrb[135].mxu0 }
 0x3ba   : > { %v4267_v58 = vsel %vm4143_vm5, %v4262_v4, %v4266_v20  ;;  %v4284_v4 = vrot.slane %v11182_v38, 4 }
 0x3bb   : > { %3871 = vmatmul.mubr.bf16.gmra.mrb[240].mxu0 %v11117_v54  ;;  %4841 = vmatmul.mubr.bf16.gmra.mrb[132].mxu1 %v4247_v8 }
 0x3bc   : > { %8424 = vmatprep.mubr.msk.bf16.mxu0 %vm2679_vm2, %v11121_v32  ;;  %8484 = vmatprep.mubr.msk.bf16.mxu1 %vm2679_vm2, %v4253_v36  ;;  %v4272_v36 = vrot.slane %v11134_v46, 4 }
 0x3be   : > { %v11127_v25 = vpop.f32.mrb[136].mxu0 }
 0x3bf   : > { %v3687_v13 = vpop.f32.mrb[137].mxu0 }
 0x3c0   : > { %v3688_v15 = vpop.f32.mrb[138].mxu0  ;;  %v11198_v13 = vld [vmem:[#allocation3 + $0x258] sm:$0xff] }
 0x3c1   : > { %v3689_v53 = vpop.f32.mrb[139].mxu0  ;;  %v4273_v15 = vsel %vm4143_vm5, %v4268_v55, %v4272_v36 }
 0x3c2   : > { %v4270_v53 = vrot.slane %v11149_v48, 4 }
 0x3c3   : > { %3878 = vmatmul.mubr.bf16.gmra.mrb[244].mxu0 %v11130_v29  ;;  %4847 = vmatmul.mubr.bf16.gmra.mrb[136].mxu1 %v4251_v12  ;;  %v4276_v12 = vrot.slane %v11154_v44, 4 }
 0x3c4   : > { %8425 = vmatprep.mubr.msk.bf16.mxu0 %vm2679_vm2, %v11134_v46  ;;  %8485 = vmatprep.mubr.msk.bf16.mxu1 %vm2679_vm2, %v4257_v27  ;;  %v4271_v59 = vsel %vm4143_vm5, %v4266_v20, %v4270_v53 }
 0x3c6   : > { %v11140_v28 = vpop.f32.mrb[140].mxu0 }
 0x3c7   : > { %v3694_v37 = vpop.f32.mrb[141].mxu0 }
 0x3c8   : > { %v11147_v2 = vpop.f32.mrb[142].mxu0  ;;  %v9363_v37 = vld [vmem:[%s12359_s4 + $0x118] sm:$0xff]  }
 0x3c9   : > { %v3697_v22 = vpop.f32.mrb[143].mxu0  ;;  %5767 = vmatpush1.bf16.msra.mxu1 %v9363_v37 }
 0x3ca   : > { %v11215_v22 = vld [vmem:[#allocation3 + $0x268] sm:$0xff] }
 0x3cb   : > { %3885 = vmatmul.mubr.bf16.gmra.mrb[248].mxu0 %v11149_v48  ;;  %4853 = vmatmul.mubr.bf16.gmra.mrb[140].mxu1 %v4255_v61  ;;  %v4277_v48 = vsel %vm4143_vm5, %v4272_v36, %v4276_v12  ;;  %v4274_v61 = vrot.slane %v11164_v3, 4  ;;  %v4288_v36 = vrot.slane %v11198_v13, 4 }
 0x3cc   : > { %8426 = vmatprep.mubr.msk.bf16.mxu0 %vm2679_vm2, %v11154_v44  ;;  %8486 = vmatprep.mubr.msk.bf16.mxu1 %vm2679_vm2, %v4261_v42  ;;  %v4280_v42 = vrot.slane %v11168_v34, 4 }
 0x3ce   : > { %v3700_v17 = vpop.f32.mrb[144].mxu0  ;;  %v4285_v20 = vsel %vm4143_vm5, %v4280_v42, %v4284_v4 }
 0x3cf   : > { %v3701_v45 = vpop.f32.mrb[145].mxu0 }
 0x3d0   : > { %v11162_v26 = vpop.f32.mrb[146].mxu0  ;;  %v11225_v45 = vld [vmem:[#allocation3 + $0x260] sm:$0xff] }
 0x3d1   : > { %v3704_v40 = vpop.f32.mrb[147].mxu0 }
 0x3d2   : > { %v4275_v40 = vsel %vm4143_vm5, %v4270_v53, %v4274_v61 }
 0x3d3   : > { %3893 = vmatmul.mubr.bf16.gmra.mrb[252].mxu0 %v11164_v3  ;;  %4861 = vmatmul.mubr.bf16.gmra.mrb[144].mxu1 %v4259_v5  ;;  %v11229_v5 = vld [vmem:[#allocation3 + $0x278] sm:$0xff] }
 0x3d4   : > { %8427 = vmatprep.mubr.msk.bf16.mxu0 %vm2679_vm2, %v11168_v34  ;;  %8487 = vmatprep.mubr.msk.bf16.mxu1 %vm2679_vm2, %v4265_v56  ;;  %v4281_v56 = vsel %vm4143_vm5, %v4276_v12, %v4280_v42  ;;  %v4278_v34 = vrot.slane %v11178_v19, 4  ;;  %v4289_v12 = vsel %vm4143_vm5, %v4284_v4, %v4288_v36  ;;  %v11273_v42 = vld [vmem:[#allocation3 + $0x2a8] sm:$0xff] }
 0x3d6   : > { %v11175_v41 = vpop.f32.mrb[148].mxu0 }
 0x3d7   : > { %v3709_v10 = vpop.f32.mrb[149].mxu0 }
 0x3d8   : > { %v3710_v30 = vpop.f32.mrb[150].mxu0 }
 0x3d9   : > { %v3711_v7 = vpop.f32.mrb[151].mxu0 }
 0x3da   : > { %v11241_v7 = vld [vmem:[#allocation3 + $0x270] sm:$0xff] }
 0x3db   : > { %3900 = vmatmul.mubr.bf16.gmra.mrb[0].mxu0 %v11178_v19  ;;  %4868 = vmatmul.mubr.bf16.gmra.mrb[148].mxu1 %v4263_v39  ;;  %v4279_v39 = vsel %vm4143_vm5, %v4274_v61, %v4278_v34 }
 0x3dc   : > { %8428 = vmatprep.mubr.msk.bf16.mxu0 %vm2679_vm2, %v11182_v38  ;;  %8488 = vmatprep.mubr.msk.bf16.mxu1 %vm2679_vm2, %v4269_v23  ;;  %v11245_v23 = vld [vmem:[#allocation3 + $0x288] sm:$0xff]  ;;  %v4282_v38 = vrot.slane %v11194_v24, 4 }
 0x3de   : > { %v11189_v16 = vpop.f32.mrb[152].mxu0  ;;  %v4283_v53 = vsel %vm4143_vm5, %v4278_v34, %v4282_v38  ;;  %v11285_v34 = vld [vmem:[#allocation3 + $0x2a0] sm:$0xff] }
 0x3df   : > { %v3716_v54 = vpop.f32.mrb[153].mxu0 }
 0x3e0   : > { %v11192_v8 = vpop.f32.mrb[154].mxu0 }
 0x3e1   : > { %v3719_v32 = vpop.f32.mrb[155].mxu0 }
 0x3e3   : > { %3907 = vmatmul.mubr.bf16.gmra.mrb[4].mxu0 %v11194_v24  ;;  %4875 = vmatmul.mubr.bf16.gmra.mrb[152].mxu1 %v4267_v58 }
 0x3e4   : > { %8429 = vmatprep.mubr.msk.bf16.mxu0 %vm2679_vm2, %v11198_v13  ;;  %8489 = vmatprep.mubr.msk.bf16.mxu1 %vm2679_vm2, %v4273_v15  ;;  %v11255_v15 = vld [vmem:[#allocation3 + $0x280] sm:$0xff]  ;;  %v4286_v13 = vrot.slane %v11211_v50, 4 }
 0x3e6   : > { %v3722_v29 = vpop.f32.mrb[156].mxu0  ;;  %v4287_v61 = vsel %vm4143_vm5, %v4282_v38, %v4286_v13 }
 0x3e7   : > { %v3723_v46 = vpop.f32.mrb[157].mxu0  ;;  %v11259_v29 = vld [vmem:[#allocation3 + $0x298] sm:$0xff] }
 0x3e8   : > { %v11206_v27 = vpop.f32.mrb[158].mxu0  ;;  %v4292_v46 = vrot.slane %v11215_v22, 4 }
 0x3e9   : > { %v3726_v21 = vpop.f32.mrb[159].mxu0 }
 0x3eb   : > { %3915 = vmatmul.mubr.bf16.gmra.mrb[8].mxu0 %v11211_v50  ;;  %4883 = vmatmul.mubr.bf16.gmra.mrb[156].mxu1 %v4271_v59 }
 0x3ec   : > { %8430 = vmatprep.mubr.msk.bf16.mxu0 %vm2679_vm2, %v11215_v22  ;;  %8490 = vmatprep.mubr.msk.bf16.mxu1 %vm2679_vm2, %v4277_v48  ;;  %v11269_v48 = vld [vmem:[#allocation3 + $0x290] sm:$0xff]  ;;  %v4290_v22 = vrot.slane %v11225_v45, 4 }
 0x3ee   : > { %v11222_v44 = vpop.f32.mrb[160].mxu0  ;;  %v4291_v4 = vsel %vm4143_vm5, %v4286_v13, %v4290_v22 }
 0x3ef   : > { %v3731_v51 = vpop.f32.mrb[161].mxu0 }
 0x3f0   : > { %v3732_v17 = vpop.f32.mrb[162].mxu0  ;;  %v4293_v51 = vsel %vm4143_vm5, %v4288_v36, %v4292_v46  ;;  %v11299_v36 = vld [vmem:[#allocation3 + $0x2b0] sm:$0xff] }
 0x3f1   : > { %v3733_v57 = vpop.f32.mrb[163].mxu0  ;;  %v4296_v17 = vrot.slane %v11229_v5, 4 }
 0x3f3   : > { %3922 = vmatmul.mubr.bf16.gmra.mrb[12].mxu0 %v11225_v45  ;;  %4890 = vmatmul.mubr.bf16.gmra.mrb[160].mxu1 %v4275_v40 }
 0x3f4   : > { %8431 = vmatprep.mubr.msk.bf16.mxu0 %vm2679_vm2, %v11229_v5  ;;  %8491 = vmatprep.mubr.msk.bf16.mxu1 %vm2679_vm2, %v4281_v56  ;;  %v4294_v5 = vrot.slane %v11241_v7, 4 }
 0x3f6   : > { %v11235_v3 = vpop.f32.mrb[164].mxu0 }
 0x3f7   : > { %v3738_v55 = vpop.f32.mrb[165].mxu0 }
 0x3f8   : > { %v11239_v10 = vpop.f32.mrb[166].mxu0  ;;  %v11289_v55 = vld [vmem:[#allocation3 + $0x2b8] sm:$0xff] }
 0x3f9   : > { %v3741_v30 = vpop.f32.mrb[167].mxu0 }
 0x3fa   : > { %v4297_v30 = vsel %vm4143_vm5, %v4292_v46, %v4296_v17 }
 0x3fb   : > { %3929 = vmatmul.mubr.bf16.gmra.mrb[16].mxu0 %v11241_v7  ;;  %4897 = vmatmul.mubr.bf16.gmra.mrb[164].mxu1 %v4279_v39  ;;  %v4300_v39 = vrot.slane %v11245_v23, 4 }
 0x3fc   : > { %8432 = vmatprep.mubr.msk.bf16.mxu0 %vm2679_vm2, %v11245_v23  ;;  %8492 = vmatprep.mubr.msk.bf16.mxu1 %vm2679_vm2, %v4285_v20  ;;  %v4298_v23 = vrot.slane %v11255_v15, 4 }
 0x3fe   : > { %v3744_v19 = vpop.f32.mrb[168].mxu0 }
 0x3ff   : > { %v3745_v54 = vpop.f32.mrb[169].mxu0 }
 0x400   : > { %v11253_v32 = vpop.f32.mrb[170].mxu0  ;;  %v4295_v54 = vsel %vm4143_vm5, %v4290_v22, %v4294_v5  ;;  %v9364_v22 = vld [vmem:[%s12362_s7] ss:$8 sps:$4 sm:$0xff]  }
 0x401   : > { %v3748_v58 = vpop.f32.mrb[171].mxu0 }
 0x402   : > { %v11303_v58 = vld [vmem:[#allocation3 + $0x2c8] sm:$0xff] }
 0x403   : > { %3937 = vmatmul.mubr.bf16.gmra.mrb[20].mxu0 %v11255_v15  ;;  %4905 = vmatmul.mubr.bf16.gmra.mrb[168].mxu1 %v4283_v53  ;;  %v4301_v53 = vsel %vm4143_vm5, %v4296_v17, %v4300_v39  ;;  %v9366_v17 = vld [vmem:[%s12362_s7 + $0x4] ss:$8 sps:$4 sm:$0xff]  }
 0x404   : > { %8433 = vmatprep.mubr.msk.bf16.mxu0 %vm2679_vm2, %v11259_v29  ;;  %8493 = vmatprep.mubr.msk.bf16.mxu1 %vm2679_vm2, %v4289_v12  ;;  %v4304_v12 = vrot.slane %v11259_v29, 4  ;;  %v4302_v29 = vrot.slane %v11269_v48, 4 }
 0x405   : > { %6593 = vmatprep.subr.bf16.mxu0 %v9366_v17 }
 0x406   : > { %v11265_v24 = vpop.f32.mrb[172].mxu0  ;;  %6594 = vmatpush1.bf16.msra.mxu0 %v9364_v22 }
 0x407   : > { %v3753_v21 = vpop.f32.mrb[173].mxu0 }
 0x408   : > { %v3754_v37 = vpop.f32.mrb[174].mxu0 }
 0x409   : > { %v3755_v59 = vpop.f32.mrb[175].mxu0  ;;  %v11313_v37 = vld [vmem:[#allocation3 + $0x2c0] sm:$0xff] }
 0x40a   : > { %v4299_v59 = vsel %vm4143_vm5, %v4294_v5, %v4298_v23  ;;  %v4303_v5 = vsel %vm4143_vm5, %v4298_v23, %v4302_v29  ;;  %v4314_v17 = vrot.slane %v11313_v37, 4 }
 0x40b   : > { %3944 = vmatmul.mubr.bf16.gmra.mrb[24].mxu0 %v11269_v48  ;;  %4912 = vmatmul.mubr.bf16.gmra.mrb[172].mxu1 %v4287_v61  ;;  %v3343_v61 = vld [vmem:[#allocation3 + $0x2d8] sm:$0xff] }
 0x40c   : > { %8434 = vmatprep.mubr.msk.bf16.mxu0 %vm2679_vm2, %v11273_v42  ;;  %8494 = vmatprep.mubr.msk.bf16.mxu1 %vm2679_vm2, %v4293_v51  ;;  %v4305_v51 = vsel %vm4143_vm5, %v4300_v39, %v4304_v12 }
 0x40e   : > { %v11279_v50 = vpop.f32.mrb[176].mxu0 }
 0x40f   : > { %v3760_v57 = vpop.f32.mrb[177].mxu0 }
 0x410   : > { %v11283_v40 = vpop.f32.mrb[178].mxu0  ;;  %v4308_v57 = vrot.slane %v11273_v42, 4  ;;  %v4306_v42 = vrot.slane %v11285_v34, 4 }
 0x411   : > { %v3763_v56 = vpop.f32.mrb[179].mxu0 }
 0x412   : > { %v4309_v48 = vsel %vm4143_vm5, %v4304_v12, %v4308_v57 }
 0x413   : > { %3951 = vmatmul.mubr.bf16.gmra.mrb[28].mxu0 %v11285_v34  ;;  %4919 = vmatmul.mubr.bf16.gmra.mrb[176].mxu1 %v4291_v4 }
 0x414   : > { %8435 = vmatprep.mubr.msk.bf16.mxu0 %vm2679_vm2, %v11289_v55  ;;  %8495 = vmatprep.mubr.msk.bf16.mxu1 %vm2679_vm2, %v4297_v30 }
 0x416   : > { %v3766_v45 = vpop.f32.mrb[180].mxu0 }
 0x417   : > { %v3767_v20 = vpop.f32.mrb[181].mxu0  ;;  %v3342_v45 = vld [vmem:[#allocation3 + $0x2d0] sm:$0xff] }
 0x418   : > { %v11297_v19 = vpop.f32.mrb[182].mxu0  ;;  %v4312_v20 = vrot.slane %v11289_v55, 4 }
 0x419   : > { %v3770_v38 = vpop.f32.mrb[183].mxu0 }
 0x41a   : > { %v4313_v23 = vsel %vm4143_vm5, %v4308_v57, %v4312_v20  ;;  %v4320_v57 = vrot.slane %v3343_v61, 4 }
 0x41b   : > { %3959 = vmatmul.mubr.bf16.gmra.mrb[32].mxu0 %v11299_v36  ;;  %4927 = vmatmul.mubr.bf16.gmra.mrb[180].mxu1 %v4295_v54 }
 0x41c   : > { %8436 = vmatprep.mubr.msk.bf16.mxu0 %vm2679_vm2, %v11303_v58  ;;  %8496 = vmatprep.mubr.msk.bf16.mxu1 %vm2679_vm2, %v4301_v53 }
 0x41e   : > { %v11309_v7 = vpop.f32.mrb[184].mxu0 }
 0x41f   : > { %v3775_v13 = vpop.f32.mrb[185].mxu0 }
 0x420   : > { %v3776_v46 = vpop.f32.mrb[186].mxu0  ;;  %v4307_v13 = vsel %vm4143_vm5, %v4302_v29, %v4306_v42 }
 0x421   : > { %v3777_v21 = vpop.f32.mrb[187].mxu0  ;;  %v4310_v46 = vrot.slane %v11299_v36, 4 }
 0x422   : > { %v4316_v21 = vrot.slane %v11303_v58, 4 }
 0x423   : > { %3966 = vmatmul.mubr.bf16.gmra.mrb[36].mxu0 %v11313_v37  ;;  %4934 = vmatmul.mubr.bf16.gmra.mrb[184].mxu1 %v4299_v59  ;;  %v4315_v58 = vsel %vm4143_vm5, %v4310_v46, %v4314_v17 }
 0x424   : > { %8437 = vmatprep.mubr.msk.bf16.mxu0 %vm2679_vm2, %v3343_v61  ;;  %8497 = vmatprep.mubr.msk.bf16.mxu1 %vm2679_vm2, %v4305_v51  ;;  %v4311_v51 = vsel %vm4143_vm5, %v4306_v42, %v4310_v46  ;;  %v4317_v22 = vsel %vm4143_vm5, %v4312_v20, %v4316_v21  ;;  %v9420_v42 = vld [vmem:[#allocation3 + $0x2e8] sm:$0xff]  ;;  %v9421_v46 = vld [vmem:[#allocation3 + $0x2f8] sm:$0xff] }
 0x425   : > { %v4324_v20 = vrot.slane %v9420_v42, 4 }
 0x426   : > { %v11320_v15 = vpop.f32.mrb[188].mxu0 }
 0x427   : > { %v3782_v56 = vpop.f32.mrb[189].mxu0 }
 0x428   : > { %v11330_v4 = vpop.f32.mrb[190].mxu0 }
 0x429   : > { %v3785_v30 = vpop.f32.mrb[191].mxu0 }
 0x42b   : > { %3973 = vmatmul.mubr.bf16.gmra.mrb[40].mxu0 %v3342_v45  ;;  %4941 = vmatmul.mubr.bf16.gmra.mrb[188].mxu1 %v4303_v5  ;;  %v4321_v5 = vsel %vm4143_vm5, %v4316_v21, %v4320_v57  ;;  %v4328_v21 = vrot.slane %v9421_v46, 4 }
 0x42c   : > { %8498 = vmatprep.mubr.msk.bf16.mxu1 %vm2679_vm2, %v4309_v48  ;;  %6625 = vmatprep.mubr.bf16.mxu0 %v12368_v0 }
 0x42e   : > { %v3788_v39 = vpop.f32.mrb[192].mxu0 }
 0x42f   : > { %v3789_v38 = vpop.f32.mrb[193].mxu0  ;;  %v4318_v39 = vrot.slane %v3342_v45, 4 }
 0x430   : > { %v11338_v54 = vpop.f32.mrb[194].mxu0 }
 0x431   : > { %v3792_v53 = vpop.f32.mrb[195].mxu0  ;;  %v4319_v61 = vsel %vm4143_vm5, %v4314_v17, %v4318_v39  ;;  %v9422_v17 = vld [vmem:[#allocation3 + $0x308] sm:$0xff] }
 0x433   : > { %4949 = vmatmul.mubr.bf16.gmra.mrb[192].mxu1 %v4307_v13  ;;  %v4325_v13 = vsel %vm4143_vm5, %v4320_v57, %v4324_v20  ;;  %v4332_v57 = vrot.slane %v9422_v17, 4 }
 0x434   : > { %8499 = vmatprep.mubr.msk.bf16.mxu1 %vm2679_vm2, %v4313_v23 }
 0x436   : > { %v11343_v12 = vpop.f32.mrb[196].mxu0 }
 0x437   : > { %v3797_v34 = vpop.f32.mrb[197].mxu0 }
 0x438   : > { %v3798_v59 = vpop.f32.mrb[198].mxu0 }
 0x439   : > { %v3799_v55 = vpop.f32.mrb[199].mxu0 }
 0x43a   : > { %v4323_v55 = vsel %vm4143_vm5, %v4318_v39, %v4322_v1  ;;  %v9423_v1 = vld [vmem:[#allocation3 + $0x318] sm:$0xff] }
 0x43b   : > { %4956 = vmatmul.mubr.bf16.gmra.mrb[196].mxu1 %v4311_v51  ;;  %v4329_v51 = vsel %vm4143_vm5, %v4324_v20, %v4328_v21 }
 0x43c   : > { %8500 = vmatprep.mubr.msk.bf16.mxu1 %vm2679_vm2, %v4317_v22 }
 0x43e   : > { %v11350_v29 = vpop.f32.mrb[200].mxu0 }
 0x43f   : > { %v3804_v56 = vpop.f32.mrb[201].mxu0 }
 0x440   : > { %v11353_v30 = vpop.f32.mrb[202].mxu0 }
 0x441   : > { %v3807_v36 = vpop.f32.mrb[203].mxu0 }
 0x443   : > { %4963 = vmatmul.mubr.bf16.gmra.mrb[200].mxu1 %v4315_v58 }
 0x444   : > { %8501 = vmatprep.mubr.msk.bf16.mxu1 %vm2679_vm2, %v4321_v5  ;;  %v4333_v5 = vsel %vm4143_vm5, %v4328_v21, %v4332_v57 }
 0x446   : > { %v3810_v48 = vpop.f32.mrb[204].mxu0 }
 0x447   : > { %v3811_v38 = vpop.f32.mrb[205].mxu0  ;;  %v4336_v48 = vrot.slane %v9423_v1, 4 }
 0x448   : > { %v11358_v53 = vpop.f32.mrb[206].mxu0 }
 0x449   : > { %v3814_v37 = vpop.f32.mrb[207].mxu0  ;;  %v4337_v38 = vsel %vm4143_vm5, %v4332_v57, %v4336_v48 }
 0x44b   : > { %4971 = vmatmul.mubr.bf16.gmra.mrb[0].mxu1 %v4319_v61 }
 0x44c   : > { %8502 = vmatprep.mubr.msk.bf16.mxu1 %vm2679_vm2, %v4325_v13 }
 0x44e   : > { %v11363_v23 = vpop.f32.mrb[208].mxu0 }
 0x44f   : > { %v3819_v34 = vpop.f32.mrb[209].mxu0 }
 0x450   : > { %v3820_v59 = vpop.f32.mrb[210].mxu0 }
 0x451   : > { %v3821_v45 = vpop.f32.mrb[211].mxu0 }
 0x452   : > { %v9425_v45 = vld [vmem:[#allocation3 + $0x338] sm:$0xff] }
 0x453   : > { %4978 = vmatmul.mubr.bf16.gmra.mrb[4].mxu1 %v4323_v55 }
 0x454   : > { %8503 = vmatprep.mubr.msk.bf16.mxu1 %vm2679_vm2, %v4329_v51 }
 0x456   : > { %v11370_v22 = vpop.f32.mrb[212].mxu0 }
 0x457   : > { %v3826_v56 = vpop.f32.mrb[213].mxu0 }
 0x458   : > { %v11372_v36 = vpop.f32.mrb[214].mxu0  ;;  %v3357_v56 = vld [vmem:[#allocation3 + $0x348] sm:$0xf] }
 0x459   : > { %v3829_v58 = vpop.f32.mrb[215].mxu0 }
 0x45b   : > { %4985 = vmatmul.mubr.bf16.gmra.mrb[8].mxu1 %v10742_v43  ;;  %v9424_v43 = vld [vmem:[#allocation3 + $0x328] sm:$0xff] }
 0x45c   : > { %8504 = vmatprep.mubr.msk.bf16.mxu1 %vm2679_vm2, %v4333_v5  ;;  %v4340_v61 = vrot.slane %v9424_v43, 4  ;;  %v4348_v5 = vrot.slane %v3357_v56, 4 }
 0x45e   : > { %v3832_v47 = vpop.f32.mrb[216].mxu0  ;;  %v4341_v34 = vsel %vm4143_vm5, %v4336_v48, %v4340_v61 }
 0x45f   : > { %v3833_v39 = vpop.f32.mrb[217].mxu0 }
 0x460   : > { %v11377_v42 = vpop.f32.mrb[218].mxu0  ;;  %v3356_v39 = vld [vmem:[#allocation3 + $0x340] sm:$0xf] }
 0x461   : > { %v3836_v20 = vpop.f32.mrb[219].mxu0 }
 0x462   : > { %v5032_v20 = vld [vmem:[#allocation3 + $0x58] sm:$0xff] }
 0x463   : > { %4993 = vmatmul.mubr.bf16.gmra.mrb[12].mxu1 %v10755_v18  ;;  %v4344_v18 = vrot.slane %v9425_v45, 4 }
 0x464   : > { %8505 = vmatprep.mubr.msk.bf16.mxu1 %vm2679_vm2, %v4337_v38  ;;  %v9369_v38 = vld [vmem:[%s12362_s7 + $0x14] ss:$8 sps:$4 sm:$0xff]  }
 0x465   : > { %v4345_v57 = vsel %vm4143_vm5, %v4340_v61, %v4344_v18  ;;  %v4349_v48 = vsel %vm4143_vm5, %v4344_v18, %v4348_v5  ;;  %v4346_v61 = vrot.slane %v3356_v39, 4  ;;  %6595 = vmatprep.subr.bf16.mxu0 %v9369_v38  ;;  %v5033_v38 = vld [vmem:[#allocation3 + $0x60] sm:$0xff] }
 0x466   : > { %v11382_v37 = vpop.f32.mrb[220].mxu0 }
 0x467   : > { %v3841_v13 = vpop.f32.mrb[221].mxu0  ;;  %v4347_v45 = vsel %vm4143_vm5, %v4342_v31, %v4346_v61 }
 0x468   : > { %v3842_v46 = vpop.f32.mrb[222].mxu0  ;;  %v5030_v13 = vld [vmem:[#allocation3 + $0x48] sm:$0xf0] }
 0x469   : > { %v3843_v21 = vpop.f32.mrb[223].mxu0 }
 0x46b   : > { %5000 = vmatmul.mubr.bf16.gmra.mrb[16].mxu1 %v10768_v60 }
 0x46c   : > { %8506 = vmatprep.mubr.msk.bf16.mxu1 %vm2679_vm2, %v4341_v34  ;;  %v5265_v34 = vrot.slane %v5030_v13, 4 }
 0x46e   : > { %v3846_v59 = vpop.f32.mrb[224].mxu0 }
 0x46f   : > { %v3847_v55 = vpop.f32.mrb[225].mxu0 }
 0x470   : > { %v3848_v51 = vpop.f32.mrb[226].mxu0  ;;  %v5031_v55 = vld [vmem:[#allocation3 + $0x50] sm:$0xff] }
 0x471   : > { %v3849_v17 = vpop.f32.mrb[227].mxu0  ;;  %v5034_v51 = vld [vmem:[#allocation3 + $0x68] sm:$0xff] }
 0x472   : > { %v5029_v17 = vld [vmem:[#allocation3 + $0x40] sm:$0xf0] }
 0x473   : > { %5007 = vmatmul.mubr.bf16.gmra.mrb[20].mxu1 %v10774_v62  ;;  %v9367_v62 = vld [vmem:[%s12362_s7 + $0x10] ss:$8 sps:$4 sm:$0xff]  }
 0x474   : > { %8507 = vmatprep.mubr.msk.bf16.mxu1 %vm2679_vm2, %v4345_v57  ;;  %6596 = vmatpush1.bf16.msra.mxu0 %v9367_v62 }
 0x476   : > { %v3852_v58 = vpop.f32.mrb[228].mxu0 }
 0x477   : > { %v3853_v60 = vpop.f32.mrb[229].mxu0  ;;  %v5263_v58 = vrot.slane %v5031_v55, 4 }
 0x478   : > { %v3854_v47 = vpop.f32.mrb[230].mxu0 }
 0x479   : > { %v3855_v1 = vpop.f32.mrb[231].mxu0  ;;  %v5270_v47 = vrot.slane %v5034_v51, 4 }
 0x47b   : > { %5015 = vmatmul.mubr.bf16.gmra.mrb[24].mxu1 %v10791_v6  ;;  %v5266_v6 = vrot.slane %v5032_v20, 4 }
 0x47c   : > { %8508 = vmatprep.mubr.msk.bf16.mxu1 %vm2679_vm2, %v4349_v48  ;;  %v5262_v48 = vrot.slane %v5029_v17, 4 }
 0x47d   : > { %v5267_v18 = vsel %vm4143_vm5, %v5265_v34, %v5266_v6  ;;  %v5271_v62 = vsel %vm4143_vm5, %v5266_v6, %v5270_v47 }
 0x47e   : > { %v3858_v43 = vpop.f32.mrb[232].mxu0  ;;  %v5264_v20 = vsel %vm4143_vm5, %v5262_v48, %v5263_v58 }
 0x47f   : > { %v3859_v46 = vpop.f32.mrb[233].mxu0  ;;  %v5036_v43 = vld [vmem:[#allocation3 + $0x78] sm:$0xff] }
 0x480   : > { %v3860_v21 = vpop.f32.mrb[234].mxu0  ;;  %v5268_v46 = vrot.slane %v5033_v38, 4 }
 0x481   : > { %v3861_v59 = vpop.f32.mrb[235].mxu0 }
 0x482   : > { %v5274_v59 = vrot.slane %v5036_v43, 4  ;;  %v5269_v17 = vsel %vm4143_vm5, %v5263_v58, %v5268_v46 }
 0x483   : > { %5022 = vmatmul.mubr.bf16.gmra.mrb[28].mxu1 %v4347_v45 }
 0x484   : > { %8545 = vmatprep.mubr.msk.bf16.mxu1 %vm2679_vm2, %v5267_v18  ;;  %v5275_v6 = vsel %vm4143_vm5, %v5270_v47, %v5274_v59 }
 0x486   : > { %v11404_v57 = vpop.f32.mrb[236].mxu0  ;;  %v4836_v56 = vpop.f32.mrb[128].mxu1 }
 0x487   : > { %v3866_v5 = vpop.f32.mrb[237].mxu0  ;;  %v4837_v60 = vpop.f32.mrb[129].mxu1  ;;  %v5035_v56 = vld [vmem:[#allocation3 + $0x70] sm:$0xff] }
 0x488   : > { %v11406_v1 = vpop.f32.mrb[238].mxu0  ;;  %v4838_v63 = vpop.f32.mrb[130].mxu1  ;;  %v5038_v5 = vld [vmem:[#allocation3 + $0x88] sm:$0xff]  ;;  %v5272_v48 = vrot.slane %v5035_v56, 4 }
 0x489   : > { %v3869_v31 = vpop.f32.mrb[239].mxu0  ;;  %v4839_v39 = vpop.f32.mrb[131].mxu1 }
 0x48a   : > { %v5273_v58 = vsel %vm4143_vm5, %v5268_v46, %v5272_v48 }
 0x48b   : > { %5777 = vmatmul.mubr.bf16.vlgmr.msra.gmra.mrb[32].mxu1 %v5264_v20  ;;  %v5278_v20 = vrot.slane %v5038_v5, 4  ;;  %v5039_v5 = vld [vmem:[#allocation3 + $0x90] sm:$0xff] }
 0x48c   : > { %8546 = vmatprep.mubr.msk.bf16.mxu1 %vm2679_vm2, %v5271_v62 }
 0x48d   : > { %v5279_v47 = vsel %vm4143_vm5, %v5274_v59, %v5278_v20  ;;  %v5042_v59 = vld [vmem:[#allocation3 + $0xa8] sm:$0xff] }
 0x48e   : > { %v3872_v61 = vpop.f32.mrb[240].mxu0  ;;  %v4842_v13 = vpop.f32.mrb[132].mxu1 }
 0x48f   : > { %v3873_v21 = vpop.f32.mrb[241].mxu0  ;;  %v4843_v34 = vpop.f32.mrb[133].mxu1  ;;  %v5037_v13 = vld [vmem:[#allocation3 + $0x80] sm:$0xff] }
 0x490   : > { %v11411_v45 = vpop.f32.mrb[242].mxu0  ;;  %v4844_v18 = vpop.f32.mrb[134].mxu1  ;;  %v5040_v21 = vld [vmem:[#allocation3 + $0x98] sm:$0xff] }
 0x491   : > { %v3876_v55 = vpop.f32.mrb[243].mxu0  ;;  %v4845_v51 = vpop.f32.mrb[135].mxu1  ;;  %v5276_v18 = vrot.slane %v5037_v13, 4 }
 0x492   : > { %v5282_v51 = vrot.slane %v5040_v21, 4 }
 0x493   : > { %5785 = vmatmul.mubr.bf16.gmra.mrb[36].mxu1 %v5269_v17  ;;  %v5277_v56 = vsel %vm4143_vm5, %v5272_v48, %v5276_v18  ;;  %v5041_v48 = vld [vmem:[#allocation3 + $0xa0] sm:$0xff] }
 0x494   : > { %8547 = vmatprep.mubr.msk.bf16.mxu1 %vm2679_vm2, %v5275_v6  ;;  %v5283_v46 = vsel %vm4143_vm5, %v5278_v20, %v5282_v51  ;;  %v5044_v20 = vld [vmem:[#allocation3 + $0xb8] sm:$0xff]  ;;  %v5284_v13 = vrot.slane %v5041_v48, 4 }
 0x496   : > { %v11416_v60 = vpop.f32.mrb[244].mxu0  ;;  %v4848_v63 = vpop.f32.mrb[136].mxu1 }
 0x497   : > { %v3881_v31 = vpop.f32.mrb[245].mxu0  ;;  %v4849_v39 = vpop.f32.mrb[137].mxu1 }
 0x498   : > { %v3882_v62 = vpop.f32.mrb[246].mxu0  ;;  %v4850_v38 = vpop.f32.mrb[138].mxu1  ;;  %v5280_v31 = vrot.slane %v5039_v5, 4 }
 0x499   : > { %v3883_v43 = vpop.f32.mrb[247].mxu0  ;;  %v4851_v61 = vpop.f32.mrb[139].mxu1  ;;  %v5286_v62 = vrot.slane %v5042_v59, 4 }
 0x49a   : > { %v5281_v61 = vsel %vm4143_vm5, %v5276_v18, %v5280_v31  ;;  %v5043_v18 = vld [vmem:[#allocation3 + $0xb0] sm:$0xff] }
 0x49b   : > { %5792 = vmatmul.mubr.bf16.gmra.mrb[40].mxu1 %v5273_v58  ;;  %v5287_v58 = vsel %vm4143_vm5, %v5282_v51, %v5286_v62  ;;  %v5046_v51 = vld [vmem:[#allocation3 + $0xc8] sm:$0xff] }
 0x49c   : > { %8548 = vmatprep.mubr.msk.bf16.mxu1 %vm2679_vm2, %v5279_v47 }
 0x49e   : > { %v11421_v34 = vpop.f32.mrb[248].mxu0 }
 0x49f   : > { %v3888_v55 = vpop.f32.mrb[249].mxu0 }
 0x4a0   : > { %v11423_v17 = vpop.f32.mrb[250].mxu0  ;;  %v5290_v55 = vrot.slane %v5044_v20, 4  ;;  %v5045_v20 = vld [vmem:[#allocation3 + $0xc0] sm:$0xff] }
 0x4a1   : > { %v3891_v6 = vpop.f32.mrb[251].mxu0 }
 0x4a2   : > { %v5291_v5 = vsel %vm4143_vm5, %v5286_v62, %v5290_v55  ;;  %v5048_v62 = vld [vmem:[#allocation3 + $0xd8] sm:$0xff] }
 0x4a3   : > { %5799 = vmatmul.mubr.bf16.gmra.mrb[44].mxu1 %v5277_v56 }
 0x4a4   : > { %8549 = vmatprep.mubr.msk.bf16.mxu1 %vm2679_vm2, %v5283_v46  ;;  %v5285_v46 = vsel %vm4143_vm5, %v5280_v31, %v5284_v13 }
 0x4a6   : > { %v3894_v63 = vpop.f32.mrb[252].mxu0 }
 0x4a7   : > { %v3895_v39 = vpop.f32.mrb[253].mxu0  ;;  %v5288_v63 = vrot.slane %v5043_v18, 4 }
 0x4a8   : > { %v11428_v38 = vpop.f32.mrb[254].mxu0 }
 0x4a9   : > { %v3898_v43 = vpop.f32.mrb[255].mxu0  ;;  %v5289_v48 = vsel %vm4143_vm5, %v5284_v13, %v5288_v63  ;;  %v5047_v13 = vld [vmem:[#allocation3 + $0xd0] sm:$0xff] }
 0x4aa   : > { %v5294_v43 = vrot.slane %v5046_v51, 4 }
 0x4ab   : > { %5807 = vmatmul.mubr.bf16.gmra.mrb[48].mxu1 %v5281_v61 }
 0x4ac   : > { %8550 = vmatprep.mubr.msk.bf16.mxu1 %vm2679_vm2, %v5287_v58  ;;  %v5295_v31 = vsel %vm4143_vm5, %v5290_v55, %v5294_v43  ;;  %v5050_v55 = vld [vmem:[#allocation3 + $0xe8] sm:$0xff] }
 0x4ae   : > { %v11433_v47 = vpop.f32.mrb[0].mxu0 }
 0x4af   : > { %v3903_v21 = vpop.f32.mrb[1].mxu0 }
 0x4b0   : > { %v3904_v6 = vpop.f32.mrb[2].mxu0 }
 0x4b1   : > { %v3905_v56 = vpop.f32.mrb[3].mxu0  ;;  %v5292_v6 = vrot.slane %v5045_v20, 4 }
 0x4b3   : > { %5814 = vmatmul.mubr.bf16.gmra.mrb[52].mxu1 %v5285_v46  ;;  %v5298_v46 = vrot.slane %v5048_v62, 4  ;;  %v5293_v51 = vsel %vm4143_vm5, %v5288_v63, %v5292_v6  ;;  %v5049_v63 = vld [vmem:[#allocation3 + $0xe0] sm:$0xff] }
 0x4b4   : > { %8551 = vmatprep.mubr.msk.bf16.mxu1 %vm2679_vm2, %v5291_v5 }
 0x4b6   : > { %v11438_v59 = vpop.f32.mrb[4].mxu0 }
 0x4b7   : > { %v3910_v39 = vpop.f32.mrb[5].mxu0 }
 0x4b8   : > { %v11440_v61 = vpop.f32.mrb[6].mxu0  ;;  %v5299_v39 = vsel %vm4143_vm5, %v5294_v43, %v5298_v46  ;;  %v5052_v43 = vld [vmem:[#allocation3 + $0xf8] sm:$0xff] }
 0x4b9   : > { %12377 = vst [vmem:[#allocation11_spill] sm:$0xff] %v11440_v61  ;;  %v3913_v58 = vpop.f32.mrb[7].mxu0 }
 0x4bb   : > { %5821 = vmatmul.mubr.bf16.gmra.mrb[56].mxu1 %v5289_v48  ;;  %v5296_v48 = vrot.slane %v5047_v13, 4 }
 0x4bc   : > { %8552 = vmatprep.mubr.msk.bf16.mxu1 %vm2679_vm2, %v5295_v31 }
 0x4bd   : > { %v5297_v62 = vsel %vm4143_vm5, %v5292_v6, %v5296_v48 }
 0x4be   : > { %v3916_v21 = vpop.f32.mrb[8].mxu0 }
 0x4bf   : > { %v3917_v56 = vpop.f32.mrb[9].mxu0  ;;  %v5302_v21 = vrot.slane %v5050_v55, 4  ;;  %v5300_v55 = vrot.slane %v5049_v63, 4  ;;  %v5310_v63 = vrot.slane %v5054_v52, 4 }
 0x4c0   : > { %v11445_v5 = vpop.f32.mrb[10].mxu0 }
 0x4c1   : > { %12378 = vst [vmem:[#allocation12_spill] sm:$0xff] %v11445_v5  ;;  %v3920_v18 = vpop.f32.mrb[11].mxu0 }
 0x4c2   : > { %v5303_v18 = vsel %vm4143_vm5, %v5298_v46, %v5302_v21 }
 0x4c3   : > { %5829 = vmatmul.mubr.bf16.gmra.mrb[60].mxu1 %v5293_v51  ;;  %v9370_v51 = vld [vmem:[%s12362_s7 + $0x20] ss:$8 sps:$4 sm:$0xff]  }
 0x4c4   : > { %8553 = vmatprep.mubr.msk.bf16.mxu1 %vm2679_vm2, %v5299_v39  ;;  %v9372_v39 = vld [vmem:[%s12362_s7 + $0x24] ss:$8 sps:$4 sm:$0xff]  }
 0x4c5   : > { %6597 = vmatprep.subr.bf16.mxu0 %v9372_v39 }
 0x4c6   : > { %v11450_v58 = vpop.f32.mrb[12].mxu0  ;;  %6598 = vmatpush1.bf16.msra.mxu0 %v9370_v51 }
 0x4c7   : > { %12379 = vst [vmem:[#allocation13_spill] sm:$0xff] %v11450_v58  ;;  %v3925_v31 = vpop.f32.mrb[13].mxu0 }
 0x4c8   : > { %v3926_v20 = vpop.f32.mrb[14].mxu0  ;;  %v5306_v31 = vrot.slane %v5052_v43, 4 }
 0x4c9   : > { %v3927_v56 = vpop.f32.mrb[15].mxu0 }
 0x4ca   : > { %v5301_v56 = vsel %vm4143_vm5, %v5296_v48, %v5300_v55  ;;  %v5053_v48 = vld [vmem:[#allocation3 + $0x100] sm:$0xff] }
 0x4cb   : > { %5836 = vmatmul.mubr.bf16.gmra.mrb[64].mxu1 %v5297_v62  ;;  %v5307_v62 = vsel %vm4143_vm5, %v5302_v21, %v5306_v31  ;;  %v5056_v21 = vld [vmem:[#allocation3 + $0x118] sm:$0xff] }
 0x4cc   : > { %8554 = vmatprep.mubr.msk.bf16.mxu1 %vm2679_vm2, %v5303_v18  ;;  %v5051_v18 = vld [vmem:[#allocation3 + $0xf0] sm:$0xff] }
 0x4cd   : > { %v5304_v58 = vrot.slane %v5051_v18, 4 }
 0x4ce   : > { %v11461_v13 = vpop.f32.mrb[16].mxu0 }
 0x4cf   : > { %12380 = vst [vmem:[#allocation14_spill] sm:$0xff] %v11461_v13  ;;  %v3932_v6 = vpop.f32.mrb[17].mxu0  ;;  %v5305_v51 = vsel %vm4143_vm5, %v5300_v55, %v5304_v58  ;;  %v5055_v55 = vld [vmem:[#allocation3 + $0x110] sm:$0xff] }
 0x4d0   : > { %v11463_v46 = vpop.f32.mrb[18].mxu0  ;;  %v5311_v6 = vsel %vm4143_vm5, %v5306_v31, %v5310_v63  ;;  %v5058_v31 = vld [vmem:[#allocation3 + $0x128] sm:$0xff] }
 0x4d1   : > { %12381 = vst [vmem:[#allocation15_spill] sm:$0xff] %v11463_v46  ;;  %v3935_v20 = vpop.f32.mrb[19].mxu0  ;;  %v5318_v46 = vrot.slane %v5058_v31, 4 }
 0x4d3   : > { %5843 = vmatmul.mubr.bf16.gmra.mrb[68].mxu1 %v5301_v56  ;;  %v5308_v56 = vrot.slane %v5053_v48, 4 }
 0x4d4   : > { %8555 = vmatprep.mubr.msk.bf16.mxu1 %vm2679_vm2, %v5307_v62 }
 0x4d5   : > { %v5309_v52 = vsel %vm4143_vm5, %v5304_v58, %v5308_v56  ;;  %v9375_v58 = vld [vmem:[%s12362_s7 + $0x34] ss:$8 sps:$4 sm:$0xff]  }
 0x4d6   : > { %v3938_v0 = vpop.f32.mrb[20].mxu0  ;;  %6599 = vmatprep.subr.bf16.mxu0 %v9375_v58 }
 0x4d7   : > { %v3939_v13 = vpop.f32.mrb[21].mxu0  ;;  %v5314_v0 = vrot.slane %v5056_v21, 4  ;;  %v9373_v21 = vld [vmem:[%s12362_s7 + $0x30] ss:$8 sps:$4 sm:$0xff]  }
 0x4d8   : > { %v11468_v39 = vpop.f32.mrb[22].mxu0  ;;  %6600 = vmatpush1.bf16.msra.mxu0 %v9373_v21 }
 0x4d9   : > { %12382 = vst [vmem:[#allocation16_spill] sm:$0xff] %v11468_v39  ;;  %v3942_v43 = vpop.f32.mrb[23].mxu0 }
 0x4da   : > { %v5315_v43 = vsel %vm4143_vm5, %v5310_v63, %v5314_v0 }
 0x4db   : > { %5851 = vmatmul.mubr.bf16.gmra.mrb[72].mxu1 %v5305_v51 }
 0x4dc   : > { %8556 = vmatprep.mubr.msk.bf16.mxu1 %vm2679_vm2, %v5311_v6  ;;  %v5312_v6 = vrot.slane %v5055_v55, 4 }
 0x4de   : > { %v11473_v20 = vpop.f32.mrb[24].mxu0  ;;  %v5313_v63 = vsel %vm4143_vm5, %v5308_v56, %v5312_v6 }
 0x4df   : > { %12383 = vst [vmem:[#allocation17_spill] sm:$0xff] %v11473_v20  ;;  %v3947_v62 = vpop.f32.mrb[25].mxu0 }
 0x4e0   : > { %v3948_v18 = vpop.f32.mrb[26].mxu0  ;;  %v5319_v62 = vsel %vm4143_vm5, %v5314_v0, %v5318_v46  ;;  %v5062_v0 = vld [vmem:[#allocation3 + $0x148] sm:$0xff] }
 0x4e1   : > { %v3949_v13 = vpop.f32.mrb[27].mxu0  ;;  %v5057_v18 = vld [vmem:[#allocation3 + $0x120] sm:$0xff] }
 0x4e3   : > { %5858 = vmatmul.mubr.bf16.gmra.mrb[76].mxu1 %v5309_v52  ;;  %v5316_v52 = vrot.slane %v5057_v18, 4 }
 0x4e4   : > { %8557 = vmatprep.mubr.msk.bf16.mxu1 %vm2679_vm2, %v5315_v43 }
 0x4e6   : > { %v11478_v51 = vpop.f32.mrb[28].mxu0 }
 0x4e7   : > { %12384 = vst [vmem:[#allocation18_spill] sm:$0xff] %v11478_v51  ;;  %v3954_v39 = vpop.f32.mrb[29].mxu0 }
 0x4e8   : > { %v11480_v20 = vpop.f32.mrb[30].mxu0  ;;  %v5060_v39 = vld [vmem:[#allocation3 + $0x138] sm:$0xff] }
 0x4e9   : > { %12385 = vst [vmem:[#allocation19_spill] sm:$0xff] %v11480_v20  ;;  %v3957_v48 = vpop.f32.mrb[31].mxu0  ;;  %v5322_v55 = vrot.slane %v5060_v39, 4  ;;  %v5317_v20 = vsel %vm4143_vm5, %v5312_v6, %v5316_v52  ;;  %v5061_v6 = vld [vmem:[#allocation3 + $0x140] sm:$0xff] }
 0x4eb   : > { %5865 = vmatmul.mubr.bf16.gmra.mrb[80].mxu1 %v5313_v63  ;;  %v5323_v56 = vsel %vm4143_vm5, %v5318_v46, %v5322_v55  ;;  %v5059_v63 = vld [vmem:[#allocation3 + $0x130] sm:$0xff]  ;;  %v5064_v46 = vld [vmem:[#allocation3 + $0x158] sm:$0xff] }
 0x4ec   : > { %8558 = vmatprep.mubr.msk.bf16.mxu1 %vm2679_vm2, %v5319_v62  ;;  %v5320_v62 = vrot.slane %v5059_v63, 4  ;;  %v5330_v51 = vrot.slane %v5064_v46, 4 }
 0x4ee   : > { %v3960_v13 = vpop.f32.mrb[32].mxu0  ;;  %v5321_v39 = vsel %vm4143_vm5, %v5316_v52, %v5320_v62 }
 0x4ef   : > { %v3961_v43 = vpop.f32.mrb[33].mxu0  ;;  %v5326_v13 = vrot.slane %v5062_v0, 4 }
 0x4f0   : > { %v11491_v31 = vpop.f32.mrb[34].mxu0 }
 0x4f1   : > { %12386 = vst [vmem:[#allocation20_spill] sm:$0xff] %v11491_v31  ;;  %v3964_v48 = vpop.f32.mrb[35].mxu0  ;;  %v5331_v52 = vsel %vm4143_vm5, %v5326_v13, %v5330_v51 }
 0x4f2   : > { %v5327_v48 = vsel %vm4143_vm5, %v5322_v55, %v5326_v13  ;;  %v5066_v55 = vld [vmem:[#allocation3 + $0x168] sm:$0xff] }
 0x4f3   : > { %5873 = vmatmul.mubr.bf16.gmra.mrb[84].mxu1 %v5317_v20 }
 0x4f4   : > { %8559 = vmatprep.mubr.msk.bf16.mxu1 %vm2679_vm2, %v5323_v56  ;;  %v5324_v56 = vrot.slane %v5061_v6, 4  ;;  %v5068_v6 = vld [vmem:[#allocation3 + $0x178] sm:$0xff] }
 0x4f6   : > { %v11496_v58 = vpop.f32.mrb[36].mxu0  ;;  %v5325_v0 = vsel %vm4143_vm5, %v5320_v62, %v5324_v56  ;;  %v5338_v62 = vrot.slane %v5068_v6, 4 }
 0x4f7   : > { %12387 = vst [vmem:[#allocation21_spill] sm:$0xff] %v11496_v58  ;;  %v3969_v21 = vpop.f32.mrb[37].mxu0 }
 0x4f8   : > { %v3970_v18 = vpop.f32.mrb[38].mxu0  ;;  %v5063_v21 = vld [vmem:[#allocation3 + $0x150] sm:$0xff] }
 0x4f9   : > { %v3971_v43 = vpop.f32.mrb[39].mxu0  ;;  %v5328_v18 = vrot.slane %v5063_v21, 4 }
 0x4fa   : > { %v5334_v43 = vrot.slane %v5066_v55, 4  ;;  %v9377_v55 = vld [vmem:[#allocation2 + $0x1c0] sm:$0xff]  }
 0x4fb   : > { %5880 = vmatmul.mubr.bf16.gmra.mrb[88].mxu1 %v5321_v39  ;;  %v5329_v39 = vsel %vm4143_vm5, %v5324_v56, %v5328_v18  ;;  %v2615_v6 = vshll.u32 %v9377_v55, 16  ;;  %2849 = vrot.lane.b32.xlu0 %v9377_v55, %s9599_s12 }
 0x4fc   : > { %8560 = vmatprep.mubr.msk.bf16.mxu1 %vm2679_vm2, %v5327_v48  ;;  %v5065_v48 = vld [vmem:[#allocation3 + $0x160] sm:$0xff]  ;;  %v5339_v13 = vsel %vm4143_vm5, %v5334_v43, %v5338_v62 }
 0x4fd   : > { %v5332_v46 = vrot.slane %v5065_v48, 4 }
 0x4fe   : > { %v11501_v20 = vpop.f32.mrb[40].mxu0 }
 0x4ff   : > { %12388 = vst [vmem:[#allocation22_spill] sm:$0xff] %v11501_v20  ;;  %v3976_v31 = vpop.f32.mrb[41].mxu0 }
 0x500   : > { %v11503_v58 = vpop.f32.mrb[42].mxu0  ;;  %v5335_v31 = vsel %vm4143_vm5, %v5330_v51, %v5334_v43 }
 0x501   : > { %12389 = vst [vmem:[#allocation23_spill] sm:$0xff] %v11503_v58  ;;  %v3979_v63 = vpop.f32.mrb[43].mxu0 }
 0x502   : > { %v5333_v63 = vsel %vm4143_vm5, %v5328_v18, %v5332_v46  ;;  %v5069_v18 = vld [vmem:[#allocation3 + $0x180] sm:$0xff] }
 0x503   : > { %5887 = vmatmul.mubr.bf16.gmra.mrb[92].mxu1 %v5325_v0  ;;  %v5067_v0 = vld [vmem:[#allocation3 + $0x170] sm:$0xff] }
 0x504   : > { %8561 = vmatprep.mubr.msk.bf16.mxu1 %vm2679_vm2, %v5331_v52  ;;  %v5070_v52 = vld [vmem:[#allocation3 + $0x188] sm:$0xff]  ;;  %v5336_v21 = vrot.slane %v5067_v0, 4  ;;  %v5340_v0 = vrot.slane %v5069_v18, 4 }
 0x505   : > { %v5342_v56 = vrot.slane %v5070_v52, 4 }
 0x507   : > { %v5343_v48 = vsel %vm4143_vm5, %v5338_v62, %v5342_v56 }
 0x50b   : > { %5895 = vmatmul.mubr.bf16.gmra.mrb[96].mxu1 %v5329_v39  ;;  %v11514_v39 = vld [vmem:[#allocation2 + $0x1b8] sm:$0xff]  }
 0x50c   : > { %8562 = vmatprep.mubr.msk.bf16.mxu1 %vm2679_vm2, %v5335_v31  ;;  %v12370_v51 = vshrl.u32 %v11514_v39, 16  ;;  %v5337_v31 = vsel %vm4143_vm5, %v5332_v46, %v5336_v21  ;;  %v5341_v46 = vsel %vm4143_vm5, %v5336_v21, %v5340_v0 }
 0x50e   : > { %v3133_v43 = vor.u32 %v10387_v9, %v12370_v51  ;;  %v5074_v9 = vld [vmem:[#allocation3 + $0x1a8] sm:$0xff] }
 0x50f   : > { %v5350_v51 = vrot.slane %v5074_v9, 4  ;;  %v5077_v9 = vld [vmem:[#allocation3 + $0x1c0] sm:$0xff] }
 0x513   : > { %5902 = vmatmul.mubr.bf16.gmra.mrb[100].mxu1 %v5333_v63  ;;  %v5072_v63 = vld [vmem:[#allocation3 + $0x198] sm:$0xff] }
 0x514   : > { %8563 = vmatprep.mubr.msk.bf16.mxu1 %vm2679_vm2, %v5339_v13  ;;  %v3134_v13 = vrot.slane %v2615_v6, 1  ;;  %v5346_v52 = vrot.slane %v5072_v63, 4  ;;  %v5073_v6 = vld [vmem:[#allocation3 + $0x1a0] sm:$0xff] }
 0x516   : > { %v3135_v58 = vsel %vm2966_vm1, %v3133_v43, %v3134_v13  ;;  %v5347_v62 = vsel %vm4143_vm5, %v5342_v56, %v5346_v52  ;;  %v5351_v18 = vsel %vm4143_vm5, %v5346_v52, %v5350_v51  ;;  %v5348_v43 = vrot.slane %v5073_v6, 4  ;;  %v5075_v13 = vld [vmem:[#allocation3 + $0x1b0] sm:$0xff] }
 0x517   : > { %3252 = vst.msk [vmem:[#allocation3 + $0x378] sm:$0xff] %vm2679_vm2, %v3135_v58  ;;  %v5076_v58 = vld [vmem:[#allocation3 + $0x1b8] sm:$0xff] }
 0x518   : > { %v5354_v21 = vrot.slane %v5076_v58, 4  ;;  %v5082_v58 = vld [vmem:[#allocation3 + $0x1e8] sm:$0xff] }
 0x51a   : > { %v5355_v56 = vsel %vm4143_vm5, %v5350_v51, %v5354_v21 }
 0x51b   : > { %5909 = vmatmul.mubr.bf16.gmra.mrb[104].mxu1 %v5337_v31  ;;  %v5071_v31 = vld [vmem:[#allocation3 + $0x190] sm:$0xff] }
 0x51c   : > { %8564 = vmatprep.mubr.msk.bf16.mxu1 %vm2679_vm2, %v5343_v48  ;;  %v5344_v55 = vrot.slane %v5071_v31, 4 }
 0x51e   : > { %v5345_v48 = vsel %vm4143_vm5, %v5340_v0, %v5344_v55  ;;  %v5349_v63 = vsel %vm4143_vm5, %v5344_v55, %v5348_v43 }
 0x523   : > { %5917 = vmatmul.mubr.bf16.gmra.mrb[108].mxu1 %v5341_v46  ;;  %v5078_v46 = vld [vmem:[#allocation3 + $0x1c8] sm:$0xff] }
 0x524   : > { %8565 = vmatprep.mubr.msk.bf16.mxu1 %vm2679_vm2, %v5347_v62  ;;  %v5352_v62 = vrot.slane %v5075_v13, 4  ;;  %v5358_v0 = vrot.slane %v5078_v46, 4  ;;  %v5081_v46 = vld [vmem:[#allocation3 + $0x1e0] sm:$0xff] }
 0x526   : > { %v5359_v31 = vsel %vm4143_vm5, %v5354_v21, %v5358_v0  ;;  %v5353_v52 = vsel %vm4143_vm5, %v5348_v43, %v5352_v62 }
 0x52b   : > { %5924 = vmatmul.mubr.bf16.gmra.mrb[112].mxu1 %v5345_v48  ;;  %v5080_v48 = vld [vmem:[#allocation3 + $0x1d8] sm:$0xff] }
 0x52c   : > { %8566 = vmatprep.mubr.msk.bf16.mxu1 %vm2679_vm2, %v5351_v18  ;;  %v5356_v18 = vrot.slane %v5077_v9, 4  ;;  %v5362_v55 = vrot.slane %v5080_v48, 4  ;;  %v5083_v48 = vld [vmem:[#allocation3 + $0x1f0] sm:$0xff] }
 0x52e   : > { %v5357_v6 = vsel %vm4143_vm5, %v5352_v62, %v5356_v18  ;;  %v5363_v51 = vsel %vm4143_vm5, %v5358_v0, %v5362_v55 }
 0x533   : > { %5931 = vmatmul.mubr.bf16.gmra.mrb[116].mxu1 %v5349_v63  ;;  %v5079_v63 = vld [vmem:[#allocation3 + $0x1d0] sm:$0xff] }
 0x534   : > { %8567 = vmatprep.mubr.msk.bf16.mxu1 %vm2679_vm2, %v5355_v56  ;;  %v5366_v56 = vrot.slane %v5082_v58, 4  ;;  %v5360_v21 = vrot.slane %v5079_v63, 4  ;;  %v5085_v63 = vld [vmem:[#allocation3 + $0x200] sm:$0xff] }
 0x536   : > { %v5361_v43 = vsel %vm4143_vm5, %v5356_v18, %v5360_v21  ;;  %v5367_v13 = vsel %vm4143_vm5, %v5362_v55, %v5366_v56 }
 0x53b   : > { %5939 = vmatmul.mubr.bf16.gmra.mrb[120].mxu1 %v5353_v52  ;;  %v5364_v52 = vrot.slane %v5081_v46, 4 }
 0x53c   : > { %8568 = vmatprep.mubr.msk.bf16.mxu1 %vm2679_vm2, %v5359_v31  ;;  %v5084_v31 = vld [vmem:[#allocation3 + $0x1f8] sm:$0xff] }
 0x53d   : > { %v5370_v62 = vrot.slane %v5084_v31, 4  ;;  %v5365_v9 = vsel %vm4143_vm5, %v5360_v21, %v5364_v52  ;;  %v5372_v21 = vrot.slane %v5085_v63, 4 }
 0x53f   : > { %v5371_v0 = vsel %vm4143_vm5, %v5366_v56, %v5370_v62  ;;  %v11553_v56 = vld [vmem:[%s12360_s5] ss:$0 sm:$0xff] }
 0x543   : > { %5946 = vmatmul.mubr.bf16.gmra.mrb[124].mxu1 %v5357_v6  ;;  %v5086_v6 = vld [vmem:[#allocation3 + $0x208] sm:$0xff] }
 0x544   : > { %8569 = vmatprep.mubr.msk.bf16.mxu1 %vm2679_vm2, %v5363_v51  ;;  %v5368_v51 = vrot.slane %v5083_v48, 4  ;;  %v5374_v18 = vrot.slane %v5086_v6, 4 }
 0x546   : > { %v5369_v58 = vsel %vm4143_vm5, %v5364_v52, %v5368_v51  ;;  %v5375_v55 = vsel %vm4143_vm5, %v5370_v62, %v5374_v18  ;;  %v11559_v52 = vld [vmem:[%s12361_s6] ss:$0 sm:$0xff] }
 0x54b   : > { %5953 = vmatmul.mubr.bf16.gmra.mrb[204].mxu1 %v5361_v43  ;;  %v5088_v43 = vld [vmem:[#allocation3 + $0x218] sm:$0xff] }
 0x54c   : > { %8570 = vmatprep.mubr.msk.bf16.mxu1 %vm2679_vm2, %v5367_v13 }
 0x553   : > { %5959 = vmatmul.mubr.bf16.gmra.mrb[208].mxu1 %v5365_v9  ;;  %v5378_v9 = vrot.slane %v5088_v43, 4  ;;  %v5087_v43 = vld [vmem:[#allocation3 + $0x210] sm:$0xff] }
 0x554   : > { %8571 = vmatprep.mubr.msk.bf16.mxu1 %vm2679_vm2, %v5371_v0 }
 0x55b   : > { %5965 = vmatmul.mubr.bf16.gmra.mrb[212].mxu1 %v5369_v58  ;;  %v5373_v58 = vsel %vm4143_vm5, %v5368_v51, %v5372_v21 }
 0x55c   : > { %8572 = vmatprep.mubr.msk.bf16.mxu1 %vm2679_vm2, %v5375_v55 }
 0x55e   : > { %v5778_v13 = vpop.f32.mrb[32].mxu1 }
 0x55f   : > { %v8864_v46 = vadd.f32 %v5778_v13, %v11098_v11  ;;  %v5780_v31 = vpop.f32.mrb[33].mxu1  ;;  %v5379_v11 = vsel %vm4143_vm5, %v5374_v18, %v5378_v9  ;;  %v5090_v13 = vld [vmem:[#allocation3 + $0x228] sm:$0xff] }
 0x560   : > { %v5781_v62 = vpop.f32.mrb[34].mxu1 }
 0x561   : > { %v6218_v0 = vmul.f32 %v8864_v46, %v11553_v56  ;;  %v8865_v48 = vadd.f32 %v5781_v62, %v11100_v49  ;;  %v5783_v6 = vpop.f32.mrb[35].mxu1  ;;  %v5376_v46 = vrot.slane %v5087_v43, 4 }
 0x562   : > { %v5382_v6 = vrot.slane %v5090_v13, 4 }
 0x563   : > { %v6289_v55 = vadd.f32 %v11559_v52, %v6218_v0  ;;  %v6219_v63 = vmul.f32 %v8865_v48, %v11553_v56  ;;  %5971 = vmatmul.mubr.bf16.gmra.mrb[140].mxu1 %v5373_v58  ;;  %v5377_v58 = vsel %vm4143_vm5, %v5372_v21, %v5376_v46 }
 0x564   : > { %8573 = vmatprep.mubr.msk.bf16.mxu1 %vm2679_vm2, %v5379_v11  ;;  %v5383_v18 = vsel %vm4143_vm5, %v5378_v9, %v5382_v6  ;;  %v5089_v11 = vld [vmem:[#allocation3 + $0x220] sm:$0xff] }
 0x565   : > { %v6290_v31 = vadd.f32 %v11559_v52, %v6219_v63  ;;  %v6353_v5 = vmax.f32 %v6289_v55, 0.0  ;;  %v12390_v55 = vmov 0  }
 0x566   : > { %v5786_v20 = vpop.f32.mrb[36].mxu1 }
 0x567   : > { %v6354_v49 = vmax.f32 %v6290_v31, 0.0  ;;  %v5787_v62 = vpop.f32.mrb[37].mxu1  ;;  %v5092_v20 = vld [vmem:[#allocation3 + $0x238] sm:$0xff] }
 0x568   : > { %v5788_v51 = vpop.f32.mrb[38].mxu1  ;;  %v5386_v31 = vrot.slane %v5092_v20, 4 }
 0x569   : > { %v6417_v61 = vpack.c.bf16 %v6354_v49, %v6353_v5  ;;  %v8866_v0 = vadd.f32 %v5788_v51, %v11114_v14  ;;  %v5790_v48 = vpop.f32.mrb[39].mxu1  ;;  %v5380_v5 = vrot.slane %v5089_v11, 4 }
 0x56a   : > { %v5387_v48 = vsel %vm4143_vm5, %v5382_v6, %v5386_v31 }
 0x56b   : > { %5979 = vmatmul.mubr.bf16.gmra.mrb[144].mxu1 %v5377_v58  ;;  %8606 = vmatmul.mubr.msk.bf16.vlgmr.msra.gmra.mrb[44].mxu0 %vm2679_vm2, %v6417_v61  ;;  %v6220_v63 = vmul.f32 %v8866_v0, %v11553_v56  ;;  %v5381_v62 = vsel %vm4143_vm5, %v5376_v46, %v5380_v5  ;;  %v5091_v0 = vld [vmem:[#allocation3 + $0x230] sm:$0xff]  ;;  %v5094_v58 = vld [vmem:[#allocation3 + $0x248] sm:$0xff] }
 0x56c   : > { %8574 = vmatprep.mubr.msk.bf16.mxu1 %vm2679_vm2, %v5383_v18  ;;  %6635 = vmatprep.mubr.bf16.mxu0 %v12390_v55  ;;  %v5384_v20 = vrot.slane %v5091_v0, 4 }
 0x56d   : > { %v6291_v49 = vadd.f32 %v11559_v52, %v6220_v63 }
 0x56e   : > { %v5793_v43 = vpop.f32.mrb[40].mxu1  ;;  %v5385_v6 = vsel %vm4143_vm5, %v5380_v5, %v5384_v20 }
 0x56f   : > { %v8867_v14 = vadd.f32 %v5793_v43, %v11127_v25  ;;  %v5795_v13 = vpop.f32.mrb[41].mxu1  ;;  %v6355_v25 = vmax.f32 %v6291_v49, 0.0 }
 0x570   : > { %v5796_v21 = vpop.f32.mrb[42].mxu1  ;;  %v5390_v13 = vrot.slane %v5094_v58, 4 }
 0x571   : > { %v6221_v61 = vmul.f32 %v8867_v14, %v11553_v56  ;;  %v5797_v9 = vpop.f32.mrb[43].mxu1 }
 0x573   : > { %v6292_v51 = vadd.f32 %v11559_v52, %v6221_v61  ;;  %5986 = vmatmul.mubr.bf16.gmra.mrb[148].mxu1 %v5381_v62 }
 0x574   : > { %8575 = vmatprep.mubr.msk.bf16.mxu1 %vm2679_vm2, %v5387_v48  ;;  %v5096_v48 = vld [vmem:[#allocation3 + $0x258] sm:$0xff] }
 0x575   : > { %v6356_v18 = vmax.f32 %v6292_v51, 0.0  ;;  %v5093_v51 = vld [vmem:[#allocation3 + $0x240] sm:$0xff] }
 0x576   : > { %v5800_v11 = vpop.f32.mrb[44].mxu1  ;;  %v5388_v58 = vrot.slane %v5093_v51, 4 }
 0x577   : > { %v6418_v43 = vpack.c.bf16 %v6356_v18, %v6355_v25  ;;  %v8868_v63 = vadd.f32 %v5800_v11, %v11140_v28  ;;  %v5802_v14 = vpop.f32.mrb[45].mxu1  ;;  %v5391_v28 = vsel %vm4143_vm5, %v5386_v31, %v5390_v13  ;;  %v5394_v11 = vrot.slane %v5096_v48, 4 }
 0x578   : > { %v5803_v21 = vpop.f32.mrb[46].mxu1 }
 0x579   : > { %v6222_v46 = vmul.f32 %v8868_v63, %v11553_v56  ;;  %v8869_v61 = vadd.f32 %v5803_v21, %v11147_v2  ;;  %v5805_v9 = vpop.f32.mrb[47].mxu1  ;;  %8607 = vmatmul.mubr.msk.bf16.gmra.mrb[48].mxu0 %vm2679_vm2, %v6418_v43  ;;  %v5395_v31 = vsel %vm4143_vm5, %v5390_v13, %v5394_v11 }
 0x57a   : > { %6645 = vmatprep.mubr.bf16.mxu0 %v12390_v55  ;;  %v5098_v9 = vld [vmem:[#allocation3 + $0x268] sm:$0xff] }
 0x57b   : > { %v6293_v49 = vadd.f32 %v11559_v52, %v6222_v46  ;;  %v6223_v62 = vmul.f32 %v8869_v61, %v11553_v56  ;;  %5993 = vmatmul.mubr.bf16.gmra.mrb[152].mxu1 %v5385_v6  ;;  %v5389_v46 = vsel %vm4143_vm5, %v5384_v20, %v5388_v58  ;;  %v5095_v61 = vld [vmem:[#allocation3 + $0x250] sm:$0xff]  ;;  %v5398_v48 = vrot.slane %v5098_v9, 4 }
 0x57c   : > { %8576 = vmatprep.mubr.msk.bf16.mxu1 %vm2679_vm2, %v5391_v28  ;;  %v5392_v28 = vrot.slane %v5095_v61, 4  ;;  %v2848_v61 = vpop.permute.xlu0 %2847 }
 0x57d   : > { %v6294_v2 = vadd.f32 %v11559_v52, %v6223_v62  ;;  %v6357_v25 = vmax.f32 %v6293_v49, 0.0  ;;  %v12391_v49 = vshrl.u32 %v11514_v39, 16 }
 0x57e   : > { %v5808_v0 = vpop.f32.mrb[48].mxu1 }
 0x57f   : > { %v6358_v18 = vmax.f32 %v6294_v2, 0.0  ;;  %v5809_v5 = vpop.f32.mrb[49].mxu1  ;;  %v2606_v62 = vrot.slane %v12391_v49, 7 }
 0x580   : > { %v5810_v43 = vpop.f32.mrb[50].mxu1 }
 0x581   : > { %v6419_v63 = vpack.c.bf16 %v6358_v18, %v6357_v25  ;;  %v8870_v14 = vadd.f32 %v5810_v43, %v11162_v26  ;;  %v5812_v21 = vpop.f32.mrb[51].mxu1  ;;  %v12392_v18 = vshll.u32 %v10358_v33, 16  ;;  %v5393_v43 = vsel %vm4143_vm5, %v5388_v58, %v5392_v28 }
 0x583   : > { %6001 = vmatmul.mubr.bf16.gmra.mrb[156].mxu1 %v5389_v46  ;;  %8608 = vmatmul.mubr.msk.bf16.gmra.mrb[52].mxu0 %vm2679_vm2, %v6419_v63  ;;  %v6224_v6 = vmul.f32 %v8870_v14, %v11553_v56  ;;  %v2609_v5 = vor.u32 %v12392_v18, %v2606_v62  ;;  %v5399_v63 = vsel %vm4143_vm5, %v5394_v11, %v5398_v48  ;;  %v5097_v14 = vld [vmem:[#allocation3 + $0x260] sm:$0xff] }
 0x584   : > { %8577 = vmatprep.mubr.msk.bf16.mxu1 %vm2679_vm2, %v5395_v31  ;;  %6655 = vmatprep.mubr.bf16.mxu0 %v12390_v55  ;;  %v5396_v33 = vrot.slane %v5097_v14, 4 }
 0x585   : > { %v6295_v13 = vadd.f32 %v11559_v52, %v6224_v6  ;;  %v2610_v31 = vsel %vm2163_vm3, %v10626_v35, %v2609_v5 }
 0x586   : > { %v5815_v26 = vpop.f32.mrb[52].mxu1  ;;  %2735 = vst.msk [vmem:[#allocation3 + $0x370] sm:$0xff] %vm2679_vm2, %v2610_v31  ;;  %v5397_v35 = vsel %vm4143_vm5, %v5392_v28, %v5396_v33 }
 0x587   : > { %v8871_v20 = vadd.f32 %v5815_v26, %v11175_v41  ;;  %v5817_v51 = vpop.f32.mrb[53].mxu1  ;;  %v5100_v41 = vld [vmem:[#allocation3 + $0x278] sm:$0xff]  ;;  %v6359_v21 = vmax.f32 %v6295_v13, 0.0  ;;  %2964 = vst.msk [vmem:[#allocation3 + $0x370] sm:$0xff] %vm2908_vm4, %v2848_v61  ;;  %v5101_v61 = vld [vmem:[#allocation3 + $0x280] sm:$0xff] }
 0x588   : > { %v5818_v2 = vpop.f32.mrb[54].mxu1  ;;  %v5402_v62 = vrot.slane %v5100_v41, 4 }
 0x589   : > { %v6225_v0 = vmul.f32 %v8871_v20, %v11553_v56  ;;  %v5819_v25 = vpop.f32.mrb[55].mxu1 }
 0x58a   : > { %v5403_v13 = vsel %vm4143_vm5, %v5398_v48, %v5402_v62  ;;  %v5102_v25 = vld [vmem:[#allocation3 + $0x288] sm:$0xff] }
 0x58b   : > { %v6296_v39 = vadd.f32 %v11559_v52, %v6225_v0  ;;  %6008 = vmatmul.mubr.bf16.gmra.mrb[160].mxu1 %v5393_v43  ;;  %v5099_v0 = vld [vmem:[#allocation3 + $0x270] sm:$0xff] }
 0x58c   : > { %8578 = vmatprep.mubr.msk.bf16.mxu1 %vm2679_vm2, %v5399_v63  ;;  %v5400_v5 = vrot.slane %v5099_v0, 4  ;;  %v5406_v63 = vrot.slane %v5102_v25, 4  ;;  %v5106_v0 = vld [vmem:[#allocation3 + $0x2a8] sm:$0xff] }
 0x58d   : > { %v6360_v46 = vmax.f32 %v6296_v39, 0.0 }
 0x58e   : > { %v5822_v9 = vpop.f32.mrb[56].mxu1  ;;  %v5401_v31 = vsel %vm4143_vm5, %v5396_v33, %v5400_v5  ;;  %v5407_v48 = vsel %vm4143_vm5, %v5402_v62, %v5406_v63 }
 0x58f   : > { %v6420_v58 = vpack.c.bf16 %v6360_v46, %v6359_v21  ;;  %v8872_v6 = vadd.f32 %v5822_v9, %v11189_v16  ;;  %v5824_v49 = vpop.f32.mrb[57].mxu1  ;;  %v5104_v9 = vld [vmem:[#allocation3 + $0x298] sm:$0xff] }
 0x590   : > { %v5825_v11 = vpop.f32.mrb[58].mxu1  ;;  %v5404_v49 = vrot.slane %v5101_v61, 4  ;;  %v5105_v61 = vld [vmem:[#allocation3 + $0x2a0] sm:$0xff] }
 0x591   : > { %v6226_v26 = vmul.f32 %v8872_v6, %v11553_v56  ;;  %v8873_v20 = vadd.f32 %v5825_v11, %v11192_v8  ;;  %v5827_v51 = vpop.f32.mrb[59].mxu1  ;;  %8609 = vmatmul.mubr.msk.bf16.gmra.mrb[56].mxu0 %vm2679_vm2, %v6420_v58 }
 0x592   : > { %6665 = vmatprep.mubr.bf16.mxu0 %v12390_v55 }
 0x593   : > { %v6297_v2 = vadd.f32 %v11559_v52, %v6226_v26  ;;  %v6227_v16 = vmul.f32 %v8873_v20, %v11553_v56  ;;  %6015 = vmatmul.mubr.bf16.gmra.mrb[164].mxu1 %v5397_v35  ;;  %v5410_v26 = vrot.slane %v5104_v9, 4  ;;  %v5405_v35 = vsel %vm4143_vm5, %v5400_v5, %v5404_v49  ;;  %v5108_v9 = vld [vmem:[#allocation3 + $0x2b8] sm:$0xff] }
 0x594   : > { %8579 = vmatprep.mubr.msk.bf16.mxu1 %vm2679_vm2, %v5403_v13  ;;  %v5103_v13 = vld [vmem:[#allocation3 + $0x290] sm:$0xff] }
 0x595   : > { %v6298_v8 = vadd.f32 %v11559_v52, %v6227_v16  ;;  %v6361_v43 = vmax.f32 %v6297_v2, 0.0  ;;  %v5411_v16 = vsel %vm4143_vm5, %v5406_v63, %v5410_v26 }
 0x596   : > { %v5830_v18 = vpop.f32.mrb[60].mxu1 }
 0x597   : > { %v6362_v39 = vmax.f32 %v6298_v8, 0.0  ;;  %v5831_v28 = vpop.f32.mrb[61].mxu1  ;;  %v5408_v18 = vrot.slane %v5103_v13, 4  ;;  %v5110_v13 = vld [vmem:[#allocation3 + $0x2c8] sm:$0xff] }
 0x598   : > { %v5832_v14 = vpop.f32.mrb[62].mxu1 }
 0x599   : > { %v6421_v41 = vpack.c.bf16 %v6362_v39, %v6361_v43  ;;  %v8874_v21 = vadd.f32 %v5832_v14, %v11206_v27  ;;  %v5834_v46 = vpop.f32.mrb[63].mxu1  ;;  %v5414_v14 = vrot.slane %v5106_v0, 4  ;;  %v5409_v63 = vsel %vm4143_vm5, %v5404_v49, %v5408_v18 }
 0x59b   : > { %6023 = vmatmul.mubr.bf16.gmra.mrb[168].mxu1 %v5401_v31  ;;  %8610 = vmatmul.mubr.msk.bf16.gmra.mrb[60].mxu0 %vm2679_vm2, %v6421_v41  ;;  %v6228_v58 = vmul.f32 %v8874_v21, %v11553_v56 }
 0x59c   : > { %8580 = vmatprep.mubr.msk.bf16.mxu1 %vm2679_vm2, %v5407_v48  ;;  %6675 = vmatprep.mubr.bf16.mxu0 %v12390_v55 }
 0x59d   : > { %v6299_v20 = vadd.f32 %v11559_v52, %v6228_v58 }
 0x59e   : > { %v5837_v6 = vpop.f32.mrb[64].mxu1 }
 0x59f   : > { %v8875_v27 = vadd.f32 %v5837_v6, %v11222_v44  ;;  %v5839_v11 = vpop.f32.mrb[65].mxu1  ;;  %v6363_v44 = vmax.f32 %v6299_v20, 0.0  ;;  %v5412_v6 = vrot.slane %v5105_v61, 4 }
 0x5a0   : > { %v5840_v33 = vpop.f32.mrb[66].mxu1 }
 0x5a1   : > { %v6229_v51 = vmul.f32 %v8875_v27, %v11553_v56  ;;  %v5841_v62 = vpop.f32.mrb[67].mxu1  ;;  %v5418_v33 = vrot.slane %v5108_v9, 4 }
 0x5a3   : > { %v6300_v2 = vadd.f32 %v11559_v52, %v6229_v51  ;;  %6030 = vmatmul.mubr.bf16.gmra.mrb[172].mxu1 %v5405_v35 }
 0x5a4   : > { %8581 = vmatprep.mubr.msk.bf16.mxu1 %vm2679_vm2, %v5411_v16  ;;  %v5107_v16 = vld [vmem:[#allocation3 + $0x2b0] sm:$0xff] }
 0x5a5   : > { %v6364_v25 = vmax.f32 %v6300_v2, 0.0  ;;  %v5413_v2 = vsel %vm4143_vm5, %v5408_v18, %v5412_v6 }
 0x5a6   : > { %v5844_v8 = vpop.f32.mrb[68].mxu1 }
 0x5a7   : > { %v6422_v43 = vpack.c.bf16 %v6364_v25, %v6363_v44  ;;  %v8876_v39 = vadd.f32 %v5844_v8, %v11235_v3  ;;  %v5846_v28 = vpop.f32.mrb[69].mxu1  ;;  %v5415_v3 = vsel %vm4143_vm5, %v5410_v26, %v5414_v14  ;;  %v5419_v26 = vsel %vm4143_vm5, %v5414_v14, %v5418_v33 }
 0x5a8   : > { %v5847_v41 = vpop.f32.mrb[70].mxu1  ;;  %v5416_v25 = vrot.slane %v5107_v16, 4 }
 0x5a9   : > { %v6230_v5 = vmul.f32 %v8876_v39, %v11553_v56  ;;  %v8877_v21 = vadd.f32 %v5847_v41, %v11239_v10  ;;  %v5849_v46 = vpop.f32.mrb[71].mxu1  ;;  %8611 = vmatmul.mubr.msk.bf16.gmra.mrb[64].mxu0 %vm2679_vm2, %v6422_v43  ;;  %v5422_v43 = vrot.slane %v5110_v13, 4 }
 0x5aa   : > { %6685 = vmatprep.mubr.bf16.mxu0 %v12390_v55  ;;  %v5417_v41 = vsel %vm4143_vm5, %v5412_v6, %v5416_v25  ;;  %v5109_v46 = vld [vmem:[#allocation3 + $0x2c0] sm:$0xff] }
 0x5ab   : > { %v6301_v31 = vadd.f32 %v11559_v52, %v6230_v5  ;;  %v6231_v48 = vmul.f32 %v8877_v21, %v11553_v56  ;;  %6037 = vmatmul.mubr.bf16.gmra.mrb[176].mxu1 %v5409_v63  ;;  %v5423_v21 = vsel %vm4143_vm5, %v5418_v33, %v5422_v43  ;;  %v5112_v63 = vld [vmem:[#allocation3 + $0x2d8] sm:$0xff] }
 0x5ac   : > { %8582 = vmatprep.mubr.msk.bf16.mxu1 %vm2679_vm2, %v5415_v3  ;;  %v5420_v3 = vrot.slane %v5109_v46, 4 }
 0x5ad   : > { %v6302_v10 = vadd.f32 %v11559_v52, %v6231_v48  ;;  %v6365_v27 = vmax.f32 %v6301_v31, 0.0 }
 0x5ae   : > { %v5852_v58 = vpop.f32.mrb[72].mxu1  ;;  %v5421_v33 = vsel %vm4143_vm5, %v5416_v25, %v5420_v3 }
 0x5af   : > { %v6366_v11 = vmax.f32 %v6302_v10, 0.0  ;;  %v5853_v49 = vpop.f32.mrb[73].mxu1  ;;  %v5426_v58 = vrot.slane %v5112_v63, 4 }
 0x5b0   : > { %v5854_v20 = vpop.f32.mrb[74].mxu1 }
 0x5b1   : > { %v6423_v51 = vpack.c.bf16 %v6366_v11, %v6365_v27  ;;  %v8878_v62 = vadd.f32 %v5854_v20, %v11253_v32  ;;  %v5856_v35 = vpop.f32.mrb[75].mxu1 }
 0x5b2   : > { %v5114_v35 = vld [vmem:[#allocation3 + $0x2e8] sm:$0xff] }
 0x5b3   : > { %6045 = vmatmul.mubr.bf16.gmra.mrb[180].mxu1 %v5413_v2  ;;  %8612 = vmatmul.mubr.msk.bf16.gmra.mrb[68].mxu0 %vm2679_vm2, %v6423_v51  ;;  %v6232_v0 = vmul.f32 %v8878_v62, %v11553_v56  ;;  %v5111_v62 = vld [vmem:[#allocation3 + $0x2d0] sm:$0xff] }
 0x5b4   : > { %8583 = vmatprep.mubr.msk.bf16.mxu1 %vm2679_vm2, %v5419_v26  ;;  %6695 = vmatprep.mubr.bf16.mxu0 %v12390_v55  ;;  %v5424_v26 = vrot.slane %v5111_v62, 4 }
 0x5b5   : > { %v6303_v39 = vadd.f32 %v11559_v52, %v6232_v0 }
 0x5b6   : > { %v5859_v44 = vpop.f32.mrb[76].mxu1 }
 0x5b7   : > { %v8879_v32 = vadd.f32 %v5859_v44, %v11265_v24  ;;  %v5861_v8 = vpop.f32.mrb[77].mxu1  ;;  %v6367_v24 = vmax.f32 %v6303_v39, 0.0  ;;  %v5430_v44 = vrot.slane %v5114_v35, 4  ;;  %v5425_v39 = vsel %vm4143_vm5, %v5420_v3, %v5424_v26 }
 0x5b8   : > { %v5862_v18 = vpop.f32.mrb[78].mxu1 }
 0x5b9   : > { %v6233_v28 = vmul.f32 %v8879_v32, %v11553_v56  ;;  %v5863_v14 = vpop.f32.mrb[79].mxu1 }
 0x5bb   : > { %v6304_v5 = vadd.f32 %v11559_v52, %v6233_v28  ;;  %6052 = vmatmul.mubr.bf16.gmra.mrb[184].mxu1 %v5417_v41  ;;  %v5116_v28 = vld [vmem:[#allocation3 + $0x2f8] sm:$0xff]  ;;  %v5113_v41 = vld [vmem:[#allocation3 + $0x2e0] sm:$0xff] }
 0x5bc   : > { %8584 = vmatprep.mubr.msk.bf16.mxu1 %vm2679_vm2, %v5423_v21  ;;  %v5434_v46 = vrot.slane %v5116_v28, 4 }
 0x5bd   : > { %v6368_v31 = vmax.f32 %v6304_v5, 0.0 }
 0x5be   : > { %v5866_v48 = vpop.f32.mrb[80].mxu1 }
 0x5bf   : > { %v6424_v61 = vpack.c.bf16 %v6368_v31, %v6367_v24  ;;  %v8880_v9 = vadd.f32 %v5866_v48, %v11279_v50  ;;  %v5868_v10 = vpop.f32.mrb[81].mxu1  ;;  %v5427_v50 = vsel %vm4143_vm5, %v5422_v43, %v5426_v58  ;;  %v5431_v43 = vsel %vm4143_vm5, %v5426_v58, %v5430_v44  ;;  %v5115_v58 = vld [vmem:[#allocation3 + $0x2f0] sm:$0xff] }
 0x5c0   : > { %v5869_v27 = vpop.f32.mrb[82].mxu1  ;;  %v5428_v24 = vrot.slane %v5113_v41, 4  ;;  %v5435_v10 = vsel %vm4143_vm5, %v5430_v44, %v5434_v46  ;;  %v5120_v44 = vld [vmem:[#allocation3 + $0x318] sm:$0xff] }
 0x5c1   : > { %v6234_v6 = vmul.f32 %v8880_v9, %v11553_v56  ;;  %v8881_v11 = vadd.f32 %v5869_v27, %v11283_v40  ;;  %v5871_v49 = vpop.f32.mrb[83].mxu1  ;;  %8613 = vmatmul.mubr.msk.bf16.gmra.mrb[72].mxu0 %vm2679_vm2, %v6424_v61 }
 0x5c2   : > { %6705 = vmatprep.mubr.bf16.mxu0 %v12390_v55  ;;  %v5429_v61 = vsel %vm4143_vm5, %v5424_v26, %v5428_v24  ;;  %v5432_v49 = vrot.slane %v5115_v58, 4 }
 0x5c3   : > { %v6305_v20 = vadd.f32 %v11559_v52, %v6234_v6  ;;  %v6235_v51 = vmul.f32 %v8881_v11, %v11553_v56  ;;  %6059 = vmatmul.mubr.bf16.gmra.mrb[188].mxu1 %v5421_v33 }
 0x5c4   : > { %8585 = vmatprep.mubr.msk.bf16.mxu1 %vm2679_vm2, %v5427_v50  ;;  %v5433_v26 = vsel %vm4143_vm5, %v5428_v24, %v5432_v49 }
 0x5c5   : > { %v6306_v40 = vadd.f32 %v11559_v52, %v6235_v51  ;;  %v6369_v16 = vmax.f32 %v6305_v20, 0.0 }
 0x5c6   : > { %v5874_v2 = vpop.f32.mrb[84].mxu1 }
 0x5c7   : > { %v6370_v13 = vmax.f32 %v6306_v40, 0.0  ;;  %v5875_v0 = vpop.f32.mrb[85].mxu1 }
 0x5c8   : > { %v5876_v25 = vpop.f32.mrb[86].mxu1  ;;  %v5117_v0 = vld [vmem:[#allocation3 + $0x300] sm:$0xff] }
 0x5c9   : > { %v6425_v32 = vpack.c.bf16 %v6370_v13, %v6369_v16  ;;  %v8882_v8 = vadd.f32 %v5876_v25, %v11297_v19  ;;  %v5878_v18 = vpop.f32.mrb[87].mxu1 }
 0x5cb   : > { %6067 = vmatmul.mubr.bf16.gmra.mrb[192].mxu1 %v5425_v39  ;;  %8614 = vmatmul.mubr.msk.bf16.gmra.mrb[76].mxu0 %vm2679_vm2, %v6425_v32  ;;  %v6236_v14 = vmul.f32 %v8882_v8, %v11553_v56  ;;  %v5436_v32 = vrot.slane %v5117_v0, 4 }
 0x5cc   : > { %8586 = vmatprep.mubr.msk.bf16.mxu1 %vm2679_vm2, %v5431_v43  ;;  %6715 = vmatprep.mubr.bf16.mxu0 %v12390_v55  ;;  %v5442_v43 = vrot.slane %v5120_v44, 4 }
 0x5cd   : > { %v6307_v31 = vadd.f32 %v11559_v52, %v6236_v14 }
 0x5ce   : > { %v5881_v5 = vpop.f32.mrb[88].mxu1 }
 0x5cf   : > { %v8883_v21 = vadd.f32 %v5881_v5, %v11309_v7  ;;  %v5883_v19 = vpop.f32.mrb[89].mxu1  ;;  %v5118_v7 = vld [vmem:[#allocation3 + $0x308] sm:$0xff]  ;;  %v6371_v27 = vmax.f32 %v6307_v31, 0.0 }
 0x5d0   : > { %v5884_v63 = vpop.f32.mrb[90].mxu1  ;;  %v5438_v50 = vrot.slane %v5118_v7, 4 }
 0x5d1   : > { %v6237_v48 = vmul.f32 %v8883_v21, %v11553_v56  ;;  %v5885_v3 = vpop.f32.mrb[91].mxu1  ;;  %v5437_v21 = vsel %vm4143_vm5, %v5432_v49, %v5436_v32  ;;  %v5122_v63 = vld [vmem:[#allocation3 + $0x328] sm:$0xff]  ;;  %v5121_v49 = vld [vmem:[#allocation3 + $0x320] sm:$0xff] }
 0x5d2   : > { %v5443_v19 = vsel %vm4143_vm5, %v5438_v50, %v5442_v43 }
 0x5d3   : > { %v6308_v9 = vadd.f32 %v11559_v52, %v6237_v48  ;;  %6074 = vmatmul.mubr.bf16.gmra.mrb[196].mxu1 %v5429_v61  ;;  %v5446_v61 = vrot.slane %v5122_v63, 4 }
 0x5d4   : > { %8587 = vmatprep.mubr.msk.bf16.mxu1 %vm2679_vm2, %v5435_v10 }
 0x5d5   : > { %v6372_v6 = vmax.f32 %v6308_v9, 0.0 }
 0x5d6   : > { %v5888_v11 = vpop.f32.mrb[92].mxu1 }
 0x5d7   : > { %v6426_v33 = vpack.c.bf16 %v6372_v6, %v6371_v27  ;;  %v8884_v20 = vadd.f32 %v5888_v11, %v11320_v15  ;;  %v5890_v51 = vpop.f32.mrb[93].mxu1  ;;  %v5439_v15 = vsel %vm4143_vm5, %v5434_v46, %v5438_v50  ;;  %v5119_v46 = vld [vmem:[#allocation3 + $0x310] sm:$0xff]  ;;  %v5447_v11 = vsel %vm4143_vm5, %v5442_v43, %v5446_v61 }
 0x5d8   : > { %v5891_v62 = vpop.f32.mrb[94].mxu1  ;;  %v5440_v48 = vrot.slane %v5119_v46, 4  ;;  %v5444_v50 = vrot.slane %v5121_v49, 4 }
 0x5d9   : > { %v6238_v35 = vmul.f32 %v8884_v20, %v11553_v56  ;;  %v8885_v40 = vadd.f32 %v5891_v62, %v11330_v4  ;;  %v5893_v2 = vpop.f32.mrb[95].mxu1  ;;  %8615 = vmatmul.mubr.msk.bf16.gmra.mrb[80].mxu0 %vm2679_vm2, %v6426_v33  ;;  %v5124_v33 = vld [vmem:[#allocation3 + $0x338] sm:$0xff] }
 0x5da   : > { %6725 = vmatprep.mubr.bf16.mxu0 %v12390_v55  ;;  %v5441_v27 = vsel %vm4143_vm5, %v5436_v32, %v5440_v48  ;;  %v5450_v2 = vrot.slane %v5124_v33, 4  ;;  %v5445_v0 = vsel %vm4143_vm5, %v5440_v48, %v5444_v50  ;;  %v5126_v32 = vld [vmem:[#allocation3 + $0x348] sm:$0xff]  ;;  %v5127_v33 = vld [vmem:[#allocation3 + $0x350] sm:$0xff] }
 0x5db   : > { %v6309_v16 = vadd.f32 %v11559_v52, %v6238_v35  ;;  %v6239_v13 = vmul.f32 %v8885_v40, %v11553_v56  ;;  %6081 = vmatmul.mubr.bf16.gmra.mrb[200].mxu1 %v5433_v26 }
 0x5dc   : > { %8588 = vmatprep.mubr.msk.bf16.mxu1 %vm2679_vm2, %v5439_v15 }
 0x5dd   : > { %v6310_v4 = vadd.f32 %v11559_v52, %v6239_v13  ;;  %v6373_v8 = vmax.f32 %v6309_v16, 0.0 }
 0x5de   : > { %v5896_v25 = vpop.f32.mrb[96].mxu1 }
 0x5df   : > { %v6374_v18 = vmax.f32 %v6310_v4, 0.0  ;;  %v5897_v39 = vpop.f32.mrb[97].mxu1  ;;  %v5123_v25 = vld [vmem:[#allocation3 + $0x330] sm:$0xff] }
 0x5e0   : > { %v5898_v28 = vpop.f32.mrb[98].mxu1 }
 0x5e1   : > { %v6427_v14 = vpack.c.bf16 %v6374_v18, %v6373_v8  ;;  %v8886_v41 = vadd.f32 %v5898_v28, %v11338_v54  ;;  %v5900_v5 = vpop.f32.mrb[99].mxu1  ;;  %v5448_v18 = vrot.slane %v5123_v25, 4  ;;  %v5129_v25 = vld [vmem:[#allocation3 + $0x360] sm:$0xff] }
 0x5e3   : > { %6089 = vmatmul.mubr.bf16.gmra.mrb[0].mxu1 %v5437_v21  ;;  %8616 = vmatmul.mubr.msk.bf16.gmra.mrb[84].mxu0 %vm2679_vm2, %v6427_v14  ;;  %v6240_v24 = vmul.f32 %v8886_v41, %v11553_v56  ;;  %v5454_v14 = vrot.slane %v5126_v32, 4  ;;  %v5449_v46 = vsel %vm4143_vm5, %v5444_v50, %v5448_v18  ;;  %v5456_v50 = vrot.slane %v5127_v33, 4 }
 0x5e4   : > { %8589 = vmatprep.mubr.msk.bf16.mxu1 %vm2679_vm2, %v5443_v19  ;;  %6735 = vmatprep.mubr.bf16.mxu0 %v12390_v55 }
 0x5e5   : > { %v6311_v10 = vadd.f32 %v11559_v52, %v6240_v24  ;;  %v5455_v63 = vsel %vm4143_vm5, %v5450_v2, %v5454_v14  ;;  %v5125_v24 = vld [vmem:[#allocation3 + $0x340] sm:$0xff] }
 0x5e6   : > { %v5903_v31 = vpop.f32.mrb[100].mxu1 }
 0x5e7   : > { %v8887_v54 = vadd.f32 %v5903_v31, %v11343_v12  ;;  %v5905_v3 = vpop.f32.mrb[101].mxu1  ;;  %v6375_v12 = vmax.f32 %v6311_v10, 0.0  ;;  %v5128_v31 = vld [vmem:[#allocation3 + $0x358] sm:$0xff] }
 0x5e8   : > { %v5906_v9 = vpop.f32.mrb[102].mxu1  ;;  %v5452_v3 = vrot.slane %v5125_v24, 4 }
 0x5e9   : > { %v6241_v58 = vmul.f32 %v8887_v54, %v11553_v56  ;;  %v5907_v7 = vpop.f32.mrb[103].mxu1  ;;  %v5458_v9 = vrot.slane %v5128_v31, 4 }
 0x5eb   : > { %v6312_v6 = vadd.f32 %v11559_v52, %v6241_v58  ;;  %6096 = vmatmul.mubr.bf16.gmra.mrb[4].mxu1 %v5441_v27  ;;  %v5459_v49 = vsel %vm4143_vm5, %v5454_v14, %v5458_v9 }
 0x5ec   : > { %8590 = vmatprep.mubr.msk.bf16.mxu1 %vm2679_vm2, %v5447_v11 }
 0x5ed   : > { %v6376_v20 = vmax.f32 %v6312_v6, 0.0  ;;  %v5453_v6 = vsel %vm4143_vm5, %v5448_v18, %v5452_v3 }
 0x5ee   : > { %v5910_v51 = vpop.f32.mrb[104].mxu1 }
 0x5ef   : > { %v6428_v62 = vpack.c.bf16 %v6376_v20, %v6375_v12  ;;  %v8888_v35 = vadd.f32 %v5910_v51, %v11350_v29  ;;  %v5912_v40 = vpop.f32.mrb[105].mxu1  ;;  %v5451_v29 = vsel %vm4143_vm5, %v5446_v61, %v5450_v2  ;;  %v5130_v12 = vld [vmem:[#allocation3 + $0x368] sm:$0xff] }
 0x5f0   : > { %v5913_v26 = vpop.f32.mrb[106].mxu1  ;;  %v5462_v2 = vrot.slane %v5130_v12, 4 }
 0x5f1   : > { %v6242_v16 = vmul.f32 %v8888_v35, %v11553_v56  ;;  %v8889_v13 = vadd.f32 %v5913_v26, %v11353_v30  ;;  %v5915_v15 = vpop.f32.mrb[107].mxu1  ;;  %8617 = vmatmul.mubr.msk.bf16.gmra.mrb[88].mxu0 %vm2679_vm2, %v6428_v62 }
 0x5f2   : > { %6745 = vmatprep.mubr.bf16.mxu0 %v12390_v55 }
 0x5f3   : > { %v6313_v44 = vadd.f32 %v11559_v52, %v6242_v16  ;;  %v6243_v4 = vmul.f32 %v8889_v13, %v11553_v56  ;;  %6103 = vmatmul.mubr.bf16.gmra.mrb[8].mxu1 %v5445_v0  ;;  %v5457_v0 = vsel %vm4143_vm5, %v5452_v3, %v5456_v50 }
 0x5f4   : > { %8591 = vmatprep.mubr.msk.bf16.mxu1 %vm2679_vm2, %v5451_v29 }
 0x5f5   : > { %v6314_v30 = vadd.f32 %v11559_v52, %v6243_v4  ;;  %v6377_v39 = vmax.f32 %v6313_v44, 0.0  ;;  %v5132_v44 = vld [vmem:[#allocation3 + $0x378] sm:$0xf] }
 0x5f6   : > { %v5918_v8 = vpop.f32.mrb[108].mxu1  ;;  %v5466_v32 = vrot.slane %v5132_v44, 4  ;;  %v6946_v44 = vld [vmem:[%s12363_s8] sm:$0x3] }
 0x5f7   : > { %v6378_v43 = vmax.f32 %v6314_v30, 0.0  ;;  %v5919_v28 = vpop.f32.mrb[109].mxu1  ;;  %v5460_v8 = vrot.slane %v5129_v25, 4 }
 0x5f8   : > { %v5920_v41 = vpop.f32.mrb[110].mxu1 }
 0x5f9   : > { %v6429_v5 = vpack.c.bf16 %v6378_v43, %v6377_v39  ;;  %v8890_v21 = vadd.f32 %v5920_v41, %v11358_v53  ;;  %v5922_v19 = vpop.f32.mrb[111].mxu1 }
 0x5fa   : > { %v5461_v19 = vsel %vm4143_vm5, %v5456_v50, %v5460_v8 }
 0x5fb   : > { %6111 = vmatmul.mubr.bf16.gmra.mrb[12].mxu1 %v5449_v46  ;;  %8618 = vmatmul.mubr.msk.bf16.gmra.mrb[92].mxu0 %vm2679_vm2, %v6429_v5  ;;  %v6244_v48 = vmul.f32 %v8890_v21, %v11553_v56  ;;  %v5467_v21 = vsel %vm4143_vm5, %v5462_v2, %v5466_v32  ;;  %v5131_v46 = vld [vmem:[#allocation3 + $0x370] sm:$0xf] }
 0x5fc   : > { %8592 = vmatprep.mubr.msk.bf16.mxu1 %vm2679_vm2, %v5455_v63  ;;  %6755 = vmatprep.mubr.bf16.mxu0 %v12390_v55  ;;  %v5464_v31 = vrot.slane %v5131_v46, 4 }
 0x5fd   : > { %v6315_v58 = vadd.f32 %v11559_v52, %v6244_v48 }
 0x5fe   : > { %v5925_v54 = vpop.f32.mrb[112].mxu1 }
 0x5ff   : > { %v8891_v53 = vadd.f32 %v5925_v54, %v11363_v23  ;;  %v5927_v61 = vpop.f32.mrb[113].mxu1  ;;  %v6379_v23 = vmax.f32 %v6315_v58, 0.0 }
 0x600   : > { %v5928_v10 = vpop.f32.mrb[114].mxu1 }
 0x601   : > { %v6245_v7 = vmul.f32 %v8891_v53, %v11553_v56  ;;  %v5929_v27 = vpop.f32.mrb[115].mxu1 }
 0x603   : > { %v6316_v11 = vadd.f32 %v11559_v52, %v6245_v7  ;;  %6118 = vmatmul.mubr.bf16.gmra.mrb[16].mxu1 %v5453_v6 }
 0x604   : > { %8593 = vmatprep.mubr.msk.bf16.mxu1 %vm2679_vm2, %v5459_v49 }
 0x605   : > { %v6380_v20 = vmax.f32 %v6316_v11, 0.0 }
 0x606   : > { %v5932_v51 = vpop.f32.mrb[116].mxu1 }
 0x607   : > { %v6430_v62 = vpack.c.bf16 %v6380_v20, %v6379_v23  ;;  %v8892_v35 = vadd.f32 %v5932_v51, %v11370_v22  ;;  %v5934_v40 = vpop.f32.mrb[117].mxu1  ;;  %v5463_v22 = vsel %vm4143_vm5, %v5458_v9, %v5462_v2  ;;  %v5465_v9 = vsel %vm4143_vm5, %v5460_v8, %v5464_v31 }
 0x608   : > { %v5935_v26 = vpop.f32.mrb[118].mxu1 }
 0x609   : > { %v6246_v16 = vmul.f32 %v8892_v35, %v11553_v56  ;;  %v8893_v13 = vadd.f32 %v5935_v26, %v11372_v36  ;;  %v5937_v15 = vpop.f32.mrb[119].mxu1  ;;  %8619 = vmatmul.mubr.msk.bf16.gmra.mrb[96].mxu0 %vm2679_vm2, %v6430_v62  ;;  %v6948_v62 = vlaneseq }
 0x60a   : > { %6765 = vmatprep.mubr.bf16.mxu0 %v12390_v55 }
 0x60b   : > { %v6317_v4 = vadd.f32 %v11559_v52, %v6246_v16  ;;  %v6247_v29 = vmul.f32 %v8893_v13, %v11553_v56  ;;  %6125 = vmatmul.mubr.bf16.gmra.mrb[20].mxu1 %v5457_v0  ;;  %v6949_v2 = vshrl.u32 %v6948_v62, 7 }
 0x60c   : > { %8594 = vmatprep.mubr.msk.bf16.mxu1 %vm2679_vm2, %v5463_v22 }
 0x60d   : > { %v6318_v36 = vadd.f32 %v11559_v52, %v6247_v29  ;;  %v6381_v18 = vmax.f32 %v6317_v4, 0.0  ;;  %v6950_v15 = vsub.s32 0, %v6949_v2  ;;  %v6954_v4 = vsub.s32 1, %v6949_v2 }
 0x60e   : > { %v5940_v30 = vpop.f32.mrb[120].mxu1 }
 0x60f   : > { %v6382_v39 = vmax.f32 %v6318_v36, 0.0  ;;  %v5941_v43 = vpop.f32.mrb[121].mxu1  ;;  %v7086_v36 = vld [vmem:[%s12364_s9] sm:$0x3]  ;;  %v11777_v30 = vrot.slane %v6946_v44, %v6950_v15  ;;  %v11779_v8 = vrot.slane %v6946_v44, %v6954_v4 }
 0x610   : > { %v5942_v28 = vpop.f32.mrb[122].mxu1 }
 0x611   : > { %v6431_v14 = vpack.c.bf16 %v6382_v39, %v6381_v18  ;;  %v8894_v41 = vadd.f32 %v5942_v28, %v11377_v42  ;;  %v5944_v5 = vpop.f32.mrb[123].mxu1  ;;  %v11782_v39 = vrot.slane %v7086_v36, %v6950_v15  ;;  %v11784_v28 = vrot.slane %v7086_v36, %v6954_v4 }
 0x613   : > { %6133 = vmatmul.mubr.bf16.gmra.mrb[24].mxu1 %v5461_v19  ;;  %8620 = vmatmul.mubr.msk.bf16.gmra.mrb[100].mxu0 %vm2679_vm2, %v6431_v14  ;;  %v6248_v63 = vmul.f32 %v8894_v41, %v11553_v56 }
 0x614   : > { %8595 = vmatprep.mubr.msk.bf16.mxu1 %vm2679_vm2, %v5467_v21  ;;  %6775 = vmatprep.mubr.bf16.mxu0 %v12390_v55  ;;  %v9427_v21 = vld [vmem:[%s9767_s23] sm:$0xff] }
 0x615   : > { %v6319_v3 = vadd.f32 %v11559_v52, %v6248_v63  ;;  %v7226_v19 = vunpack.c.l.bf16 %v9427_v21 }
 0x616   : > { %v5947_v24 = vpop.f32.mrb[124].mxu1 }
 0x617   : > { %v8895_v48 = vadd.f32 %v5947_v24, %v11382_v37  ;;  %v5949_v42 = vpop.f32.mrb[125].mxu1  ;;  %v6383_v58 = vmax.f32 %v6319_v3, 0.0  ;;  %v7227_v24 = vunpack.c.h.bf16 %v9427_v21 }
 0x618   : > { %v5950_v54 = vpop.f32.mrb[126].mxu1 }
 0x619   : > { %v6249_v53 = vmul.f32 %v8895_v48, %v11553_v56  ;;  %v5951_v61 = vpop.f32.mrb[127].mxu1  ;;  %v9428_v48 = vld [vmem:[%s9767_s23 + $0x8] sm:$0xff] }
 0x61a   : > { %v7228_v42 = vunpack.c.l.bf16 %v9428_v48 }
 0x61b   : > { %v6320_v10 = vadd.f32 %v11559_v52, %v6249_v53  ;;  %6140 = vmatmul.mubr.bf16.gmra.mrb[28].mxu1 %v5465_v9 }
 0x61d   : > { %v6384_v7 = vmax.f32 %v6320_v10, 0.0 }
 0x61e   : > { %v5954_v27 = vpop.f32.mrb[204].mxu1 }
 0x61f   : > { %v6432_v6 = vpack.c.bf16 %v6384_v7, %v6383_v58  ;;  %v5955_v11 = vpop.f32.mrb[205].mxu1  ;;  %v7229_v27 = vunpack.c.h.bf16 %v9428_v48 }
 0x620   : > { %v5956_v49 = vpop.f32.mrb[206].mxu1 }
 0x621   : > { %v5957_v33 = vpop.f32.mrb[207].mxu1  ;;  %8621 = vmatmul.mubr.msk.bf16.gmra.mrb[104].mxu0 %vm2679_vm2, %v6432_v6 }
 0x622   : > { %6785 = vmatprep.mubr.bf16.mxu0 %v12390_v55 }
 0x626   : > { %v5960_v37 = vpop.f32.mrb[208].mxu1 }
 0x627   : > { %v5961_v12 = vpop.f32.mrb[209].mxu1  ;;  %v11802_v37 = vld [vmem:[%s12360_s5] ss:$0 sm:$0xff] }
 0x628   : > { %v5962_v23 = vpop.f32.mrb[210].mxu1 }
 0x629   : > { %v5963_v20 = vpop.f32.mrb[211].mxu1 }
 0x62e   : > { %v5966_v51 = vpop.f32.mrb[212].mxu1 }
 0x62f   : > { %v5967_v50 = vpop.f32.mrb[213].mxu1 }
 0x630   : > { %v5968_v35 = vpop.f32.mrb[214].mxu1 }
 0x631   : > { %v5969_v40 = vpop.f32.mrb[215].mxu1 }
 0x636   : > { %v5972_v26 = vpop.f32.mrb[140].mxu1 }
 0x637   : > { %v8896_v16 = vadd.f32 %v5972_v26, %v11404_v57  ;;  %v5974_v13 = vpop.f32.mrb[141].mxu1 }
 0x638   : > { %v5975_v0 = vpop.f32.mrb[142].mxu1  ;;  %v11809_v13 = vld [vmem:[%s12361_s6] ss:$0 sm:$0xff] }
 0x639   : > { %v6250_v29 = vmul.f32 %v8896_v16, %v11553_v56  ;;  %v8897_v22 = vadd.f32 %v5975_v0, %v11406_v1  ;;  %v5977_v25 = vpop.f32.mrb[143].mxu1 }
 0x63b   : > { %v6321_v57 = vadd.f32 %v11559_v52, %v6250_v29  ;;  %v6251_v32 = vmul.f32 %v8897_v22, %v11553_v56 }
 0x63d   : > { %v6322_v18 = vadd.f32 %v11559_v52, %v6251_v32  ;;  %v6385_v14 = vmax.f32 %v6321_v57, 0.0  ;;  %v9431_v57 = vld [vmem:[%s9767_s23 + $0x10] sm:$0xff] }
 0x63e   : > { %v5980_v43 = vpop.f32.mrb[144].mxu1  ;;  %v6627_v1 = vpop.f32.mrb[44].mxu0  ;;  %v7230_v32 = vunpack.c.l.bf16 %v9431_v57 }
 0x63f   : > { %v6386_v41 = vmax.f32 %v6322_v18, 0.0  ;;  %v6958_v5 = vmul.f32 %v11777_v30, %v6627_v1  ;;  %v5981_v56 = vpop.f32.mrb[145].mxu1  ;;  %v6629_v46 = vpop.f32.mrb[45].mxu0  ;;  %v7231_v1 = vunpack.c.h.bf16 %v9431_v57 }
 0x640   : > { %v6959_v63 = vmul.f32 %v11779_v8, %v6629_v46  ;;  %v5982_v31 = vpop.f32.mrb[146].mxu1  ;;  %v6631_v52 = vpop.f32.mrb[46].mxu0 }
 0x641   : > { %v6433_v54 = vpack.c.bf16 %v6386_v41, %v6385_v14  ;;  %v7098_v3 = vadd.f32 %v11782_v39, %v6958_v5  ;;  %v8898_v53 = vadd.f32 %v5982_v31, %v11411_v45  ;;  %v6960_v61 = vmul.f32 %v11777_v30, %v6631_v52  ;;  %v5984_v9 = vpop.f32.mrb[147].mxu1  ;;  %v6633_v10 = vpop.f32.mrb[47].mxu0  ;;  %v9432_v5 = vld [vmem:[%s9767_s23 + $0x18] sm:$0xff] }
 0x642   : > { %v7099_v58 = vadd.f32 %v11784_v28, %v6959_v63  ;;  %v6961_v7 = vmul.f32 %v11779_v8, %v6633_v10  ;;  %v7232_v21 = vunpack.c.l.bf16 %v9432_v5 }
 0x643   : > { %v7354_v6 = vadd.f32 %v7226_v19, %v7098_v3  ;;  %v7100_v11 = vadd.f32 %v11782_v39, %v6960_v61  ;;  %8622 = vmatmul.mubr.msk.bf16.gmra.mrb[108].mxu0 %vm2679_vm2, %v6433_v54  ;;  %v6252_v12 = vmul.f32 %v11802_v37, %v8898_v53 }
 0x644   : > { %v7355_v49 = vadd.f32 %v7227_v24, %v7099_v58  ;;  %v7101_v33 = vadd.f32 %v11784_v28, %v6961_v7  ;;  %6795 = vmatprep.mubr.bf16.mxu0 %v12390_v55 }
 0x645   : > { %v7482_v45 = vmax.f32 %v7354_v6, 0.0  ;;  %v7356_v23 = vadd.f32 %v7228_v42, %v7100_v11  ;;  %v6323_v15 = vadd.f32 %v11809_v13, %v6252_v12  ;;  %v7233_v42 = vunpack.c.h.bf16 %v9432_v5 }
 0x646   : > { %v7483_v20 = vmax.f32 %v7355_v49, 0.0  ;;  %v7357_v51 = vadd.f32 %v7229_v27, %v7101_v33  ;;  %v5987_v50 = vpop.f32.mrb[148].mxu1 }
 0x647   : > { %v7484_v62 = vmax.f32 %v7356_v23, 0.0  ;;  %v8899_v35 = vadd.f32 %v5987_v50, %v11416_v60  ;;  %v5989_v40 = vpop.f32.mrb[149].mxu1  ;;  %v6387_v22 = vmax.f32 %v6323_v15, 0.0 }
 0x648   : > { %v8774_v2 = vpack.c.bf16 %v7483_v20, %v7482_v45  ;;  %v7485_v26 = vmax.f32 %v7357_v51, 0.0  ;;  %v5990_v16 = vpop.f32.mrb[150].mxu1  ;;  %v9433_v40 = vld [vmem:[%s9767_s23 + $0x20] sm:$0xff] }
 0x649   : > { %v6253_v0 = vmul.f32 %v11802_v37, %v8899_v35  ;;  %v5991_v44 = vpop.f32.mrb[151].mxu1 }
 0x64a   : > { %7994 = vst [vmem:[%s11815_s28] sm:$0xff] %v8774_v2  ;;  %v8775_v60 = vpack.c.bf16 %v7485_v26, %v7484_v62  ;;  %v7234_v2 = vunpack.c.l.bf16 %v9433_v40  ;;  %v7235_v44 = vunpack.c.h.bf16 %v9433_v40 }
 0x64b   : > { %v6324_v4 = vadd.f32 %v11809_v13, %v6253_v0 }
 0x64c   : > { %7995 = vst [vmem:[%s11815_s28 + $0x8] sm:$0xff] %v8775_v60  ;;  %v6637_v29 = vpop.f32.mrb[48].mxu0 }
 0x64d   : > { %v6388_v25 = vmax.f32 %v6324_v4, 0.0  ;;  %v6962_v36 = vmul.f32 %v11777_v30, %v6637_v29  ;;  %v6639_v18 = vpop.f32.mrb[49].mxu0  ;;  %v9434_v29 = vld [vmem:[%s9767_s23 + $0x28] sm:$0xff] }
 0x64e   : > { %v6963_v43 = vmul.f32 %v11779_v8, %v6639_v18  ;;  %v5994_v14 = vpop.f32.mrb[152].mxu1  ;;  %v6641_v41 = vpop.f32.mrb[50].mxu0 }
 0x64f   : > { %v6434_v19 = vpack.c.bf16 %v6388_v25, %v6387_v22  ;;  %v7102_v56 = vadd.f32 %v11782_v39, %v6962_v36  ;;  %v8900_v46 = vadd.f32 %v5994_v14, %v11421_v34  ;;  %v6964_v63 = vmul.f32 %v11777_v30, %v6641_v41  ;;  %v5996_v24 = vpop.f32.mrb[153].mxu1  ;;  %v6643_v31 = vpop.f32.mrb[51].mxu0 }
 0x650   : > { %v7103_v52 = vadd.f32 %v11784_v28, %v6963_v43  ;;  %v6965_v48 = vmul.f32 %v11779_v8, %v6643_v31  ;;  %v5997_v54 = vpop.f32.mrb[154].mxu1  ;;  %v7236_v22 = vunpack.c.l.bf16 %v9434_v29  ;;  %v7237_v41 = vunpack.c.h.bf16 %v9434_v29 }
 0x651   : > { %v7358_v3 = vadd.f32 %v7230_v32, %v7102_v56  ;;  %v6254_v53 = vmul.f32 %v11802_v37, %v8900_v46  ;;  %v7104_v61 = vadd.f32 %v11782_v39, %v6964_v63  ;;  %v8901_v9 = vadd.f32 %v5997_v54, %v11423_v17  ;;  %v5999_v10 = vpop.f32.mrb[155].mxu1  ;;  %8623 = vmatmul.mubr.msk.bf16.gmra.mrb[112].mxu0 %vm2679_vm2, %v6434_v19 }
 0x652   : > { %v7359_v34 = vadd.f32 %v7231_v1, %v7103_v52  ;;  %v7105_v58 = vadd.f32 %v11784_v28, %v6965_v48  ;;  %6805 = vmatprep.mubr.bf16.mxu0 %v12390_v55 }
 0x653   : > { %v7486_v7 = vmax.f32 %v7358_v3, 0.0  ;;  %v6325_v27 = vadd.f32 %v11809_v13, %v6254_v53  ;;  %v7360_v6 = vadd.f32 %v7232_v21, %v7104_v61  ;;  %v6255_v11 = vmul.f32 %v11802_v37, %v8901_v9 }
 0x654   : > { %v7487_v49 = vmax.f32 %v7359_v34, 0.0  ;;  %v7361_v33 = vadd.f32 %v7233_v42, %v7105_v58 }
 0x655   : > { %v7488_v45 = vmax.f32 %v7360_v6, 0.0  ;;  %v6326_v17 = vadd.f32 %v11809_v13, %v6255_v11  ;;  %v6389_v50 = vmax.f32 %v6325_v27, 0.0 }
 0x656   : > { %v8776_v12 = vpack.c.bf16 %v7487_v49, %v7486_v7  ;;  %v7489_v23 = vmax.f32 %v7361_v33, 0.0  ;;  %v6002_v20 = vpop.f32.mrb[156].mxu1  ;;  %v6647_v51 = vpop.f32.mrb[52].mxu0  ;;  %v9435_v49 = vld [vmem:[%s9767_s23 + $0x30] sm:$0xff] }
 0x657   : > { %v6390_v62 = vmax.f32 %v6326_v17, 0.0  ;;  %v6966_v35 = vmul.f32 %v11777_v30, %v6647_v51  ;;  %v6003_v26 = vpop.f32.mrb[157].mxu1  ;;  %v6649_v16 = vpop.f32.mrb[53].mxu0  ;;  %v7238_v33 = vunpack.c.l.bf16 %v9435_v49  ;;  %v9436_v51 = vld [vmem:[%s9767_s23 + $0x38] sm:$0xff] }
 0x658   : > { %7996 = vst [vmem:[%s11815_s28 + $0x10] sm:$0xff] %v8776_v12  ;;  %v8777_v15 = vpack.c.bf16 %v7489_v23, %v7488_v45  ;;  %v6967_v0 = vmul.f32 %v11779_v8, %v6649_v16  ;;  %v6004_v60 = vpop.f32.mrb[158].mxu1  ;;  %v6651_v4 = vpop.f32.mrb[54].mxu0  ;;  %v7239_v12 = vunpack.c.h.bf16 %v9435_v49 }
 0x659   : > { %v6435_v25 = vpack.c.bf16 %v6390_v62, %v6389_v50  ;;  %v7106_v36 = vadd.f32 %v11782_v39, %v6966_v35  ;;  %v8902_v57 = vadd.f32 %v6004_v60, %v11428_v38  ;;  %v6968_v32 = vmul.f32 %v11777_v30, %v6651_v4  ;;  %v6006_v18 = vpop.f32.mrb[159].mxu1  ;;  %v6653_v43 = vpop.f32.mrb[55].mxu0 }
 0x65a   : > { %7997 = vst [vmem:[%s11815_s28 + $0x18] sm:$0xff] %v8777_v15  ;;  %v7107_v1 = vadd.f32 %v11784_v28, %v6967_v0  ;;  %v6969_v14 = vmul.f32 %v11779_v8, %v6653_v43  ;;  %v7240_v50 = vunpack.c.l.bf16 %v9436_v51 }
 0x65b   : > { %v7362_v5 = vadd.f32 %v7234_v2, %v7106_v36  ;;  %v7108_v21 = vadd.f32 %v11782_v39, %v6968_v32  ;;  %8624 = vmatmul.mubr.msk.bf16.gmra.mrb[116].mxu0 %vm2679_vm2, %v6435_v25  ;;  %v6256_v46 = vmul.f32 %v11802_v37, %v8902_v57  ;;  %v12393_v25 = vld [vmem:[#allocation11_spill] sm:$0xff] }
 0x65c   : > { %v7363_v19 = vadd.f32 %v7235_v44, %v7107_v1  ;;  %v7109_v56 = vadd.f32 %v11784_v28, %v6969_v14  ;;  %6815 = vmatprep.mubr.bf16.mxu0 %v12390_v55  ;;  %v7241_v44 = vunpack.c.h.bf16 %v9436_v51 }
 0x65d   : > { %v7490_v38 = vmax.f32 %v7362_v5, 0.0  ;;  %v7364_v63 = vadd.f32 %v7236_v22, %v7108_v21  ;;  %v6327_v9 = vadd.f32 %v11809_v13, %v6256_v46 }
 0x65e   : > { %v7491_v24 = vmax.f32 %v7363_v19, 0.0  ;;  %v7365_v31 = vadd.f32 %v7237_v41, %v7109_v56  ;;  %v6009_v52 = vpop.f32.mrb[160].mxu1 }
 0x65f   : > { %v7492_v48 = vmax.f32 %v7364_v63, 0.0  ;;  %v8903_v42 = vadd.f32 %v6009_v52, %v11433_v47  ;;  %v6011_v54 = vpop.f32.mrb[161].mxu1  ;;  %v6391_v6 = vmax.f32 %v6327_v9, 0.0 }
 0x660   : > { %v8778_v3 = vpack.c.bf16 %v7491_v24, %v7490_v38  ;;  %v7493_v53 = vmax.f32 %v7365_v31, 0.0  ;;  %v6012_v61 = vpop.f32.mrb[162].mxu1 }
 0x661   : > { %v6257_v10 = vmul.f32 %v11802_v37, %v8903_v42  ;;  %v6013_v34 = vpop.f32.mrb[163].mxu1 }
 0x662   : > { %7998 = vst [vmem:[%s11815_s28 + $0x20] sm:$0xff] %v8778_v3  ;;  %v8779_v58 = vpack.c.bf16 %v7493_v53, %v7492_v48  ;;  %v9437_v48 = vld [vmem:[%s9767_s23 + $0x40] sm:$0xff] }
 0x663   : > { %v6328_v7 = vadd.f32 %v11809_v13, %v6257_v10  ;;  %v7242_v42 = vunpack.c.l.bf16 %v9437_v48  ;;  %v7243_v9 = vunpack.c.h.bf16 %v9437_v48 }
 0x664   : > { %7999 = vst [vmem:[%s11815_s28 + $0x28] sm:$0xff] %v8779_v58  ;;  %v6657_v27 = vpop.f32.mrb[56].mxu0  ;;  %v9438_v58 = vld [vmem:[%s9767_s23 + $0x48] sm:$0xff] }
 0x665   : > { %v6392_v11 = vmax.f32 %v6328_v7, 0.0  ;;  %v6970_v47 = vmul.f32 %v11777_v30, %v6657_v27  ;;  %v6659_v45 = vpop.f32.mrb[57].mxu0  ;;  %v7244_v7 = vunpack.c.l.bf16 %v9438_v58 }
 0x666   : > { %v6971_v17 = vmul.f32 %v11779_v8, %v6659_v45  ;;  %v6016_v23 = vpop.f32.mrb[164].mxu1  ;;  %v6661_v20 = vpop.f32.mrb[58].mxu0 }
 0x667   : > { %v6436_v62 = vpack.c.bf16 %v6392_v11, %v6391_v6  ;;  %v7110_v35 = vadd.f32 %v11782_v39, %v6970_v47  ;;  %v8904_v40 = vadd.f32 %v6016_v23, %v11438_v59  ;;  %v6972_v2 = vmul.f32 %v11777_v30, %v6661_v20  ;;  %v6018_v26 = vpop.f32.mrb[165].mxu1  ;;  %v6663_v16 = vpop.f32.mrb[59].mxu0  ;;  %v12394_v11 = vld [vmem:[#allocation12_spill] sm:$0xff] }
 0x668   : > { %v7111_v15 = vadd.f32 %v11784_v28, %v6971_v17  ;;  %v6973_v0 = vmul.f32 %v11779_v8, %v6663_v16  ;;  %v6019_v60 = vpop.f32.mrb[166].mxu1  ;;  %v7245_v23 = vunpack.c.h.bf16 %v9438_v58 }
 0x669   : > { %v7366_v4 = vadd.f32 %v7238_v33, %v7110_v35  ;;  %v6258_v29 = vmul.f32 %v11802_v37, %v8904_v40  ;;  %v7112_v22 = vadd.f32 %v11782_v39, %v6972_v2  ;;  %v8905_v36 = vadd.f32 %v6019_v60, %v12393_v25  ;;  %v6021_v57 = vpop.f32.mrb[167].mxu1  ;;  %8625 = vmatmul.mubr.msk.bf16.gmra.mrb[120].mxu0 %vm2679_vm2, %v6436_v62 }
 0x66a   : > { %v7367_v59 = vadd.f32 %v7239_v12, %v7111_v15  ;;  %v7113_v32 = vadd.f32 %v11784_v28, %v6973_v0  ;;  %6825 = vmatprep.mubr.bf16.mxu0 %v12390_v55 }
 0x66b   : > { %v7494_v18 = vmax.f32 %v7366_v4, 0.0  ;;  %v6329_v43 = vadd.f32 %v11809_v13, %v6258_v29  ;;  %v7368_v1 = vadd.f32 %v7240_v50, %v7112_v22  ;;  %v6259_v14 = vmul.f32 %v11802_v37, %v8905_v36 }
 0x66c   : > { %v7495_v41 = vmax.f32 %v7367_v59, 0.0  ;;  %v7369_v5 = vadd.f32 %v7241_v44, %v7113_v32  ;;  %v12395_v44 = vld [vmem:[#allocation13_spill] sm:$0xff] }
 0x66d   : > { %v7496_v21 = vmax.f32 %v7368_v1, 0.0  ;;  %v6330_v19 = vadd.f32 %v11809_v13, %v6259_v14  ;;  %v6393_v24 = vmax.f32 %v6329_v43, 0.0 }
 0x66e   : > { %v8780_v56 = vpack.c.bf16 %v7495_v41, %v7494_v18  ;;  %v7497_v38 = vmax.f32 %v7369_v5, 0.0  ;;  %v6024_v46 = vpop.f32.mrb[168].mxu1  ;;  %v6667_v63 = vpop.f32.mrb[60].mxu0  ;;  %v9439_v5 = vld [vmem:[%s9767_s23 + $0x50] sm:$0xff] }
 0x66f   : > { %v6394_v31 = vmax.f32 %v6330_v19, 0.0  ;;  %v6974_v52 = vmul.f32 %v11777_v30, %v6667_v63  ;;  %v6025_v54 = vpop.f32.mrb[169].mxu1  ;;  %v6669_v3 = vpop.f32.mrb[61].mxu0 }
 0x670   : > { %8000 = vst [vmem:[%s11815_s28 + $0x30] sm:$0xff] %v8780_v56  ;;  %v8781_v53 = vpack.c.bf16 %v7497_v38, %v7496_v21  ;;  %v6975_v61 = vmul.f32 %v11779_v8, %v6669_v3  ;;  %v6026_v10 = vpop.f32.mrb[170].mxu1  ;;  %v6671_v34 = vpop.f32.mrb[62].mxu0  ;;  %v7246_v21 = vunpack.c.l.bf16 %v9439_v5  ;;  %v7247_v38 = vunpack.c.h.bf16 %v9439_v5 }
 0x671   : > { %v6437_v27 = vpack.c.bf16 %v6394_v31, %v6393_v24  ;;  %v7114_v6 = vadd.f32 %v11782_v39, %v6974_v52  ;;  %v8906_v47 = vadd.f32 %v6026_v10, %v12394_v11  ;;  %v6976_v49 = vmul.f32 %v11777_v30, %v6671_v34  ;;  %v6028_v33 = vpop.f32.mrb[171].mxu1  ;;  %v6673_v45 = vpop.f32.mrb[63].mxu0  ;;  %v9440_v24 = vld [vmem:[%s9767_s23 + $0x58] sm:$0xff]  ;;  %v12397_v11 = vld [vmem:[#allocation15_spill] sm:$0xff] }
 0x672   : > { %8001 = vst [vmem:[%s11815_s28 + $0x38] sm:$0xff] %v8781_v53  ;;  %v7115_v17 = vadd.f32 %v11784_v28, %v6975_v61  ;;  %v6977_v12 = vmul.f32 %v11779_v8, %v6673_v45  ;;  %v7248_v31 = vunpack.c.l.bf16 %v9440_v24  ;;  %v7249_v34 = vunpack.c.h.bf16 %v9440_v24 }
 0x673   : > { %v7370_v20 = vadd.f32 %v7242_v42, %v7114_v6  ;;  %v7116_v51 = vadd.f32 %v11782_v39, %v6976_v49  ;;  %8626 = vmatmul.mubr.msk.bf16.gmra.mrb[124].mxu0 %vm2679_vm2, %v6437_v27  ;;  %v6260_v40 = vmul.f32 %v11802_v37, %v8906_v47  ;;  %v12396_v42 = vld [vmem:[#allocation14_spill] sm:$0xff] }
 0x674   : > { %v7371_v50 = vadd.f32 %v7243_v9, %v7115_v17  ;;  %v7117_v62 = vadd.f32 %v11784_v28, %v6977_v12  ;;  %6835 = vmatprep.mubr.bf16.mxu0 %v12390_v55 }
 0x675   : > { %v7498_v35 = vmax.f32 %v7370_v20, 0.0  ;;  %v7372_v2 = vadd.f32 %v7244_v7, %v7116_v51  ;;  %v6331_v36 = vadd.f32 %v11809_v13, %v6260_v40 }
 0x676   : > { %v7499_v26 = vmax.f32 %v7371_v50, 0.0  ;;  %v7373_v16 = vadd.f32 %v7245_v23, %v7117_v62  ;;  %v6031_v15 = vpop.f32.mrb[172].mxu1 }
 0x677   : > { %v7500_v0 = vmax.f32 %v7372_v2, 0.0  ;;  %v8907_v60 = vadd.f32 %v6031_v15, %v12395_v44  ;;  %v6033_v4 = vpop.f32.mrb[173].mxu1  ;;  %v6395_v1 = vmax.f32 %v6331_v36, 0.0 }
 0x678   : > { %v8782_v29 = vpack.c.bf16 %v7499_v26, %v7498_v35  ;;  %v7501_v22 = vmax.f32 %v7373_v16, 0.0  ;;  %v6034_v25 = vpop.f32.mrb[174].mxu1 }
 0x679   : > { %v6261_v57 = vmul.f32 %v11802_v37, %v8907_v60  ;;  %v6035_v59 = vpop.f32.mrb[175].mxu1  ;;  %v9441_v60 = vld [vmem:[%s9767_s23 + $0x60] sm:$0xff] }
 0x67a   : > { %8002 = vst [vmem:[%s11815_s28 + $0x40] sm:$0xff] %v8782_v29  ;;  %v8783_v32 = vpack.c.bf16 %v7501_v22, %v7500_v0  ;;  %v7250_v4 = vunpack.c.l.bf16 %v9441_v60 }
 0x67b   : > { %v6332_v18 = vadd.f32 %v11809_v13, %v6261_v57  ;;  %v7251_v57 = vunpack.c.h.bf16 %v9441_v60 }
 0x67c   : > { %8003 = vst [vmem:[%s11815_s28 + $0x48] sm:$0xff] %v8783_v32  ;;  %v6677_v43 = vpop.f32.mrb[64].mxu0 }
 0x67d   : > { %v6396_v14 = vmax.f32 %v6332_v18, 0.0  ;;  %v6978_v41 = vmul.f32 %v11777_v30, %v6677_v43  ;;  %v6679_v19 = vpop.f32.mrb[65].mxu0  ;;  %v9442_v18 = vld [vmem:[%s9767_s23 + $0x68] sm:$0xff] }
 0x67e   : > { %v6979_v56 = vmul.f32 %v11779_v8, %v6679_v19  ;;  %v6038_v46 = vpop.f32.mrb[176].mxu1  ;;  %v6681_v63 = vpop.f32.mrb[66].mxu0  ;;  %v7252_v43 = vunpack.c.l.bf16 %v9442_v18 }
 0x67f   : > { %v6438_v52 = vpack.c.bf16 %v6396_v14, %v6395_v1  ;;  %v7118_v48 = vadd.f32 %v11782_v39, %v6978_v41  ;;  %v8908_v54 = vadd.f32 %v6038_v46, %v12396_v42  ;;  %v6980_v3 = vmul.f32 %v11777_v30, %v6681_v63  ;;  %v6040_v53 = vpop.f32.mrb[177].mxu1  ;;  %v6683_v61 = vpop.f32.mrb[67].mxu0  ;;  %v12398_v41 = vld [vmem:[#allocation16_spill] sm:$0xff] }
 0x680   : > { %v7119_v9 = vadd.f32 %v11784_v28, %v6979_v56  ;;  %v6981_v10 = vmul.f32 %v11779_v8, %v6683_v61  ;;  %v6041_v58 = vpop.f32.mrb[178].mxu1  ;;  %v7253_v63 = vunpack.c.h.bf16 %v9442_v18 }
 0x681   : > { %v7374_v7 = vadd.f32 %v7246_v21, %v7118_v48  ;;  %v6262_v27 = vmul.f32 %v11802_v37, %v8908_v54  ;;  %v7120_v6 = vadd.f32 %v11782_v39, %v6980_v3  ;;  %v8909_v47 = vadd.f32 %v6041_v58, %v12397_v11  ;;  %v6043_v49 = vpop.f32.mrb[179].mxu1  ;;  %8627 = vmatmul.mubr.msk.bf16.gmra.mrb[224].mxu0 %vm2679_vm2, %v6438_v52 }
 0x682   : > { %v7375_v33 = vadd.f32 %v7247_v38, %v7119_v9  ;;  %v7121_v45 = vadd.f32 %v11784_v28, %v6981_v10  ;;  %6845 = vmatprep.mubr.bf16.mxu0 %v12390_v55 }
 0x683   : > { %v7502_v17 = vmax.f32 %v7374_v7, 0.0  ;;  %v6333_v12 = vadd.f32 %v11809_v13, %v6262_v27  ;;  %v7376_v23 = vadd.f32 %v7248_v31, %v7120_v6  ;;  %v6263_v20 = vmul.f32 %v11802_v37, %v8909_v47 }
 0x684   : > { %v7503_v51 = vmax.f32 %v7375_v33, 0.0  ;;  %v7377_v50 = vadd.f32 %v7249_v34, %v7121_v45  ;;  %v12399_v34 = vld [vmem:[#allocation17_spill] sm:$0xff] }
 0x685   : > { %v7504_v62 = vmax.f32 %v7376_v23, 0.0  ;;  %v6334_v35 = vadd.f32 %v11809_v13, %v6263_v20  ;;  %v6397_v15 = vmax.f32 %v6333_v12, 0.0 }
 0x686   : > { %v8784_v40 = vpack.c.bf16 %v7503_v51, %v7502_v17  ;;  %v7505_v2 = vmax.f32 %v7377_v50, 0.0  ;;  %v6046_v26 = vpop.f32.mrb[180].mxu1  ;;  %v6687_v16 = vpop.f32.mrb[68].mxu0  ;;  %v9443_v50 = vld [vmem:[%s9767_s23 + $0x70] sm:$0xff] }
 0x687   : > { %v6398_v0 = vmax.f32 %v6334_v35, 0.0  ;;  %v6982_v44 = vmul.f32 %v11777_v30, %v6687_v16  ;;  %v6047_v29 = vpop.f32.mrb[181].mxu1  ;;  %v6689_v22 = vpop.f32.mrb[69].mxu0 }
 0x688   : > { %8004 = vst [vmem:[%s11815_s28 + $0x50] sm:$0xff] %v8784_v40  ;;  %v8785_v25 = vpack.c.bf16 %v7505_v2, %v7504_v62  ;;  %v6983_v36 = vmul.f32 %v11779_v8, %v6689_v22  ;;  %v6048_v59 = vpop.f32.mrb[182].mxu1  ;;  %v6691_v32 = vpop.f32.mrb[70].mxu0  ;;  %v7254_v62 = vunpack.c.l.bf16 %v9443_v50  ;;  %v7255_v2 = vunpack.c.h.bf16 %v9443_v50 }
 0x689   : > { %v6439_v1 = vpack.c.bf16 %v6398_v0, %v6397_v15  ;;  %v7122_v14 = vadd.f32 %v11782_v39, %v6982_v44  ;;  %v8910_v5 = vadd.f32 %v6048_v59, %v12398_v41  ;;  %v6984_v21 = vmul.f32 %v11777_v30, %v6691_v32  ;;  %v6050_v19 = vpop.f32.mrb[183].mxu1  ;;  %v6693_v56 = vpop.f32.mrb[71].mxu0  ;;  %v9444_v15 = vld [vmem:[%s9767_s23 + $0x78] sm:$0xff]  ;;  %v12401_v41 = vld [vmem:[#allocation19_spill] sm:$0xff] }
 0x68a   : > { %8005 = vst [vmem:[%s11815_s28 + $0x58] sm:$0xff] %v8785_v25  ;;  %v7123_v38 = vadd.f32 %v11784_v28, %v6983_v36  ;;  %v6985_v46 = vmul.f32 %v11779_v8, %v6693_v56  ;;  %v7256_v0 = vunpack.c.l.bf16 %v9444_v15  ;;  %v7257_v32 = vunpack.c.h.bf16 %v9444_v15 }
 0x68b   : > { %v7378_v24 = vadd.f32 %v7250_v4, %v7122_v14  ;;  %v7124_v31 = vadd.f32 %v11782_v39, %v6984_v21  ;;  %8628 = vmatmul.mubr.msk.bf16.gmra.mrb[228].mxu0 %vm2679_vm2, %v6439_v1  ;;  %v6264_v54 = vmul.f32 %v11802_v37, %v8910_v5  ;;  %v12400_v4 = vld [vmem:[#allocation18_spill] sm:$0xff] }
 0x68c   : > { %v7379_v52 = vadd.f32 %v7251_v57, %v7123_v38  ;;  %v7125_v48 = vadd.f32 %v11784_v28, %v6985_v46  ;;  %6855 = vmatprep.mubr.bf16.mxu0 %v12390_v55 }
 0x68d   : > { %v7506_v42 = vmax.f32 %v7378_v24, 0.0  ;;  %v7380_v3 = vadd.f32 %v7252_v43, %v7124_v31  ;;  %v6335_v47 = vadd.f32 %v11809_v13, %v6264_v54 }
 0x68e   : > { %v7507_v53 = vmax.f32 %v7379_v52, 0.0  ;;  %v7381_v61 = vadd.f32 %v7253_v63, %v7125_v48  ;;  %v6053_v9 = vpop.f32.mrb[184].mxu1 }
 0x68f   : > { %v7508_v10 = vmax.f32 %v7380_v3, 0.0  ;;  %v8911_v58 = vadd.f32 %v6053_v9, %v12399_v34  ;;  %v6055_v7 = vpop.f32.mrb[185].mxu1  ;;  %v6399_v23 = vmax.f32 %v6335_v47, 0.0 }
 0x690   : > { %v8786_v27 = vpack.c.bf16 %v7507_v53, %v7506_v42  ;;  %v7509_v6 = vmax.f32 %v7381_v61, 0.0  ;;  %v6056_v11 = vpop.f32.mrb[186].mxu1 }
 0x691   : > { %v6265_v49 = vmul.f32 %v11802_v37, %v8911_v58  ;;  %v6057_v33 = vpop.f32.mrb[187].mxu1  ;;  %v9445_v58 = vld [vmem:[%s9767_s23 + $0x80] sm:$0xff] }
 0x692   : > { %8006 = vst [vmem:[%s11815_s28 + $0x60] sm:$0xff] %v8786_v27  ;;  %v8787_v45 = vpack.c.bf16 %v7509_v6, %v7508_v10  ;;  %v7258_v7 = vunpack.c.l.bf16 %v9445_v58 }
 0x693   : > { %v6336_v17 = vadd.f32 %v11809_v13, %v6265_v49  ;;  %v7259_v49 = vunpack.c.h.bf16 %v9445_v58 }
 0x694   : > { %8007 = vst [vmem:[%s11815_s28 + $0x68] sm:$0xff] %v8787_v45  ;;  %v6697_v12 = vpop.f32.mrb[72].mxu0 }
 0x695   : > { %v6400_v20 = vmax.f32 %v6336_v17, 0.0  ;;  %v6986_v51 = vmul.f32 %v11777_v30, %v6697_v12  ;;  %v6699_v35 = vpop.f32.mrb[73].mxu0  ;;  %v9446_v17 = vld [vmem:[%s9767_s23 + $0x88] sm:$0xff] }
 0x696   : > { %v6987_v40 = vmul.f32 %v11779_v8, %v6699_v35  ;;  %v6060_v26 = vpop.f32.mrb[188].mxu1  ;;  %v6701_v16 = vpop.f32.mrb[74].mxu0  ;;  %v7260_v12 = vunpack.c.l.bf16 %v9446_v17 }
 0x697   : > { %v6440_v44 = vpack.c.bf16 %v6400_v20, %v6399_v23  ;;  %v7126_v60 = vadd.f32 %v11782_v39, %v6986_v51  ;;  %v8912_v29 = vadd.f32 %v6060_v26, %v12400_v4  ;;  %v6988_v22 = vmul.f32 %v11777_v30, %v6701_v16  ;;  %v6062_v25 = vpop.f32.mrb[189].mxu1  ;;  %v6703_v36 = vpop.f32.mrb[75].mxu0  ;;  %v12402_v51 = vld [vmem:[#allocation20_spill] sm:$0xff] }
 0x698   : > { %v7127_v57 = vadd.f32 %v11784_v28, %v6987_v40  ;;  %v6989_v59 = vmul.f32 %v11779_v8, %v6703_v36  ;;  %v6063_v18 = vpop.f32.mrb[190].mxu1  ;;  %v7261_v16 = vunpack.c.h.bf16 %v9446_v17 }
 0x699   : > { %v7382_v43 = vadd.f32 %v7254_v62, %v7126_v60  ;;  %v6266_v1 = vmul.f32 %v11802_v37, %v8912_v29  ;;  %v7128_v14 = vadd.f32 %v11782_v39, %v6988_v22  ;;  %v8913_v5 = vadd.f32 %v6063_v18, %v12401_v41  ;;  %v6065_v21 = vpop.f32.mrb[191].mxu1  ;;  %8629 = vmatmul.mubr.msk.bf16.gmra.mrb[232].mxu0 %vm2679_vm2, %v6440_v44 }
 0x69a   : > { %v7383_v19 = vadd.f32 %v7255_v2, %v7127_v57  ;;  %v7129_v56 = vadd.f32 %v11784_v28, %v6989_v59  ;;  %6865 = vmatprep.mubr.bf16.mxu0 %v12390_v55 }
 0x69b   : > { %v7510_v38 = vmax.f32 %v7382_v43, 0.0  ;;  %v6337_v46 = vadd.f32 %v11809_v13, %v6266_v1  ;;  %v7384_v63 = vadd.f32 %v7256_v0, %v7128_v14  ;;  %v6267_v24 = vmul.f32 %v11802_v37, %v8913_v5 }
 0x69c   : > { %v7511_v31 = vmax.f32 %v7383_v19, 0.0  ;;  %v7385_v52 = vadd.f32 %v7257_v32, %v7129_v56  ;;  %v12403_v32 = vld [vmem:[#allocation21_spill] sm:$0xff] }
 0x69d   : > { %v7512_v48 = vmax.f32 %v7384_v63, 0.0  ;;  %v6338_v42 = vadd.f32 %v11809_v13, %v6267_v24  ;;  %v6401_v9 = vmax.f32 %v6337_v46, 0.0 }
 0x69e   : > { %v8788_v54 = vpack.c.bf16 %v7511_v31, %v7510_v38  ;;  %v7513_v3 = vmax.f32 %v7385_v52, 0.0  ;;  %v6068_v53 = vpop.f32.mrb[192].mxu1  ;;  %v6707_v61 = vpop.f32.mrb[76].mxu0  ;;  %v9447_v52 = vld [vmem:[%s9767_s23 + $0x90] sm:$0xff] }
 0x69f   : > { %v6402_v10 = vmax.f32 %v6338_v42, 0.0  ;;  %v6990_v34 = vmul.f32 %v11777_v30, %v6707_v61  ;;  %v6069_v27 = vpop.f32.mrb[193].mxu1  ;;  %v6709_v6 = vpop.f32.mrb[77].mxu0 }
 0x6a0   : > { %8008 = vst [vmem:[%s11815_s28 + $0x70] sm:$0xff] %v8788_v54  ;;  %v8789_v11 = vpack.c.bf16 %v7513_v3, %v7512_v48  ;;  %v6991_v47 = vmul.f32 %v11779_v8, %v6709_v6  ;;  %v6070_v33 = vpop.f32.mrb[194].mxu1  ;;  %v6711_v45 = vpop.f32.mrb[78].mxu0  ;;  %v7262_v48 = vunpack.c.l.bf16 %v9447_v52  ;;  %v7263_v3 = vunpack.c.h.bf16 %v9447_v52 }
 0x6a1   : > { %v6441_v23 = vpack.c.bf16 %v6402_v10, %v6401_v9  ;;  %v7130_v20 = vadd.f32 %v11782_v39, %v6990_v34  ;;  %v8914_v50 = vadd.f32 %v6070_v33, %v12402_v51  ;;  %v6992_v62 = vmul.f32 %v11777_v30, %v6711_v45  ;;  %v6072_v35 = vpop.f32.mrb[195].mxu1  ;;  %v6713_v40 = vpop.f32.mrb[79].mxu0  ;;  %v9448_v9 = vld [vmem:[%s9767_s23 + $0x98] sm:$0xff]  ;;  %v12405_v51 = vld [vmem:[#allocation23_spill] sm:$0xff] }
 0x6a2   : > { %8009 = vst [vmem:[%s11815_s28 + $0x78] sm:$0xff] %v8789_v11  ;;  %v7131_v2 = vadd.f32 %v11784_v28, %v6991_v47  ;;  %v6993_v26 = vmul.f32 %v11779_v8, %v6713_v40  ;;  %v7264_v10 = vunpack.c.l.bf16 %v9448_v9  ;;  %v7265_v45 = vunpack.c.h.bf16 %v9448_v9 }
 0x6a3   : > { %v7386_v15 = vadd.f32 %v7258_v7, %v7130_v20  ;;  %v7132_v0 = vadd.f32 %v11782_v39, %v6992_v62  ;;  %8630 = vmatmul.mubr.msk.bf16.gmra.mrb[128].mxu0 %vm2679_vm2, %v6441_v23  ;;  %v6268_v29 = vmul.f32 %v11802_v37, %v8914_v50  ;;  %v12404_v7 = vld [vmem:[#allocation22_spill] sm:$0xff] }
 0x6a4   : > { %v7387_v44 = vadd.f32 %v7259_v49, %v7131_v2  ;;  %v7133_v60 = vadd.f32 %v11784_v28, %v6993_v26  ;;  %6875 = vmatprep.mubr.bf16.mxu0 %v12390_v55 }
 0x6a5   : > { %v7514_v4 = vmax.f32 %v7386_v15, 0.0  ;;  %v7388_v22 = vadd.f32 %v7260_v12, %v7132_v0  ;;  %v6339_v5 = vadd.f32 %v11809_v13, %v6268_v29 }
 0x6a6   : > { %v7515_v25 = vmax.f32 %v7387_v44, 0.0  ;;  %v7389_v36 = vadd.f32 %v7261_v16, %v7133_v60  ;;  %v6075_v57 = vpop.f32.mrb[196].mxu1 }
 0x6a7   : > { %v7516_v59 = vmax.f32 %v7388_v22, 0.0  ;;  %v8915_v18 = vadd.f32 %v6075_v57, %v12403_v32  ;;  %v6077_v43 = vpop.f32.mrb[197].mxu1  ;;  %v6403_v63 = vmax.f32 %v6339_v5, 0.0 }
 0x6a8   : > { %v8790_v1 = vpack.c.bf16 %v7515_v25, %v7514_v4  ;;  %v7517_v14 = vmax.f32 %v7389_v36, 0.0  ;;  %v6078_v41 = vpop.f32.mrb[198].mxu1 }
 0x6a9   : > { %v6269_v21 = vmul.f32 %v11802_v37, %v8915_v18  ;;  %v6079_v19 = vpop.f32.mrb[199].mxu1  ;;  %v9449_v18 = vld [vmem:[%s9767_s23 + $0xa0] sm:$0xff] }
 0x6aa   : > { %8010 = vst [vmem:[%s11815_s28 + $0x80] sm:$0xff] %v8790_v1  ;;  %v8791_v56 = vpack.c.bf16 %v7517_v14, %v7516_v59  ;;  %v7266_v43 = vunpack.c.l.bf16 %v9449_v18 }
 0x6ab   : > { %v6340_v38 = vadd.f32 %v11809_v13, %v6269_v21  ;;  %v7267_v21 = vunpack.c.h.bf16 %v9449_v18 }
 0x6ac   : > { %8011 = vst [vmem:[%s11815_s28 + $0x88] sm:$0xff] %v8791_v56  ;;  %v6717_v46 = vpop.f32.mrb[80].mxu0 }
 0x6ad   : > { %v6404_v24 = vmax.f32 %v6340_v38, 0.0  ;;  %v6994_v31 = vmul.f32 %v11777_v30, %v6717_v46  ;;  %v6719_v42 = vpop.f32.mrb[81].mxu0 }
 0x6ae   : > { %v6995_v54 = vmul.f32 %v11779_v8, %v6719_v42  ;;  %v6082_v53 = vpop.f32.mrb[200].mxu1  ;;  %v6721_v61 = vpop.f32.mrb[82].mxu0 }
 0x6af   : > { %v6442_v34 = vpack.c.bf16 %v6404_v24, %v6403_v63  ;;  %v7134_v58 = vadd.f32 %v11782_v39, %v6994_v31  ;;  %v8916_v27 = vadd.f32 %v6082_v53, %v12404_v7  ;;  %v6996_v6 = vmul.f32 %v11777_v30, %v6721_v61  ;;  %v6084_v11 = vpop.f32.mrb[201].mxu1  ;;  %v6723_v47 = vpop.f32.mrb[83].mxu0  ;;  %v9450_v24 = vld [vmem:[%s9767_s23 + $0xa8] sm:$0xff] }
 0x6b0   : > { %v7135_v49 = vadd.f32 %v11784_v28, %v6995_v54  ;;  %v6997_v33 = vmul.f32 %v11779_v8, %v6723_v47  ;;  %v6085_v17 = vpop.f32.mrb[202].mxu1  ;;  %v7268_v31 = vunpack.c.l.bf16 %v9450_v24 }
 0x6b1   : > { %v7390_v12 = vadd.f32 %v7262_v48, %v7134_v58  ;;  %v6270_v23 = vmul.f32 %v11802_v37, %v8916_v27  ;;  %v7136_v20 = vadd.f32 %v11782_v39, %v6996_v6  ;;  %v8917_v50 = vadd.f32 %v6085_v17, %v12405_v51  ;;  %v6087_v62 = vpop.f32.mrb[203].mxu1  ;;  %8631 = vmatmul.mubr.msk.bf16.gmra.mrb[132].mxu0 %vm2679_vm2, %v6442_v34 }
 0x6b2   : > { %v7391_v35 = vadd.f32 %v7263_v3, %v7135_v49  ;;  %v7137_v40 = vadd.f32 %v11784_v28, %v6997_v33  ;;  %6885 = vmatprep.mubr.bf16.mxu0 %v12390_v55  ;;  %v7269_v3 = vunpack.c.h.bf16 %v9450_v24 }
 0x6b3   : > { %v7518_v2 = vmax.f32 %v7390_v12, 0.0  ;;  %v6341_v26 = vadd.f32 %v11809_v13, %v6270_v23  ;;  %v7392_v16 = vadd.f32 %v7264_v10, %v7136_v20  ;;  %v6271_v15 = vmul.f32 %v11802_v37, %v8917_v50 }
 0x6b4   : > { %v7519_v0 = vmax.f32 %v7391_v35, 0.0  ;;  %v7393_v44 = vadd.f32 %v7265_v45, %v7137_v40 }
 0x6b5   : > { %v7520_v60 = vmax.f32 %v7392_v16, 0.0  ;;  %v6342_v4 = vadd.f32 %v11809_v13, %v6271_v15  ;;  %v6405_v57 = vmax.f32 %v6341_v26, 0.0  ;;  %v9451_v16 = vld [vmem:[%s9767_s23 + $0xb0] sm:$0xff] }
 0x6b6   : > { %v8792_v29 = vpack.c.bf16 %v7519_v0, %v7518_v2  ;;  %v7521_v22 = vmax.f32 %v7393_v44, 0.0  ;;  %v6090_v25 = vpop.f32.mrb[0].mxu1  ;;  %v6727_v36 = vpop.f32.mrb[84].mxu0  ;;  %v7270_v15 = vunpack.c.l.bf16 %v9451_v16 }
 0x6b7   : > { %v6406_v59 = vmax.f32 %v6342_v4, 0.0  ;;  %v6998_v32 = vmul.f32 %v11777_v30, %v6727_v36  ;;  %v6091_v1 = vpop.f32.mrb[1].mxu1  ;;  %v6729_v14 = vpop.f32.mrb[85].mxu0 }
 0x6b8   : > { %8012 = vst [vmem:[%s11815_s28 + $0x90] sm:$0xff] %v8792_v29  ;;  %v8793_v41 = vpack.c.bf16 %v7521_v22, %v7520_v60  ;;  %v6999_v5 = vmul.f32 %v11779_v8, %v6729_v14  ;;  %v6092_v19 = vpop.f32.mrb[2].mxu1  ;;  %v6731_v56 = vpop.f32.mrb[86].mxu0  ;;  %v7271_v60 = vunpack.c.h.bf16 %v9451_v16 }
 0x6b9   : > { %v6443_v38 = vpack.c.bf16 %v6406_v59, %v6405_v57  ;;  %v7138_v46 = vadd.f32 %v11782_v39, %v6998_v32  ;;  %v7000_v63 = vmul.f32 %v11777_v30, %v6731_v56  ;;  %v6094_v52 = vpop.f32.mrb[3].mxu1  ;;  %v6733_v48 = vpop.f32.mrb[87].mxu0  ;;  %v6272_v61 = vmul.f32 %v11802_v37, %v6092_v19  ;;  %v9452_v57 = vld [vmem:[%s9767_s23 + $0xb8] sm:$0xff] }
 0x6ba   : > { %8013 = vst [vmem:[%s11815_s28 + $0x98] sm:$0xff] %v8793_v41  ;;  %v7139_v42 = vadd.f32 %v11784_v28, %v6999_v5  ;;  %v7001_v54 = vmul.f32 %v11779_v8, %v6733_v48  ;;  %v7272_v59 = vunpack.c.l.bf16 %v9452_v57  ;;  %v7273_v14 = vunpack.c.h.bf16 %v9452_v57 }
 0x6bb   : > { %v7394_v53 = vadd.f32 %v7266_v43, %v7138_v46  ;;  %v7140_v9 = vadd.f32 %v11782_v39, %v7000_v63  ;;  %8632 = vmatmul.mubr.msk.bf16.gmra.mrb[136].mxu0 %vm2679_vm2, %v6443_v38  ;;  %v6343_v47 = vadd.f32 %v11809_v13, %v6272_v61 }
 0x6bc   : > { %v7395_v10 = vadd.f32 %v7267_v21, %v7139_v42  ;;  %v7141_v34 = vadd.f32 %v11784_v28, %v7001_v54  ;;  %6895 = vmatprep.mubr.bf16.mxu0 %v12390_v55 }
 0x6bd   : > { %v7522_v58 = vmax.f32 %v7394_v53, 0.0  ;;  %v7396_v7 = vadd.f32 %v7268_v31, %v7140_v9  ;;  %v6407_v62 = vmax.f32 %v6343_v47, 0.0 }
 0x6be   : > { %v7523_v27 = vmax.f32 %v7395_v10, 0.0  ;;  %v7397_v6 = vadd.f32 %v7269_v3, %v7141_v34  ;;  %v6097_v11 = vpop.f32.mrb[4].mxu1 }
 0x6bf   : > { %v7524_v49 = vmax.f32 %v7396_v7, 0.0  ;;  %v6273_v33 = vmul.f32 %v11802_v37, %v6097_v11  ;;  %v6099_v45 = vpop.f32.mrb[5].mxu1  ;;  %v9453_v7 = vld [vmem:[%s9767_s23 + $0xc0] sm:$0xff] }
 0x6c0   : > { %v8794_v17 = vpack.c.bf16 %v7523_v27, %v7522_v58  ;;  %v7525_v12 = vmax.f32 %v7397_v6, 0.0  ;;  %v6100_v23 = vpop.f32.mrb[6].mxu1  ;;  %v7274_v27 = vunpack.c.l.bf16 %v9453_v7 }
 0x6c1   : > { %v6344_v20 = vadd.f32 %v11809_v13, %v6273_v33  ;;  %v6101_v51 = vpop.f32.mrb[7].mxu1  ;;  %v9454_v23 = vld [vmem:[%s9767_s23 + $0xc8] sm:$0xff] }
 0x6c2   : > { %8014 = vst [vmem:[%s11815_s28 + $0xa0] sm:$0xff] %v8794_v17  ;;  %v8795_v50 = vpack.c.bf16 %v7525_v12, %v7524_v49  ;;  %v7275_v49 = vunpack.c.h.bf16 %v9453_v7 }
 0x6c3   : > { %v6408_v35 = vmax.f32 %v6344_v20, 0.0  ;;  %v7276_v20 = vunpack.c.l.bf16 %v9454_v23 }
 0x6c4   : > { %8015 = vst [vmem:[%s11815_s28 + $0xa8] sm:$0xff] %v8795_v50  ;;  %v6737_v40 = vpop.f32.mrb[88].mxu0 }
 0x6c5   : > { %v6444_v2 = vpack.c.bf16 %v6408_v35, %v6407_v62  ;;  %v7002_v26 = vmul.f32 %v11777_v30, %v6737_v40  ;;  %v6739_v0 = vpop.f32.mrb[89].mxu0  ;;  %v7277_v40 = vunpack.c.h.bf16 %v9454_v23 }
 0x6c6   : > { %v7003_v44 = vmul.f32 %v11779_v8, %v6739_v0  ;;  %v6104_v4 = vpop.f32.mrb[8].mxu1  ;;  %v6741_v29 = vpop.f32.mrb[90].mxu0 }
 0x6c7   : > { %v7142_v22 = vadd.f32 %v11782_v39, %v7002_v26  ;;  %v6274_v25 = vmul.f32 %v11802_v37, %v6104_v4  ;;  %v7004_v36 = vmul.f32 %v11777_v30, %v6741_v29  ;;  %v6106_v32 = vpop.f32.mrb[9].mxu1  ;;  %v6743_v18 = vpop.f32.mrb[91].mxu0  ;;  %8633 = vmatmul.mubr.msk.bf16.gmra.mrb[140].mxu0 %vm2679_vm2, %v6444_v2  ;;  %v12049_v26 = vld [vmem:[%s12360_s5] ss:$0 sm:$0xff] }
 0x6c8   : > { %v7143_v43 = vadd.f32 %v11784_v28, %v7003_v44  ;;  %v7005_v1 = vmul.f32 %v11779_v8, %v6743_v18  ;;  %v6107_v41 = vpop.f32.mrb[10].mxu1  ;;  %6905 = vmatprep.mubr.bf16.mxu0 %v12390_v55 }
 0x6c9   : > { %v7398_v5 = vadd.f32 %v7270_v15, %v7142_v22  ;;  %v6345_v21 = vadd.f32 %v11809_v13, %v6274_v25  ;;  %v7144_v19 = vadd.f32 %v11782_v39, %v7004_v36  ;;  %v6275_v56 = vmul.f32 %v11802_v37, %v6107_v41  ;;  %v6109_v38 = vpop.f32.mrb[11].mxu1  ;;  %v12057_v36 = vld [vmem:[%s12361_s6] ss:$0 sm:$0xff] }
 0x6ca   : > { %v7399_v46 = vadd.f32 %v7271_v60, %v7143_v43  ;;  %v7145_v63 = vadd.f32 %v11784_v28, %v7005_v1 }
 0x6cb   : > { %v7526_v24 = vmax.f32 %v7398_v5, 0.0  ;;  %v7400_v31 = vadd.f32 %v7272_v59, %v7144_v19  ;;  %v6346_v52 = vadd.f32 %v11809_v13, %v6275_v56  ;;  %v6409_v54 = vmax.f32 %v6345_v21, 0.0 }
 0x6cc   : > { %v7527_v48 = vmax.f32 %v7399_v46, 0.0  ;;  %v7401_v42 = vadd.f32 %v7273_v14, %v7145_v63 }
 0x6cd   : > { %v7528_v3 = vmax.f32 %v7400_v31, 0.0  ;;  %v6410_v53 = vmax.f32 %v6346_v52, 0.0 }
 0x6ce   : > { %v8796_v61 = vpack.c.bf16 %v7527_v48, %v7526_v24  ;;  %v7529_v9 = vmax.f32 %v7401_v42, 0.0  ;;  %v6112_v10 = vpop.f32.mrb[12].mxu1  ;;  %v6747_v37 = vpop.f32.mrb[92].mxu0  ;;  %v9457_v24 = vld [vmem:[%s9767_s23 + $0xd0] sm:$0xff] }
 0x6cf   : > { %v6445_v34 = vpack.c.bf16 %v6410_v53, %v6409_v54  ;;  %v7006_v58 = vmul.f32 %v11777_v30, %v6747_v37  ;;  %v6113_v6 = vpop.f32.mrb[13].mxu1  ;;  %v6749_v11 = vpop.f32.mrb[93].mxu0  ;;  %v7278_v31 = vunpack.c.l.bf16 %v9457_v24  ;;  %v7279_v42 = vunpack.c.h.bf16 %v9457_v24  ;;  %v9458_v10 = vld [vmem:[%s9767_s23 + $0xd8] sm:$0xff] }
 0x6d0   : > { %8016 = vst [vmem:[%s11815_s28 + $0xb0] sm:$0xff] %v8796_v61  ;;  %v8797_v13 = vpack.c.bf16 %v7529_v9, %v7528_v3  ;;  %v7007_v47 = vmul.f32 %v11779_v8, %v6749_v11  ;;  %v6114_v33 = vpop.f32.mrb[14].mxu1  ;;  %v6751_v45 = vpop.f32.mrb[94].mxu0  ;;  %v7280_v37 = vunpack.c.l.bf16 %v9458_v10  ;;  %v7281_v6 = vunpack.c.h.bf16 %v9458_v10 }
 0x6d1   : > { %v7146_v17 = vadd.f32 %v11782_v39, %v7006_v58  ;;  %v7008_v12 = vmul.f32 %v11777_v30, %v6751_v45  ;;  %v6116_v51 = vpop.f32.mrb[15].mxu1  ;;  %v6753_v50 = vpop.f32.mrb[95].mxu0  ;;  %8634 = vmatmul.mubr.msk.bf16.gmra.mrb[144].mxu0 %vm2679_vm2, %v6445_v34  ;;  %v6276_v16 = vmul.f32 %v12049_v26, %v6114_v33 }
 0x6d2   : > { %8017 = vst [vmem:[%s11815_s28 + $0xb8] sm:$0xff] %v8797_v13  ;;  %v7147_v62 = vadd.f32 %v11784_v28, %v7007_v47  ;;  %v7009_v35 = vmul.f32 %v11779_v8, %v6753_v50  ;;  %6915 = vmatprep.mubr.bf16.mxu0 %v12390_v55 }
 0x6d3   : > { %v7402_v2 = vadd.f32 %v7274_v27, %v7146_v17  ;;  %v7148_v15 = vadd.f32 %v11782_v39, %v7008_v12  ;;  %v6347_v57 = vadd.f32 %v12057_v36, %v6276_v16 }
 0x6d4   : > { %v7403_v0 = vadd.f32 %v7275_v49, %v7147_v62  ;;  %v7149_v44 = vadd.f32 %v11784_v28, %v7009_v35 }
 0x6d5   : > { %v7530_v60 = vmax.f32 %v7402_v2, 0.0  ;;  %v7404_v4 = vadd.f32 %v7276_v20, %v7148_v15  ;;  %v6411_v19 = vmax.f32 %v6347_v57, 0.0 }
 0x6d6   : > { %v7531_v29 = vmax.f32 %v7403_v0, 0.0  ;;  %v7405_v22 = vadd.f32 %v7277_v40, %v7149_v44  ;;  %v6119_v25 = vpop.f32.mrb[16].mxu1 }
 0x6d7   : > { %v7532_v59 = vmax.f32 %v7404_v4, 0.0  ;;  %v6277_v32 = vmul.f32 %v12049_v26, %v6119_v25  ;;  %v6121_v18 = vpop.f32.mrb[17].mxu1 }
 0x6d8   : > { %v8798_v43 = vpack.c.bf16 %v7531_v29, %v7530_v60  ;;  %v7533_v1 = vmax.f32 %v7405_v22, 0.0  ;;  %v6122_v14 = vpop.f32.mrb[18].mxu1  ;;  %v9459_v29 = vld [vmem:[%s9767_s23 + $0xe0] sm:$0xff] }
 0x6d9   : > { %v6348_v41 = vadd.f32 %v12057_v36, %v6277_v32  ;;  %v6123_v5 = vpop.f32.mrb[19].mxu1  ;;  %v7282_v22 = vunpack.c.l.bf16 %v9459_v29  ;;  %v7283_v18 = vunpack.c.h.bf16 %v9459_v29 }
 0x6da   : > { %8018 = vst [vmem:[%s11815_s28 + $0xc0] sm:$0xff] %v8798_v43  ;;  %v8799_v21 = vpack.c.bf16 %v7533_v1, %v7532_v59  ;;  %v9460_v5 = vld [vmem:[%s9767_s23 + $0xe8] sm:$0xff] }
 0x6db   : > { %v6412_v56 = vmax.f32 %v6348_v41, 0.0 }
 0x6dc   : > { %8019 = vst [vmem:[%s11815_s28 + $0xc8] sm:$0xff] %v8799_v21  ;;  %v6757_v38 = vpop.f32.mrb[96].mxu0  ;;  %v7284_v21 = vunpack.c.l.bf16 %v9460_v5 }
 0x6dd   : > { %v6446_v46 = vpack.c.bf16 %v6412_v56, %v6411_v19  ;;  %v7010_v63 = vmul.f32 %v11777_v30, %v6757_v38  ;;  %v6759_v52 = vpop.f32.mrb[97].mxu0 }
 0x6de   : > { %v7011_v48 = vmul.f32 %v11779_v8, %v6759_v52  ;;  %v6126_v54 = vpop.f32.mrb[20].mxu1  ;;  %v6761_v3 = vpop.f32.mrb[98].mxu0 }
 0x6df   : > { %v7150_v53 = vadd.f32 %v11782_v39, %v7010_v63  ;;  %v6278_v61 = vmul.f32 %v12049_v26, %v6126_v54  ;;  %v7012_v9 = vmul.f32 %v11777_v30, %v6761_v3  ;;  %v6128_v34 = vpop.f32.mrb[21].mxu1  ;;  %v6763_v58 = vpop.f32.mrb[99].mxu0  ;;  %8635 = vmatmul.mubr.msk.bf16.gmra.mrb[148].mxu0 %vm2679_vm2, %v6446_v46  ;;  %v7285_v63 = vunpack.c.h.bf16 %v9460_v5  ;;  %v9463_v5 = vld [vmem:[%s9767_s23 + $0x100] sm:$0xff] }
 0x6e0   : > { %v7151_v7 = vadd.f32 %v11784_v28, %v7011_v48  ;;  %v7013_v27 = vmul.f32 %v11779_v8, %v6763_v58  ;;  %v6129_v11 = vpop.f32.mrb[22].mxu1  ;;  %6925 = vmatprep.mubr.bf16.mxu0 %v12390_v55 }
 0x6e1   : > { %v7406_v13 = vadd.f32 %v7278_v31, %v7150_v53  ;;  %v6349_v47 = vadd.f32 %v12057_v36, %v6278_v61  ;;  %v7152_v49 = vadd.f32 %v11782_v39, %v7012_v9  ;;  %v6279_v33 = vmul.f32 %v12049_v26, %v6129_v11  ;;  %v6131_v45 = vpop.f32.mrb[23].mxu1 }
 0x6e2   : > { %v7407_v17 = vadd.f32 %v7279_v42, %v7151_v7  ;;  %v7153_v12 = vadd.f32 %v11784_v28, %v7013_v27 }
 0x6e3   : > { %v7534_v23 = vmax.f32 %v7406_v13, 0.0  ;;  %v7408_v20 = vadd.f32 %v7280_v37, %v7152_v49  ;;  %v6350_v51 = vadd.f32 %v12057_v36, %v6279_v33  ;;  %v6413_v35 = vmax.f32 %v6349_v47, 0.0 }
 0x6e4   : > { %v7535_v50 = vmax.f32 %v7407_v17, 0.0  ;;  %v7409_v62 = vadd.f32 %v7281_v6, %v7153_v12  ;;  %v9461_v12 = vld [vmem:[%s9767_s23 + $0xf0] sm:$0xff] }
 0x6e5   : > { %v7536_v40 = vmax.f32 %v7408_v20, 0.0  ;;  %v6414_v2 = vmax.f32 %v6350_v51, 0.0  ;;  %v7287_v51 = vunpack.c.h.bf16 %v9461_v12 }
 0x6e6   : > { %v8800_v16 = vpack.c.bf16 %v7535_v50, %v7534_v23  ;;  %v7537_v15 = vmax.f32 %v7409_v62, 0.0  ;;  %v6134_v0 = vpop.f32.mrb[24].mxu1  ;;  %v6767_v44 = vpop.f32.mrb[100].mxu0  ;;  %v7286_v23 = vunpack.c.l.bf16 %v9461_v12 }
 0x6e7   : > { %v6447_v60 = vpack.c.bf16 %v6414_v2, %v6413_v35  ;;  %v7014_v4 = vmul.f32 %v11777_v30, %v6767_v44  ;;  %v6135_v25 = vpop.f32.mrb[25].mxu1  ;;  %v6769_v57 = vpop.f32.mrb[101].mxu0  ;;  %v9462_v35 = vld [vmem:[%s9767_s23 + $0xf8] sm:$0xff] }
 0x6e8   : > { %8020 = vst [vmem:[%s11815_s28 + $0xd0] sm:$0xff] %v8800_v16  ;;  %v8801_v59 = vpack.c.bf16 %v7537_v15, %v7536_v40  ;;  %v7015_v32 = vmul.f32 %v11779_v8, %v6769_v57  ;;  %v6136_v43 = vpop.f32.mrb[26].mxu1  ;;  %v6771_v1 = vpop.f32.mrb[102].mxu0  ;;  %v7288_v40 = vunpack.c.l.bf16 %v9462_v35  ;;  %v7289_v0 = vunpack.c.h.bf16 %v9462_v35 }
 0x6e9   : > { %v7154_v14 = vadd.f32 %v11782_v39, %v7014_v4  ;;  %v7016_v41 = vmul.f32 %v11777_v30, %v6771_v1  ;;  %v6138_v19 = vpop.f32.mrb[27].mxu1  ;;  %v6773_v56 = vpop.f32.mrb[103].mxu0  ;;  %8636 = vmatmul.mubr.msk.bf16.gmra.mrb[152].mxu0 %vm2679_vm2, %v6447_v60  ;;  %v6280_v31 = vmul.f32 %v12049_v26, %v6136_v43 }
 0x6ea   : > { %8021 = vst [vmem:[%s11815_s28 + $0xd8] sm:$0xff] %v8801_v59  ;;  %v7155_v38 = vadd.f32 %v11784_v28, %v7015_v32  ;;  %v7017_v46 = vmul.f32 %v11779_v8, %v6773_v56  ;;  %6935 = vmatprep.mubr.bf16.mxu0 %v12390_v55 }
 0x6eb   : > { %v7410_v24 = vadd.f32 %v7282_v22, %v7154_v14  ;;  %v7156_v52 = vadd.f32 %v11782_v39, %v7016_v41  ;;  %v6351_v10 = vadd.f32 %v12057_v36, %v6280_v31  ;;  %v9464_v31 = vld [vmem:[%s9767_s23 + $0x108] sm:$0xff] }
 0x6ec   : > { %v7411_v48 = vadd.f32 %v7283_v18, %v7155_v38  ;;  %v7157_v42 = vadd.f32 %v11784_v28, %v7017_v46  ;;  %v7291_v38 = vunpack.c.h.bf16 %v9463_v5 }
 0x6ed   : > { %v7538_v54 = vmax.f32 %v7410_v24, 0.0  ;;  %v7412_v3 = vadd.f32 %v7284_v21, %v7156_v52  ;;  %v6415_v47 = vmax.f32 %v6351_v10, 0.0  ;;  %v7290_v21 = vunpack.c.l.bf16 %v9463_v5 }
 0x6ee   : > { %v7539_v53 = vmax.f32 %v7411_v48, 0.0  ;;  %v7413_v61 = vadd.f32 %v7285_v63, %v7157_v42  ;;  %v6141_v9 = vpop.f32.mrb[28].mxu1  ;;  %v7292_v52 = vunpack.c.l.bf16 %v9464_v31 }
 0x6ef   : > { %v7540_v37 = vmax.f32 %v7412_v3, 0.0  ;;  %v6281_v55 = vmul.f32 %v12049_v26, %v6141_v9  ;;  %v6143_v34 = vpop.f32.mrb[29].mxu1  ;;  %v7293_v3 = vunpack.c.h.bf16 %v9464_v31 }
 0x6f0   : > { %v8802_v58 = vpack.c.bf16 %v7539_v53, %v7538_v54  ;;  %v7541_v7 = vmax.f32 %v7413_v61, 0.0  ;;  %v6144_v27 = vpop.f32.mrb[30].mxu1 }
 0x6f1   : > { %v6352_v6 = vadd.f32 %v12057_v36, %v6281_v55  ;;  %v6145_v11 = vpop.f32.mrb[31].mxu1 }
 0x6f2   : > { %8022 = vst [vmem:[%s11815_s28 + $0xe0] sm:$0xff] %v8802_v58  ;;  %v8803_v13 = vpack.c.bf16 %v7541_v7, %v7540_v37 }
 0x6f3   : > { %v6416_v49 = vmax.f32 %v6352_v6, 0.0 }
 0x6f4   : > { %8023 = vst [vmem:[%s11815_s28 + $0xe8] sm:$0xff] %v8803_v13  ;;  %v6777_v33 = vpop.f32.mrb[104].mxu0 }
 0x6f5   : > { %v6448_v45 = vpack.c.bf16 %v6416_v49, %v6415_v47  ;;  %v7018_v17 = vmul.f32 %v11777_v30, %v6777_v33  ;;  %v6779_v26 = vpop.f32.mrb[105].mxu0  ;;  %v9465_v49 = vld [vmem:[%s9767_s23 + $0x110] sm:$0xff] }
 0x6f6   : > { %v7019_v20 = vmul.f32 %v11779_v8, %v6779_v26  ;;  %v6781_v50 = vpop.f32.mrb[106].mxu0  ;;  %v7294_v33 = vunpack.c.l.bf16 %v9465_v49  ;;  %v7295_v12 = vunpack.c.h.bf16 %v9465_v49 }
 0x6f7   : > { %v7158_v36 = vadd.f32 %v11782_v39, %v7018_v17  ;;  %v7020_v62 = vmul.f32 %v11777_v30, %v6781_v50  ;;  %v6783_v2 = vpop.f32.mrb[107].mxu0  ;;  %8637 = vmatmul.mubr.msk.bf16.gmra.mrb[156].mxu0 %vm2679_vm2, %v6448_v45 }
 0x6f8   : > { %v7159_v16 = vadd.f32 %v11784_v28, %v7019_v20  ;;  %v7021_v15 = vmul.f32 %v11779_v8, %v6783_v2 }
 0x6f9   : > { %v7414_v44 = vadd.f32 %v7286_v23, %v7158_v36  ;;  %v7160_v60 = vadd.f32 %v11782_v39, %v7020_v62 }
 0x6fa   : > { %v7415_v4 = vadd.f32 %v7287_v51, %v7159_v16  ;;  %v7161_v29 = vadd.f32 %v11784_v28, %v7021_v15  ;;  %v9466_v51 = vld [vmem:[%s9767_s23 + $0x118] sm:$0xff] }
 0x6fb   : > { %v7542_v22 = vmax.f32 %v7414_v44, 0.0  ;;  %v7416_v25 = vadd.f32 %v7288_v40, %v7160_v60  ;;  %v7296_v50 = vunpack.c.l.bf16 %v9466_v51  ;;  %v7297_v40 = vunpack.c.h.bf16 %v9466_v51 }
 0x6fc   : > { %v7543_v57 = vmax.f32 %v7415_v4, 0.0  ;;  %v7417_v59 = vadd.f32 %v7289_v0, %v7161_v29 }
 0x6fd   : > { %v7544_v32 = vmax.f32 %v7416_v25, 0.0 }
 0x6fe   : > { %v8804_v18 = vpack.c.bf16 %v7543_v57, %v7542_v22  ;;  %v7545_v43 = vmax.f32 %v7417_v59, 0.0 }
 0x700   : > { %8024 = vst [vmem:[%s11815_s28 + $0xf0] sm:$0xff] %v8804_v18  ;;  %v8805_v1 = vpack.c.bf16 %v7545_v43, %v7544_v32  ;;  %v9467_v18 = vld [vmem:[%s9767_s23 + $0x120] sm:$0xff] }
 0x701   : > { %v7298_v43 = vunpack.c.l.bf16 %v9467_v18  ;;  %v7299_v5 = vunpack.c.h.bf16 %v9467_v18 }
 0x702   : > { %8025 = vst [vmem:[%s11815_s28 + $0xf8] sm:$0xff] %v8805_v1 }
 0x716   : > { %v6787_v14 = vpop.f32.mrb[108].mxu0 }
 0x717   : > { %v7022_v41 = vmul.f32 %v11777_v30, %v6787_v14  ;;  %v6789_v19 = vpop.f32.mrb[109].mxu0 }
 0x718   : > { %v7023_v56 = vmul.f32 %v11779_v8, %v6789_v19  ;;  %v6791_v46 = vpop.f32.mrb[110].mxu0 }
 0x719   : > { %v7162_v63 = vadd.f32 %v11782_v39, %v7022_v41  ;;  %v7024_v24 = vmul.f32 %v11777_v30, %v6791_v46  ;;  %v6793_v48 = vpop.f32.mrb[111].mxu0 }
 0x71a   : > { %v7163_v42 = vadd.f32 %v11784_v28, %v7023_v56  ;;  %v7025_v54 = vmul.f32 %v11779_v8, %v6793_v48 }
 0x71b   : > { %v7418_v53 = vadd.f32 %v7290_v21, %v7162_v63  ;;  %v7164_v61 = vadd.f32 %v11782_v39, %v7024_v24 }
 0x71c   : > { %v7419_v9 = vadd.f32 %v7291_v38, %v7163_v42  ;;  %v7165_v10 = vadd.f32 %v11784_v28, %v7025_v54  ;;  %v9468_v38 = vld [vmem:[%s9767_s23 + $0x128] sm:$0xff] }
 0x71d   : > { %v7546_v37 = vmax.f32 %v7418_v53, 0.0  ;;  %v7420_v55 = vadd.f32 %v7292_v52, %v7164_v61  ;;  %v7300_v46 = vunpack.c.l.bf16 %v9468_v38  ;;  %v7301_v52 = vunpack.c.h.bf16 %v9468_v38 }
 0x71e   : > { %v7547_v34 = vmax.f32 %v7419_v9, 0.0  ;;  %v7421_v58 = vadd.f32 %v7293_v3, %v7165_v10 }
 0x71f   : > { %v7548_v7 = vmax.f32 %v7420_v55, 0.0 }
 0x720   : > { %v8806_v27 = vpack.c.bf16 %v7547_v34, %v7546_v37  ;;  %v7549_v6 = vmax.f32 %v7421_v58, 0.0 }
 0x722   : > { %8026 = vst [vmem:[%s11815_s28 + $0x100] sm:$0xff] %v8806_v27  ;;  %v8807_v11 = vpack.c.bf16 %v7549_v6, %v7548_v7  ;;  %v9469_v6 = vld [vmem:[%s9767_s23 + $0x130] sm:$0xff] }
 0x723   : > { %v7303_v49 = vunpack.c.h.bf16 %v9469_v6 }
 0x724   : > { %8027 = vst [vmem:[%s11815_s28 + $0x108] sm:$0xff] %v8807_v11  ;;  %v6797_v13 = vpop.f32.mrb[112].mxu0  ;;  %v7302_v11 = vunpack.c.l.bf16 %v9469_v6 }
 0x725   : > { %v7026_v47 = vmul.f32 %v11777_v30, %v6797_v13  ;;  %v6799_v45 = vpop.f32.mrb[113].mxu0 }
 0x726   : > { %v7027_v17 = vmul.f32 %v11779_v8, %v6799_v45  ;;  %v6801_v23 = vpop.f32.mrb[114].mxu0 }
 0x727   : > { %v7166_v26 = vadd.f32 %v11782_v39, %v7026_v47  ;;  %v7028_v20 = vmul.f32 %v11777_v30, %v6801_v23  ;;  %v6803_v36 = vpop.f32.mrb[115].mxu0 }
 0x728   : > { %v7167_v62 = vadd.f32 %v11784_v28, %v7027_v17  ;;  %v7029_v35 = vmul.f32 %v11779_v8, %v6803_v36 }
 0x729   : > { %v7422_v2 = vadd.f32 %v7294_v33, %v7166_v26  ;;  %v7168_v16 = vadd.f32 %v11782_v39, %v7028_v20 }
 0x72a   : > { %v7423_v15 = vadd.f32 %v7295_v12, %v7167_v62  ;;  %v7169_v0 = vadd.f32 %v11784_v28, %v7029_v35  ;;  %v9470_v12 = vld [vmem:[%s9767_s23 + $0x138] sm:$0xff] }
 0x72b   : > { %v7550_v44 = vmax.f32 %v7422_v2, 0.0  ;;  %v7424_v60 = vadd.f32 %v7296_v50, %v7168_v16  ;;  %v7304_v23 = vunpack.c.l.bf16 %v9470_v12  ;;  %v7305_v50 = vunpack.c.h.bf16 %v9470_v12 }
 0x72c   : > { %v7551_v4 = vmax.f32 %v7423_v15, 0.0  ;;  %v7425_v29 = vadd.f32 %v7297_v40, %v7169_v0 }
 0x72d   : > { %v7552_v22 = vmax.f32 %v7424_v60, 0.0 }
 0x72e   : > { %v8808_v25 = vpack.c.bf16 %v7551_v4, %v7550_v44  ;;  %v7553_v57 = vmax.f32 %v7425_v29, 0.0  ;;  %v6807_v59 = vpop.f32.mrb[116].mxu0 }
 0x72f   : > { %v7030_v32 = vmul.f32 %v11777_v30, %v6807_v59  ;;  %v6809_v1 = vpop.f32.mrb[117].mxu0 }
 0x730   : > { %8028 = vst [vmem:[%s11815_s28 + $0x110] sm:$0xff] %v8808_v25  ;;  %v8809_v14 = vpack.c.bf16 %v7553_v57, %v7552_v22  ;;  %v7031_v41 = vmul.f32 %v11779_v8, %v6809_v1  ;;  %v6811_v21 = vpop.f32.mrb[118].mxu0  ;;  %v9471_v25 = vld [vmem:[%s9767_s23 + $0x140] sm:$0xff] }
 0x731   : > { %v7170_v19 = vadd.f32 %v11782_v39, %v7030_v32  ;;  %v7032_v56 = vmul.f32 %v11777_v30, %v6811_v21  ;;  %v6813_v63 = vpop.f32.mrb[119].mxu0  ;;  %v7306_v57 = vunpack.c.l.bf16 %v9471_v25 }
 0x732   : > { %8029 = vst [vmem:[%s11815_s28 + $0x118] sm:$0xff] %v8809_v14  ;;  %v7171_v24 = vadd.f32 %v11784_v28, %v7031_v41  ;;  %v7033_v31 = vmul.f32 %v11779_v8, %v6813_v63 }
 0x733   : > { %v7426_v48 = vadd.f32 %v7298_v43, %v7170_v19  ;;  %v7172_v42 = vadd.f32 %v11782_v39, %v7032_v56  ;;  %v7307_v43 = vunpack.c.h.bf16 %v9471_v25 }
 0x734   : > { %v7427_v54 = vadd.f32 %v7299_v5, %v7171_v24  ;;  %v7173_v3 = vadd.f32 %v11784_v28, %v7033_v31  ;;  %v9472_v5 = vld [vmem:[%s9767_s23 + $0x148] sm:$0xff] }
 0x735   : > { %v7554_v53 = vmax.f32 %v7426_v48, 0.0  ;;  %v7428_v61 = vadd.f32 %v7300_v46, %v7172_v42  ;;  %v7308_v21 = vunpack.c.l.bf16 %v9472_v5  ;;  %v7309_v46 = vunpack.c.h.bf16 %v9472_v5 }
 0x736   : > { %v7555_v9 = vmax.f32 %v7427_v54, 0.0  ;;  %v7429_v10 = vadd.f32 %v7301_v52, %v7173_v3 }
 0x737   : > { %v7556_v37 = vmax.f32 %v7428_v61, 0.0 }
 0x738   : > { %v8810_v55 = vpack.c.bf16 %v7555_v9, %v7554_v53  ;;  %v7557_v34 = vmax.f32 %v7429_v10, 0.0 }
 0x73a   : > { %8030 = vst [vmem:[%s11815_s28 + $0x120] sm:$0xff] %v8810_v55  ;;  %v8811_v58 = vpack.c.bf16 %v7557_v34, %v7556_v37  ;;  %v9473_v34 = vld [vmem:[%s9767_s23 + $0x150] sm:$0xff] }
 0x73b   : > { %v7311_v6 = vunpack.c.h.bf16 %v9473_v34 }
 0x73c   : > { %8031 = vst [vmem:[%s11815_s28 + $0x128] sm:$0xff] %v8811_v58  ;;  %v6817_v7 = vpop.f32.mrb[120].mxu0  ;;  %v7310_v58 = vunpack.c.l.bf16 %v9473_v34 }
 0x73d   : > { %v7034_v27 = vmul.f32 %v11777_v30, %v6817_v7  ;;  %v6819_v13 = vpop.f32.mrb[121].mxu0 }
 0x73e   : > { %v7035_v47 = vmul.f32 %v11779_v8, %v6819_v13  ;;  %v6821_v33 = vpop.f32.mrb[122].mxu0 }
 0x73f   : > { %v7174_v45 = vadd.f32 %v11782_v39, %v7034_v27  ;;  %v7036_v17 = vmul.f32 %v11777_v30, %v6821_v33  ;;  %v6823_v26 = vpop.f32.mrb[123].mxu0 }
 0x740   : > { %v7175_v20 = vadd.f32 %v11784_v28, %v7035_v47  ;;  %v7037_v51 = vmul.f32 %v11779_v8, %v6823_v26 }
 0x741   : > { %v7430_v36 = vadd.f32 %v7302_v11, %v7174_v45  ;;  %v7176_v62 = vadd.f32 %v11782_v39, %v7036_v17 }
 0x742   : > { %v7431_v35 = vadd.f32 %v7303_v49, %v7175_v20  ;;  %v7177_v40 = vadd.f32 %v11784_v28, %v7037_v51  ;;  %v9474_v49 = vld [vmem:[%s9767_s23 + $0x158] sm:$0xff] }
 0x743   : > { %v7558_v2 = vmax.f32 %v7430_v36, 0.0  ;;  %v7432_v16 = vadd.f32 %v7304_v23, %v7176_v62  ;;  %v7312_v33 = vunpack.c.l.bf16 %v9474_v49  ;;  %v7313_v17 = vunpack.c.h.bf16 %v9474_v49 }
 0x744   : > { %v7559_v15 = vmax.f32 %v7431_v35, 0.0  ;;  %v7433_v0 = vadd.f32 %v7305_v50, %v7177_v40 }
 0x745   : > { %v7560_v44 = vmax.f32 %v7432_v16, 0.0 }
 0x746   : > { %v8812_v60 = vpack.c.bf16 %v7559_v15, %v7558_v2  ;;  %v7561_v4 = vmax.f32 %v7433_v0, 0.0  ;;  %v6827_v29 = vpop.f32.mrb[124].mxu0  ;;  %v2738_v2 = vpop.permute.xlu1 %2737 }
 0x747   : > { %v7038_v22 = vmul.f32 %v11777_v30, %v6827_v29  ;;  %v6829_v59 = vpop.f32.mrb[125].mxu0  ;;  %v2850_v15 = vpop.permute.xlu0 %2849  ;;  %v9477_v29 = vld [vmem:[%s9767_s23 + $0x160] sm:$0xff] }
 0x748   : > { %8032 = vst [vmem:[%s11815_s28 + $0x130] sm:$0xff] %v8812_v60  ;;  %v8813_v32 = vpack.c.bf16 %v7561_v4, %v7560_v44  ;;  %v7039_v18 = vmul.f32 %v11779_v8, %v6829_v59  ;;  %v6831_v1 = vpop.f32.mrb[126].mxu0 }
 0x749   : > { %v7178_v14 = vadd.f32 %v11782_v39, %v7038_v22  ;;  %v7040_v41 = vmul.f32 %v11777_v30, %v6831_v1  ;;  %v6833_v19 = vpop.f32.mrb[127].mxu0  ;;  %v7314_v22 = vunpack.c.l.bf16 %v9477_v29 }
 0x74a   : > { %8033 = vst [vmem:[%s11815_s28 + $0x138] sm:$0xff] %v8813_v32  ;;  %v7179_v56 = vadd.f32 %v11784_v28, %v7039_v18  ;;  %v7041_v38 = vmul.f32 %v11779_v8, %v6833_v19  ;;  %v7315_v32 = vunpack.c.h.bf16 %v9477_v29 }
 0x74b   : > { %v7434_v63 = vadd.f32 %v7306_v57, %v7178_v14  ;;  %v7180_v24 = vadd.f32 %v11782_v39, %v7040_v41  ;;  %v9478_v14 = vld [vmem:[%s9767_s23 + $0x168] sm:$0xff] }
 0x74c   : > { %v7435_v31 = vadd.f32 %v7307_v43, %v7179_v56  ;;  %v7181_v52 = vadd.f32 %v11784_v28, %v7041_v38  ;;  %v7316_v41 = vunpack.c.l.bf16 %v9478_v14  ;;  %v7317_v56 = vunpack.c.h.bf16 %v9478_v14 }
 0x74d   : > { %v7562_v48 = vmax.f32 %v7434_v63, 0.0  ;;  %v7436_v42 = vadd.f32 %v7308_v21, %v7180_v24 }
 0x74e   : > { %v7563_v54 = vmax.f32 %v7435_v31, 0.0  ;;  %v7437_v3 = vadd.f32 %v7309_v46, %v7181_v52 }
 0x74f   : > { %v7564_v53 = vmax.f32 %v7436_v42, 0.0 }
 0x750   : > { %v8814_v61 = vpack.c.bf16 %v7563_v54, %v7562_v48  ;;  %v7565_v9 = vmax.f32 %v7437_v3, 0.0 }
 0x752   : > { %8034 = vst [vmem:[%s11815_s28 + $0x140] sm:$0xff] %v8814_v61  ;;  %v8815_v10 = vpack.c.bf16 %v7565_v9, %v7564_v53 }
 0x754   : > { %8035 = vst [vmem:[%s11815_s28 + $0x148] sm:$0xff] %v8815_v10  ;;  %v6837_v37 = vpop.f32.mrb[224].mxu0 }
 0x755   : > { %v7042_v55 = vmul.f32 %v11777_v30, %v6837_v37  ;;  %v6839_v7 = vpop.f32.mrb[225].mxu0  ;;  %v9479_v37 = vld [vmem:[%s9767_s23 + $0x170] sm:$0xff] }
 0x756   : > { %v7043_v27 = vmul.f32 %v11779_v8, %v6839_v7  ;;  %v6841_v11 = vpop.f32.mrb[226].mxu0  ;;  %v7319_v7 = vunpack.c.h.bf16 %v9479_v37 }
 0x757   : > { %v7182_v13 = vadd.f32 %v11782_v39, %v7042_v55  ;;  %v7044_v47 = vmul.f32 %v11777_v30, %v6841_v11  ;;  %v6843_v45 = vpop.f32.mrb[227].mxu0  ;;  %v7318_v55 = vunpack.c.l.bf16 %v9479_v37 }
 0x758   : > { %v7183_v12 = vadd.f32 %v11784_v28, %v7043_v27  ;;  %v7045_v23 = vmul.f32 %v11779_v8, %v6843_v45 }
 0x759   : > { %v7438_v26 = vadd.f32 %v7310_v58, %v7182_v13  ;;  %v7184_v20 = vadd.f32 %v11782_v39, %v7044_v47  ;;  %v9480_v13 = vld [vmem:[%s9767_s23 + $0x178] sm:$0xff] }
 0x75a   : > { %v7439_v51 = vadd.f32 %v7311_v6, %v7183_v12  ;;  %v7185_v50 = vadd.f32 %v11784_v28, %v7045_v23  ;;  %v7320_v47 = vunpack.c.l.bf16 %v9480_v13 }
 0x75b   : > { %v7566_v36 = vmax.f32 %v7438_v26, 0.0  ;;  %v7440_v62 = vadd.f32 %v7312_v33, %v7184_v20 }
 0x75c   : > { %v7567_v35 = vmax.f32 %v7439_v51, 0.0  ;;  %v7441_v40 = vadd.f32 %v7313_v17, %v7185_v50  ;;  %v7321_v17 = vunpack.c.h.bf16 %v9480_v13 }
 0x75d   : > { %v7568_v16 = vmax.f32 %v7440_v62, 0.0 }
 0x75e   : > { %v8816_v0 = vpack.c.bf16 %v7567_v35, %v7566_v36  ;;  %v7569_v44 = vmax.f32 %v7441_v40, 0.0  ;;  %v6847_v60 = vpop.f32.mrb[228].mxu0 }
 0x75f   : > { %v7046_v4 = vmul.f32 %v11777_v30, %v6847_v60  ;;  %v6849_v25 = vpop.f32.mrb[229].mxu0 }
 0x760   : > { %8036 = vst [vmem:[%s11815_s28 + $0x150] sm:$0xff] %v8816_v0  ;;  %v8817_v57 = vpack.c.bf16 %v7569_v44, %v7568_v16  ;;  %v7047_v59 = vmul.f32 %v11779_v8, %v6849_v25  ;;  %v6851_v18 = vpop.f32.mrb[230].mxu0  ;;  %v9481_v0 = vld [vmem:[%s9767_s23 + $0x180] sm:$0xff] }
 0x761   : > { %v7186_v43 = vadd.f32 %v11782_v39, %v7046_v4  ;;  %v7048_v1 = vmul.f32 %v11777_v30, %v6851_v18  ;;  %v6853_v5 = vpop.f32.mrb[231].mxu0  ;;  %v7322_v44 = vunpack.c.l.bf16 %v9481_v0 }
 0x762   : > { %8037 = vst [vmem:[%s11815_s28 + $0x158] sm:$0xff] %v8817_v57  ;;  %v7187_v21 = vadd.f32 %v11784_v28, %v7047_v59  ;;  %v7049_v19 = vmul.f32 %v11779_v8, %v6853_v5 }
 0x763   : > { %v7442_v38 = vadd.f32 %v7314_v22, %v7186_v43  ;;  %v7188_v46 = vadd.f32 %v11782_v39, %v7048_v1  ;;  %v7323_v22 = vunpack.c.h.bf16 %v9481_v0 }
 0x764   : > { %v7443_v63 = vadd.f32 %v7315_v32, %v7187_v21  ;;  %v7189_v24 = vadd.f32 %v11784_v28, %v7049_v19  ;;  %v9482_v32 = vld [vmem:[%s9767_s23 + $0x188] sm:$0xff] }
 0x765   : > { %v7570_v31 = vmax.f32 %v7442_v38, 0.0  ;;  %v7444_v52 = vadd.f32 %v7316_v41, %v7188_v46  ;;  %v7324_v18 = vunpack.c.l.bf16 %v9482_v32  ;;  %v7325_v41 = vunpack.c.h.bf16 %v9482_v32 }
 0x766   : > { %v7571_v48 = vmax.f32 %v7443_v63, 0.0  ;;  %v7445_v42 = vadd.f32 %v7317_v56, %v7189_v24 }
 0x767   : > { %v7572_v54 = vmax.f32 %v7444_v52, 0.0 }
 0x768   : > { %v8818_v3 = vpack.c.bf16 %v7571_v48, %v7570_v31  ;;  %v7573_v53 = vmax.f32 %v7445_v42, 0.0 }
 0x76a   : > { %8038 = vst [vmem:[%s11815_s28 + $0x160] sm:$0xff] %v8818_v3  ;;  %v8819_v61 = vpack.c.bf16 %v7573_v53, %v7572_v54  ;;  %v9483_v53 = vld [vmem:[%s9767_s23 + $0x190] sm:$0xff] }
 0x76b   : > { %v7327_v37 = vunpack.c.h.bf16 %v9483_v53 }
 0x76c   : > { %8039 = vst [vmem:[%s11815_s28 + $0x168] sm:$0xff] %v8819_v61  ;;  %v6857_v9 = vpop.f32.mrb[232].mxu0  ;;  %v7326_v61 = vunpack.c.l.bf16 %v9483_v53 }
 0x76d   : > { %v7050_v10 = vmul.f32 %v11777_v30, %v6857_v9  ;;  %v6859_v34 = vpop.f32.mrb[233].mxu0 }
 0x76e   : > { %v7051_v58 = vmul.f32 %v11779_v8, %v6859_v34  ;;  %v6861_v27 = vpop.f32.mrb[234].mxu0 }
 0x76f   : > { %v7190_v6 = vadd.f32 %v11782_v39, %v7050_v10  ;;  %v7052_v11 = vmul.f32 %v11777_v30, %v6861_v27  ;;  %v6863_v49 = vpop.f32.mrb[235].mxu0 }
 0x770   : > { %v7191_v33 = vadd.f32 %v11784_v28, %v7051_v58  ;;  %v7053_v45 = vmul.f32 %v11779_v8, %v6863_v49 }
 0x771   : > { %v7446_v12 = vadd.f32 %v7318_v55, %v7190_v6  ;;  %v7192_v23 = vadd.f32 %v11782_v39, %v7052_v11 }
 0x772   : > { %v7447_v26 = vadd.f32 %v7319_v7, %v7191_v33  ;;  %v7193_v20 = vadd.f32 %v11784_v28, %v7053_v45  ;;  %v9484_v7 = vld [vmem:[%s9767_s23 + $0x198] sm:$0xff] }
 0x773   : > { %v7574_v51 = vmax.f32 %v7446_v12, 0.0  ;;  %v7448_v50 = vadd.f32 %v7320_v47, %v7192_v23  ;;  %v7328_v27 = vunpack.c.l.bf16 %v9484_v7  ;;  %v7329_v47 = vunpack.c.h.bf16 %v9484_v7 }
 0x774   : > { %v7575_v36 = vmax.f32 %v7447_v26, 0.0  ;;  %v7449_v62 = vadd.f32 %v7321_v17, %v7193_v20 }
 0x775   : > { %v7576_v35 = vmax.f32 %v7448_v50, 0.0 }
 0x776   : > { %v8820_v40 = vpack.c.bf16 %v7575_v36, %v7574_v51  ;;  %v7577_v2 = vmax.f32 %v7449_v62, 0.0  ;;  %v6867_v16 = vpop.f32.mrb[128].mxu0 }
 0x777   : > { %v7054_v15 = vmul.f32 %v11777_v30, %v6867_v16  ;;  %v6869_v60 = vpop.f32.mrb[129].mxu0 }
 0x778   : > { %8040 = vst [vmem:[%s11815_s28 + $0x170] sm:$0xff] %v8820_v40  ;;  %v8821_v4 = vpack.c.bf16 %v7577_v2, %v7576_v35  ;;  %v7055_v29 = vmul.f32 %v11779_v8, %v6869_v60  ;;  %v6871_v25 = vpop.f32.mrb[130].mxu0  ;;  %v9485_v40 = vld [vmem:[%s9767_s23 + $0x1a0] sm:$0xff] }
 0x779   : > { %v7194_v57 = vadd.f32 %v11782_v39, %v7054_v15  ;;  %v7056_v59 = vmul.f32 %v11777_v30, %v6871_v25  ;;  %v6873_v43 = vpop.f32.mrb[131].mxu0  ;;  %v7330_v2 = vunpack.c.l.bf16 %v9485_v40 }
 0x77a   : > { %8041 = vst [vmem:[%s11815_s28 + $0x178] sm:$0xff] %v8821_v4  ;;  %v7195_v1 = vadd.f32 %v11784_v28, %v7055_v29  ;;  %v7057_v14 = vmul.f32 %v11779_v8, %v6873_v43 }
 0x77b   : > { %v7450_v5 = vadd.f32 %v7322_v44, %v7194_v57  ;;  %v7196_v21 = vadd.f32 %v11782_v39, %v7056_v59  ;;  %v7331_v44 = vunpack.c.h.bf16 %v9485_v40 }
 0x77c   : > { %v7451_v19 = vadd.f32 %v7323_v22, %v7195_v1  ;;  %v7197_v56 = vadd.f32 %v11784_v28, %v7057_v14  ;;  %v9486_v22 = vld [vmem:[%s9767_s23 + $0x1a8] sm:$0xff] }
 0x77d   : > { %v7578_v38 = vmax.f32 %v7450_v5, 0.0  ;;  %v7452_v46 = vadd.f32 %v7324_v18, %v7196_v21  ;;  %v7332_v25 = vunpack.c.l.bf16 %v9486_v22  ;;  %v7333_v18 = vunpack.c.h.bf16 %v9486_v22 }
 0x77e   : > { %v7579_v63 = vmax.f32 %v7451_v19, 0.0  ;;  %v7453_v24 = vadd.f32 %v7325_v41, %v7197_v56 }
 0x77f   : > { %v7580_v31 = vmax.f32 %v7452_v46, 0.0 }
 0x780   : > { %v8822_v52 = vpack.c.bf16 %v7579_v63, %v7578_v38  ;;  %v7581_v48 = vmax.f32 %v7453_v24, 0.0 }
 0x782   : > { %8042 = vst [vmem:[%s11815_s28 + $0x180] sm:$0xff] %v8822_v52  ;;  %v8823_v42 = vpack.c.bf16 %v7581_v48, %v7580_v31  ;;  %v9487_v48 = vld [vmem:[%s9767_s23 + $0x1b0] sm:$0xff] }
 0x783   : > { %v7335_v53 = vunpack.c.h.bf16 %v9487_v48 }
 0x784   : > { %8043 = vst [vmem:[%s11815_s28 + $0x188] sm:$0xff] %v8823_v42  ;;  %v6877_v54 = vpop.f32.mrb[132].mxu0  ;;  %v7334_v42 = vunpack.c.l.bf16 %v9487_v48 }
 0x785   : > { %v7058_v3 = vmul.f32 %v11777_v30, %v6877_v54  ;;  %v6879_v9 = vpop.f32.mrb[133].mxu0 }
 0x786   : > { %v7059_v10 = vmul.f32 %v11779_v8, %v6879_v9  ;;  %v6881_v55 = vpop.f32.mrb[134].mxu0 }
 0x787   : > { %v7198_v34 = vadd.f32 %v11782_v39, %v7058_v3  ;;  %v7060_v58 = vmul.f32 %v11777_v30, %v6881_v55  ;;  %v6883_v6 = vpop.f32.mrb[135].mxu0 }
 0x788   : > { %v7199_v11 = vadd.f32 %v11784_v28, %v7059_v10  ;;  %v7061_v13 = vmul.f32 %v11779_v8, %v6883_v6 }
 0x789   : > { %v7454_v49 = vadd.f32 %v7326_v61, %v7198_v34  ;;  %v7200_v33 = vadd.f32 %v11782_v39, %v7060_v58 }
 0x78a   : > { %v7455_v45 = vadd.f32 %v7327_v37, %v7199_v11  ;;  %v7201_v17 = vadd.f32 %v11784_v28, %v7061_v13  ;;  %v9488_v37 = vld [vmem:[%s9767_s23 + $0x1b8] sm:$0xff] }
 0x78b   : > { %v7582_v12 = vmax.f32 %v7454_v49, 0.0  ;;  %v7456_v23 = vadd.f32 %v7328_v27, %v7200_v33  ;;  %v7336_v55 = vunpack.c.l.bf16 %v9488_v37  ;;  %v7337_v27 = vunpack.c.h.bf16 %v9488_v37 }
 0x78c   : > { %v7583_v26 = vmax.f32 %v7455_v45, 0.0  ;;  %v7457_v20 = vadd.f32 %v7329_v47, %v7201_v17 }
 0x78d   : > { %v7584_v51 = vmax.f32 %v7456_v23, 0.0 }
 0x78e   : > { %v8824_v50 = vpack.c.bf16 %v7583_v26, %v7582_v12  ;;  %v7585_v36 = vmax.f32 %v7457_v20, 0.0  ;;  %v6887_v62 = vpop.f32.mrb[136].mxu0 }
 0x78f   : > { %v7062_v35 = vmul.f32 %v11777_v30, %v6887_v62  ;;  %v6889_v16 = vpop.f32.mrb[137].mxu0 }
 0x790   : > { %8044 = vst [vmem:[%s11815_s28 + $0x190] sm:$0xff] %v8824_v50  ;;  %v8825_v15 = vpack.c.bf16 %v7585_v36, %v7584_v51  ;;  %v7063_v0 = vmul.f32 %v11779_v8, %v6889_v16  ;;  %v6891_v60 = vpop.f32.mrb[138].mxu0  ;;  %v9489_v50 = vld [vmem:[%s9767_s23 + $0x1c0] sm:$0xff] }
 0x791   : > { %v7202_v4 = vadd.f32 %v11782_v39, %v7062_v35  ;;  %v7064_v29 = vmul.f32 %v11777_v30, %v6891_v60  ;;  %v6893_v57 = vpop.f32.mrb[139].mxu0  ;;  %v7338_v36 = vunpack.c.l.bf16 %v9489_v50 }
 0x792   : > { %8045 = vst [vmem:[%s11815_s28 + $0x198] sm:$0xff] %v8825_v15  ;;  %v7203_v59 = vadd.f32 %v11784_v28, %v7063_v0  ;;  %v7065_v32 = vmul.f32 %v11779_v8, %v6893_v57 }
 0x793   : > { %v7458_v43 = vadd.f32 %v7330_v2, %v7202_v4  ;;  %v7204_v1 = vadd.f32 %v11782_v39, %v7064_v29  ;;  %v7339_v2 = vunpack.c.h.bf16 %v9489_v50 }
 0x794   : > { %v7459_v14 = vadd.f32 %v7331_v44, %v7203_v59  ;;  %v7205_v41 = vadd.f32 %v11784_v28, %v7065_v32  ;;  %v9490_v44 = vld [vmem:[%s9767_s23 + $0x1c8] sm:$0xff] }
 0x795   : > { %v7586_v5 = vmax.f32 %v7458_v43, 0.0  ;;  %v7460_v21 = vadd.f32 %v7332_v25, %v7204_v1  ;;  %v7340_v60 = vunpack.c.l.bf16 %v9490_v44  ;;  %v7341_v25 = vunpack.c.h.bf16 %v9490_v44 }
 0x796   : > { %v7587_v19 = vmax.f32 %v7459_v14, 0.0  ;;  %v7461_v56 = vadd.f32 %v7333_v18, %v7205_v41 }
 0x797   : > { %v7588_v38 = vmax.f32 %v7460_v21, 0.0 }
 0x798   : > { %v8826_v46 = vpack.c.bf16 %v7587_v19, %v7586_v5  ;;  %v7589_v63 = vmax.f32 %v7461_v56, 0.0 }
 0x79a   : > { %8046 = vst [vmem:[%s11815_s28 + $0x1a0] sm:$0xff] %v8826_v46  ;;  %v8827_v24 = vpack.c.bf16 %v7589_v63, %v7588_v38  ;;  %v6897_v31 = vpop.f32.mrb[140].mxu0  ;;  %v9491_v63 = vld [vmem:[%s9767_s23 + $0x1d0] sm:$0xff] }
 0x79b   : > { %v7066_v52 = vmul.f32 %v11777_v30, %v6897_v31  ;;  %v6899_v54 = vpop.f32.mrb[141].mxu0  ;;  %v7343_v48 = vunpack.c.h.bf16 %v9491_v63 }
 0x79c   : > { %8047 = vst [vmem:[%s11815_s28 + $0x1a8] sm:$0xff] %v8827_v24  ;;  %v7067_v3 = vmul.f32 %v11779_v8, %v6899_v54  ;;  %v6901_v61 = vpop.f32.mrb[142].mxu0  ;;  %v7342_v24 = vunpack.c.l.bf16 %v9491_v63 }
 0x79d   : > { %v7206_v9 = vadd.f32 %v11782_v39, %v7066_v52  ;;  %v7068_v10 = vmul.f32 %v11777_v30, %v6901_v61  ;;  %v6903_v34 = vpop.f32.mrb[143].mxu0 }
 0x79e   : > { %v7207_v58 = vadd.f32 %v11784_v28, %v7067_v3  ;;  %v7069_v7 = vmul.f32 %v11779_v8, %v6903_v34 }
 0x79f   : > { %v7462_v6 = vadd.f32 %v7334_v42, %v7206_v9  ;;  %v7208_v11 = vadd.f32 %v11782_v39, %v7068_v10 }
 0x7a0   : > { %v7463_v13 = vadd.f32 %v7335_v53, %v7207_v58  ;;  %v7209_v47 = vadd.f32 %v11784_v28, %v7069_v7  ;;  %v9492_v53 = vld [vmem:[%s9767_s23 + $0x1d8] sm:$0xff] }
 0x7a1   : > { %v7590_v49 = vmax.f32 %v7462_v6, 0.0  ;;  %v7464_v33 = vadd.f32 %v7336_v55, %v7208_v11  ;;  %v7344_v61 = vunpack.c.l.bf16 %v9492_v53  ;;  %v7345_v55 = vunpack.c.h.bf16 %v9492_v53 }
 0x7a2   : > { %v7591_v45 = vmax.f32 %v7463_v13, 0.0  ;;  %v7465_v17 = vadd.f32 %v7337_v27, %v7209_v47 }
 0x7a3   : > { %v7592_v12 = vmax.f32 %v7464_v33, 0.0 }
 0x7a4   : > { %v8828_v23 = vpack.c.bf16 %v7591_v45, %v7590_v49  ;;  %v7593_v26 = vmax.f32 %v7465_v17, 0.0  ;;  %v6907_v20 = vpop.f32.mrb[144].mxu0 }
 0x7a5   : > { %v7070_v51 = vmul.f32 %v11777_v30, %v6907_v20  ;;  %v6909_v62 = vpop.f32.mrb[145].mxu0 }
 0x7a6   : > { %8048 = vst [vmem:[%s11815_s28 + $0x1b0] sm:$0xff] %v8828_v23  ;;  %v8829_v35 = vpack.c.bf16 %v7593_v26, %v7592_v12  ;;  %v7071_v40 = vmul.f32 %v11779_v8, %v6909_v62  ;;  %v6911_v16 = vpop.f32.mrb[146].mxu0  ;;  %v9493_v23 = vld [vmem:[%s9767_s23 + $0x1e0] sm:$0xff] }
 0x7a7   : > { %v7210_v15 = vadd.f32 %v11782_v39, %v7070_v51  ;;  %v7072_v0 = vmul.f32 %v11777_v30, %v6911_v16  ;;  %v6913_v4 = vpop.f32.mrb[147].mxu0  ;;  %v7346_v26 = vunpack.c.l.bf16 %v9493_v23 }
 0x7a8   : > { %8049 = vst [vmem:[%s11815_s28 + $0x1b8] sm:$0xff] %v8829_v35  ;;  %v7211_v29 = vadd.f32 %v11784_v28, %v7071_v40  ;;  %v7073_v22 = vmul.f32 %v11779_v8, %v6913_v4 }
 0x7a9   : > { %v7466_v57 = vadd.f32 %v7338_v36, %v7210_v15  ;;  %v7212_v59 = vadd.f32 %v11782_v39, %v7072_v0  ;;  %v7347_v36 = vunpack.c.h.bf16 %v9493_v23 }
 0x7aa   : > { %v7467_v32 = vadd.f32 %v7339_v2, %v7211_v29  ;;  %v7213_v18 = vadd.f32 %v11784_v28, %v7073_v22  ;;  %v9494_v2 = vld [vmem:[%s9767_s23 + $0x1e8] sm:$0xff] }
 0x7ab   : > { %v7594_v43 = vmax.f32 %v7466_v57, 0.0  ;;  %v7468_v1 = vadd.f32 %v7340_v60, %v7212_v59  ;;  %v7348_v16 = vunpack.c.l.bf16 %v9494_v2  ;;  %v7349_v60 = vunpack.c.h.bf16 %v9494_v2 }
 0x7ac   : > { %v7595_v14 = vmax.f32 %v7467_v32, 0.0  ;;  %v7469_v41 = vadd.f32 %v7341_v25, %v7213_v18 }
 0x7ad   : > { %v7596_v5 = vmax.f32 %v7468_v1, 0.0 }
 0x7ae   : > { %v8830_v21 = vpack.c.bf16 %v7595_v14, %v7594_v43  ;;  %v7597_v19 = vmax.f32 %v7469_v41, 0.0 }
 0x7b0   : > { %8050 = vst [vmem:[%s11815_s28 + $0x1c0] sm:$0xff] %v8830_v21  ;;  %v8831_v56 = vpack.c.bf16 %v7597_v19, %v7596_v5  ;;  %v9495_v19 = vld [vmem:[%s9767_s23 + $0x1f0] sm:$0xff] }
 0x7b1   : > { %v7351_v63 = vunpack.c.h.bf16 %v9495_v19 }
 0x7b2   : > { %8051 = vst [vmem:[%s11815_s28 + $0x1c8] sm:$0xff] %v8831_v56  ;;  %v6917_v38 = vpop.f32.mrb[148].mxu0  ;;  %v7350_v56 = vunpack.c.l.bf16 %v9495_v19 }
 0x7b3   : > { %v7074_v46 = vmul.f32 %v11777_v30, %v6917_v38  ;;  %v6919_v31 = vpop.f32.mrb[149].mxu0 }
 0x7b4   : > { %v7075_v52 = vmul.f32 %v11779_v8, %v6919_v31  ;;  %v6921_v42 = vpop.f32.mrb[150].mxu0 }
 0x7b5   : > { %v7214_v54 = vadd.f32 %v11782_v39, %v7074_v46  ;;  %v7076_v3 = vmul.f32 %v11777_v30, %v6921_v42  ;;  %v6923_v9 = vpop.f32.mrb[151].mxu0 }
 0x7b6   : > { %v7215_v10 = vadd.f32 %v11784_v28, %v7075_v52  ;;  %v7077_v37 = vmul.f32 %v11779_v8, %v6923_v9 }
 0x7b7   : > { %v7470_v34 = vadd.f32 %v7342_v24, %v7214_v54  ;;  %v7216_v58 = vadd.f32 %v11782_v39, %v7076_v3 }
 0x7b8   : > { %v7471_v7 = vadd.f32 %v7343_v48, %v7215_v10  ;;  %v7217_v27 = vadd.f32 %v11784_v28, %v7077_v37  ;;  %v9496_v48 = vld [vmem:[%s9767_s23 + $0x1f8] sm:$0xff]  ;;  %s8839_s23 = sshll.u32 %s9679_s17, 13  ;;  %s9600_s17 = smov [#allocation7]  }
 0x7b9   : > { %v7598_v6 = vmax.f32 %v7470_v34, 0.0  ;;  %v7472_v11 = vadd.f32 %v7344_v61, %v7216_v58  ;;  %v7352_v42 = vunpack.c.l.bf16 %v9496_v48  ;;  %v7353_v61 = vunpack.c.h.bf16 %v9496_v48  ;;  %s12308_s30 = scalar_lea.hbm %s12365_s10, %s8839_s23  ;;  %s9531_s22 = sshll.u32 %s9600_s17, 4  ;;  %s9532_s22 = int_to_ptr.vmem [resolvable:$false] %s9531_s22 }
 0x7ba   : > { %v7599_v13 = vmax.f32 %v7471_v7, 0.0  ;;  %v7473_v47 = vadd.f32 %v7345_v55, %v7217_v27  ;;  %s9533_s20 = scalar_lea.vmem %s9532_s22, 16384  ;;  %p9534_p8 = scmp.lt.s32.totalorder %s12310_s24, %s9532_s22 }
 0x7bb   : > { %v7600_v49 = vmax.f32 %v7472_v11, 0.0  ;;  %p9535_p9 = scmp.lt.s32.totalorder %s9533_s20, %s9527_s27 }
 0x7bc   : > { %v8832_v33 = vpack.c.bf16 %v7599_v13, %v7598_v6  ;;  %v7601_v45 = vmax.f32 %v7473_v47, 0.0  ;;  %v6927_v17 = vpop.f32.mrb[152].mxu0 }
 0x7bd   : > { %v7078_v12 = vmul.f32 %v11777_v30, %v6927_v17  ;;  %v6929_v20 = vpop.f32.mrb[153].mxu0  ;;  %p9536_p13 = por %p9535_p9, %p9534_p8 }
 0x7be   : > { %8052 = vst [vmem:[%s11815_s28 + $0x1d0] sm:$0xff] %v8832_v33  ;;  %v8833_v51 = vpack.c.bf16 %v7601_v45, %v7600_v49  ;;  %v7079_v50 = vmul.f32 %v11779_v8, %v6929_v20  ;;  %v6931_v62 = vpop.f32.mrb[154].mxu0 }
 0x7bf   : > { %v7218_v35 = vadd.f32 %v11782_v39, %v7078_v12  ;;  %v7080_v40 = vmul.f32 %v11777_v30, %v6931_v62  ;;  %v6933_v15 = vpop.f32.mrb[155].mxu0  ;;  %p9537_p1 = pnand %p9536_p13, %p9530_p12 }
 0x7c0   : > { %8053 = vst [vmem:[%s11815_s28 + $0x1d8] sm:$0xff] %v8833_v51  ;;  %v7219_v0 = vadd.f32 %v11784_v28, %v7079_v50  ;;  %v7081_v44 = vmul.f32 %v11779_v8, %v6933_v15 }
 0x7c1   : > { %v7474_v4 = vadd.f32 %v7346_v26, %v7218_v35  ;;  %v7220_v29 = vadd.f32 %v11782_v39, %v7080_v40 }
 0x7c2   : > { %v7475_v22 = vadd.f32 %v7347_v36, %v7219_v0  ;;  %v7221_v25 = vadd.f32 %v11784_v28, %v7081_v44 }
 0x7c3   : > { %v7602_v57 = vmax.f32 %v7474_v4, 0.0  ;;  %v7476_v59 = vadd.f32 %v7348_v16, %v7220_v29 }
 0x7c4   : > { %v7603_v32 = vmax.f32 %v7475_v22, 0.0  ;;  %v7477_v18 = vadd.f32 %v7349_v60, %v7221_v25 }
 0x7c5   : > { %v7604_v43 = vmax.f32 %v7476_v59, 0.0 }
 0x7c6   : > { %v8834_v1 = vpack.c.bf16 %v7603_v32, %v7602_v57  ;;  %v7605_v14 = vmax.f32 %v7477_v18, 0.0 }
 0x7c8   : > { %8054 = vst [vmem:[%s11815_s28 + $0x1e0] sm:$0xff] %v8834_v1  ;;  %v8835_v41 = vpack.c.bf16 %v7605_v14, %v7604_v43 }
 0x7ca   : > { %8055 = vst [vmem:[%s11815_s28 + $0x1e8] sm:$0xff] %v8835_v41  ;;  %v6937_v5 = vpop.f32.mrb[156].mxu0 }
 0x7cb   : > { %v7082_v21 = vmul.f32 %v11777_v30, %v6937_v5  ;;  %v6939_v38 = vpop.f32.mrb[157].mxu0 }
 0x7cc   : > { %v7083_v46 = vmul.f32 %v11779_v8, %v6939_v38  ;;  %v6941_v24 = vpop.f32.mrb[158].mxu0 }
 0x7cd   : > { %v7222_v31 = vadd.f32 %v11782_v39, %v7082_v21  ;;  %v7084_v52 = vmul.f32 %v11777_v30, %v6941_v24  ;;  %v6943_v54 = vpop.f32.mrb[159].mxu0 }
 0x7ce   : > { %v7223_v3 = vadd.f32 %v11784_v28, %v7083_v46  ;;  %v7085_v53 = vmul.f32 %v11779_v8, %v6943_v54 }
 0x7cf   : > { %v7478_v9 = vadd.f32 %v7350_v56, %v7222_v31  ;;  %v7224_v10 = vadd.f32 %v11782_v39, %v7084_v52 }
 0x7d0   : > { %v7479_v37 = vadd.f32 %v7351_v63, %v7223_v3  ;;  %v7225_v55 = vadd.f32 %v11784_v28, %v7085_v53 }
 0x7d1   : > { %v7606_v34 = vmax.f32 %v7478_v9, 0.0  ;;  %v7480_v30 = vadd.f32 %v7352_v42, %v7224_v10 }
 0x7d2   : > { %v7607_v58 = vmax.f32 %v7479_v37, 0.0  ;;  %v7481_v7 = vadd.f32 %v7353_v61, %v7225_v55 }
 0x7d3   : > { %v7608_v27 = vmax.f32 %v7480_v30, 0.0 }
 0x7d4   : > { %v8836_v6 = vpack.c.bf16 %v7607_v58, %v7606_v34  ;;  %v7609_v8 = vmax.f32 %v7481_v7, 0.0 }
 0x7d6   : > { %8056 = vst [vmem:[%s11815_s28 + $0x1f0] sm:$0xff] %v8836_v6  ;;  %v8837_v39 = vpack.c.bf16 %v7609_v8, %v7608_v27 }
 0x7d8   : > { %8057 = vst [vmem:[%s11815_s28 + $0x1f8] sm:$0xff] %v8837_v39 }
 0x7d9   : > { %9540 = shalt.err (!%p9537_p1)
}
 0x7da   : > { %s9541_s28 = scalar_lea.hbm %s12308_s30, 8192  ;;  %s9545_s11 = scalar_lea.hbm %s12365_s10, 32768 }
 0x7db   : > { %p9542_p3 = scmp.ne.s32.totalorder %s12308_s30, %s9541_s28  ;;  %p9546_p0 = scmp.lt.u32.totalorder %s12308_s30, %s12365_s10 }
 0x7dc   : > { %p9547_p2 = scmp.lt.u32.totalorder %s9545_s11, %s9541_s28  ;;  %p9549_p6 = scmp.lt.u32.totalorder %s9541_s28, %s12308_s30 }
 0x7dd   : > { %p9543_p4 = pnand %p9542_p3, %p12406_p10 }
 0x7de   : > { %p9548_p7 = por %p9547_p2, %p9546_p0 }
 0x7df   : > { %p9544_p5 = pneg %p9543_p4 }
 0x7e0   : > { %p9550_p11 = por %p9549_p6, %p9548_p7 }
 0x7e2   : > { %p9551_p12 = pnand %p9550_p11, %p9544_p5 }
 0x7e4   : > { %9554 = shalt.err (!%p9551_p12)
}
 0x7e5   : > { %s9601_s27 = smov 128   ;;  %s9602_s22 = smov 8  }
 0x7e6   : > { %9144 = dma.vmem_to_hbm [thread:$0]  (%p12406_p10), %s12310_s24, 8192, %s12308_s30, %s8059_s29, %s9601_s27, %s9601_s27, %s9602_s22  }
 0x7e7 PF: > { %p9155_p8 = scmp.ge.s32.totalorder %s9593_s16, 2  ;;  %s8088_s20 = sand.u32 1, %s9581_s13  }
 0x7e8   : > { %p12407_p9 = scmp.ne.s32.totalorder %s12375_s26, 0  ;;  %s8089_s28 = scalar_lea.sflag [#allocation6], %s8088_s20 }
 0x7ea   : > { %p9151_p13 = pnand %p9155_p8, %p12407_p9 }
 0x7ec   : > { %9576 = dma.done.wait (!%p9151_p13), %s8089_s28, 8192  }
 0x7ed   : > { %9578 = vsyncadd (!%p9151_p13), %s8089_s28, 4294959104  ;;  %s12408_s21 = sld [smem:[#allocation10_spill]]  ;;  %p23_p1 = scmp.ge.s32.totalorder %s9683_s19, 6  }
 0x7ee   : > { %s12409_s13 = smov %s9585_s14  ;;  %s12410_s14 = smov %s9589_s15 }
 0x7ef   : > { %s12412_s16 = smov %s9683_s19  ;;  %25 = sbr.rel (!%p23_p1) target bundleno = 5 (0x5), region = 111 }
 0x7f3   : > { %s12411_s15 = smov %s12408_s21 }
 0x7f6   :  { %8094 = vsyncpa [#allocation5], 1 }
 0x7f7   :  { %8096 = vsyncpa [#allocation5 + $0x1], 1 }
 0x7f8   :  { %8097 = vsyncpa [#allocation6], 1 }
 0x7f9   :  { %8099 = vsyncpa [#allocation6 + $0x1], 1 }

</bundles_post_ra>
